<compile_context>
chip_gen: v7x
topology: tpu7x:2x2x1
jax: 0.10.0
libtpu: 0.0.40
codegen_flags: <defaults>
</compile_context>

<pallas_src>
import functools
import math

import jax
import jax.numpy as jnp
from jax.experimental import pallas as pl
from jax.experimental.pallas import tpu as pltpu


_VMEM_LIMIT = 32 * 1024 * 1024          # explicit scoped-VMEM cap (v7x-safe)
_LN_EPS = 1e-5


def _round_up(x, m):
    return (x + m - 1) // m * m


def _cparams(n_grid_axes):
    return pltpu.CompilerParams(
        dimension_semantics=("parallel",) * n_grid_axes,
        vmem_limit_bytes=_VMEM_LIMIT)


def _bspec(shape):
    # Broadcast a whole weight / bias / LN-param array to every grid step.
    nd = len(shape)
    return pl.BlockSpec(shape, lambda *_: (0,) * nd)


def _masked_layernorm(x32, g, b, d_real):
    """LayerNorm over the first `d_real` lanes of a zero-padded (R, Dp) f32 tile.

    Padded lanes of x32 are exactly zero, so sum / sum-of-squares over the full
    lane width equal the real-lane statistics; g/b are zero on padded lanes so
    the output padded lanes stay zero.
    """
    inv_d = 1.0 / d_real
    mu = jnp.sum(x32, axis=-1, keepdims=True) * inv_d
    ms = jnp.sum(x32 * x32, axis=-1, keepdims=True) * inv_d
    var = ms - mu * mu
    xn = (x32 - mu) * jax.lax.rsqrt(var + _LN_EPS)
    return xn * g + b


# ----------------------------- Pallas kernels ------------------------------

def _input_layer_kernel(x_ref, w_ref, b_ref, g_ref, beta_ref, pe_ref, o_ref, *,
                        d_real, scale):
    # Linear -> LayerNorm -> Dropout(eval) -> ReLU, fused with x*sqrt(adim)+PE.
    x = x_ref[0].astype(jnp.bfloat16)                          # (T, idim)
    y = jnp.dot(x, w_ref[...], preferred_element_type=jnp.float32) + b_ref[...]
    y = _masked_layernorm(y, g_ref[...], beta_ref[...], d_real)
    y = jnp.maximum(y, 0.0)
    y = y * scale + pe_ref[...]
    o_ref[0] = y.astype(o_ref.dtype)


def _block_kernel(x_ref,
                  ln_ff1_g, ln_ff1_b, ff1_w1, ff1_b1, ff1_w2, ff1_b2,
                  ln_mha_g, ln_mha_b, wqkv_ref, bqkv_ref, wo_ref, bo_ref,
                  ln_conv_g, ln_conv_b, pw1a_w, pw1a_b, pw1b_w, pw1b_b,
                  dw_ref, bns_ref, bnb_ref, pw2_w, pw2_b,
                  ln_ff2_g, ln_ff2_b, ff2_w1, ff2_b1, ff2_w2, ff2_b2,
                  ln_fin_g, ln_fin_b,
                  o_ref, *, d_real, heads, dh, dp, ksize):
    """One full conformer block for one batch element, fully fused in VMEM."""
    x32 = x_ref[0].astype(jnp.float32)                         # (T, Dp) residual

    # ---------- macaron feed-forward (half-step) ----------
    def ff_half(res, g, b, w1, b1, w2, b2):
        xn = _masked_layernorm(res, g[...], b[...], d_real).astype(jnp.bfloat16)
        h = jnp.dot(xn, w1[...], preferred_element_type=jnp.float32) + b1[...]
        h = h * jax.nn.sigmoid(h)                              # swish in f32
        h = jnp.dot(h.astype(jnp.bfloat16), w2[...],
                    preferred_element_type=jnp.float32) + b2[...]
        return res + 0.5 * h

    x32 = ff_half(x32, ln_ff1_g, ln_ff1_b, ff1_w1, ff1_b1, ff1_w2, ff1_b2)

    # ---------- multi-head self-attention ----------
    xn = _masked_layernorm(x32, ln_mha_g[...], ln_mha_b[...],
                           d_real).astype(jnp.bfloat16)
    qkv = jnp.dot(xn, wqkv_ref[...],
                  preferred_element_type=jnp.float32) + bqkv_ref[...]   # (T, 3Dp)
    wo = wo_ref[...]                                           # (Dp, Dp) bf16
    scale = 1.0 / math.sqrt(dh)
    acc = x32 + bo_ref[...]                                    # residual + out bias
    for h_i in range(heads):                                   # all heads, one step
        lo = h_i * dh
        q = qkv[:, lo:lo + dh].astype(jnp.bfloat16)
        k = qkv[:, dp + lo:dp + lo + dh].astype(jnp.bfloat16)
        v = qkv[:, 2 * dp + lo:2 * dp + lo + dh].astype(jnp.bfloat16)
        s = jax.lax.dot_general(q, k, (((1,), (1,)), ((), ())),
                                preferred_element_type=jnp.float32) * scale
        s = s - jnp.max(s, axis=-1, keepdims=True)
        p = jnp.exp(s)
        p = p * pl.reciprocal(jnp.sum(p, axis=-1, keepdims=True), approx=True)
        ctx = jnp.dot(p.astype(jnp.bfloat16), v,
                      preferred_element_type=jnp.float32)
        acc = acc + jnp.dot(ctx.astype(jnp.bfloat16), wo[lo:lo + dh, :],
                            preferred_element_type=jnp.float32)
    x32 = acc

    # ---------- convolution module ----------
    xn = _masked_layernorm(x32, ln_conv_g[...], ln_conv_b[...],
                           d_real).astype(jnp.bfloat16)
    a = jnp.dot(xn, pw1a_w[...], preferred_element_type=jnp.float32) + pw1a_b[...]
    gate = jnp.dot(xn, pw1b_w[...], preferred_element_type=jnp.float32) + pw1b_b[...]
    u = a * jax.nn.sigmoid(gate)                               # GLU, f32 (T, Dp)

    t = u.shape[0]
    pad = (ksize - 1) // 2
    tpos = jax.lax.broadcasted_iota(jnp.int32, u.shape, 0)
    dw = dw_ref[...]                                           # (ksize, Dp) f32
    cacc = jnp.zeros_like(u)
    for kk in range(ksize):
        off = kk - pad
        shifted = u if off == 0 else pltpu.roll(u, (-off) % t, 0)
        valid = jnp.logical_and(tpos + off >= 0, tpos + off < t)
        cacc = cacc + jnp.where(valid, shifted, 0.0) * dw[kk:kk + 1, :]

    y = cacc * bns_ref[...] + bnb_ref[...]                     # folded BN (eval)
    y = y * jax.nn.sigmoid(y)                                  # swish
    y = jnp.dot(y.astype(jnp.bfloat16), pw2_w[...],
                preferred_element_type=jnp.float32) + pw2_b[...]
    x32 = x32 + y

    # ---------- macaron feed-forward (half-step) + block-final LN ----------
    x32 = ff_half(x32, ln_ff2_g, ln_ff2_b, ff2_w1, ff2_b1, ff2_w2, ff2_b2)
    x32 = _masked_layernorm(x32, ln_fin_g[...], ln_fin_b[...], d_real)

    o_ref[0] = x32.astype(o_ref.dtype)


# ------------------------------ kernel wrappers -----------------------------

def input_layer(x_u, w, b, g, beta, pe, *, d_real, scale):
    B, T, idim = x_u.shape
    dp = w.shape[1]
    return pl.pallas_call(
        functools.partial(_input_layer_kernel, d_real=d_real, scale=scale),
        grid=(B,),
        in_specs=[pl.BlockSpec((1, T, idim), lambda i: (i, 0, 0)),
                  _bspec((idim, dp)), _bspec((1, dp)),
                  _bspec((1, dp)), _bspec((1, dp)),
                  _bspec((T, dp))],
        out_specs=pl.BlockSpec((1, T, dp), lambda i: (i, 0, 0)),
        out_shape=jax.ShapeDtypeStruct((B, T, dp), jnp.bfloat16),
        compiler_params=_cparams(1),
    )(x_u, w, b, g, beta, pe)


def conformer_block(h, p, *, adim, aheads):
    B, T, dp = h.shape
    ksize = p["dw_w"].shape[0]
    dh = adim // aheads

    args = [
        h,
        p["ln_ff1_g"], p["ln_ff1_b"], p["ff1_w1"], p["ff1_b1"],
        p["ff1_w2"], p["ff1_b2"],
        p["ln_mha_g"], p["ln_mha_b"], p["wqkv"], p["bqkv"], p["wo"], p["bo"],
        p["ln_conv_g"], p["ln_conv_b"], p["pw1a_w"], p["pw1a_b"],
        p["pw1b_w"], p["pw1b_b"],
        p["dw_w"], p["bn_scale"], p["bn_shift"], p["pw2_w"], p["pw2_b"],
        p["ln_ff2_g"], p["ln_ff2_b"], p["ff2_w1"], p["ff2_b1"],
        p["ff2_w2"], p["ff2_b2"],
        p["ln_final_g"], p["ln_final_b"],
    ]
    in_specs = ([pl.BlockSpec((1, T, dp), lambda i: (i, 0, 0))]
                + [_bspec(a.shape) for a in args[1:]])

    return pl.pallas_call(
        functools.partial(_block_kernel, d_real=adim, heads=aheads, dh=dh,
                          dp=dp, ksize=ksize),
        grid=(B,),
        in_specs=in_specs,
        out_specs=pl.BlockSpec((1, T, dp), lambda i: (i, 0, 0)),
        out_shape=jax.ShapeDtypeStruct((B, T, dp), h.dtype),
        input_output_aliases={0: 0},
        compiler_params=_cparams(1),
    )(*args)


# ------------------------------ model pieces -------------------------------

def sinusoidal_pe(max_len, d, d_pad):
    pos = jnp.arange(max_len, dtype=jnp.float32)[:, None]
    div = jnp.exp(jnp.arange(0, d, 2, dtype=jnp.float32)
                  * (-math.log(10000.0) / d))
    pe = jnp.zeros((max_len, d_pad), jnp.float32)
    pe = pe.at[:, 0:d:2].set(jnp.sin(pos * div))
    pe = pe.at[:, 1:d:2].set(jnp.cos(pos * div))
    return pe                                                   # padded lanes stay 0


def init_params(key, idim, adim, eunits, aheads, elayers, ksize,
                prompt_nums, prompt_layers):
    D, Dp = adim, _round_up(adim, 128)
    E, Ep = eunits, _round_up(eunits, 128)
    keys = iter(jax.random.split(key, 64))

    def lin(din, dout, dp_in, dp_out):
        w = jax.random.normal(next(keys), (din, dout), jnp.float32) * 0.02
        wp = jnp.zeros((dp_in, dp_out), jnp.float32).at[:din, :dout].set(w)
        return wp.astype(jnp.bfloat16), jnp.zeros((1, dp_out), jnp.float32)

    def ln_pair():
        g = jnp.zeros((1, Dp), jnp.float32).at[:, :D].set(1.0)   # 0 on padded lanes
        return g, jnp.zeros((1, Dp), jnp.float32)

    params = {}
    params["in_w"], params["in_b"] = lin(idim, D, idim, Dp)
    params["in_ln_g"], params["in_ln_b"] = ln_pair()
    # PromptEmbedding(deep=True): torch.nn.init.uniform_ -> U[0, 1)
    params["prompt_tokens"] = jax.random.uniform(
        next(keys), (prompt_layers, prompt_nums, idim), jnp.float32)

    blocks = []
    for _ in range(elayers):
        p = {}
        for nm in ("ln_ff1", "ln_mha", "ln_conv", "ln_ff2", "ln_final"):
            p[nm + "_g"], p[nm + "_b"] = ln_pair()
        p["ff1_w1"], p["ff1_b1"] = lin(D, E, Dp, Ep)
        p["ff1_w2"], p["ff1_b2"] = lin(E, D, Ep, Dp)
        p["ff2_w1"], p["ff2_b1"] = lin(D, E, Dp, Ep)
        p["ff2_w2"], p["ff2_b2"] = lin(E, D, Ep, Dp)
        wq, _ = lin(D, D, Dp, Dp)
        wk, _ = lin(D, D, Dp, Dp)
        wv, _ = lin(D, D, Dp, Dp)
        p["wqkv"] = jnp.concatenate([wq, wk, wv], axis=1)        # (Dp, 3Dp) bf16
        p["bqkv"] = jnp.zeros((1, 3 * Dp), jnp.float32)
        p["wo"], p["bo"] = lin(D, D, Dp, Dp)
        # conv-module pointwise1 stored as the two GLU halves (lane-dense outputs)
        p["pw1a_w"], p["pw1a_b"] = lin(D, D, Dp, Dp)
        p["pw1b_w"], p["pw1b_b"] = lin(D, D, Dp, Dp)
        p["pw2_w"], p["pw2_b"] = lin(D, D, Dp, Dp)
        dw = jax.random.normal(next(keys), (ksize, D), jnp.float32) * 0.02
        p["dw_w"] = jnp.zeros((ksize, Dp), jnp.float32).at[:, :D].set(dw)
        # BatchNorm in eval mode at init: mean=0, var=1, gamma=1, beta=0 (folded)
        bn_eps = 1e-5
        p["bn_scale"] = jnp.zeros((1, Dp), jnp.float32).at[:, :D].set(
            1.0 / math.sqrt(1.0 + bn_eps))
        p["bn_shift"] = jnp.zeros((1, Dp), jnp.float32)
        blocks.append(p)
    params["blocks"] = blocks
    # NOTE: self.fc in the PyTorch module is never used in forward -> omitted.
    return params


def prompted_conformer_masked_encoder(params, x, masked_id, unmasked_id, *,
                                      adim, aheads, cls_token=True,
                                      unmasked_only=False, prompt_tuning=True):
    assert cls_token and not unmasked_only, "only the default path is implemented"
    inds_all = jnp.sort(jnp.concatenate(
        [jnp.zeros((1,), jnp.int32), masked_id + 1, unmasked_id + 1]))
    B, fn, d = x.shape
    dp = params["in_w"].shape[1]

    x_u = x
    if prompt_tuning:
        prompts = jnp.broadcast_to(
            params["prompt_tokens"][0][None],
            (B,) + params["prompt_tokens"][0].shape)
        x_u = jnp.concatenate([x[:, 0:1, :], prompts, x[:, 1:, :]], axis=1)
    T = x_u.shape[1]
    P = T - fn

    # MaskedPositionalEncoding: x*sqrt(adim) + PE[positions], dropout=eval.
    # TODO(synk): MaskedPositionalEncoding / ConformerBlock sources are not
    # provided; standard ESPnet semantics are used, and prompt tokens get fresh
    # positions fn..fn+P-1 (the original inds_all no longer matches the
    # prompt-extended sequence length).
    pos = jnp.concatenate(
        [inds_all[0:1], fn + jnp.arange(P, dtype=jnp.int32), inds_all[1:]])
    pe = sinusoidal_pe(fn + P, adim, dp)[pos]                   # (T, Dp)

    # Input layer (Linear -> LayerNorm -> Dropout(eval) -> ReLU) fused with the
    # positional-encoding scale/add, one grid step per batch element.
    h = input_layer(x_u, params["in_w"], params["in_b"],
                    params["in_ln_g"], params["in_ln_b"], pe,
                    d_real=adim, scale=math.sqrt(adim))

    # self.conformer_blocks on a ModuleList -> sequential application; each
    # block is a single fused pallas_call.
    for p in params["blocks"]:
        h = conformer_block(h, p, adim=adim, aheads=aheads)

    out = h[:, :, :adim].astype(jnp.float32)                    # drop lane padding
    return out, (masked_id, unmasked_id)


# --------------------------------- driver ----------------------------------

if __name__ == "__main__":
    idim, adim, eunits, aheads, elayers, ksize = 16, 32, 64, 4, 3, 7
    prompt_nums, prompt_layers = 8, 3        # T = fn + prompt_nums = 16 (8-aligned)
    B, fn = 2, 8

    key = jax.random.PRNGKey(0)
    kx, kp = jax.random.split(key)
    params = init_params(kp, idim, adim, eunits, aheads, elayers, ksize,
                         prompt_nums, prompt_layers)
    x = jax.random.normal(kx, (B, fn, idim), jnp.float32)
    masked_id = jnp.array([1, 3, 5], jnp.int32)
    unmasked_id = jnp.array([0, 2, 4, 6], jnp.int32)

    fwd = jax.jit(functools.partial(
        prompted_conformer_masked_encoder, adim=adim, aheads=aheads,
        cls_token=True, unmasked_only=False, prompt_tuning=True))
    out, _ = fwd(params, x, masked_id, unmasked_id)
    out = jax.block_until_ready(out)

    assert out.shape == (B, fn + prompt_nums, adim)
    assert out.dtype == jnp.float32
    assert bool(jnp.all(jnp.isfinite(out)))
    print("KERNEL_OK")
</pallas_src>

<mosaic_0001>
module attributes {stable_mosaic.version = 11 : i64} {
  func.func @_input_layer_kernel(%arg0: i32, %arg1: memref<1x16x16xf32, #tpu.memory_space<vmem>>, %arg2: memref<16x128xbf16, #tpu.memory_space<vmem>>, %arg3: memref<1x128xf32, #tpu.memory_space<vmem>>, %arg4: memref<1x128xf32, #tpu.memory_space<vmem>>, %arg5: memref<1x128xf32, #tpu.memory_space<vmem>>, %arg6: memref<16x128xf32, #tpu.memory_space<vmem>>, %arg7: memref<1x16x128xbf16, #tpu.memory_space<vmem>>) attributes {dimension_semantics = [#tpu.dimension_semantics<parallel>], iteration_bounds = array<i64: 2>, scalar_prefetch = 0 : i64, scratch_operands = 0 : i64, tpu.core_type = #tpu.core_type<tc>, window_params = [{transform_indices = @transform_0, window_bounds = array<i64: 1, 16, 16>}, {pipeline_mode = #tpu.pipeline_mode<synchronous>, transform_indices = @transform_1, window_bounds = array<i64: 16, 128>}, {pipeline_mode = #tpu.pipeline_mode<synchronous>, transform_indices = @transform_2, window_bounds = array<i64: 1, 128>}, {pipeline_mode = #tpu.pipeline_mode<synchronous>, transform_indices = @transform_3, window_bounds = array<i64: 1, 128>}, {pipeline_mode = #tpu.pipeline_mode<synchronous>, transform_indices = @transform_4, window_bounds = array<i64: 1, 128>}, {pipeline_mode = #tpu.pipeline_mode<synchronous>, transform_indices = @transform_5, window_bounds = array<i64: 16, 128>}, {transform_indices = @transform_6, window_bounds = array<i64: 1, 16, 128>}]} {
    %c0 = arith.constant 0 : index
    %c0_0 = arith.constant 0 : index
    %c0_1 = arith.constant 0 : index
    %0 = vector.load %arg1[%c0, %c0_0, %c0_1] : memref<1x16x16xf32, #tpu.memory_space<vmem>>, vector<1x16x16xf32>
    %1 = vector.shape_cast %0 : vector<1x16x16xf32> to vector<16x16xf32>
    %2 = arith.truncf %1 : vector<16x16xf32> to vector<16x16xbf16>
    %c0_2 = arith.constant 0 : index
    %c0_3 = arith.constant 0 : index
    %3 = vector.load %arg2[%c0_2, %c0_3] : memref<16x128xbf16, #tpu.memory_space<vmem>>, vector<16x128xbf16>
    %cst = arith.constant dense<0.000000e+00> : vector<16x128xf32>
    %4 = tpu.matmul %2, %3, %cst {dimension_numbers = #tpu.dot_dimension_numbers<[1], [0], [0], [1], [0, 0, 1, 1], [], []>} : vector<16x16xbf16>, vector<16x128xbf16>, vector<16x128xf32> -> vector<16x128xf32>
    %c0_4 = arith.constant 0 : index
    %c0_5 = arith.constant 0 : index
    %5 = vector.load %arg3[%c0_4, %c0_5] : memref<1x128xf32, #tpu.memory_space<vmem>>, vector<1x128xf32>
    %6 = vector.broadcast %5 : vector<1x128xf32> to vector<16x128xf32>
    %7 = arith.addf %4, %6 : vector<16x128xf32>
    %c0_6 = arith.constant 0 : index
    %c0_7 = arith.constant 0 : index
    %8 = vector.load %arg4[%c0_6, %c0_7] : memref<1x128xf32, #tpu.memory_space<vmem>>, vector<1x128xf32>
    %c0_8 = arith.constant 0 : index
    %c0_9 = arith.constant 0 : index
    %9 = vector.load %arg5[%c0_8, %c0_9] : memref<1x128xf32, #tpu.memory_space<vmem>>, vector<1x128xf32>
    %cst_10 = arith.constant dense<0.000000e+00> : vector<16xf32>
    %10 = vector.multi_reduction <add>, %7, %cst_10 [1] : vector<16x128xf32> to vector<16xf32>
    %11 = vector.shape_cast %10 : vector<16xf32> to vector<16x1xf32>
    %cst_11 = arith.constant 3.125000e-02 : f32
    %12 = vector.broadcast %cst_11 : f32 to vector<16x1xf32>
    %13 = arith.mulf %11, %12 : vector<16x1xf32>
    %14 = arith.mulf %7, %7 : vector<16x128xf32>
    %cst_12 = arith.constant dense<0.000000e+00> : vector<16xf32>
    %15 = vector.multi_reduction <add>, %14, %cst_12 [1] : vector<16x128xf32> to vector<16xf32>
    %16 = vector.shape_cast %15 : vector<16xf32> to vector<16x1xf32>
    %cst_13 = arith.constant 3.125000e-02 : f32
    %17 = vector.broadcast %cst_13 : f32 to vector<16x1xf32>
    %18 = arith.mulf %16, %17 : vector<16x1xf32>
    %19 = arith.mulf %13, %13 : vector<16x1xf32>
    %20 = arith.subf %18, %19 : vector<16x1xf32>
    %21 = vector.broadcast %13 : vector<16x1xf32> to vector<16x128xf32>
    %22 = arith.subf %7, %21 : vector<16x128xf32>
    %cst_14 = arith.constant 9.99999974E-6 : f32
    %23 = vector.broadcast %cst_14 : f32 to vector<16x1xf32>
    %24 = arith.addf %20, %23 : vector<16x1xf32>
    %25 = math.rsqrt %24 : vector<16x1xf32>
    %26 = vector.broadcast %25 : vector<16x1xf32> to vector<16x128xf32>
    %27 = arith.mulf %22, %26 : vector<16x128xf32>
    %28 = vector.broadcast %8 : vector<1x128xf32> to vector<16x128xf32>
    %29 = arith.mulf %27, %28 : vector<16x128xf32>
    %30 = vector.broadcast %9 : vector<1x128xf32> to vector<16x128xf32>
    %31 = arith.addf %29, %30 : vector<16x128xf32>
    %cst_15 = arith.constant 0.000000e+00 : f32
    %32 = vector.broadcast %cst_15 : f32 to vector<16x128xf32>
    %33 = arith.maximumf %31, %32 : vector<16x128xf32>
    %cst_16 = arith.constant 5.65685415 : f32
    %34 = vector.broadcast %cst_16 : f32 to vector<16x128xf32>
    %35 = arith.mulf %33, %34 : vector<16x128xf32>
    %c0_17 = arith.constant 0 : index
    %c0_18 = arith.constant 0 : index
    %36 = vector.load %arg6[%c0_17, %c0_18] : memref<16x128xf32, #tpu.memory_space<vmem>>, vector<16x128xf32>
    %37 = arith.addf %35, %36 : vector<16x128xf32>
    %38 = arith.truncf %37 : vector<16x128xf32> to vector<16x128xbf16>
    %c0_19 = arith.constant 0 : index
    %c0_20 = arith.constant 0 : index
    %c0_21 = arith.constant 0 : index
    %39 = vector.load %arg7[%c0_19, %c0_20, %c0_21] : memref<1x16x128xbf16, #tpu.memory_space<vmem>>, vector<1x16x128xbf16>
    %40 = vector.shape_cast %39 : vector<1x16x128xbf16> to vector<16x128xbf16>
    %41 = vector.shape_cast %38 : vector<16x128xbf16> to vector<1x16x128xbf16>
    tpu.vector_store %arg7[%c0_19, %c0_20, %c0_21], %41 {strides = array<i32>} : memref<1x16x128xbf16, #tpu.memory_space<vmem>>, vector<1x16x128xbf16>,
    return
  }
  func.func @transform_0(%arg0: i32) -> (i32, i32, i32) {
    %c0_i32 = arith.constant 0 : i32
    %c0_i32_0 = arith.constant 0 : i32
    %c0_i32_1 = arith.constant 0 : i32
    return %arg0, %c0_i32, %c0_i32_0 : i32, i32, i32
  }
  func.func @transform_1(%arg0: i32) -> (i32, i32) {
    %c0_i32 = arith.constant 0 : i32
    %c0_i32_0 = arith.constant 0 : i32
    %c0_i32_1 = arith.constant 0 : i32
    return %c0_i32, %c0_i32_0 : i32, i32
  }
  func.func @transform_2(%arg0: i32) -> (i32, i32) {
    %c0_i32 = arith.constant 0 : i32
    %c0_i32_0 = arith.constant 0 : i32
    %c0_i32_1 = arith.constant 0 : i32
    return %c0_i32, %c0_i32_0 : i32, i32
  }
  func.func @transform_3(%arg0: i32) -> (i32, i32) {
    %c0_i32 = arith.constant 0 : i32
    %c0_i32_0 = arith.constant 0 : i32
    %c0_i32_1 = arith.constant 0 : i32
    return %c0_i32, %c0_i32_0 : i32, i32
  }
  func.func @transform_4(%arg0: i32) -> (i32, i32) {
    %c0_i32 = arith.constant 0 : i32
    %c0_i32_0 = arith.constant 0 : i32
    %c0_i32_1 = arith.constant 0 : i32
    return %c0_i32, %c0_i32_0 : i32, i32
  }
  func.func @transform_5(%arg0: i32) -> (i32, i32) {
    %c0_i32 = arith.constant 0 : i32
    %c0_i32_0 = arith.constant 0 : i32
    %c0_i32_1 = arith.constant 0 : i32
    return %c0_i32, %c0_i32_0 : i32, i32
  }
  func.func @transform_6(%arg0: i32) -> (i32, i32, i32) {
    %c0_i32 = arith.constant 0 : i32
    %c0_i32_0 = arith.constant 0 : i32
    %c0_i32_1 = arith.constant 0 : i32
    return %arg0, %c0_i32, %c0_i32_0 : i32, i32, i32
  }
}

module attributes {stable_mosaic.version = 11 : i64} {
  func.func @_block_kernel(%arg0: i32, %arg1: memref<1x16x128xbf16, #tpu.memory_space<vmem>>, %arg2: memref<1x128xf32, #tpu.memory_space<vmem>>, %arg3: memref<1x128xf32, #tpu.memory_space<vmem>>, %arg4: memref<128x128xbf16, #tpu.memory_space<vmem>>, %arg5: memref<1x128xf32, #tpu.memory_space<vmem>>, %arg6: memref<128x128xbf16, #tpu.memory_space<vmem>>, %arg7: memref<1x128xf32, #tpu.memory_space<vmem>>, %arg8: memref<1x128xf32, #tpu.memory_space<vmem>>, %arg9: memref<1x128xf32, #tpu.memory_space<vmem>>, %arg10: memref<128x384xbf16, #tpu.memory_space<vmem>>, %arg11: memref<1x384xf32, #tpu.memory_space<vmem>>, %arg12: memref<128x128xbf16, #tpu.memory_space<vmem>>, %arg13: memref<1x128xf32, #tpu.memory_space<vmem>>, %arg14: memref<1x128xf32, #tpu.memory_space<vmem>>, %arg15: memref<1x128xf32, #tpu.memory_space<vmem>>, %arg16: memref<128x128xbf16, #tpu.memory_space<vmem>>, %arg17: memref<1x128xf32, #tpu.memory_space<vmem>>, %arg18: memref<128x128xbf16, #tpu.memory_space<vmem>>, %arg19: memref<1x128xf32, #tpu.memory_space<vmem>>, %arg20: memref<7x128xf32, #tpu.memory_space<vmem>>, %arg21: memref<1x128xf32, #tpu.memory_space<vmem>>, %arg22: memref<1x128xf32, #tpu.memory_space<vmem>>, %arg23: memref<128x128xbf16, #tpu.memory_space<vmem>>, %arg24: memref<1x128xf32, #tpu.memory_space<vmem>>, %arg25: memref<1x128xf32, #tpu.memory_space<vmem>>, %arg26: memref<1x128xf32, #tpu.memory_space<vmem>>, %arg27: memref<128x128xbf16, #tpu.memory_space<vmem>>, %arg28: memref<1x128xf32, #tpu.memory_space<vmem>>, %arg29: memref<128x128xbf16, #tpu.memory_space<vmem>>, %arg30: memref<1x128xf32, #tpu.memory_space<vmem>>, %arg31: memref<1x128xf32, #tpu.memory_space<vmem>>, %arg32: memref<1x128xf32, #tpu.memory_space<vmem>>, %arg33: memref<1x16x128xbf16, #tpu.memory_space<vmem>>) attributes {dimension_semantics = [#tpu.dimension_semantics<parallel>], iteration_bounds = array<i64: 2>, scalar_prefetch = 0 : i64, scratch_operands = 0 : i64, tpu.core_type = #tpu.core_type<tc>, window_params = [{transform_indices = @transform_0, window_bounds = array<i64: 1, 16, 128>}, {pipeline_mode = #tpu.pipeline_mode<synchronous>, transform_indices = @transform_1, window_bounds = array<i64: 1, 128>}, {pipeline_mode = #tpu.pipeline_mode<synchronous>, transform_indices = @transform_2, window_bounds = array<i64: 1, 128>}, {pipeline_mode = #tpu.pipeline_mode<synchronous>, transform_indices = @transform_3, window_bounds = array<i64: 128, 128>}, {pipeline_mode = #tpu.pipeline_mode<synchronous>, transform_indices = @transform_4, window_bounds = array<i64: 1, 128>}, {pipeline_mode = #tpu.pipeline_mode<synchronous>, transform_indices = @transform_5, window_bounds = array<i64: 128, 128>}, {pipeline_mode = #tpu.pipeline_mode<synchronous>, transform_indices = @transform_6, window_bounds = array<i64: 1, 128>}, {pipeline_mode = #tpu.pipeline_mode<synchronous>, transform_indices = @transform_7, window_bounds = array<i64: 1, 128>}, {pipeline_mode = #tpu.pipeline_mode<synchronous>, transform_indices = @transform_8, window_bounds = array<i64: 1, 128>}, {pipeline_mode = #tpu.pipeline_mode<synchronous>, transform_indices = @transform_9, window_bounds = array<i64: 128, 384>}, {pipeline_mode = #tpu.pipeline_mode<synchronous>, transform_indices = @transform_10, window_bounds = array<i64: 1, 384>}, {pipeline_mode = #tpu.pipeline_mode<synchronous>, transform_indices = @transform_11, window_bounds = array<i64: 128, 128>}, {pipeline_mode = #tpu.pipeline_mode<synchronous>, transform_indices = @transform_12, window_bounds = array<i64: 1, 128>}, {pipeline_mode = #tpu.pipeline_mode<synchronous>, transform_indices = @transform_13, window_bounds = array<i64: 1, 128>}, {pipeline_mode = #tpu.pipeline_mode<synchronous>, transform_indices = @transform_14, window_bounds = array<i64: 1, 128>}, {pipeline_mode = #tpu.pipeline_mode<synchronous>, transform_indices = @transform_15, window_bounds = array<i64: 128, 128>}, {pipeline_mode = #tpu.pipeline_mode<synchronous>, transform_indices = @transform_16, window_bounds = array<i64: 1, 128>}, {pipeline_mode = #tpu.pipeline_mode<synchronous>, transform_indices = @transform_17, window_bounds = array<i64: 128, 128>}, {pipeline_mode = #tpu.pipeline_mode<synchronous>, transform_indices = @transform_18, window_bounds = array<i64: 1, 128>}, {pipeline_mode = #tpu.pipeline_mode<synchronous>, transform_indices = @transform_19, window_bounds = array<i64: 7, 128>}, {pipeline_mode = #tpu.pipeline_mode<synchronous>, transform_indices = @transform_20, window_bounds = array<i64: 1, 128>}, {pipeline_mode = #tpu.pipeline_mode<synchronous>, transform_indices = @transform_21, window_bounds = array<i64: 1, 128>}, {pipeline_mode = #tpu.pipeline_mode<synchronous>, transform_indices = @transform_22, window_bounds = array<i64: 128, 128>}, {pipeline_mode = #tpu.pipeline_mode<synchronous>, transform_indices = @transform_23, window_bounds = array<i64: 1, 128>}, {pipeline_mode = #tpu.pipeline_mode<synchronous>, transform_indices = @transform_24, window_bounds = array<i64: 1, 128>}, {pipeline_mode = #tpu.pipeline_mode<synchronous>, transform_indices = @transform_25, window_bounds = array<i64: 1, 128>}, {pipeline_mode = #tpu.pipeline_mode<synchronous>, transform_indices = @transform_26, window_bounds = array<i64: 128, 128>}, {pipeline_mode = #tpu.pipeline_mode<synchronous>, transform_indices = @transform_27, window_bounds = array<i64: 1, 128>}, {pipeline_mode = #tpu.pipeline_mode<synchronous>, transform_indices = @transform_28, window_bounds = array<i64: 128, 128>}, {pipeline_mode = #tpu.pipeline_mode<synchronous>, transform_indices = @transform_29, window_bounds = array<i64: 1, 128>}, {pipeline_mode = #tpu.pipeline_mode<synchronous>, transform_indices = @transform_30, window_bounds = array<i64: 1, 128>}, {pipeline_mode = #tpu.pipeline_mode<synchronous>, transform_indices = @transform_31, window_bounds = array<i64: 1, 128>}, {transform_indices = @transform_32, window_bounds = array<i64: 1, 16, 128>}]} {
    %c0 = arith.constant 0 : index
    %c0_0 = arith.constant 0 : index
    %c0_1 = arith.constant 0 : index
    %0 = vector.load %arg1[%c0, %c0_0, %c0_1] : memref<1x16x128xbf16, #tpu.memory_space<vmem>>, vector<1x16x128xbf16>
    %1 = vector.shape_cast %0 : vector<1x16x128xbf16> to vector<16x128xbf16>
    %2 = arith.extf %1 : vector<16x128xbf16> to vector<16x128xf32>
    %c0_2 = arith.constant 0 : index
    %c0_3 = arith.constant 0 : index
    %3 = vector.load %arg2[%c0_2, %c0_3] : memref<1x128xf32, #tpu.memory_space<vmem>>, vector<1x128xf32>
    %c0_4 = arith.constant 0 : index
    %c0_5 = arith.constant 0 : index
    %4 = vector.load %arg3[%c0_4, %c0_5] : memref<1x128xf32, #tpu.memory_space<vmem>>, vector<1x128xf32>
    %cst = arith.constant dense<0.000000e+00> : vector<16xf32>
    %5 = vector.multi_reduction <add>, %2, %cst [1] : vector<16x128xf32> to vector<16xf32>
    %6 = vector.shape_cast %5 : vector<16xf32> to vector<16x1xf32>
    %cst_6 = arith.constant 3.125000e-02 : f32
    %7 = vector.broadcast %cst_6 : f32 to vector<16x1xf32>
    %8 = arith.mulf %6, %7 : vector<16x1xf32>
    %9 = arith.mulf %2, %2 : vector<16x128xf32>
    %cst_7 = arith.constant dense<0.000000e+00> : vector<16xf32>
    %10 = vector.multi_reduction <add>, %9, %cst_7 [1] : vector<16x128xf32> to vector<16xf32>
    %11 = vector.shape_cast %10 : vector<16xf32> to vector<16x1xf32>
    %cst_8 = arith.constant 3.125000e-02 : f32
    %12 = vector.broadcast %cst_8 : f32 to vector<16x1xf32>
    %13 = arith.mulf %11, %12 : vector<16x1xf32>
    %14 = arith.mulf %8, %8 : vector<16x1xf32>
    %15 = arith.subf %13, %14 : vector<16x1xf32>
    %16 = vector.broadcast %8 : vector<16x1xf32> to vector<16x128xf32>
    %17 = arith.subf %2, %16 : vector<16x128xf32>
    %cst_9 = arith.constant 9.99999974E-6 : f32
    %18 = vector.broadcast %cst_9 : f32 to vector<16x1xf32>
    %19 = arith.addf %15, %18 : vector<16x1xf32>
    %20 = math.rsqrt %19 : vector<16x1xf32>
    %21 = vector.broadcast %20 : vector<16x1xf32> to vector<16x128xf32>
    %22 = arith.mulf %17, %21 : vector<16x128xf32>
    %23 = vector.broadcast %3 : vector<1x128xf32> to vector<16x128xf32>
    %24 = arith.mulf %22, %23 : vector<16x128xf32>
    %25 = vector.broadcast %4 : vector<1x128xf32> to vector<16x128xf32>
    %26 = arith.addf %24, %25 : vector<16x128xf32>
    %27 = arith.truncf %26 : vector<16x128xf32> to vector<16x128xbf16>
    %c0_10 = arith.constant 0 : index
    %c0_11 = arith.constant 0 : index
    %28 = vector.load %arg4[%c0_10, %c0_11] : memref<128x128xbf16, #tpu.memory_space<vmem>>, vector<128x128xbf16>
    %cst_12 = arith.constant dense<0.000000e+00> : vector<16x128xf32>
    %29 = tpu.matmul %27, %28, %cst_12 {dimension_numbers = #tpu.dot_dimension_numbers<[1], [0], [0], [1], [0, 0, 1, 1], [], []>} : vector<16x128xbf16>, vector<128x128xbf16>, vector<16x128xf32> -> vector<16x128xf32>
    %c0_13 = arith.constant 0 : index
    %c0_14 = arith.constant 0 : index
    %30 = vector.load %arg5[%c0_13, %c0_14] : memref<1x128xf32, #tpu.memory_space<vmem>>, vector<1x128xf32>
    %31 = vector.broadcast %30 : vector<1x128xf32> to vector<16x128xf32>
    %32 = arith.addf %29, %31 : vector<16x128xf32>
    %33 = arith.negf %32 : vector<16x128xf32>
    %34 = math.exp %33 : vector<16x128xf32>
    %cst_15 = arith.constant 1.000000e+00 : f32
    %35 = vector.broadcast %cst_15 : f32 to vector<16x128xf32>
    %36 = arith.addf %35, %34 : vector<16x128xf32>
    %37 = arith.divf %35, %36 : vector<16x128xf32>
    %38 = arith.mulf %32, %37 : vector<16x128xf32>
    %39 = arith.truncf %38 : vector<16x128xf32> to vector<16x128xbf16>
    %c0_16 = arith.constant 0 : index
    %c0_17 = arith.constant 0 : index
    %40 = vector.load %arg6[%c0_16, %c0_17] : memref<128x128xbf16, #tpu.memory_space<vmem>>, vector<128x128xbf16>
    %cst_18 = arith.constant dense<0.000000e+00> : vector<16x128xf32>
    %41 = tpu.matmul %39, %40, %cst_18 {dimension_numbers = #tpu.dot_dimension_numbers<[1], [0], [0], [1], [0, 0, 1, 1], [], []>} : vector<16x128xbf16>, vector<128x128xbf16>, vector<16x128xf32> -> vector<16x128xf32>
    %c0_19 = arith.constant 0 : index
    %c0_20 = arith.constant 0 : index
    %42 = vector.load %arg7[%c0_19, %c0_20] : memref<1x128xf32, #tpu.memory_space<vmem>>, vector<1x128xf32>
    %43 = vector.broadcast %42 : vector<1x128xf32> to vector<16x128xf32>
    %44 = arith.addf %41, %43 : vector<16x128xf32>
    %cst_21 = arith.constant 5.000000e-01 : f32
    %45 = vector.broadcast %cst_21 : f32 to vector<16x128xf32>
    %46 = arith.mulf %45, %44 : vector<16x128xf32>
    %47 = arith.addf %2, %46 : vector<16x128xf32>
    %c0_22 = arith.constant 0 : index
    %c0_23 = arith.constant 0 : index
    %48 = vector.load %arg8[%c0_22, %c0_23] : memref<1x128xf32, #tpu.memory_space<vmem>>, vector<1x128xf32>
    %c0_24 = arith.constant 0 : index
    %c0_25 = arith.constant 0 : index
    %49 = vector.load %arg9[%c0_24, %c0_25] : memref<1x128xf32, #tpu.memory_space<vmem>>, vector<1x128xf32>
    %cst_26 = arith.constant dense<0.000000e+00> : vector<16xf32>
    %50 = vector.multi_reduction <add>, %47, %cst_26 [1] : vector<16x128xf32> to vector<16xf32>
    %51 = vector.shape_cast %50 : vector<16xf32> to vector<16x1xf32>
    %cst_27 = arith.constant 3.125000e-02 : f32
    %52 = vector.broadcast %cst_27 : f32 to vector<16x1xf32>
    %53 = arith.mulf %51, %52 : vector<16x1xf32>
    %54 = arith.mulf %47, %47 : vector<16x128xf32>
    %cst_28 = arith.constant dense<0.000000e+00> : vector<16xf32>
    %55 = vector.multi_reduction <add>, %54, %cst_28 [1] : vector<16x128xf32> to vector<16xf32>
    %56 = vector.shape_cast %55 : vector<16xf32> to vector<16x1xf32>
    %cst_29 = arith.constant 3.125000e-02 : f32
    %57 = vector.broadcast %cst_29 : f32 to vector<16x1xf32>
    %58 = arith.mulf %56, %57 : vector<16x1xf32>
    %59 = arith.mulf %53, %53 : vector<16x1xf32>
    %60 = arith.subf %58, %59 : vector<16x1xf32>
    %61 = vector.broadcast %53 : vector<16x1xf32> to vector<16x128xf32>
    %62 = arith.subf %47, %61 : vector<16x128xf32>
    %cst_30 = arith.constant 9.99999974E-6 : f32
    %63 = vector.broadcast %cst_30 : f32 to vector<16x1xf32>
    %64 = arith.addf %60, %63 : vector<16x1xf32>
    %65 = math.rsqrt %64 : vector<16x1xf32>
    %66 = vector.broadcast %65 : vector<16x1xf32> to vector<16x128xf32>
    %67 = arith.mulf %62, %66 : vector<16x128xf32>
    %68 = vector.broadcast %48 : vector<1x128xf32> to vector<16x128xf32>
    %69 = arith.mulf %67, %68 : vector<16x128xf32>
    %70 = vector.broadcast %49 : vector<1x128xf32> to vector<16x128xf32>
    %71 = arith.addf %69, %70 : vector<16x128xf32>
    %72 = arith.truncf %71 : vector<16x128xf32> to vector<16x128xbf16>
    %c0_31 = arith.constant 0 : index
    %c0_32 = arith.constant 0 : index
    %73 = vector.load %arg10[%c0_31, %c0_32] : memref<128x384xbf16, #tpu.memory_space<vmem>>, vector<128x384xbf16>
    %cst_33 = arith.constant dense<0.000000e+00> : vector<16x384xf32>
    %74 = tpu.matmul %72, %73, %cst_33 {dimension_numbers = #tpu.dot_dimension_numbers<[1], [0], [0], [1], [0, 0, 1, 1], [], []>} : vector<16x128xbf16>, vector<128x384xbf16>, vector<16x384xf32> -> vector<16x384xf32>
    %c0_34 = arith.constant 0 : index
    %c0_35 = arith.constant 0 : index
    %75 = vector.load %arg11[%c0_34, %c0_35] : memref<1x384xf32, #tpu.memory_space<vmem>>, vector<1x384xf32>
    %76 = vector.broadcast %75 : vector<1x384xf32> to vector<16x384xf32>
    %77 = arith.addf %74, %76 : vector<16x384xf32>
    %c0_36 = arith.constant 0 : index
    %c0_37 = arith.constant 0 : index
    %78 = vector.load %arg12[%c0_36, %c0_37] : memref<128x128xbf16, #tpu.memory_space<vmem>>, vector<128x128xbf16>
    %c0_38 = arith.constant 0 : index
    %c0_39 = arith.constant 0 : index
    %79 = vector.load %arg13[%c0_38, %c0_39] : memref<1x128xf32, #tpu.memory_space<vmem>>, vector<1x128xf32>
    %80 = vector.broadcast %79 : vector<1x128xf32> to vector<16x128xf32>
    %81 = arith.addf %47, %80 : vector<16x128xf32>
    %82 = vector.extract_strided_slice %77 {offsets = [0, 0], sizes = [16, 8], strides = [1, 1]} : vector<16x384xf32> to vector<16x8xf32>
    %83 = arith.truncf %82 : vector<16x8xf32> to vector<16x8xbf16>
    %84 = vector.extract_strided_slice %77 {offsets = [0, 128], sizes = [16, 8], strides = [1, 1]} : vector<16x384xf32> to vector<16x8xf32>
    %85 = arith.truncf %84 : vector<16x8xf32> to vector<16x8xbf16>
    %86 = vector.extract_strided_slice %77 {offsets = [0, 256], sizes = [16, 8], strides = [1, 1]} : vector<16x384xf32> to vector<16x8xf32>
    %87 = arith.truncf %86 : vector<16x8xf32> to vector<16x8xbf16>
    %cst_40 = arith.constant dense<0.000000e+00> : vector<16x16xf32>
    %88 = tpu.matmul %83, %85, %cst_40 {dimension_numbers = #tpu.dot_dimension_numbers<[1], [1], [0], [0], [0, 0, 1, 0], [], []>} : vector<16x8xbf16>, vector<16x8xbf16>, vector<16x16xf32> -> vector<16x16xf32>
    %cst_41 = arith.constant 0.353553385 : f32
    %89 = vector.broadcast %cst_41 : f32 to vector<16x16xf32>
    %90 = arith.mulf %88, %89 : vector<16x16xf32>
    %cst_42 = arith.constant dense<0xFF800000> : vector<16xf32>
    %91 = vector.multi_reduction <maximumf>, %90, %cst_42 [1] : vector<16x16xf32> to vector<16xf32>
    %92 = vector.shape_cast %91 : vector<16xf32> to vector<16x1xf32>
    %93 = vector.broadcast %92 : vector<16x1xf32> to vector<16x16xf32>
    %94 = arith.subf %90, %93 : vector<16x16xf32>
    %95 = math.exp %94 : vector<16x16xf32>
    %cst_43 = arith.constant dense<0.000000e+00> : vector<16xf32>
    %96 = vector.multi_reduction <add>, %95, %cst_43 [1] : vector<16x16xf32> to vector<16xf32>
    %97 = vector.shape_cast %96 : vector<16xf32> to vector<16x1xf32>
    %98 = tpu.reciprocal %97 {approx = true} : vector<16x1xf32> -> vector<16x1xf32>
    %99 = vector.broadcast %98 : vector<16x1xf32> to vector<16x16xf32>
    %100 = arith.mulf %95, %99 : vector<16x16xf32>
    %101 = arith.truncf %100 : vector<16x16xf32> to vector<16x16xbf16>
    %cst_44 = arith.constant dense<0.000000e+00> : vector<16x8xf32>
    %102 = tpu.matmul %101, %87, %cst_44 {dimension_numbers = #tpu.dot_dimension_numbers<[1], [0], [0], [1], [0, 0, 1, 1], [], []>} : vector<16x16xbf16>, vector<16x8xbf16>, vector<16x8xf32> -> vector<16x8xf32>
    %103 = arith.truncf %102 : vector<16x8xf32> to vector<16x8xbf16>
    %104 = vector.extract_strided_slice %78 {offsets = [0, 0], sizes = [8, 128], strides = [1, 1]} : vector<128x128xbf16> to vector<8x128xbf16>
    %cst_45 = arith.constant dense<0.000000e+00> : vector<16x128xf32>
    %105 = tpu.matmul %103, %104, %cst_45 {dimension_numbers = #tpu.dot_dimension_numbers<[1], [0], [0], [1], [0, 0, 1, 1], [], []>} : vector<16x8xbf16>, vector<8x128xbf16>, vector<16x128xf32> -> vector<16x128xf32>
    %106 = arith.addf %81, %105 : vector<16x128xf32>
    %107 = vector.extract_strided_slice %77 {offsets = [0, 8], sizes = [16, 8], strides = [1, 1]} : vector<16x384xf32> to vector<16x8xf32>
    %108 = arith.truncf %107 : vector<16x8xf32> to vector<16x8xbf16>
    %109 = vector.extract_strided_slice %77 {offsets = [0, 136], sizes = [16, 8], strides = [1, 1]} : vector<16x384xf32> to vector<16x8xf32>
    %110 = arith.truncf %109 : vector<16x8xf32> to vector<16x8xbf16>
    %111 = vector.extract_strided_slice %77 {offsets = [0, 264], sizes = [16, 8], strides = [1, 1]} : vector<16x384xf32> to vector<16x8xf32>
    %112 = arith.truncf %111 : vector<16x8xf32> to vector<16x8xbf16>
    %cst_46 = arith.constant dense<0.000000e+00> : vector<16x16xf32>
    %113 = tpu.matmul %108, %110, %cst_46 {dimension_numbers = #tpu.dot_dimension_numbers<[1], [1], [0], [0], [0, 0, 1, 0], [], []>} : vector<16x8xbf16>, vector<16x8xbf16>, vector<16x16xf32> -> vector<16x16xf32>
    %cst_47 = arith.constant 0.353553385 : f32
    %114 = vector.broadcast %cst_47 : f32 to vector<16x16xf32>
    %115 = arith.mulf %113, %114 : vector<16x16xf32>
    %cst_48 = arith.constant dense<0xFF800000> : vector<16xf32>
    %116 = vector.multi_reduction <maximumf>, %115, %cst_48 [1] : vector<16x16xf32> to vector<16xf32>
    %117 = vector.shape_cast %116 : vector<16xf32> to vector<16x1xf32>
    %118 = vector.broadcast %117 : vector<16x1xf32> to vector<16x16xf32>
    %119 = arith.subf %115, %118 : vector<16x16xf32>
    %120 = math.exp %119 : vector<16x16xf32>
    %cst_49 = arith.constant dense<0.000000e+00> : vector<16xf32>
    %121 = vector.multi_reduction <add>, %120, %cst_49 [1] : vector<16x16xf32> to vector<16xf32>
    %122 = vector.shape_cast %121 : vector<16xf32> to vector<16x1xf32>
    %123 = tpu.reciprocal %122 {approx = true} : vector<16x1xf32> -> vector<16x1xf32>
    %124 = vector.broadcast %123 : vector<16x1xf32> to vector<16x16xf32>
    %125 = arith.mulf %120, %124 : vector<16x16xf32>
    %126 = arith.truncf %125 : vector<16x16xf32> to vector<16x16xbf16>
    %cst_50 = arith.constant dense<0.000000e+00> : vector<16x8xf32>
    %127 = tpu.matmul %126, %112, %cst_50 {dimension_numbers = #tpu.dot_dimension_numbers<[1], [0], [0], [1], [0, 0, 1, 1], [], []>} : vector<16x16xbf16>, vector<16x8xbf16>, vector<16x8xf32> -> vector<16x8xf32>
    %128 = arith.truncf %127 : vector<16x8xf32> to vector<16x8xbf16>
    %129 = vector.extract_strided_slice %78 {offsets = [8, 0], sizes = [8, 128], strides = [1, 1]} : vector<128x128xbf16> to vector<8x128xbf16>
    %cst_51 = arith.constant dense<0.000000e+00> : vector<16x128xf32>
    %130 = tpu.matmul %128, %129, %cst_51 {dimension_numbers = #tpu.dot_dimension_numbers<[1], [0], [0], [1], [0, 0, 1, 1], [], []>} : vector<16x8xbf16>, vector<8x128xbf16>, vector<16x128xf32> -> vector<16x128xf32>
    %131 = arith.addf %106, %130 : vector<16x128xf32>
    %132 = vector.extract_strided_slice %77 {offsets = [0, 16], sizes = [16, 8], strides = [1, 1]} : vector<16x384xf32> to vector<16x8xf32>
    %133 = arith.truncf %132 : vector<16x8xf32> to vector<16x8xbf16>
    %134 = vector.extract_strided_slice %77 {offsets = [0, 144], sizes = [16, 8], strides = [1, 1]} : vector<16x384xf32> to vector<16x8xf32>
    %135 = arith.truncf %134 : vector<16x8xf32> to vector<16x8xbf16>
    %136 = vector.extract_strided_slice %77 {offsets = [0, 272], sizes = [16, 8], strides = [1, 1]} : vector<16x384xf32> to vector<16x8xf32>
    %137 = arith.truncf %136 : vector<16x8xf32> to vector<16x8xbf16>
    %cst_52 = arith.constant dense<0.000000e+00> : vector<16x16xf32>
    %138 = tpu.matmul %133, %135, %cst_52 {dimension_numbers = #tpu.dot_dimension_numbers<[1], [1], [0], [0], [0, 0, 1, 0], [], []>} : vector<16x8xbf16>, vector<16x8xbf16>, vector<16x16xf32> -> vector<16x16xf32>
    %cst_53 = arith.constant 0.353553385 : f32
    %139 = vector.broadcast %cst_53 : f32 to vector<16x16xf32>
    %140 = arith.mulf %138, %139 : vector<16x16xf32>
    %cst_54 = arith.constant dense<0xFF800000> : vector<16xf32>
    %141 = vector.multi_reduction <maximumf>, %140, %cst_54 [1] : vector<16x16xf32> to vector<16xf32>
    %142 = vector.shape_cast %141 : vector<16xf32> to vector<16x1xf32>
    %143 = vector.broadcast %142 : vector<16x1xf32> to vector<16x16xf32>
    %144 = arith.subf %140, %143 : vector<16x16xf32>
    %145 = math.exp %144 : vector<16x16xf32>
    %cst_55 = arith.constant dense<0.000000e+00> : vector<16xf32>
    %146 = vector.multi_reduction <add>, %145, %cst_55 [1] : vector<16x16xf32> to vector<16xf32>
    %147 = vector.shape_cast %146 : vector<16xf32> to vector<16x1xf32>
    %148 = tpu.reciprocal %147 {approx = true} : vector<16x1xf32> -> vector<16x1xf32>
    %149 = vector.broadcast %148 : vector<16x1xf32> to vector<16x16xf32>
    %150 = arith.mulf %145, %149 : vector<16x16xf32>
    %151 = arith.truncf %150 : vector<16x16xf32> to vector<16x16xbf16>
    %cst_56 = arith.constant dense<0.000000e+00> : vector<16x8xf32>
    %152 = tpu.matmul %151, %137, %cst_56 {dimension_numbers = #tpu.dot_dimension_numbers<[1], [0], [0], [1], [0, 0, 1, 1], [], []>} : vector<16x16xbf16>, vector<16x8xbf16>, vector<16x8xf32> -> vector<16x8xf32>
    %153 = arith.truncf %152 : vector<16x8xf32> to vector<16x8xbf16>
    %154 = vector.extract_strided_slice %78 {offsets = [16, 0], sizes = [8, 128], strides = [1, 1]} : vector<128x128xbf16> to vector<8x128xbf16>
    %cst_57 = arith.constant dense<0.000000e+00> : vector<16x128xf32>
    %155 = tpu.matmul %153, %154, %cst_57 {dimension_numbers = #tpu.dot_dimension_numbers<[1], [0], [0], [1], [0, 0, 1, 1], [], []>} : vector<16x8xbf16>, vector<8x128xbf16>, vector<16x128xf32> -> vector<16x128xf32>
    %156 = arith.addf %131, %155 : vector<16x128xf32>
    %157 = vector.extract_strided_slice %77 {offsets = [0, 24], sizes = [16, 8], strides = [1, 1]} : vector<16x384xf32> to vector<16x8xf32>
    %158 = arith.truncf %157 : vector<16x8xf32> to vector<16x8xbf16>
    %159 = vector.extract_strided_slice %77 {offsets = [0, 152], sizes = [16, 8], strides = [1, 1]} : vector<16x384xf32> to vector<16x8xf32>
    %160 = arith.truncf %159 : vector<16x8xf32> to vector<16x8xbf16>
    %161 = vector.extract_strided_slice %77 {offsets = [0, 280], sizes = [16, 8], strides = [1, 1]} : vector<16x384xf32> to vector<16x8xf32>
    %162 = arith.truncf %161 : vector<16x8xf32> to vector<16x8xbf16>
    %cst_58 = arith.constant dense<0.000000e+00> : vector<16x16xf32>
    %163 = tpu.matmul %158, %160, %cst_58 {dimension_numbers = #tpu.dot_dimension_numbers<[1], [1], [0], [0], [0, 0, 1, 0], [], []>} : vector<16x8xbf16>, vector<16x8xbf16>, vector<16x16xf32> -> vector<16x16xf32>
    %cst_59 = arith.constant 0.353553385 : f32
    %164 = vector.broadcast %cst_59 : f32 to vector<16x16xf32>
    %165 = arith.mulf %163, %164 : vector<16x16xf32>
    %cst_60 = arith.constant dense<0xFF800000> : vector<16xf32>
    %166 = vector.multi_reduction <maximumf>, %165, %cst_60 [1] : vector<16x16xf32> to vector<16xf32>
    %167 = vector.shape_cast %166 : vector<16xf32> to vector<16x1xf32>
    %168 = vector.broadcast %167 : vector<16x1xf32> to vector<16x16xf32>
    %169 = arith.subf %165, %168 : vector<16x16xf32>
    %170 = math.exp %169 : vector<16x16xf32>
    %cst_61 = arith.constant dense<0.000000e+00> : vector<16xf32>
    %171 = vector.multi_reduction <add>, %170, %cst_61 [1] : vector<16x16xf32> to vector<16xf32>
    %172 = vector.shape_cast %171 : vector<16xf32> to vector<16x1xf32>
    %173 = tpu.reciprocal %172 {approx = true} : vector<16x1xf32> -> vector<16x1xf32>
    %174 = vector.broadcast %173 : vector<16x1xf32> to vector<16x16xf32>
    %175 = arith.mulf %170, %174 : vector<16x16xf32>
    %176 = arith.truncf %175 : vector<16x16xf32> to vector<16x16xbf16>
    %cst_62 = arith.constant dense<0.000000e+00> : vector<16x8xf32>
    %177 = tpu.matmul %176, %162, %cst_62 {dimension_numbers = #tpu.dot_dimension_numbers<[1], [0], [0], [1], [0, 0, 1, 1], [], []>} : vector<16x16xbf16>, vector<16x8xbf16>, vector<16x8xf32> -> vector<16x8xf32>
    %178 = arith.truncf %177 : vector<16x8xf32> to vector<16x8xbf16>
    %179 = vector.extract_strided_slice %78 {offsets = [24, 0], sizes = [8, 128], strides = [1, 1]} : vector<128x128xbf16> to vector<8x128xbf16>
    %cst_63 = arith.constant dense<0.000000e+00> : vector<16x128xf32>
    %180 = tpu.matmul %178, %179, %cst_63 {dimension_numbers = #tpu.dot_dimension_numbers<[1], [0], [0], [1], [0, 0, 1, 1], [], []>} : vector<16x8xbf16>, vector<8x128xbf16>, vector<16x128xf32> -> vector<16x128xf32>
    %181 = arith.addf %156, %180 : vector<16x128xf32>
    %c0_64 = arith.constant 0 : index
    %c0_65 = arith.constant 0 : index
    %182 = vector.load %arg14[%c0_64, %c0_65] : memref<1x128xf32, #tpu.memory_space<vmem>>, vector<1x128xf32>
    %c0_66 = arith.constant 0 : index
    %c0_67 = arith.constant 0 : index
    %183 = vector.load %arg15[%c0_66, %c0_67] : memref<1x128xf32, #tpu.memory_space<vmem>>, vector<1x128xf32>
    %cst_68 = arith.constant dense<0.000000e+00> : vector<16xf32>
    %184 = vector.multi_reduction <add>, %181, %cst_68 [1] : vector<16x128xf32> to vector<16xf32>
    %185 = vector.shape_cast %184 : vector<16xf32> to vector<16x1xf32>
    %cst_69 = arith.constant 3.125000e-02 : f32
    %186 = vector.broadcast %cst_69 : f32 to vector<16x1xf32>
    %187 = arith.mulf %185, %186 : vector<16x1xf32>
    %188 = arith.mulf %181, %181 : vector<16x128xf32>
    %cst_70 = arith.constant dense<0.000000e+00> : vector<16xf32>
    %189 = vector.multi_reduction <add>, %188, %cst_70 [1] : vector<16x128xf32> to vector<16xf32>
    %190 = vector.shape_cast %189 : vector<16xf32> to vector<16x1xf32>
    %cst_71 = arith.constant 3.125000e-02 : f32
    %191 = vector.broadcast %cst_71 : f32 to vector<16x1xf32>
    %192 = arith.mulf %190, %191 : vector<16x1xf32>
    %193 = arith.mulf %187, %187 : vector<16x1xf32>
    %194 = arith.subf %192, %193 : vector<16x1xf32>
    %195 = vector.broadcast %187 : vector<16x1xf32> to vector<16x128xf32>
    %196 = arith.subf %181, %195 : vector<16x128xf32>
    %cst_72 = arith.constant 9.99999974E-6 : f32
    %197 = vector.broadcast %cst_72 : f32 to vector<16x1xf32>
    %198 = arith.addf %194, %197 : vector<16x1xf32>
    %199 = math.rsqrt %198 : vector<16x1xf32>
    %200 = vector.broadcast %199 : vector<16x1xf32> to vector<16x128xf32>
    %201 = arith.mulf %196, %200 : vector<16x128xf32>
    %202 = vector.broadcast %182 : vector<1x128xf32> to vector<16x128xf32>
    %203 = arith.mulf %201, %202 : vector<16x128xf32>
    %204 = vector.broadcast %183 : vector<1x128xf32> to vector<16x128xf32>
    %205 = arith.addf %203, %204 : vector<16x128xf32>
    %206 = arith.truncf %205 : vector<16x128xf32> to vector<16x128xbf16>
    %c0_73 = arith.constant 0 : index
    %c0_74 = arith.constant 0 : index
    %207 = vector.load %arg16[%c0_73, %c0_74] : memref<128x128xbf16, #tpu.memory_space<vmem>>, vector<128x128xbf16>
    %cst_75 = arith.constant dense<0.000000e+00> : vector<16x128xf32>
    %208 = tpu.matmul %206, %207, %cst_75 {dimension_numbers = #tpu.dot_dimension_numbers<[1], [0], [0], [1], [0, 0, 1, 1], [], []>} : vector<16x128xbf16>, vector<128x128xbf16>, vector<16x128xf32> -> vector<16x128xf32>
    %c0_76 = arith.constant 0 : index
    %c0_77 = arith.constant 0 : index
    %209 = vector.load %arg17[%c0_76, %c0_77] : memref<1x128xf32, #tpu.memory_space<vmem>>, vector<1x128xf32>
    %210 = vector.broadcast %209 : vector<1x128xf32> to vector<16x128xf32>
    %211 = arith.addf %208, %210 : vector<16x128xf32>
    %c0_78 = arith.constant 0 : index
    %c0_79 = arith.constant 0 : index
    %212 = vector.load %arg18[%c0_78, %c0_79] : memref<128x128xbf16, #tpu.memory_space<vmem>>, vector<128x128xbf16>
    %cst_80 = arith.constant dense<0.000000e+00> : vector<16x128xf32>
    %213 = tpu.matmul %206, %212, %cst_80 {dimension_numbers = #tpu.dot_dimension_numbers<[1], [0], [0], [1], [0, 0, 1, 1], [], []>} : vector<16x128xbf16>, vector<128x128xbf16>, vector<16x128xf32> -> vector<16x128xf32>
    %c0_81 = arith.constant 0 : index
    %c0_82 = arith.constant 0 : index
    %214 = vector.load %arg19[%c0_81, %c0_82] : memref<1x128xf32, #tpu.memory_space<vmem>>, vector<1x128xf32>
    %215 = vector.broadcast %214 : vector<1x128xf32> to vector<16x128xf32>
    %216 = arith.addf %213, %215 : vector<16x128xf32>
    %217 = arith.negf %216 : vector<16x128xf32>
    %218 = math.exp %217 : vector<16x128xf32>
    %cst_83 = arith.constant 1.000000e+00 : f32
    %219 = vector.broadcast %cst_83 : f32 to vector<16x128xf32>
    %220 = arith.addf %219, %218 : vector<16x128xf32>
    %221 = arith.divf %219, %220 : vector<16x128xf32>
    %222 = arith.mulf %211, %221 : vector<16x128xf32>
    %223 = tpu.iota {dimensions = array<i32: 0>} : vector<16x128xi32>
    %c0_84 = arith.constant 0 : index
    %c0_85 = arith.constant 0 : index
    %224 = vector.load %arg20[%c0_84, %c0_85] : memref<7x128xf32, #tpu.memory_space<vmem>>, vector<7x128xf32>
    %cst_86 = arith.constant 0.000000e+00 : f32
    %225 = vector.broadcast %cst_86 : f32 to vector<16x128xf32>
    %c3_i32 = arith.constant 3 : i32
    %226 = tpu.dynamic_rotate %222 by %c3_i32 dim 0 : vector<16x128xf32>, i32 -> vector<16x128xf32>
    %c-3_i32 = arith.constant -3 : i32
    %227 = vector.broadcast %c-3_i32 : i32 to vector<16x128xi32>
    %228 = arith.addi %223, %227 : vector<16x128xi32>
    %c0_i32 = arith.constant 0 : i32
    %229 = vector.broadcast %c0_i32 : i32 to vector<16x128xi32>
    %230 = arith.cmpi sge, %228, %229 : vector<16x128xi32>
    %c-3_i32_87 = arith.constant -3 : i32
    %231 = vector.broadcast %c-3_i32_87 : i32 to vector<16x128xi32>
    %232 = arith.addi %223, %231 : vector<16x128xi32>
    %c16_i32 = arith.constant 16 : i32
    %233 = vector.broadcast %c16_i32 : i32 to vector<16x128xi32>
    %234 = arith.cmpi slt, %232, %233 : vector<16x128xi32>
    %235 = arith.andi %230, %234 : vector<16x128xi1>
    %cst_88 = arith.constant 0.000000e+00 : f32
    %236 = vector.broadcast %cst_88 : f32 to vector<16x128xf32>
    %237 = arith.select %235, %226, %236 : vector<16x128xi1>, vector<16x128xf32>
    %238 = vector.extract_strided_slice %224 {offsets = [0, 0], sizes = [1, 128], strides = [1, 1]} : vector<7x128xf32> to vector<1x128xf32>
    %239 = vector.broadcast %238 : vector<1x128xf32> to vector<16x128xf32>
    %240 = arith.mulf %237, %239 : vector<16x128xf32>
    %241 = arith.addf %225, %240 : vector<16x128xf32>
    %c2_i32 = arith.constant 2 : i32
    %242 = tpu.dynamic_rotate %222 by %c2_i32 dim 0 : vector<16x128xf32>, i32 -> vector<16x128xf32>
    %c-2_i32 = arith.constant -2 : i32
    %243 = vector.broadcast %c-2_i32 : i32 to vector<16x128xi32>
    %244 = arith.addi %223, %243 : vector<16x128xi32>
    %c0_i32_89 = arith.constant 0 : i32
    %245 = vector.broadcast %c0_i32_89 : i32 to vector<16x128xi32>
    %246 = arith.cmpi sge, %244, %245 : vector<16x128xi32>
    %c-2_i32_90 = arith.constant -2 : i32
    %247 = vector.broadcast %c-2_i32_90 : i32 to vector<16x128xi32>
    %248 = arith.addi %223, %247 : vector<16x128xi32>
    %c16_i32_91 = arith.constant 16 : i32
    %249 = vector.broadcast %c16_i32_91 : i32 to vector<16x128xi32>
    %250 = arith.cmpi slt, %248, %249 : vector<16x128xi32>
    %251 = arith.andi %246, %250 : vector<16x128xi1>
    %cst_92 = arith.constant 0.000000e+00 : f32
    %252 = vector.broadcast %cst_92 : f32 to vector<16x128xf32>
    %253 = arith.select %251, %242, %252 : vector<16x128xi1>, vector<16x128xf32>
    %254 = vector.extract_strided_slice %224 {offsets = [1, 0], sizes = [1, 128], strides = [1, 1]} : vector<7x128xf32> to vector<1x128xf32>
    %255 = vector.broadcast %254 : vector<1x128xf32> to vector<16x128xf32>
    %256 = arith.mulf %253, %255 : vector<16x128xf32>
    %257 = arith.addf %241, %256 : vector<16x128xf32>
    %c1_i32 = arith.constant 1 : i32
    %258 = tpu.dynamic_rotate %222 by %c1_i32 dim 0 : vector<16x128xf32>, i32 -> vector<16x128xf32>
    %c-1_i32 = arith.constant -1 : i32
    %259 = vector.broadcast %c-1_i32 : i32 to vector<16x128xi32>
    %260 = arith.addi %223, %259 : vector<16x128xi32>
    %c0_i32_93 = arith.constant 0 : i32
    %261 = vector.broadcast %c0_i32_93 : i32 to vector<16x128xi32>
    %262 = arith.cmpi sge, %260, %261 : vector<16x128xi32>
    %c-1_i32_94 = arith.constant -1 : i32
    %263 = vector.broadcast %c-1_i32_94 : i32 to vector<16x128xi32>
    %264 = arith.addi %223, %263 : vector<16x128xi32>
    %c16_i32_95 = arith.constant 16 : i32
    %265 = vector.broadcast %c16_i32_95 : i32 to vector<16x128xi32>
    %266 = arith.cmpi slt, %264, %265 : vector<16x128xi32>
    %267 = arith.andi %262, %266 : vector<16x128xi1>
    %cst_96 = arith.constant 0.000000e+00 : f32
    %268 = vector.broadcast %cst_96 : f32 to vector<16x128xf32>
    %269 = arith.select %267, %258, %268 : vector<16x128xi1>, vector<16x128xf32>
    %270 = vector.extract_strided_slice %224 {offsets = [2, 0], sizes = [1, 128], strides = [1, 1]} : vector<7x128xf32> to vector<1x128xf32>
    %271 = vector.broadcast %270 : vector<1x128xf32> to vector<16x128xf32>
    %272 = arith.mulf %269, %271 : vector<16x128xf32>
    %273 = arith.addf %257, %272 : vector<16x128xf32>
    %c0_i32_97 = arith.constant 0 : i32
    %274 = vector.broadcast %c0_i32_97 : i32 to vector<16x128xi32>
    %275 = arith.addi %223, %274 : vector<16x128xi32>
    %c0_i32_98 = arith.constant 0 : i32
    %276 = vector.broadcast %c0_i32_98 : i32 to vector<16x128xi32>
    %277 = arith.cmpi sge, %275, %276 : vector<16x128xi32>
    %c0_i32_99 = arith.constant 0 : i32
    %278 = vector.broadcast %c0_i32_99 : i32 to vector<16x128xi32>
    %279 = arith.addi %223, %278 : vector<16x128xi32>
    %c16_i32_100 = arith.constant 16 : i32
    %280 = vector.broadcast %c16_i32_100 : i32 to vector<16x128xi32>
    %281 = arith.cmpi slt, %279, %280 : vector<16x128xi32>
    %282 = arith.andi %277, %281 : vector<16x128xi1>
    %cst_101 = arith.constant 0.000000e+00 : f32
    %283 = vector.broadcast %cst_101 : f32 to vector<16x128xf32>
    %284 = arith.select %282, %222, %283 : vector<16x128xi1>, vector<16x128xf32>
    %285 = vector.extract_strided_slice %224 {offsets = [3, 0], sizes = [1, 128], strides = [1, 1]} : vector<7x128xf32> to vector<1x128xf32>
    %286 = vector.broadcast %285 : vector<1x128xf32> to vector<16x128xf32>
    %287 = arith.mulf %284, %286 : vector<16x128xf32>
    %288 = arith.addf %273, %287 : vector<16x128xf32>
    %c15_i32 = arith.constant 15 : i32
    %289 = tpu.dynamic_rotate %222 by %c15_i32 dim 0 : vector<16x128xf32>, i32 -> vector<16x128xf32>
    %c1_i32_102 = arith.constant 1 : i32
    %290 = vector.broadcast %c1_i32_102 : i32 to vector<16x128xi32>
    %291 = arith.addi %223, %290 : vector<16x128xi32>
    %c0_i32_103 = arith.constant 0 : i32
    %292 = vector.broadcast %c0_i32_103 : i32 to vector<16x128xi32>
    %293 = arith.cmpi sge, %291, %292 : vector<16x128xi32>
    %c1_i32_104 = arith.constant 1 : i32
    %294 = vector.broadcast %c1_i32_104 : i32 to vector<16x128xi32>
    %295 = arith.addi %223, %294 : vector<16x128xi32>
    %c16_i32_105 = arith.constant 16 : i32
    %296 = vector.broadcast %c16_i32_105 : i32 to vector<16x128xi32>
    %297 = arith.cmpi slt, %295, %296 : vector<16x128xi32>
    %298 = arith.andi %293, %297 : vector<16x128xi1>
    %cst_106 = arith.constant 0.000000e+00 : f32
    %299 = vector.broadcast %cst_106 : f32 to vector<16x128xf32>
    %300 = arith.select %298, %289, %299 : vector<16x128xi1>, vector<16x128xf32>
    %301 = vector.extract_strided_slice %224 {offsets = [4, 0], sizes = [1, 128], strides = [1, 1]} : vector<7x128xf32> to vector<1x128xf32>
    %302 = vector.broadcast %301 : vector<1x128xf32> to vector<16x128xf32>
    %303 = arith.mulf %300, %302 : vector<16x128xf32>
    %304 = arith.addf %288, %303 : vector<16x128xf32>
    %c14_i32 = arith.constant 14 : i32
    %305 = tpu.dynamic_rotate %222 by %c14_i32 dim 0 : vector<16x128xf32>, i32 -> vector<16x128xf32>
    %c2_i32_107 = arith.constant 2 : i32
    %306 = vector.broadcast %c2_i32_107 : i32 to vector<16x128xi32>
    %307 = arith.addi %223, %306 : vector<16x128xi32>
    %c0_i32_108 = arith.constant 0 : i32
    %308 = vector.broadcast %c0_i32_108 : i32 to vector<16x128xi32>
    %309 = arith.cmpi sge, %307, %308 : vector<16x128xi32>
    %c2_i32_109 = arith.constant 2 : i32
    %310 = vector.broadcast %c2_i32_109 : i32 to vector<16x128xi32>
    %311 = arith.addi %223, %310 : vector<16x128xi32>
    %c16_i32_110 = arith.constant 16 : i32
    %312 = vector.broadcast %c16_i32_110 : i32 to vector<16x128xi32>
    %313 = arith.cmpi slt, %311, %312 : vector<16x128xi32>
    %314 = arith.andi %309, %313 : vector<16x128xi1>
    %cst_111 = arith.constant 0.000000e+00 : f32
    %315 = vector.broadcast %cst_111 : f32 to vector<16x128xf32>
    %316 = arith.select %314, %305, %315 : vector<16x128xi1>, vector<16x128xf32>
    %317 = vector.extract_strided_slice %224 {offsets = [5, 0], sizes = [1, 128], strides = [1, 1]} : vector<7x128xf32> to vector<1x128xf32>
    %318 = vector.broadcast %317 : vector<1x128xf32> to vector<16x128xf32>
    %319 = arith.mulf %316, %318 : vector<16x128xf32>
    %320 = arith.addf %304, %319 : vector<16x128xf32>
    %c13_i32 = arith.constant 13 : i32
    %321 = tpu.dynamic_rotate %222 by %c13_i32 dim 0 : vector<16x128xf32>, i32 -> vector<16x128xf32>
    %c3_i32_112 = arith.constant 3 : i32
    %322 = vector.broadcast %c3_i32_112 : i32 to vector<16x128xi32>
    %323 = arith.addi %223, %322 : vector<16x128xi32>
    %c0_i32_113 = arith.constant 0 : i32
    %324 = vector.broadcast %c0_i32_113 : i32 to vector<16x128xi32>
    %325 = arith.cmpi sge, %323, %324 : vector<16x128xi32>
    %c3_i32_114 = arith.constant 3 : i32
    %326 = vector.broadcast %c3_i32_114 : i32 to vector<16x128xi32>
    %327 = arith.addi %223, %326 : vector<16x128xi32>
    %c16_i32_115 = arith.constant 16 : i32
    %328 = vector.broadcast %c16_i32_115 : i32 to vector<16x128xi32>
    %329 = arith.cmpi slt, %327, %328 : vector<16x128xi32>
    %330 = arith.andi %325, %329 : vector<16x128xi1>
    %cst_116 = arith.constant 0.000000e+00 : f32
    %331 = vector.broadcast %cst_116 : f32 to vector<16x128xf32>
    %332 = arith.select %330, %321, %331 : vector<16x128xi1>, vector<16x128xf32>
    %333 = vector.extract_strided_slice %224 {offsets = [6, 0], sizes = [1, 128], strides = [1, 1]} : vector<7x128xf32> to vector<1x128xf32>
    %334 = vector.broadcast %333 : vector<1x128xf32> to vector<16x128xf32>
    %335 = arith.mulf %332, %334 : vector<16x128xf32>
    %336 = arith.addf %320, %335 : vector<16x128xf32>
    %c0_117 = arith.constant 0 : index
    %c0_118 = arith.constant 0 : index
    %337 = vector.load %arg21[%c0_117, %c0_118] : memref<1x128xf32, #tpu.memory_space<vmem>>, vector<1x128xf32>
    %338 = vector.broadcast %337 : vector<1x128xf32> to vector<16x128xf32>
    %339 = arith.mulf %336, %338 : vector<16x128xf32>
    %c0_119 = arith.constant 0 : index
    %c0_120 = arith.constant 0 : index
    %340 = vector.load %arg22[%c0_119, %c0_120] : memref<1x128xf32, #tpu.memory_space<vmem>>, vector<1x128xf32>
    %341 = vector.broadcast %340 : vector<1x128xf32> to vector<16x128xf32>
    %342 = arith.addf %339, %341 : vector<16x128xf32>
    %343 = arith.negf %342 : vector<16x128xf32>
    %344 = math.exp %343 : vector<16x128xf32>
    %cst_121 = arith.constant 1.000000e+00 : f32
    %345 = vector.broadcast %cst_121 : f32 to vector<16x128xf32>
    %346 = arith.addf %345, %344 : vector<16x128xf32>
    %347 = arith.divf %345, %346 : vector<16x128xf32>
    %348 = arith.mulf %342, %347 : vector<16x128xf32>
    %349 = arith.truncf %348 : vector<16x128xf32> to vector<16x128xbf16>
    %c0_122 = arith.constant 0 : index
    %c0_123 = arith.constant 0 : index
    %350 = vector.load %arg23[%c0_122, %c0_123] : memref<128x128xbf16, #tpu.memory_space<vmem>>, vector<128x128xbf16>
    %cst_124 = arith.constant dense<0.000000e+00> : vector<16x128xf32>
    %351 = tpu.matmul %349, %350, %cst_124 {dimension_numbers = #tpu.dot_dimension_numbers<[1], [0], [0], [1], [0, 0, 1, 1], [], []>} : vector<16x128xbf16>, vector<128x128xbf16>, vector<16x128xf32> -> vector<16x128xf32>
    %c0_125 = arith.constant 0 : index
    %c0_126 = arith.constant 0 : index
    %352 = vector.load %arg24[%c0_125, %c0_126] : memref<1x128xf32, #tpu.memory_space<vmem>>, vector<1x128xf32>
    %353 = vector.broadcast %352 : vector<1x128xf32> to vector<16x128xf32>
    %354 = arith.addf %351, %353 : vector<16x128xf32>
    %355 = arith.addf %181, %354 : vector<16x128xf32>
    %c0_127 = arith.constant 0 : index
    %c0_128 = arith.constant 0 : index
    %356 = vector.load %arg25[%c0_127, %c0_128] : memref<1x128xf32, #tpu.memory_space<vmem>>, vector<1x128xf32>
    %c0_129 = arith.constant 0 : index
    %c0_130 = arith.constant 0 : index
    %357 = vector.load %arg26[%c0_129, %c0_130] : memref<1x128xf32, #tpu.memory_space<vmem>>, vector<1x128xf32>
    %cst_131 = arith.constant dense<0.000000e+00> : vector<16xf32>
    %358 = vector.multi_reduction <add>, %355, %cst_131 [1] : vector<16x128xf32> to vector<16xf32>
    %359 = vector.shape_cast %358 : vector<16xf32> to vector<16x1xf32>
    %cst_132 = arith.constant 3.125000e-02 : f32
    %360 = vector.broadcast %cst_132 : f32 to vector<16x1xf32>
    %361 = arith.mulf %359, %360 : vector<16x1xf32>
    %362 = arith.mulf %355, %355 : vector<16x128xf32>
    %cst_133 = arith.constant dense<0.000000e+00> : vector<16xf32>
    %363 = vector.multi_reduction <add>, %362, %cst_133 [1] : vector<16x128xf32> to vector<16xf32>
    %364 = vector.shape_cast %363 : vector<16xf32> to vector<16x1xf32>
    %cst_134 = arith.constant 3.125000e-02 : f32
    %365 = vector.broadcast %cst_134 : f32 to vector<16x1xf32>
    %366 = arith.mulf %364, %365 : vector<16x1xf32>
    %367 = arith.mulf %361, %361 : vector<16x1xf32>
    %368 = arith.subf %366, %367 : vector<16x1xf32>
    %369 = vector.broadcast %361 : vector<16x1xf32> to vector<16x128xf32>
    %370 = arith.subf %355, %369 : vector<16x128xf32>
    %cst_135 = arith.constant 9.99999974E-6 : f32
    %371 = vector.broadcast %cst_135 : f32 to vector<16x1xf32>
    %372 = arith.addf %368, %371 : vector<16x1xf32>
    %373 = math.rsqrt %372 : vector<16x1xf32>
    %374 = vector.broadcast %373 : vector<16x1xf32> to vector<16x128xf32>
    %375 = arith.mulf %370, %374 : vector<16x128xf32>
    %376 = vector.broadcast %356 : vector<1x128xf32> to vector<16x128xf32>
    %377 = arith.mulf %375, %376 : vector<16x128xf32>
    %378 = vector.broadcast %357 : vector<1x128xf32> to vector<16x128xf32>
    %379 = arith.addf %377, %378 : vector<16x128xf32>
    %380 = arith.truncf %379 : vector<16x128xf32> to vector<16x128xbf16>
    %c0_136 = arith.constant 0 : index
    %c0_137 = arith.constant 0 : index
    %381 = vector.load %arg27[%c0_136, %c0_137] : memref<128x128xbf16, #tpu.memory_space<vmem>>, vector<128x128xbf16>
    %cst_138 = arith.constant dense<0.000000e+00> : vector<16x128xf32>
    %382 = tpu.matmul %380, %381, %cst_138 {dimension_numbers = #tpu.dot_dimension_numbers<[1], [0], [0], [1], [0, 0, 1, 1], [], []>} : vector<16x128xbf16>, vector<128x128xbf16>, vector<16x128xf32> -> vector<16x128xf32>
    %c0_139 = arith.constant 0 : index
    %c0_140 = arith.constant 0 : index
    %383 = vector.load %arg28[%c0_139, %c0_140] : memref<1x128xf32, #tpu.memory_space<vmem>>, vector<1x128xf32>
    %384 = vector.broadcast %383 : vector<1x128xf32> to vector<16x128xf32>
    %385 = arith.addf %382, %384 : vector<16x128xf32>
    %386 = arith.negf %385 : vector<16x128xf32>
    %387 = math.exp %386 : vector<16x128xf32>
    %cst_141 = arith.constant 1.000000e+00 : f32
    %388 = vector.broadcast %cst_141 : f32 to vector<16x128xf32>
    %389 = arith.addf %388, %387 : vector<16x128xf32>
    %390 = arith.divf %388, %389 : vector<16x128xf32>
    %391 = arith.mulf %385, %390 : vector<16x128xf32>
    %392 = arith.truncf %391 : vector<16x128xf32> to vector<16x128xbf16>
    %c0_142 = arith.constant 0 : index
    %c0_143 = arith.constant 0 : index
    %393 = vector.load %arg29[%c0_142, %c0_143] : memref<128x128xbf16, #tpu.memory_space<vmem>>, vector<128x128xbf16>
    %cst_144 = arith.constant dense<0.000000e+00> : vector<16x128xf32>
    %394 = tpu.matmul %392, %393, %cst_144 {dimension_numbers = #tpu.dot_dimension_numbers<[1], [0], [0], [1], [0, 0, 1, 1], [], []>} : vector<16x128xbf16>, vector<128x128xbf16>, vector<16x128xf32> -> vector<16x128xf32>
    %c0_145 = arith.constant 0 : index
    %c0_146 = arith.constant 0 : index
    %395 = vector.load %arg30[%c0_145, %c0_146] : memref<1x128xf32, #tpu.memory_space<vmem>>, vector<1x128xf32>
    %396 = vector.broadcast %395 : vector<1x128xf32> to vector<16x128xf32>
    %397 = arith.addf %394, %396 : vector<16x128xf32>
    %cst_147 = arith.constant 5.000000e-01 : f32
    %398 = vector.broadcast %cst_147 : f32 to vector<16x128xf32>
    %399 = arith.mulf %398, %397 : vector<16x128xf32>
    %400 = arith.addf %355, %399 : vector<16x128xf32>
    %c0_148 = arith.constant 0 : index
    %c0_149 = arith.constant 0 : index
    %401 = vector.load %arg31[%c0_148, %c0_149] : memref<1x128xf32, #tpu.memory_space<vmem>>, vector<1x128xf32>
    %c0_150 = arith.constant 0 : index
    %c0_151 = arith.constant 0 : index
    %402 = vector.load %arg32[%c0_150, %c0_151] : memref<1x128xf32, #tpu.memory_space<vmem>>, vector<1x128xf32>
    %cst_152 = arith.constant dense<0.000000e+00> : vector<16xf32>
    %403 = vector.multi_reduction <add>, %400, %cst_152 [1] : vector<16x128xf32> to vector<16xf32>
    %404 = vector.shape_cast %403 : vector<16xf32> to vector<16x1xf32>
    %cst_153 = arith.constant 3.125000e-02 : f32
    %405 = vector.broadcast %cst_153 : f32 to vector<16x1xf32>
    %406 = arith.mulf %404, %405 : vector<16x1xf32>
    %407 = arith.mulf %400, %400 : vector<16x128xf32>
    %cst_154 = arith.constant dense<0.000000e+00> : vector<16xf32>
    %408 = vector.multi_reduction <add>, %407, %cst_154 [1] : vector<16x128xf32> to vector<16xf32>
    %409 = vector.shape_cast %408 : vector<16xf32> to vector<16x1xf32>
    %cst_155 = arith.constant 3.125000e-02 : f32
    %410 = vector.broadcast %cst_155 : f32 to vector<16x1xf32>
    %411 = arith.mulf %409, %410 : vector<16x1xf32>
    %412 = arith.mulf %406, %406 : vector<16x1xf32>
    %413 = arith.subf %411, %412 : vector<16x1xf32>
    %414 = vector.broadcast %406 : vector<16x1xf32> to vector<16x128xf32>
    %415 = arith.subf %400, %414 : vector<16x128xf32>
    %cst_156 = arith.constant 9.99999974E-6 : f32
    %416 = vector.broadcast %cst_156 : f32 to vector<16x1xf32>
    %417 = arith.addf %413, %416 : vector<16x1xf32>
    %418 = math.rsqrt %417 : vector<16x1xf32>
    %419 = vector.broadcast %418 : vector<16x1xf32> to vector<16x128xf32>
    %420 = arith.mulf %415, %419 : vector<16x128xf32>
    %421 = vector.broadcast %401 : vector<1x128xf32> to vector<16x128xf32>
    %422 = arith.mulf %420, %421 : vector<16x128xf32>
    %423 = vector.broadcast %402 : vector<1x128xf32> to vector<16x128xf32>
    %424 = arith.addf %422, %423 : vector<16x128xf32>
    %425 = arith.truncf %424 : vector<16x128xf32> to vector<16x128xbf16>
    %c0_157 = arith.constant 0 : index
    %c0_158 = arith.constant 0 : index
    %c0_159 = arith.constant 0 : index
    %426 = vector.load %arg33[%c0_157, %c0_158, %c0_159] : memref<1x16x128xbf16, #tpu.memory_space<vmem>>, vector<1x16x128xbf16>
    %427 = vector.shape_cast %426 : vector<1x16x128xbf16> to vector<16x128xbf16>
    %428 = vector.shape_cast %425 : vector<16x128xbf16> to vector<1x16x128xbf16>
    tpu.vector_store %arg33[%c0_157, %c0_158, %c0_159], %428 {strides = array<i32>} : memref<1x16x128xbf16, #tpu.memory_space<vmem>>, vector<1x16x128xbf16>,
    return
  }
  func.func @transform_0(%arg0: i32) -> (i32, i32, i32) {
    %c0_i32 = arith.constant 0 : i32
    %c0_i32_0 = arith.constant 0 : i32
    %c0_i32_1 = arith.constant 0 : i32
    return %arg0, %c0_i32, %c0_i32_0 : i32, i32, i32
  }
  func.func @transform_1(%arg0: i32) -> (i32, i32) {
    %c0_i32 = arith.constant 0 : i32
    %c0_i32_0 = arith.constant 0 : i32
    %c0_i32_1 = arith.constant 0 : i32
    return %c0_i32, %c0_i32_0 : i32, i32
  }
  func.func @transform_2(%arg0: i32) -> (i32, i32) {
    %c0_i32 = arith.constant 0 : i32
    %c0_i32_0 = arith.constant 0 : i32
    %c0_i32_1 = arith.constant 0 : i32
    return %c0_i32, %c0_i32_0 : i32, i32
  }
  func.func @transform_3(%arg0: i32) -> (i32, i32) {
    %c0_i32 = arith.constant 0 : i32
    %c0_i32_0 = arith.constant 0 : i32
    %c0_i32_1 = arith.constant 0 : i32
    return %c0_i32, %c0_i32_0 : i32, i32
  }
  func.func @transform_4(%arg0: i32) -> (i32, i32) {
    %c0_i32 = arith.constant 0 : i32
    %c0_i32_0 = arith.constant 0 : i32
    %c0_i32_1 = arith.constant 0 : i32
    return %c0_i32, %c0_i32_0 : i32, i32
  }
  func.func @transform_5(%arg0: i32) -> (i32, i32) {
    %c0_i32 = arith.constant 0 : i32
    %c0_i32_0 = arith.constant 0 : i32
    %c0_i32_1 = arith.constant 0 : i32
    return %c0_i32, %c0_i32_0 : i32, i32
  }
  func.func @transform_6(%arg0: i32) -> (i32, i32) {
    %c0_i32 = arith.constant 0 : i32
    %c0_i32_0 = arith.constant 0 : i32
    %c0_i32_1 = arith.constant 0 : i32
    return %c0_i32, %c0_i32_0 : i32, i32
  }
  func.func @transform_7(%arg0: i32) -> (i32, i32) {
    %c0_i32 = arith.constant 0 : i32
    %c0_i32_0 = arith.constant 0 : i32
    %c0_i32_1 = arith.constant 0 : i32
    return %c0_i32, %c0_i32_0 : i32, i32
  }
  func.func @transform_8(%arg0: i32) -> (i32, i32) {
    %c0_i32 = arith.constant 0 : i32
    %c0_i32_0 = arith.constant 0 : i32
    %c0_i32_1 = arith.constant 0 : i32
    return %c0_i32, %c0_i32_0 : i32, i32
  }
  func.func @transform_9(%arg0: i32) -> (i32, i32) {
    %c0_i32 = arith.constant 0 : i32
    %c0_i32_0 = arith.constant 0 : i32
    %c0_i32_1 = arith.constant 0 : i32
    return %c0_i32, %c0_i32_0 : i32, i32
  }
  func.func @transform_10(%arg0: i32) -> (i32, i32) {
    %c0_i32 = arith.constant 0 : i32
    %c0_i32_0 = arith.constant 0 : i32
    %c0_i32_1 = arith.constant 0 : i32
    return %c0_i32, %c0_i32_0 : i32, i32
  }
  func.func @transform_11(%arg0: i32) -> (i32, i32) {
    %c0_i32 = arith.constant 0 : i32
    %c0_i32_0 = arith.constant 0 : i32
    %c0_i32_1 = arith.constant 0 : i32
    return %c0_i32, %c0_i32_0 : i32, i32
  }
  func.func @transform_12(%arg0: i32) -> (i32, i32) {
    %c0_i32 = arith.constant 0 : i32
    %c0_i32_0 = arith.constant 0 : i32
    %c0_i32_1 = arith.constant 0 : i32
    return %c0_i32, %c0_i32_0 : i32, i32
  }
  func.func @transform_13(%arg0: i32) -> (i32, i32) {
    %c0_i32 = arith.constant 0 : i32
    %c0_i32_0 = arith.constant 0 : i32
    %c0_i32_1 = arith.constant 0 : i32
    return %c0_i32, %c0_i32_0 : i32, i32
  }
  func.func @transform_14(%arg0: i32) -> (i32, i32) {
    %c0_i32 = arith.constant 0 : i32
    %c0_i32_0 = arith.constant 0 : i32
    %c0_i32_1 = arith.constant 0 : i32
    return %c0_i32, %c0_i32_0 : i32, i32
  }
  func.func @transform_15(%arg0: i32) -> (i32, i32) {
    %c0_i32 = arith.constant 0 : i32
    %c0_i32_0 = arith.constant 0 : i32
    %c0_i32_1 = arith.constant 0 : i32
    return %c0_i32, %c0_i32_0 : i32, i32
  }
  func.func @transform_16(%arg0: i32) -> (i32, i32) {
    %c0_i32 = arith.constant 0 : i32
    %c0_i32_0 = arith.constant 0 : i32
    %c0_i32_1 = arith.constant 0 : i32
    return %c0_i32, %c0_i32_0 : i32, i32
  }
  func.func @transform_17(%arg0: i32) -> (i32, i32) {
    %c0_i32 = arith.constant 0 : i32
    %c0_i32_0 = arith.constant 0 : i32
    %c0_i32_1 = arith.constant 0 : i32
    return %c0_i32, %c0_i32_0 : i32, i32
  }
  func.func @transform_18(%arg0: i32) -> (i32, i32) {
    %c0_i32 = arith.constant 0 : i32
    %c0_i32_0 = arith.constant 0 : i32
    %c0_i32_1 = arith.constant 0 : i32
    return %c0_i32, %c0_i32_0 : i32, i32
  }
  func.func @transform_19(%arg0: i32) -> (i32, i32) {
    %c0_i32 = arith.constant 0 : i32
    %c0_i32_0 = arith.constant 0 : i32
    %c0_i32_1 = arith.constant 0 : i32
    return %c0_i32, %c0_i32_0 : i32, i32
  }
  func.func @transform_20(%arg0: i32) -> (i32, i32) {
    %c0_i32 = arith.constant 0 : i32
    %c0_i32_0 = arith.constant 0 : i32
    %c0_i32_1 = arith.constant 0 : i32
    return %c0_i32, %c0_i32_0 : i32, i32
  }
  func.func @transform_21(%arg0: i32) -> (i32, i32) {
    %c0_i32 = arith.constant 0 : i32
    %c0_i32_0 = arith.constant 0 : i32
    %c0_i32_1 = arith.constant 0 : i32
    return %c0_i32, %c0_i32_0 : i32, i32
  }
  func.func @transform_22(%arg0: i32) -> (i32, i32) {
    %c0_i32 = arith.constant 0 : i32
    %c0_i32_0 = arith.constant 0 : i32
    %c0_i32_1 = arith.constant 0 : i32
    return %c0_i32, %c0_i32_0 : i32, i32
  }
  func.func @transform_23(%arg0: i32) -> (i32, i32) {
    %c0_i32 = arith.constant 0 : i32
    %c0_i32_0 = arith.constant 0 : i32
    %c0_i32_1 = arith.constant 0 : i32
    return %c0_i32, %c0_i32_0 : i32, i32
  }
  func.func @transform_24(%arg0: i32) -> (i32, i32) {
    %c0_i32 = arith.constant 0 : i32
    %c0_i32_0 = arith.constant 0 : i32
    %c0_i32_1 = arith.constant 0 : i32
    return %c0_i32, %c0_i32_0 : i32, i32
  }
  func.func @transform_25(%arg0: i32) -> (i32, i32) {
    %c0_i32 = arith.constant 0 : i32
    %c0_i32_0 = arith.constant 0 : i32
    %c0_i32_1 = arith.constant 0 : i32
    return %c0_i32, %c0_i32_0 : i32, i32
  }
  func.func @transform_26(%arg0: i32) -> (i32, i32) {
    %c0_i32 = arith.constant 0 : i32
    %c0_i32_0 = arith.constant 0 : i32
    %c0_i32_1 = arith.constant 0 : i32
    return %c0_i32, %c0_i32_0 : i32, i32
  }
  func.func @transform_27(%arg0: i32) -> (i32, i32) {
    %c0_i32 = arith.constant 0 : i32
    %c0_i32_0 = arith.constant 0 : i32
    %c0_i32_1 = arith.constant 0 : i32
    return %c0_i32, %c0_i32_0 : i32, i32
  }
  func.func @transform_28(%arg0: i32) -> (i32, i32) {
    %c0_i32 = arith.constant 0 : i32
    %c0_i32_0 = arith.constant 0 : i32
    %c0_i32_1 = arith.constant 0 : i32
    return %c0_i32, %c0_i32_0 : i32, i32
  }
  func.func @transform_29(%arg0: i32) -> (i32, i32) {
    %c0_i32 = arith.constant 0 : i32
    %c0_i32_0 = arith.constant 0 : i32
    %c0_i32_1 = arith.constant 0 : i32
    return %c0_i32, %c0_i32_0 : i32, i32
  }
  func.func @transform_30(%arg0: i32) -> (i32, i32) {
    %c0_i32 = arith.constant 0 : i32
    %c0_i32_0 = arith.constant 0 : i32
    %c0_i32_1 = arith.constant 0 : i32
    return %c0_i32, %c0_i32_0 : i32, i32
  }
  func.func @transform_31(%arg0: i32) -> (i32, i32) {
    %c0_i32 = arith.constant 0 : i32
    %c0_i32_0 = arith.constant 0 : i32
    %c0_i32_1 = arith.constant 0 : i32
    return %c0_i32, %c0_i32_0 : i32, i32
  }
  func.func @transform_32(%arg0: i32) -> (i32, i32, i32) {
    %c0_i32 = arith.constant 0 : i32
    %c0_i32_0 = arith.constant 0 : i32
    %c0_i32_1 = arith.constant 0 : i32
    return %arg0, %c0_i32, %c0_i32_0 : i32, i32, i32
  }
}

module attributes {stable_mosaic.version = 11 : i64} {
  func.func @_block_kernel(%arg0: i32, %arg1: memref<1x16x128xbf16, #tpu.memory_space<vmem>>, %arg2: memref<1x128xf32, #tpu.memory_space<vmem>>, %arg3: memref<1x128xf32, #tpu.memory_space<vmem>>, %arg4: memref<128x128xbf16, #tpu.memory_space<vmem>>, %arg5: memref<1x128xf32, #tpu.memory_space<vmem>>, %arg6: memref<128x128xbf16, #tpu.memory_space<vmem>>, %arg7: memref<1x128xf32, #tpu.memory_space<vmem>>, %arg8: memref<1x128xf32, #tpu.memory_space<vmem>>, %arg9: memref<1x128xf32, #tpu.memory_space<vmem>>, %arg10: memref<128x384xbf16, #tpu.memory_space<vmem>>, %arg11: memref<1x384xf32, #tpu.memory_space<vmem>>, %arg12: memref<128x128xbf16, #tpu.memory_space<vmem>>, %arg13: memref<1x128xf32, #tpu.memory_space<vmem>>, %arg14: memref<1x128xf32, #tpu.memory_space<vmem>>, %arg15: memref<1x128xf32, #tpu.memory_space<vmem>>, %arg16: memref<128x128xbf16, #tpu.memory_space<vmem>>, %arg17: memref<1x128xf32, #tpu.memory_space<vmem>>, %arg18: memref<128x128xbf16, #tpu.memory_space<vmem>>, %arg19: memref<1x128xf32, #tpu.memory_space<vmem>>, %arg20: memref<7x128xf32, #tpu.memory_space<vmem>>, %arg21: memref<1x128xf32, #tpu.memory_space<vmem>>, %arg22: memref<1x128xf32, #tpu.memory_space<vmem>>, %arg23: memref<128x128xbf16, #tpu.memory_space<vmem>>, %arg24: memref<1x128xf32, #tpu.memory_space<vmem>>, %arg25: memref<1x128xf32, #tpu.memory_space<vmem>>, %arg26: memref<1x128xf32, #tpu.memory_space<vmem>>, %arg27: memref<128x128xbf16, #tpu.memory_space<vmem>>, %arg28: memref<1x128xf32, #tpu.memory_space<vmem>>, %arg29: memref<128x128xbf16, #tpu.memory_space<vmem>>, %arg30: memref<1x128xf32, #tpu.memory_space<vmem>>, %arg31: memref<1x128xf32, #tpu.memory_space<vmem>>, %arg32: memref<1x128xf32, #tpu.memory_space<vmem>>, %arg33: memref<1x16x128xbf16, #tpu.memory_space<vmem>>) attributes {dimension_semantics = [#tpu.dimension_semantics<parallel>], iteration_bounds = array<i64: 2>, scalar_prefetch = 0 : i64, scratch_operands = 0 : i64, tpu.core_type = #tpu.core_type<tc>, window_params = [{transform_indices = @transform_0, window_bounds = array<i64: 1, 16, 128>}, {pipeline_mode = #tpu.pipeline_mode<synchronous>, transform_indices = @transform_1, window_bounds = array<i64: 1, 128>}, {pipeline_mode = #tpu.pipeline_mode<synchronous>, transform_indices = @transform_2, window_bounds = array<i64: 1, 128>}, {pipeline_mode = #tpu.pipeline_mode<synchronous>, transform_indices = @transform_3, window_bounds = array<i64: 128, 128>}, {pipeline_mode = #tpu.pipeline_mode<synchronous>, transform_indices = @transform_4, window_bounds = array<i64: 1, 128>}, {pipeline_mode = #tpu.pipeline_mode<synchronous>, transform_indices = @transform_5, window_bounds = array<i64: 128, 128>}, {pipeline_mode = #tpu.pipeline_mode<synchronous>, transform_indices = @transform_6, window_bounds = array<i64: 1, 128>}, {pipeline_mode = #tpu.pipeline_mode<synchronous>, transform_indices = @transform_7, window_bounds = array<i64: 1, 128>}, {pipeline_mode = #tpu.pipeline_mode<synchronous>, transform_indices = @transform_8, window_bounds = array<i64: 1, 128>}, {pipeline_mode = #tpu.pipeline_mode<synchronous>, transform_indices = @transform_9, window_bounds = array<i64: 128, 384>}, {pipeline_mode = #tpu.pipeline_mode<synchronous>, transform_indices = @transform_10, window_bounds = array<i64: 1, 384>}, {pipeline_mode = #tpu.pipeline_mode<synchronous>, transform_indices = @transform_11, window_bounds = array<i64: 128, 128>}, {pipeline_mode = #tpu.pipeline_mode<synchronous>, transform_indices = @transform_12, window_bounds = array<i64: 1, 128>}, {pipeline_mode = #tpu.pipeline_mode<synchronous>, transform_indices = @transform_13, window_bounds = array<i64: 1, 128>}, {pipeline_mode = #tpu.pipeline_mode<synchronous>, transform_indices = @transform_14, window_bounds = array<i64: 1, 128>}, {pipeline_mode = #tpu.pipeline_mode<synchronous>, transform_indices = @transform_15, window_bounds = array<i64: 128, 128>}, {pipeline_mode = #tpu.pipeline_mode<synchronous>, transform_indices = @transform_16, window_bounds = array<i64: 1, 128>}, {pipeline_mode = #tpu.pipeline_mode<synchronous>, transform_indices = @transform_17, window_bounds = array<i64: 128, 128>}, {pipeline_mode = #tpu.pipeline_mode<synchronous>, transform_indices = @transform_18, window_bounds = array<i64: 1, 128>}, {pipeline_mode = #tpu.pipeline_mode<synchronous>, transform_indices = @transform_19, window_bounds = array<i64: 7, 128>}, {pipeline_mode = #tpu.pipeline_mode<synchronous>, transform_indices = @transform_20, window_bounds = array<i64: 1, 128>}, {pipeline_mode = #tpu.pipeline_mode<synchronous>, transform_indices = @transform_21, window_bounds = array<i64: 1, 128>}, {pipeline_mode = #tpu.pipeline_mode<synchronous>, transform_indices = @transform_22, window_bounds = array<i64: 128, 128>}, {pipeline_mode = #tpu.pipeline_mode<synchronous>, transform_indices = @transform_23, window_bounds = array<i64: 1, 128>}, {pipeline_mode = #tpu.pipeline_mode<synchronous>, transform_indices = @transform_24, window_bounds = array<i64: 1, 128>}, {pipeline_mode = #tpu.pipeline_mode<synchronous>, transform_indices = @transform_25, window_bounds = array<i64: 1, 128>}, {pipeline_mode = #tpu.pipeline_mode<synchronous>, transform_indices = @transform_26, window_bounds = array<i64: 128, 128>}, {pipeline_mode = #tpu.pipeline_mode<synchronous>, transform_indices = @transform_27, window_bounds = array<i64: 1, 128>}, {pipeline_mode = #tpu.pipeline_mode<synchronous>, transform_indices = @transform_28, window_bounds = array<i64: 128, 128>}, {pipeline_mode = #tpu.pipeline_mode<synchronous>, transform_indices = @transform_29, window_bounds = array<i64: 1, 128>}, {pipeline_mode = #tpu.pipeline_mode<synchronous>, transform_indices = @transform_30, window_bounds = array<i64: 1, 128>}, {pipeline_mode = #tpu.pipeline_mode<synchronous>, transform_indices = @transform_31, window_bounds = array<i64: 1, 128>}, {transform_indices = @transform_32, window_bounds = array<i64: 1, 16, 128>}]} {
    %c0 = arith.constant 0 : index
    %c0_0 = arith.constant 0 : index
    %c0_1 = arith.constant 0 : index
    %0 = vector.load %arg1[%c0, %c0_0, %c0_1] : memref<1x16x128xbf16, #tpu.memory_space<vmem>>, vector<1x16x128xbf16>
    %1 = vector.shape_cast %0 : vector<1x16x128xbf16> to vector<16x128xbf16>
    %2 = arith.extf %1 : vector<16x128xbf16> to vector<16x128xf32>
    %c0_2 = arith.constant 0 : index
    %c0_3 = arith.constant 0 : index
    %3 = vector.load %arg2[%c0_2, %c0_3] : memref<1x128xf32, #tpu.memory_space<vmem>>, vector<1x128xf32>
    %c0_4 = arith.constant 0 : index
    %c0_5 = arith.constant 0 : index
    %4 = vector.load %arg3[%c0_4, %c0_5] : memref<1x128xf32, #tpu.memory_space<vmem>>, vector<1x128xf32>
    %cst = arith.constant dense<0.000000e+00> : vector<16xf32>
    %5 = vector.multi_reduction <add>, %2, %cst [1] : vector<16x128xf32> to vector<16xf32>
    %6 = vector.shape_cast %5 : vector<16xf32> to vector<16x1xf32>
    %cst_6 = arith.constant 3.125000e-02 : f32
    %7 = vector.broadcast %cst_6 : f32 to vector<16x1xf32>
    %8 = arith.mulf %6, %7 : vector<16x1xf32>
    %9 = arith.mulf %2, %2 : vector<16x128xf32>
    %cst_7 = arith.constant dense<0.000000e+00> : vector<16xf32>
    %10 = vector.multi_reduction <add>, %9, %cst_7 [1] : vector<16x128xf32> to vector<16xf32>
    %11 = vector.shape_cast %10 : vector<16xf32> to vector<16x1xf32>
    %cst_8 = arith.constant 3.125000e-02 : f32
    %12 = vector.broadcast %cst_8 : f32 to vector<16x1xf32>
    %13 = arith.mulf %11, %12 : vector<16x1xf32>
    %14 = arith.mulf %8, %8 : vector<16x1xf32>
    %15 = arith.subf %13, %14 : vector<16x1xf32>
    %16 = vector.broadcast %8 : vector<16x1xf32> to vector<16x128xf32>
    %17 = arith.subf %2, %16 : vector<16x128xf32>
    %cst_9 = arith.constant 9.99999974E-6 : f32
    %18 = vector.broadcast %cst_9 : f32 to vector<16x1xf32>
    %19 = arith.addf %15, %18 : vector<16x1xf32>
    %20 = math.rsqrt %19 : vector<16x1xf32>
    %21 = vector.broadcast %20 : vector<16x1xf32> to vector<16x128xf32>
    %22 = arith.mulf %17, %21 : vector<16x128xf32>
    %23 = vector.broadcast %3 : vector<1x128xf32> to vector<16x128xf32>
    %24 = arith.mulf %22, %23 : vector<16x128xf32>
    %25 = vector.broadcast %4 : vector<1x128xf32> to vector<16x128xf32>
    %26 = arith.addf %24, %25 : vector<16x128xf32>
    %27 = arith.truncf %26 : vector<16x128xf32> to vector<16x128xbf16>
    %c0_10 = arith.constant 0 : index
    %c0_11 = arith.constant 0 : index
    %28 = vector.load %arg4[%c0_10, %c0_11] : memref<128x128xbf16, #tpu.memory_space<vmem>>, vector<128x128xbf16>
    %cst_12 = arith.constant dense<0.000000e+00> : vector<16x128xf32>
    %29 = tpu.matmul %27, %28, %cst_12 {dimension_numbers = #tpu.dot_dimension_numbers<[1], [0], [0], [1], [0, 0, 1, 1], [], []>} : vector<16x128xbf16>, vector<128x128xbf16>, vector<16x128xf32> -> vector<16x128xf32>
    %c0_13 = arith.constant 0 : index
    %c0_14 = arith.constant 0 : index
    %30 = vector.load %arg5[%c0_13, %c0_14] : memref<1x128xf32, #tpu.memory_space<vmem>>, vector<1x128xf32>
    %31 = vector.broadcast %30 : vector<1x128xf32> to vector<16x128xf32>
    %32 = arith.addf %29, %31 : vector<16x128xf32>
    %33 = arith.negf %32 : vector<16x128xf32>
    %34 = math.exp %33 : vector<16x128xf32>
    %cst_15 = arith.constant 1.000000e+00 : f32
    %35 = vector.broadcast %cst_15 : f32 to vector<16x128xf32>
    %36 = arith.addf %35, %34 : vector<16x128xf32>
    %37 = arith.divf %35, %36 : vector<16x128xf32>
    %38 = arith.mulf %32, %37 : vector<16x128xf32>
    %39 = arith.truncf %38 : vector<16x128xf32> to vector<16x128xbf16>
    %c0_16 = arith.constant 0 : index
    %c0_17 = arith.constant 0 : index
    %40 = vector.load %arg6[%c0_16, %c0_17] : memref<128x128xbf16, #tpu.memory_space<vmem>>, vector<128x128xbf16>
    %cst_18 = arith.constant dense<0.000000e+00> : vector<16x128xf32>
    %41 = tpu.matmul %39, %40, %cst_18 {dimension_numbers = #tpu.dot_dimension_numbers<[1], [0], [0], [1], [0, 0, 1, 1], [], []>} : vector<16x128xbf16>, vector<128x128xbf16>, vector<16x128xf32> -> vector<16x128xf32>
    %c0_19 = arith.constant 0 : index
    %c0_20 = arith.constant 0 : index
    %42 = vector.load %arg7[%c0_19, %c0_20] : memref<1x128xf32, #tpu.memory_space<vmem>>, vector<1x128xf32>
    %43 = vector.broadcast %42 : vector<1x128xf32> to vector<16x128xf32>
    %44 = arith.addf %41, %43 : vector<16x128xf32>
    %cst_21 = arith.constant 5.000000e-01 : f32
    %45 = vector.broadcast %cst_21 : f32 to vector<16x128xf32>
    %46 = arith.mulf %45, %44 : vector<16x128xf32>
    %47 = arith.addf %2, %46 : vector<16x128xf32>
    %c0_22 = arith.constant 0 : index
    %c0_23 = arith.constant 0 : index
    %48 = vector.load %arg8[%c0_22, %c0_23] : memref<1x128xf32, #tpu.memory_space<vmem>>, vector<1x128xf32>
    %c0_24 = arith.constant 0 : index
    %c0_25 = arith.constant 0 : index
    %49 = vector.load %arg9[%c0_24, %c0_25] : memref<1x128xf32, #tpu.memory_space<vmem>>, vector<1x128xf32>
    %cst_26 = arith.constant dense<0.000000e+00> : vector<16xf32>
    %50 = vector.multi_reduction <add>, %47, %cst_26 [1] : vector<16x128xf32> to vector<16xf32>
    %51 = vector.shape_cast %50 : vector<16xf32> to vector<16x1xf32>
    %cst_27 = arith.constant 3.125000e-02 : f32
    %52 = vector.broadcast %cst_27 : f32 to vector<16x1xf32>
    %53 = arith.mulf %51, %52 : vector<16x1xf32>
    %54 = arith.mulf %47, %47 : vector<16x128xf32>
    %cst_28 = arith.constant dense<0.000000e+00> : vector<16xf32>
    %55 = vector.multi_reduction <add>, %54, %cst_28 [1] : vector<16x128xf32> to vector<16xf32>
    %56 = vector.shape_cast %55 : vector<16xf32> to vector<16x1xf32>
    %cst_29 = arith.constant 3.125000e-02 : f32
    %57 = vector.broadcast %cst_29 : f32 to vector<16x1xf32>
    %58 = arith.mulf %56, %57 : vector<16x1xf32>
    %59 = arith.mulf %53, %53 : vector<16x1xf32>
    %60 = arith.subf %58, %59 : vector<16x1xf32>
    %61 = vector.broadcast %53 : vector<16x1xf32> to vector<16x128xf32>
    %62 = arith.subf %47, %61 : vector<16x128xf32>
    %cst_30 = arith.constant 9.99999974E-6 : f32
    %63 = vector.broadcast %cst_30 : f32 to vector<16x1xf32>
    %64 = arith.addf %60, %63 : vector<16x1xf32>
    %65 = math.rsqrt %64 : vector<16x1xf32>
    %66 = vector.broadcast %65 : vector<16x1xf32> to vector<16x128xf32>
    %67 = arith.mulf %62, %66 : vector<16x128xf32>
    %68 = vector.broadcast %48 : vector<1x128xf32> to vector<16x128xf32>
    %69 = arith.mulf %67, %68 : vector<16x128xf32>
    %70 = vector.broadcast %49 : vector<1x128xf32> to vector<16x128xf32>
    %71 = arith.addf %69, %70 : vector<16x128xf32>
    %72 = arith.truncf %71 : vector<16x128xf32> to vector<16x128xbf16>
    %c0_31 = arith.constant 0 : index
    %c0_32 = arith.constant 0 : index
    %73 = vector.load %arg10[%c0_31, %c0_32] : memref<128x384xbf16, #tpu.memory_space<vmem>>, vector<128x384xbf16>
    %cst_33 = arith.constant dense<0.000000e+00> : vector<16x384xf32>
    %74 = tpu.matmul %72, %73, %cst_33 {dimension_numbers = #tpu.dot_dimension_numbers<[1], [0], [0], [1], [0, 0, 1, 1], [], []>} : vector<16x128xbf16>, vector<128x384xbf16>, vector<16x384xf32> -> vector<16x384xf32>
    %c0_34 = arith.constant 0 : index
    %c0_35 = arith.constant 0 : index
    %75 = vector.load %arg11[%c0_34, %c0_35] : memref<1x384xf32, #tpu.memory_space<vmem>>, vector<1x384xf32>
    %76 = vector.broadcast %75 : vector<1x384xf32> to vector<16x384xf32>
    %77 = arith.addf %74, %76 : vector<16x384xf32>
    %c0_36 = arith.constant 0 : index
    %c0_37 = arith.constant 0 : index
    %78 = vector.load %arg12[%c0_36, %c0_37] : memref<128x128xbf16, #tpu.memory_space<vmem>>, vector<128x128xbf16>
    %c0_38 = arith.constant 0 : index
    %c0_39 = arith.constant 0 : index
    %79 = vector.load %arg13[%c0_38, %c0_39] : memref<1x128xf32, #tpu.memory_space<vmem>>, vector<1x128xf32>
    %80 = vector.broadcast %79 : vector<1x128xf32> to vector<16x128xf32>
    %81 = arith.addf %47, %80 : vector<16x128xf32>
    %82 = vector.extract_strided_slice %77 {offsets = [0, 0], sizes = [16, 8], strides = [1, 1]} : vector<16x384xf32> to vector<16x8xf32>
    %83 = arith.truncf %82 : vector<16x8xf32> to vector<16x8xbf16>
    %84 = vector.extract_strided_slice %77 {offsets = [0, 128], sizes = [16, 8], strides = [1, 1]} : vector<16x384xf32> to vector<16x8xf32>
    %85 = arith.truncf %84 : vector<16x8xf32> to vector<16x8xbf16>
    %86 = vector.extract_strided_slice %77 {offsets = [0, 256], sizes = [16, 8], strides = [1, 1]} : vector<16x384xf32> to vector<16x8xf32>
    %87 = arith.truncf %86 : vector<16x8xf32> to vector<16x8xbf16>
    %cst_40 = arith.constant dense<0.000000e+00> : vector<16x16xf32>
    %88 = tpu.matmul %83, %85, %cst_40 {dimension_numbers = #tpu.dot_dimension_numbers<[1], [1], [0], [0], [0, 0, 1, 0], [], []>} : vector<16x8xbf16>, vector<16x8xbf16>, vector<16x16xf32> -> vector<16x16xf32>
    %cst_41 = arith.constant 0.353553385 : f32
    %89 = vector.broadcast %cst_41 : f32 to vector<16x16xf32>
    %90 = arith.mulf %88, %89 : vector<16x16xf32>
    %cst_42 = arith.constant dense<0xFF800000> : vector<16xf32>
    %91 = vector.multi_reduction <maximumf>, %90, %cst_42 [1] : vector<16x16xf32> to vector<16xf32>
    %92 = vector.shape_cast %91 : vector<16xf32> to vector<16x1xf32>
    %93 = vector.broadcast %92 : vector<16x1xf32> to vector<16x16xf32>
    %94 = arith.subf %90, %93 : vector<16x16xf32>
    %95 = math.exp %94 : vector<16x16xf32>
    %cst_43 = arith.constant dense<0.000000e+00> : vector<16xf32>
    %96 = vector.multi_reduction <add>, %95, %cst_43 [1] : vector<16x16xf32> to vector<16xf32>
    %97 = vector.shape_cast %96 : vector<16xf32> to vector<16x1xf32>
    %98 = tpu.reciprocal %97 {approx = true} : vector<16x1xf32> -> vector<16x1xf32>
    %99 = vector.broadcast %98 : vector<16x1xf32> to vector<16x16xf32>
    %100 = arith.mulf %95, %99 : vector<16x16xf32>
    %101 = arith.truncf %100 : vector<16x16xf32> to vector<16x16xbf16>
    %cst_44 = arith.constant dense<0.000000e+00> : vector<16x8xf32>
    %102 = tpu.matmul %101, %87, %cst_44 {dimension_numbers = #tpu.dot_dimension_numbers<[1], [0], [0], [1], [0, 0, 1, 1], [], []>} : vector<16x16xbf16>, vector<16x8xbf16>, vector<16x8xf32> -> vector<16x8xf32>
    %103 = arith.truncf %102 : vector<16x8xf32> to vector<16x8xbf16>
    %104 = vector.extract_strided_slice %78 {offsets = [0, 0], sizes = [8, 128], strides = [1, 1]} : vector<128x128xbf16> to vector<8x128xbf16>
    %cst_45 = arith.constant dense<0.000000e+00> : vector<16x128xf32>
    %105 = tpu.matmul %103, %104, %cst_45 {dimension_numbers = #tpu.dot_dimension_numbers<[1], [0], [0], [1], [0, 0, 1, 1], [], []>} : vector<16x8xbf16>, vector<8x128xbf16>, vector<16x128xf32> -> vector<16x128xf32>
    %106 = arith.addf %81, %105 : vector<16x128xf32>
    %107 = vector.extract_strided_slice %77 {offsets = [0, 8], sizes = [16, 8], strides = [1, 1]} : vector<16x384xf32> to vector<16x8xf32>
    %108 = arith.truncf %107 : vector<16x8xf32> to vector<16x8xbf16>
    %109 = vector.extract_strided_slice %77 {offsets = [0, 136], sizes = [16, 8], strides = [1, 1]} : vector<16x384xf32> to vector<16x8xf32>
    %110 = arith.truncf %109 : vector<16x8xf32> to vector<16x8xbf16>
    %111 = vector.extract_strided_slice %77 {offsets = [0, 264], sizes = [16, 8], strides = [1, 1]} : vector<16x384xf32> to vector<16x8xf32>
    %112 = arith.truncf %111 : vector<16x8xf32> to vector<16x8xbf16>
    %cst_46 = arith.constant dense<0.000000e+00> : vector<16x16xf32>
    %113 = tpu.matmul %108, %110, %cst_46 {dimension_numbers = #tpu.dot_dimension_numbers<[1], [1], [0], [0], [0, 0, 1, 0], [], []>} : vector<16x8xbf16>, vector<16x8xbf16>, vector<16x16xf32> -> vector<16x16xf32>
    %cst_47 = arith.constant 0.353553385 : f32
    %114 = vector.broadcast %cst_47 : f32 to vector<16x16xf32>
    %115 = arith.mulf %113, %114 : vector<16x16xf32>
    %cst_48 = arith.constant dense<0xFF800000> : vector<16xf32>
    %116 = vector.multi_reduction <maximumf>, %115, %cst_48 [1] : vector<16x16xf32> to vector<16xf32>
    %117 = vector.shape_cast %116 : vector<16xf32> to vector<16x1xf32>
    %118 = vector.broadcast %117 : vector<16x1xf32> to vector<16x16xf32>
    %119 = arith.subf %115, %118 : vector<16x16xf32>
    %120 = math.exp %119 : vector<16x16xf32>
    %cst_49 = arith.constant dense<0.000000e+00> : vector<16xf32>
    %121 = vector.multi_reduction <add>, %120, %cst_49 [1] : vector<16x16xf32> to vector<16xf32>
    %122 = vector.shape_cast %121 : vector<16xf32> to vector<16x1xf32>
    %123 = tpu.reciprocal %122 {approx = true} : vector<16x1xf32> -> vector<16x1xf32>
    %124 = vector.broadcast %123 : vector<16x1xf32> to vector<16x16xf32>
    %125 = arith.mulf %120, %124 : vector<16x16xf32>
    %126 = arith.truncf %125 : vector<16x16xf32> to vector<16x16xbf16>
    %cst_50 = arith.constant dense<0.000000e+00> : vector<16x8xf32>
    %127 = tpu.matmul %126, %112, %cst_50 {dimension_numbers = #tpu.dot_dimension_numbers<[1], [0], [0], [1], [0, 0, 1, 1], [], []>} : vector<16x16xbf16>, vector<16x8xbf16>, vector<16x8xf32> -> vector<16x8xf32>
    %128 = arith.truncf %127 : vector<16x8xf32> to vector<16x8xbf16>
    %129 = vector.extract_strided_slice %78 {offsets = [8, 0], sizes = [8, 128], strides = [1, 1]} : vector<128x128xbf16> to vector<8x128xbf16>
    %cst_51 = arith.constant dense<0.000000e+00> : vector<16x128xf32>
    %130 = tpu.matmul %128, %129, %cst_51 {dimension_numbers = #tpu.dot_dimension_numbers<[1], [0], [0], [1], [0, 0, 1, 1], [], []>} : vector<16x8xbf16>, vector<8x128xbf16>, vector<16x128xf32> -> vector<16x128xf32>
    %131 = arith.addf %106, %130 : vector<16x128xf32>
    %132 = vector.extract_strided_slice %77 {offsets = [0, 16], sizes = [16, 8], strides = [1, 1]} : vector<16x384xf32> to vector<16x8xf32>
    %133 = arith.truncf %132 : vector<16x8xf32> to vector<16x8xbf16>
    %134 = vector.extract_strided_slice %77 {offsets = [0, 144], sizes = [16, 8], strides = [1, 1]} : vector<16x384xf32> to vector<16x8xf32>
    %135 = arith.truncf %134 : vector<16x8xf32> to vector<16x8xbf16>
    %136 = vector.extract_strided_slice %77 {offsets = [0, 272], sizes = [16, 8], strides = [1, 1]} : vector<16x384xf32> to vector<16x8xf32>
    %137 = arith.truncf %136 : vector<16x8xf32> to vector<16x8xbf16>
    %cst_52 = arith.constant dense<0.000000e+00> : vector<16x16xf32>
    %138 = tpu.matmul %133, %135, %cst_52 {dimension_numbers = #tpu.dot_dimension_numbers<[1], [1], [0], [0], [0, 0, 1, 0], [], []>} : vector<16x8xbf16>, vector<16x8xbf16>, vector<16x16xf32> -> vector<16x16xf32>
    %cst_53 = arith.constant 0.353553385 : f32
    %139 = vector.broadcast %cst_53 : f32 to vector<16x16xf32>
    %140 = arith.mulf %138, %139 : vector<16x16xf32>
    %cst_54 = arith.constant dense<0xFF800000> : vector<16xf32>
    %141 = vector.multi_reduction <maximumf>, %140, %cst_54 [1] : vector<16x16xf32> to vector<16xf32>
    %142 = vector.shape_cast %141 : vector<16xf32> to vector<16x1xf32>
    %143 = vector.broadcast %142 : vector<16x1xf32> to vector<16x16xf32>
    %144 = arith.subf %140, %143 : vector<16x16xf32>
    %145 = math.exp %144 : vector<16x16xf32>
    %cst_55 = arith.constant dense<0.000000e+00> : vector<16xf32>
    %146 = vector.multi_reduction <add>, %145, %cst_55 [1] : vector<16x16xf32> to vector<16xf32>
    %147 = vector.shape_cast %146 : vector<16xf32> to vector<16x1xf32>
    %148 = tpu.reciprocal %147 {approx = true} : vector<16x1xf32> -> vector<16x1xf32>
    %149 = vector.broadcast %148 : vector<16x1xf32> to vector<16x16xf32>
    %150 = arith.mulf %145, %149 : vector<16x16xf32>
    %151 = arith.truncf %150 : vector<16x16xf32> to vector<16x16xbf16>
    %cst_56 = arith.constant dense<0.000000e+00> : vector<16x8xf32>
    %152 = tpu.matmul %151, %137, %cst_56 {dimension_numbers = #tpu.dot_dimension_numbers<[1], [0], [0], [1], [0, 0, 1, 1], [], []>} : vector<16x16xbf16>, vector<16x8xbf16>, vector<16x8xf32> -> vector<16x8xf32>
    %153 = arith.truncf %152 : vector<16x8xf32> to vector<16x8xbf16>
    %154 = vector.extract_strided_slice %78 {offsets = [16, 0], sizes = [8, 128], strides = [1, 1]} : vector<128x128xbf16> to vector<8x128xbf16>
    %cst_57 = arith.constant dense<0.000000e+00> : vector<16x128xf32>
    %155 = tpu.matmul %153, %154, %cst_57 {dimension_numbers = #tpu.dot_dimension_numbers<[1], [0], [0], [1], [0, 0, 1, 1], [], []>} : vector<16x8xbf16>, vector<8x128xbf16>, vector<16x128xf32> -> vector<16x128xf32>
    %156 = arith.addf %131, %155 : vector<16x128xf32>
    %157 = vector.extract_strided_slice %77 {offsets = [0, 24], sizes = [16, 8], strides = [1, 1]} : vector<16x384xf32> to vector<16x8xf32>
    %158 = arith.truncf %157 : vector<16x8xf32> to vector<16x8xbf16>
    %159 = vector.extract_strided_slice %77 {offsets = [0, 152], sizes = [16, 8], strides = [1, 1]} : vector<16x384xf32> to vector<16x8xf32>
    %160 = arith.truncf %159 : vector<16x8xf32> to vector<16x8xbf16>
    %161 = vector.extract_strided_slice %77 {offsets = [0, 280], sizes = [16, 8], strides = [1, 1]} : vector<16x384xf32> to vector<16x8xf32>
    %162 = arith.truncf %161 : vector<16x8xf32> to vector<16x8xbf16>
    %cst_58 = arith.constant dense<0.000000e+00> : vector<16x16xf32>
    %163 = tpu.matmul %158, %160, %cst_58 {dimension_numbers = #tpu.dot_dimension_numbers<[1], [1], [0], [0], [0, 0, 1, 0], [], []>} : vector<16x8xbf16>, vector<16x8xbf16>, vector<16x16xf32> -> vector<16x16xf32>
    %cst_59 = arith.constant 0.353553385 : f32
    %164 = vector.broadcast %cst_59 : f32 to vector<16x16xf32>
    %165 = arith.mulf %163, %164 : vector<16x16xf32>
    %cst_60 = arith.constant dense<0xFF800000> : vector<16xf32>
    %166 = vector.multi_reduction <maximumf>, %165, %cst_60 [1] : vector<16x16xf32> to vector<16xf32>
    %167 = vector.shape_cast %166 : vector<16xf32> to vector<16x1xf32>
    %168 = vector.broadcast %167 : vector<16x1xf32> to vector<16x16xf32>
    %169 = arith.subf %165, %168 : vector<16x16xf32>
    %170 = math.exp %169 : vector<16x16xf32>
    %cst_61 = arith.constant dense<0.000000e+00> : vector<16xf32>
    %171 = vector.multi_reduction <add>, %170, %cst_61 [1] : vector<16x16xf32> to vector<16xf32>
    %172 = vector.shape_cast %171 : vector<16xf32> to vector<16x1xf32>
    %173 = tpu.reciprocal %172 {approx = true} : vector<16x1xf32> -> vector<16x1xf32>
    %174 = vector.broadcast %173 : vector<16x1xf32> to vector<16x16xf32>
    %175 = arith.mulf %170, %174 : vector<16x16xf32>
    %176 = arith.truncf %175 : vector<16x16xf32> to vector<16x16xbf16>
    %cst_62 = arith.constant dense<0.000000e+00> : vector<16x8xf32>
    %177 = tpu.matmul %176, %162, %cst_62 {dimension_numbers = #tpu.dot_dimension_numbers<[1], [0], [0], [1], [0, 0, 1, 1], [], []>} : vector<16x16xbf16>, vector<16x8xbf16>, vector<16x8xf32> -> vector<16x8xf32>
    %178 = arith.truncf %177 : vector<16x8xf32> to vector<16x8xbf16>
    %179 = vector.extract_strided_slice %78 {offsets = [24, 0], sizes = [8, 128], strides = [1, 1]} : vector<128x128xbf16> to vector<8x128xbf16>
    %cst_63 = arith.constant dense<0.000000e+00> : vector<16x128xf32>
    %180 = tpu.matmul %178, %179, %cst_63 {dimension_numbers = #tpu.dot_dimension_numbers<[1], [0], [0], [1], [0, 0, 1, 1], [], []>} : vector<16x8xbf16>, vector<8x128xbf16>, vector<16x128xf32> -> vector<16x128xf32>
    %181 = arith.addf %156, %180 : vector<16x128xf32>
    %c0_64 = arith.constant 0 : index
    %c0_65 = arith.constant 0 : index
    %182 = vector.load %arg14[%c0_64, %c0_65] : memref<1x128xf32, #tpu.memory_space<vmem>>, vector<1x128xf32>
    %c0_66 = arith.constant 0 : index
    %c0_67 = arith.constant 0 : index
    %183 = vector.load %arg15[%c0_66, %c0_67] : memref<1x128xf32, #tpu.memory_space<vmem>>, vector<1x128xf32>
    %cst_68 = arith.constant dense<0.000000e+00> : vector<16xf32>
    %184 = vector.multi_reduction <add>, %181, %cst_68 [1] : vector<16x128xf32> to vector<16xf32>
    %185 = vector.shape_cast %184 : vector<16xf32> to vector<16x1xf32>
    %cst_69 = arith.constant 3.125000e-02 : f32
    %186 = vector.broadcast %cst_69 : f32 to vector<16x1xf32>
    %187 = arith.mulf %185, %186 : vector<16x1xf32>
    %188 = arith.mulf %181, %181 : vector<16x128xf32>
    %cst_70 = arith.constant dense<0.000000e+00> : vector<16xf32>
    %189 = vector.multi_reduction <add>, %188, %cst_70 [1] : vector<16x128xf32> to vector<16xf32>
    %190 = vector.shape_cast %189 : vector<16xf32> to vector<16x1xf32>
    %cst_71 = arith.constant 3.125000e-02 : f32
    %191 = vector.broadcast %cst_71 : f32 to vector<16x1xf32>
    %192 = arith.mulf %190, %191 : vector<16x1xf32>
    %193 = arith.mulf %187, %187 : vector<16x1xf32>
    %194 = arith.subf %192, %193 : vector<16x1xf32>
    %195 = vector.broadcast %187 : vector<16x1xf32> to vector<16x128xf32>
    %196 = arith.subf %181, %195 : vector<16x128xf32>
    %cst_72 = arith.constant 9.99999974E-6 : f32
    %197 = vector.broadcast %cst_72 : f32 to vector<16x1xf32>
    %198 = arith.addf %194, %197 : vector<16x1xf32>
    %199 = math.rsqrt %198 : vector<16x1xf32>
    %200 = vector.broadcast %199 : vector<16x1xf32> to vector<16x128xf32>
    %201 = arith.mulf %196, %200 : vector<16x128xf32>
    %202 = vector.broadcast %182 : vector<1x128xf32> to vector<16x128xf32>
    %203 = arith.mulf %201, %202 : vector<16x128xf32>
    %204 = vector.broadcast %183 : vector<1x128xf32> to vector<16x128xf32>
    %205 = arith.addf %203, %204 : vector<16x128xf32>
    %206 = arith.truncf %205 : vector<16x128xf32> to vector<16x128xbf16>
    %c0_73 = arith.constant 0 : index
    %c0_74 = arith.constant 0 : index
    %207 = vector.load %arg16[%c0_73, %c0_74] : memref<128x128xbf16, #tpu.memory_space<vmem>>, vector<128x128xbf16>
    %cst_75 = arith.constant dense<0.000000e+00> : vector<16x128xf32>
    %208 = tpu.matmul %206, %207, %cst_75 {dimension_numbers = #tpu.dot_dimension_numbers<[1], [0], [0], [1], [0, 0, 1, 1], [], []>} : vector<16x128xbf16>, vector<128x128xbf16>, vector<16x128xf32> -> vector<16x128xf32>
    %c0_76 = arith.constant 0 : index
    %c0_77 = arith.constant 0 : index
    %209 = vector.load %arg17[%c0_76, %c0_77] : memref<1x128xf32, #tpu.memory_space<vmem>>, vector<1x128xf32>
    %210 = vector.broadcast %209 : vector<1x128xf32> to vector<16x128xf32>
    %211 = arith.addf %208, %210 : vector<16x128xf32>
    %c0_78 = arith.constant 0 : index
    %c0_79 = arith.constant 0 : index
    %212 = vector.load %arg18[%c0_78, %c0_79] : memref<128x128xbf16, #tpu.memory_space<vmem>>, vector<128x128xbf16>
    %cst_80 = arith.constant dense<0.000000e+00> : vector<16x128xf32>
    %213 = tpu.matmul %206, %212, %cst_80 {dimension_numbers = #tpu.dot_dimension_numbers<[1], [0], [0], [1], [0, 0, 1, 1], [], []>} : vector<16x128xbf16>, vector<128x128xbf16>, vector<16x128xf32> -> vector<16x128xf32>
    %c0_81 = arith.constant 0 : index
    %c0_82 = arith.constant 0 : index
    %214 = vector.load %arg19[%c0_81, %c0_82] : memref<1x128xf32, #tpu.memory_space<vmem>>, vector<1x128xf32>
    %215 = vector.broadcast %214 : vector<1x128xf32> to vector<16x128xf32>
    %216 = arith.addf %213, %215 : vector<16x128xf32>
    %217 = arith.negf %216 : vector<16x128xf32>
    %218 = math.exp %217 : vector<16x128xf32>
    %cst_83 = arith.constant 1.000000e+00 : f32
    %219 = vector.broadcast %cst_83 : f32 to vector<16x128xf32>
    %220 = arith.addf %219, %218 : vector<16x128xf32>
    %221 = arith.divf %219, %220 : vector<16x128xf32>
    %222 = arith.mulf %211, %221 : vector<16x128xf32>
    %223 = tpu.iota {dimensions = array<i32: 0>} : vector<16x128xi32>
    %c0_84 = arith.constant 0 : index
    %c0_85 = arith.constant 0 : index
    %224 = vector.load %arg20[%c0_84, %c0_85] : memref<7x128xf32, #tpu.memory_space<vmem>>, vector<7x128xf32>
    %cst_86 = arith.constant 0.000000e+00 : f32
    %225 = vector.broadcast %cst_86 : f32 to vector<16x128xf32>
    %c3_i32 = arith.constant 3 : i32
    %226 = tpu.dynamic_rotate %222 by %c3_i32 dim 0 : vector<16x128xf32>, i32 -> vector<16x128xf32>
    %c-3_i32 = arith.constant -3 : i32
    %227 = vector.broadcast %c-3_i32 : i32 to vector<16x128xi32>
    %228 = arith.addi %223, %227 : vector<16x128xi32>
    %c0_i32 = arith.constant 0 : i32
    %229 = vector.broadcast %c0_i32 : i32 to vector<16x128xi32>
    %230 = arith.cmpi sge, %228, %229 : vector<16x128xi32>
    %c-3_i32_87 = arith.constant -3 : i32
    %231 = vector.broadcast %c-3_i32_87 : i32 to vector<16x128xi32>
    %232 = arith.addi %223, %231 : vector<16x128xi32>
    %c16_i32 = arith.constant 16 : i32
    %233 = vector.broadcast %c16_i32 : i32 to vector<16x128xi32>
    %234 = arith.cmpi slt, %232, %233 : vector<16x128xi32>
    %235 = arith.andi %230, %234 : vector<16x128xi1>
    %cst_88 = arith.constant 0.000000e+00 : f32
    %236 = vector.broadcast %cst_88 : f32 to vector<16x128xf32>
    %237 = arith.select %235, %226, %236 : vector<16x128xi1>, vector<16x128xf32>
    %238 = vector.extract_strided_slice %224 {offsets = [0, 0], sizes = [1, 128], strides = [1, 1]} : vector<7x128xf32> to vector<1x128xf32>
    %239 = vector.broadcast %238 : vector<1x128xf32> to vector<16x128xf32>
    %240 = arith.mulf %237, %239 : vector<16x128xf32>
    %241 = arith.addf %225, %240 : vector<16x128xf32>
    %c2_i32 = arith.constant 2 : i32
    %242 = tpu.dynamic_rotate %222 by %c2_i32 dim 0 : vector<16x128xf32>, i32 -> vector<16x128xf32>
    %c-2_i32 = arith.constant -2 : i32
    %243 = vector.broadcast %c-2_i32 : i32 to vector<16x128xi32>
    %244 = arith.addi %223, %243 : vector<16x128xi32>
    %c0_i32_89 = arith.constant 0 : i32
    %245 = vector.broadcast %c0_i32_89 : i32 to vector<16x128xi32>
    %246 = arith.cmpi sge, %244, %245 : vector<16x128xi32>
    %c-2_i32_90 = arith.constant -2 : i32
    %247 = vector.broadcast %c-2_i32_90 : i32 to vector<16x128xi32>
    %248 = arith.addi %223, %247 : vector<16x128xi32>
    %c16_i32_91 = arith.constant 16 : i32
    %249 = vector.broadcast %c16_i32_91 : i32 to vector<16x128xi32>
    %250 = arith.cmpi slt, %248, %249 : vector<16x128xi32>
    %251 = arith.andi %246, %250 : vector<16x128xi1>
    %cst_92 = arith.constant 0.000000e+00 : f32
    %252 = vector.broadcast %cst_92 : f32 to vector<16x128xf32>
    %253 = arith.select %251, %242, %252 : vector<16x128xi1>, vector<16x128xf32>
    %254 = vector.extract_strided_slice %224 {offsets = [1, 0], sizes = [1, 128], strides = [1, 1]} : vector<7x128xf32> to vector<1x128xf32>
    %255 = vector.broadcast %254 : vector<1x128xf32> to vector<16x128xf32>
    %256 = arith.mulf %253, %255 : vector<16x128xf32>
    %257 = arith.addf %241, %256 : vector<16x128xf32>
    %c1_i32 = arith.constant 1 : i32
    %258 = tpu.dynamic_rotate %222 by %c1_i32 dim 0 : vector<16x128xf32>, i32 -> vector<16x128xf32>
    %c-1_i32 = arith.constant -1 : i32
    %259 = vector.broadcast %c-1_i32 : i32 to vector<16x128xi32>
    %260 = arith.addi %223, %259 : vector<16x128xi32>
    %c0_i32_93 = arith.constant 0 : i32
    %261 = vector.broadcast %c0_i32_93 : i32 to vector<16x128xi32>
    %262 = arith.cmpi sge, %260, %261 : vector<16x128xi32>
    %c-1_i32_94 = arith.constant -1 : i32
    %263 = vector.broadcast %c-1_i32_94 : i32 to vector<16x128xi32>
    %264 = arith.addi %223, %263 : vector<16x128xi32>
    %c16_i32_95 = arith.constant 16 : i32
    %265 = vector.broadcast %c16_i32_95 : i32 to vector<16x128xi32>
    %266 = arith.cmpi slt, %264, %265 : vector<16x128xi32>
    %267 = arith.andi %262, %266 : vector<16x128xi1>
    %cst_96 = arith.constant 0.000000e+00 : f32
    %268 = vector.broadcast %cst_96 : f32 to vector<16x128xf32>
    %269 = arith.select %267, %258, %268 : vector<16x128xi1>, vector<16x128xf32>
    %270 = vector.extract_strided_slice %224 {offsets = [2, 0], sizes = [1, 128], strides = [1, 1]} : vector<7x128xf32> to vector<1x128xf32>
    %271 = vector.broadcast %270 : vector<1x128xf32> to vector<16x128xf32>
    %272 = arith.mulf %269, %271 : vector<16x128xf32>
    %273 = arith.addf %257, %272 : vector<16x128xf32>
    %c0_i32_97 = arith.constant 0 : i32
    %274 = vector.broadcast %c0_i32_97 : i32 to vector<16x128xi32>
    %275 = arith.addi %223, %274 : vector<16x128xi32>
    %c0_i32_98 = arith.constant 0 : i32
    %276 = vector.broadcast %c0_i32_98 : i32 to vector<16x128xi32>
    %277 = arith.cmpi sge, %275, %276 : vector<16x128xi32>
    %c0_i32_99 = arith.constant 0 : i32
    %278 = vector.broadcast %c0_i32_99 : i32 to vector<16x128xi32>
    %279 = arith.addi %223, %278 : vector<16x128xi32>
    %c16_i32_100 = arith.constant 16 : i32
    %280 = vector.broadcast %c16_i32_100 : i32 to vector<16x128xi32>
    %281 = arith.cmpi slt, %279, %280 : vector<16x128xi32>
    %282 = arith.andi %277, %281 : vector<16x128xi1>
    %cst_101 = arith.constant 0.000000e+00 : f32
    %283 = vector.broadcast %cst_101 : f32 to vector<16x128xf32>
    %284 = arith.select %282, %222, %283 : vector<16x128xi1>, vector<16x128xf32>
    %285 = vector.extract_strided_slice %224 {offsets = [3, 0], sizes = [1, 128], strides = [1, 1]} : vector<7x128xf32> to vector<1x128xf32>
    %286 = vector.broadcast %285 : vector<1x128xf32> to vector<16x128xf32>
    %287 = arith.mulf %284, %286 : vector<16x128xf32>
    %288 = arith.addf %273, %287 : vector<16x128xf32>
    %c15_i32 = arith.constant 15 : i32
    %289 = tpu.dynamic_rotate %222 by %c15_i32 dim 0 : vector<16x128xf32>, i32 -> vector<16x128xf32>
    %c1_i32_102 = arith.constant 1 : i32
    %290 = vector.broadcast %c1_i32_102 : i32 to vector<16x128xi32>
    %291 = arith.addi %223, %290 : vector<16x128xi32>
    %c0_i32_103 = arith.constant 0 : i32
    %292 = vector.broadcast %c0_i32_103 : i32 to vector<16x128xi32>
    %293 = arith.cmpi sge, %291, %292 : vector<16x128xi32>
    %c1_i32_104 = arith.constant 1 : i32
    %294 = vector.broadcast %c1_i32_104 : i32 to vector<16x128xi32>
    %295 = arith.addi %223, %294 : vector<16x128xi32>
    %c16_i32_105 = arith.constant 16 : i32
    %296 = vector.broadcast %c16_i32_105 : i32 to vector<16x128xi32>
    %297 = arith.cmpi slt, %295, %296 : vector<16x128xi32>
    %298 = arith.andi %293, %297 : vector<16x128xi1>
    %cst_106 = arith.constant 0.000000e+00 : f32
    %299 = vector.broadcast %cst_106 : f32 to vector<16x128xf32>
    %300 = arith.select %298, %289, %299 : vector<16x128xi1>, vector<16x128xf32>
    %301 = vector.extract_strided_slice %224 {offsets = [4, 0], sizes = [1, 128], strides = [1, 1]} : vector<7x128xf32> to vector<1x128xf32>
    %302 = vector.broadcast %301 : vector<1x128xf32> to vector<16x128xf32>
    %303 = arith.mulf %300, %302 : vector<16x128xf32>
    %304 = arith.addf %288, %303 : vector<16x128xf32>
    %c14_i32 = arith.constant 14 : i32
    %305 = tpu.dynamic_rotate %222 by %c14_i32 dim 0 : vector<16x128xf32>, i32 -> vector<16x128xf32>
    %c2_i32_107 = arith.constant 2 : i32
    %306 = vector.broadcast %c2_i32_107 : i32 to vector<16x128xi32>
    %307 = arith.addi %223, %306 : vector<16x128xi32>
    %c0_i32_108 = arith.constant 0 : i32
    %308 = vector.broadcast %c0_i32_108 : i32 to vector<16x128xi32>
    %309 = arith.cmpi sge, %307, %308 : vector<16x128xi32>
    %c2_i32_109 = arith.constant 2 : i32
    %310 = vector.broadcast %c2_i32_109 : i32 to vector<16x128xi32>
    %311 = arith.addi %223, %310 : vector<16x128xi32>
    %c16_i32_110 = arith.constant 16 : i32
    %312 = vector.broadcast %c16_i32_110 : i32 to vector<16x128xi32>
    %313 = arith.cmpi slt, %311, %312 : vector<16x128xi32>
    %314 = arith.andi %309, %313 : vector<16x128xi1>
    %cst_111 = arith.constant 0.000000e+00 : f32
    %315 = vector.broadcast %cst_111 : f32 to vector<16x128xf32>
    %316 = arith.select %314, %305, %315 : vector<16x128xi1>, vector<16x128xf32>
    %317 = vector.extract_strided_slice %224 {offsets = [5, 0], sizes = [1, 128], strides = [1, 1]} : vector<7x128xf32> to vector<1x128xf32>
    %318 = vector.broadcast %317 : vector<1x128xf32> to vector<16x128xf32>
    %319 = arith.mulf %316, %318 : vector<16x128xf32>
    %320 = arith.addf %304, %319 : vector<16x128xf32>
    %c13_i32 = arith.constant 13 : i32
    %321 = tpu.dynamic_rotate %222 by %c13_i32 dim 0 : vector<16x128xf32>, i32 -> vector<16x128xf32>
    %c3_i32_112 = arith.constant 3 : i32
    %322 = vector.broadcast %c3_i32_112 : i32 to vector<16x128xi32>
    %323 = arith.addi %223, %322 : vector<16x128xi32>
    %c0_i32_113 = arith.constant 0 : i32
    %324 = vector.broadcast %c0_i32_113 : i32 to vector<16x128xi32>
    %325 = arith.cmpi sge, %323, %324 : vector<16x128xi32>
    %c3_i32_114 = arith.constant 3 : i32
    %326 = vector.broadcast %c3_i32_114 : i32 to vector<16x128xi32>
    %327 = arith.addi %223, %326 : vector<16x128xi32>
    %c16_i32_115 = arith.constant 16 : i32
    %328 = vector.broadcast %c16_i32_115 : i32 to vector<16x128xi32>
    %329 = arith.cmpi slt, %327, %328 : vector<16x128xi32>
    %330 = arith.andi %325, %329 : vector<16x128xi1>
    %cst_116 = arith.constant 0.000000e+00 : f32
    %331 = vector.broadcast %cst_116 : f32 to vector<16x128xf32>
    %332 = arith.select %330, %321, %331 : vector<16x128xi1>, vector<16x128xf32>
    %333 = vector.extract_strided_slice %224 {offsets = [6, 0], sizes = [1, 128], strides = [1, 1]} : vector<7x128xf32> to vector<1x128xf32>
    %334 = vector.broadcast %333 : vector<1x128xf32> to vector<16x128xf32>
    %335 = arith.mulf %332, %334 : vector<16x128xf32>
    %336 = arith.addf %320, %335 : vector<16x128xf32>
    %c0_117 = arith.constant 0 : index
    %c0_118 = arith.constant 0 : index
    %337 = vector.load %arg21[%c0_117, %c0_118] : memref<1x128xf32, #tpu.memory_space<vmem>>, vector<1x128xf32>
    %338 = vector.broadcast %337 : vector<1x128xf32> to vector<16x128xf32>
    %339 = arith.mulf %336, %338 : vector<16x128xf32>
    %c0_119 = arith.constant 0 : index
    %c0_120 = arith.constant 0 : index
    %340 = vector.load %arg22[%c0_119, %c0_120] : memref<1x128xf32, #tpu.memory_space<vmem>>, vector<1x128xf32>
    %341 = vector.broadcast %340 : vector<1x128xf32> to vector<16x128xf32>
    %342 = arith.addf %339, %341 : vector<16x128xf32>
    %343 = arith.negf %342 : vector<16x128xf32>
    %344 = math.exp %343 : vector<16x128xf32>
    %cst_121 = arith.constant 1.000000e+00 : f32
    %345 = vector.broadcast %cst_121 : f32 to vector<16x128xf32>
    %346 = arith.addf %345, %344 : vector<16x128xf32>
    %347 = arith.divf %345, %346 : vector<16x128xf32>
    %348 = arith.mulf %342, %347 : vector<16x128xf32>
    %349 = arith.truncf %348 : vector<16x128xf32> to vector<16x128xbf16>
    %c0_122 = arith.constant 0 : index
    %c0_123 = arith.constant 0 : index
    %350 = vector.load %arg23[%c0_122, %c0_123] : memref<128x128xbf16, #tpu.memory_space<vmem>>, vector<128x128xbf16>
    %cst_124 = arith.constant dense<0.000000e+00> : vector<16x128xf32>
    %351 = tpu.matmul %349, %350, %cst_124 {dimension_numbers = #tpu.dot_dimension_numbers<[1], [0], [0], [1], [0, 0, 1, 1], [], []>} : vector<16x128xbf16>, vector<128x128xbf16>, vector<16x128xf32> -> vector<16x128xf32>
    %c0_125 = arith.constant 0 : index
    %c0_126 = arith.constant 0 : index
    %352 = vector.load %arg24[%c0_125, %c0_126] : memref<1x128xf32, #tpu.memory_space<vmem>>, vector<1x128xf32>
    %353 = vector.broadcast %352 : vector<1x128xf32> to vector<16x128xf32>
    %354 = arith.addf %351, %353 : vector<16x128xf32>
    %355 = arith.addf %181, %354 : vector<16x128xf32>
    %c0_127 = arith.constant 0 : index
    %c0_128 = arith.constant 0 : index
    %356 = vector.load %arg25[%c0_127, %c0_128] : memref<1x128xf32, #tpu.memory_space<vmem>>, vector<1x128xf32>
    %c0_129 = arith.constant 0 : index
    %c0_130 = arith.constant 0 : index
    %357 = vector.load %arg26[%c0_129, %c0_130] : memref<1x128xf32, #tpu.memory_space<vmem>>, vector<1x128xf32>
    %cst_131 = arith.constant dense<0.000000e+00> : vector<16xf32>
    %358 = vector.multi_reduction <add>, %355, %cst_131 [1] : vector<16x128xf32> to vector<16xf32>
    %359 = vector.shape_cast %358 : vector<16xf32> to vector<16x1xf32>
    %cst_132 = arith.constant 3.125000e-02 : f32
    %360 = vector.broadcast %cst_132 : f32 to vector<16x1xf32>
    %361 = arith.mulf %359, %360 : vector<16x1xf32>
    %362 = arith.mulf %355, %355 : vector<16x128xf32>
    %cst_133 = arith.constant dense<0.000000e+00> : vector<16xf32>
    %363 = vector.multi_reduction <add>, %362, %cst_133 [1] : vector<16x128xf32> to vector<16xf32>
    %364 = vector.shape_cast %363 : vector<16xf32> to vector<16x1xf32>
    %cst_134 = arith.constant 3.125000e-02 : f32
    %365 = vector.broadcast %cst_134 : f32 to vector<16x1xf32>
    %366 = arith.mulf %364, %365 : vector<16x1xf32>
    %367 = arith.mulf %361, %361 : vector<16x1xf32>
    %368 = arith.subf %366, %367 : vector<16x1xf32>
    %369 = vector.broadcast %361 : vector<16x1xf32> to vector<16x128xf32>
    %370 = arith.subf %355, %369 : vector<16x128xf32>
    %cst_135 = arith.constant 9.99999974E-6 : f32
    %371 = vector.broadcast %cst_135 : f32 to vector<16x1xf32>
    %372 = arith.addf %368, %371 : vector<16x1xf32>
    %373 = math.rsqrt %372 : vector<16x1xf32>
    %374 = vector.broadcast %373 : vector<16x1xf32> to vector<16x128xf32>
    %375 = arith.mulf %370, %374 : vector<16x128xf32>
    %376 = vector.broadcast %356 : vector<1x128xf32> to vector<16x128xf32>
    %377 = arith.mulf %375, %376 : vector<16x128xf32>
    %378 = vector.broadcast %357 : vector<1x128xf32> to vector<16x128xf32>
    %379 = arith.addf %377, %378 : vector<16x128xf32>
    %380 = arith.truncf %379 : vector<16x128xf32> to vector<16x128xbf16>
    %c0_136 = arith.constant 0 : index
    %c0_137 = arith.constant 0 : index
    %381 = vector.load %arg27[%c0_136, %c0_137] : memref<128x128xbf16, #tpu.memory_space<vmem>>, vector<128x128xbf16>
    %cst_138 = arith.constant dense<0.000000e+00> : vector<16x128xf32>
    %382 = tpu.matmul %380, %381, %cst_138 {dimension_numbers = #tpu.dot_dimension_numbers<[1], [0], [0], [1], [0, 0, 1, 1], [], []>} : vector<16x128xbf16>, vector<128x128xbf16>, vector<16x128xf32> -> vector<16x128xf32>
    %c0_139 = arith.constant 0 : index
    %c0_140 = arith.constant 0 : index
    %383 = vector.load %arg28[%c0_139, %c0_140] : memref<1x128xf32, #tpu.memory_space<vmem>>, vector<1x128xf32>
    %384 = vector.broadcast %383 : vector<1x128xf32> to vector<16x128xf32>
    %385 = arith.addf %382, %384 : vector<16x128xf32>
    %386 = arith.negf %385 : vector<16x128xf32>
    %387 = math.exp %386 : vector<16x128xf32>
    %cst_141 = arith.constant 1.000000e+00 : f32
    %388 = vector.broadcast %cst_141 : f32 to vector<16x128xf32>
    %389 = arith.addf %388, %387 : vector<16x128xf32>
    %390 = arith.divf %388, %389 : vector<16x128xf32>
    %391 = arith.mulf %385, %390 : vector<16x128xf32>
    %392 = arith.truncf %391 : vector<16x128xf32> to vector<16x128xbf16>
    %c0_142 = arith.constant 0 : index
    %c0_143 = arith.constant 0 : index
    %393 = vector.load %arg29[%c0_142, %c0_143] : memref<128x128xbf16, #tpu.memory_space<vmem>>, vector<128x128xbf16>
    %cst_144 = arith.constant dense<0.000000e+00> : vector<16x128xf32>
    %394 = tpu.matmul %392, %393, %cst_144 {dimension_numbers = #tpu.dot_dimension_numbers<[1], [0], [0], [1], [0, 0, 1, 1], [], []>} : vector<16x128xbf16>, vector<128x128xbf16>, vector<16x128xf32> -> vector<16x128xf32>
    %c0_145 = arith.constant 0 : index
    %c0_146 = arith.constant 0 : index
    %395 = vector.load %arg30[%c0_145, %c0_146] : memref<1x128xf32, #tpu.memory_space<vmem>>, vector<1x128xf32>
    %396 = vector.broadcast %395 : vector<1x128xf32> to vector<16x128xf32>
    %397 = arith.addf %394, %396 : vector<16x128xf32>
    %cst_147 = arith.constant 5.000000e-01 : f32
    %398 = vector.broadcast %cst_147 : f32 to vector<16x128xf32>
    %399 = arith.mulf %398, %397 : vector<16x128xf32>
    %400 = arith.addf %355, %399 : vector<16x128xf32>
    %c0_148 = arith.constant 0 : index
    %c0_149 = arith.constant 0 : index
    %401 = vector.load %arg31[%c0_148, %c0_149] : memref<1x128xf32, #tpu.memory_space<vmem>>, vector<1x128xf32>
    %c0_150 = arith.constant 0 : index
    %c0_151 = arith.constant 0 : index
    %402 = vector.load %arg32[%c0_150, %c0_151] : memref<1x128xf32, #tpu.memory_space<vmem>>, vector<1x128xf32>
    %cst_152 = arith.constant dense<0.000000e+00> : vector<16xf32>
    %403 = vector.multi_reduction <add>, %400, %cst_152 [1] : vector<16x128xf32> to vector<16xf32>
    %404 = vector.shape_cast %403 : vector<16xf32> to vector<16x1xf32>
    %cst_153 = arith.constant 3.125000e-02 : f32
    %405 = vector.broadcast %cst_153 : f32 to vector<16x1xf32>
    %406 = arith.mulf %404, %405 : vector<16x1xf32>
    %407 = arith.mulf %400, %400 : vector<16x128xf32>
    %cst_154 = arith.constant dense<0.000000e+00> : vector<16xf32>
    %408 = vector.multi_reduction <add>, %407, %cst_154 [1] : vector<16x128xf32> to vector<16xf32>
    %409 = vector.shape_cast %408 : vector<16xf32> to vector<16x1xf32>
    %cst_155 = arith.constant 3.125000e-02 : f32
    %410 = vector.broadcast %cst_155 : f32 to vector<16x1xf32>
    %411 = arith.mulf %409, %410 : vector<16x1xf32>
    %412 = arith.mulf %406, %406 : vector<16x1xf32>
    %413 = arith.subf %411, %412 : vector<16x1xf32>
    %414 = vector.broadcast %406 : vector<16x1xf32> to vector<16x128xf32>
    %415 = arith.subf %400, %414 : vector<16x128xf32>
    %cst_156 = arith.constant 9.99999974E-6 : f32
    %416 = vector.broadcast %cst_156 : f32 to vector<16x1xf32>
    %417 = arith.addf %413, %416 : vector<16x1xf32>
    %418 = math.rsqrt %417 : vector<16x1xf32>
    %419 = vector.broadcast %418 : vector<16x1xf32> to vector<16x128xf32>
    %420 = arith.mulf %415, %419 : vector<16x128xf32>
    %421 = vector.broadcast %401 : vector<1x128xf32> to vector<16x128xf32>
    %422 = arith.mulf %420, %421 : vector<16x128xf32>
    %423 = vector.broadcast %402 : vector<1x128xf32> to vector<16x128xf32>
    %424 = arith.addf %422, %423 : vector<16x128xf32>
    %425 = arith.truncf %424 : vector<16x128xf32> to vector<16x128xbf16>
    %c0_157 = arith.constant 0 : index
    %c0_158 = arith.constant 0 : index
    %c0_159 = arith.constant 0 : index
    %426 = vector.load %arg33[%c0_157, %c0_158, %c0_159] : memref<1x16x128xbf16, #tpu.memory_space<vmem>>, vector<1x16x128xbf16>
    %427 = vector.shape_cast %426 : vector<1x16x128xbf16> to vector<16x128xbf16>
    %428 = vector.shape_cast %425 : vector<16x128xbf16> to vector<1x16x128xbf16>
    tpu.vector_store %arg33[%c0_157, %c0_158, %c0_159], %428 {strides = array<i32>} : memref<1x16x128xbf16, #tpu.memory_space<vmem>>, vector<1x16x128xbf16>,
    return
  }
  func.func @transform_0(%arg0: i32) -> (i32, i32, i32) {
    %c0_i32 = arith.constant 0 : i32
    %c0_i32_0 = arith.constant 0 : i32
    %c0_i32_1 = arith.constant 0 : i32
    return %arg0, %c0_i32, %c0_i32_0 : i32, i32, i32
  }
  func.func @transform_1(%arg0: i32) -> (i32, i32) {
    %c0_i32 = arith.constant 0 : i32
    %c0_i32_0 = arith.constant 0 : i32
    %c0_i32_1 = arith.constant 0 : i32
    return %c0_i32, %c0_i32_0 : i32, i32
  }
  func.func @transform_2(%arg0: i32) -> (i32, i32) {
    %c0_i32 = arith.constant 0 : i32
    %c0_i32_0 = arith.constant 0 : i32
    %c0_i32_1 = arith.constant 0 : i32
    return %c0_i32, %c0_i32_0 : i32, i32
  }
  func.func @transform_3(%arg0: i32) -> (i32, i32) {
    %c0_i32 = arith.constant 0 : i32
    %c0_i32_0 = arith.constant 0 : i32
    %c0_i32_1 = arith.constant 0 : i32
    return %c0_i32, %c0_i32_0 : i32, i32
  }
  func.func @transform_4(%arg0: i32) -> (i32, i32) {
    %c0_i32 = arith.constant 0 : i32
    %c0_i32_0 = arith.constant 0 : i32
    %c0_i32_1 = arith.constant 0 : i32
    return %c0_i32, %c0_i32_0 : i32, i32
  }
  func.func @transform_5(%arg0: i32) -> (i32, i32) {
    %c0_i32 = arith.constant 0 : i32
    %c0_i32_0 = arith.constant 0 : i32
    %c0_i32_1 = arith.constant 0 : i32
    return %c0_i32, %c0_i32_0 : i32, i32
  }
  func.func @transform_6(%arg0: i32) -> (i32, i32) {
    %c0_i32 = arith.constant 0 : i32
    %c0_i32_0 = arith.constant 0 : i32
    %c0_i32_1 = arith.constant 0 : i32
    return %c0_i32, %c0_i32_0 : i32, i32
  }
  func.func @transform_7(%arg0: i32) -> (i32, i32) {
    %c0_i32 = arith.constant 0 : i32
    %c0_i32_0 = arith.constant 0 : i32
    %c0_i32_1 = arith.constant 0 : i32
    return %c0_i32, %c0_i32_0 : i32, i32
  }
  func.func @transform_8(%arg0: i32) -> (i32, i32) {
    %c0_i32 = arith.constant 0 : i32
    %c0_i32_0 = arith.constant 0 : i32
    %c0_i32_1 = arith.constant 0 : i32
    return %c0_i32, %c0_i32_0 : i32, i32
  }
  func.func @transform_9(%arg0: i32) -> (i32, i32) {
    %c0_i32 = arith.constant 0 : i32
    %c0_i32_0 = arith.constant 0 : i32
    %c0_i32_1 = arith.constant 0 : i32
    return %c0_i32, %c0_i32_0 : i32, i32
  }
  func.func @transform_10(%arg0: i32) -> (i32, i32) {
    %c0_i32 = arith.constant 0 : i32
    %c0_i32_0 = arith.constant 0 : i32
    %c0_i32_1 = arith.constant 0 : i32
    return %c0_i32, %c0_i32_0 : i32, i32
  }
  func.func @transform_11(%arg0: i32) -> (i32, i32) {
    %c0_i32 = arith.constant 0 : i32
    %c0_i32_0 = arith.constant 0 : i32
    %c0_i32_1 = arith.constant 0 : i32
    return %c0_i32, %c0_i32_0 : i32, i32
  }
  func.func @transform_12(%arg0: i32) -> (i32, i32) {
    %c0_i32 = arith.constant 0 : i32
    %c0_i32_0 = arith.constant 0 : i32
    %c0_i32_1 = arith.constant 0 : i32
    return %c0_i32, %c0_i32_0 : i32, i32
  }
  func.func @transform_13(%arg0: i32) -> (i32, i32) {
    %c0_i32 = arith.constant 0 : i32
    %c0_i32_0 = arith.constant 0 : i32
    %c0_i32_1 = arith.constant 0 : i32
    return %c0_i32, %c0_i32_0 : i32, i32
  }
  func.func @transform_14(%arg0: i32) -> (i32, i32) {
    %c0_i32 = arith.constant 0 : i32
    %c0_i32_0 = arith.constant 0 : i32
    %c0_i32_1 = arith.constant 0 : i32
    return %c0_i32, %c0_i32_0 : i32, i32
  }
  func.func @transform_15(%arg0: i32) -> (i32, i32) {
    %c0_i32 = arith.constant 0 : i32
    %c0_i32_0 = arith.constant 0 : i32
    %c0_i32_1 = arith.constant 0 : i32
    return %c0_i32, %c0_i32_0 : i32, i32
  }
  func.func @transform_16(%arg0: i32) -> (i32, i32) {
    %c0_i32 = arith.constant 0 : i32
    %c0_i32_0 = arith.constant 0 : i32
    %c0_i32_1 = arith.constant 0 : i32
    return %c0_i32, %c0_i32_0 : i32, i32
  }
  func.func @transform_17(%arg0: i32) -> (i32, i32) {
    %c0_i32 = arith.constant 0 : i32
    %c0_i32_0 = arith.constant 0 : i32
    %c0_i32_1 = arith.constant 0 : i32
    return %c0_i32, %c0_i32_0 : i32, i32
  }
  func.func @transform_18(%arg0: i32) -> (i32, i32) {
    %c0_i32 = arith.constant 0 : i32
    %c0_i32_0 = arith.constant 0 : i32
    %c0_i32_1 = arith.constant 0 : i32
    return %c0_i32, %c0_i32_0 : i32, i32
  }
  func.func @transform_19(%arg0: i32) -> (i32, i32) {
    %c0_i32 = arith.constant 0 : i32
    %c0_i32_0 = arith.constant 0 : i32
    %c0_i32_1 = arith.constant 0 : i32
    return %c0_i32, %c0_i32_0 : i32, i32
  }
  func.func @transform_20(%arg0: i32) -> (i32, i32) {
    %c0_i32 = arith.constant 0 : i32
    %c0_i32_0 = arith.constant 0 : i32
    %c0_i32_1 = arith.constant 0 : i32
    return %c0_i32, %c0_i32_0 : i32, i32
  }
  func.func @transform_21(%arg0: i32) -> (i32, i32) {
    %c0_i32 = arith.constant 0 : i32
    %c0_i32_0 = arith.constant 0 : i32
    %c0_i32_1 = arith.constant 0 : i32
    return %c0_i32, %c0_i32_0 : i32, i32
  }
  func.func @transform_22(%arg0: i32) -> (i32, i32) {
    %c0_i32 = arith.constant 0 : i32
    %c0_i32_0 = arith.constant 0 : i32
    %c0_i32_1 = arith.constant 0 : i32
    return %c0_i32, %c0_i32_0 : i32, i32
  }
  func.func @transform_23(%arg0: i32) -> (i32, i32) {
    %c0_i32 = arith.constant 0 : i32
    %c0_i32_0 = arith.constant 0 : i32
    %c0_i32_1 = arith.constant 0 : i32
    return %c0_i32, %c0_i32_0 : i32, i32
  }
  func.func @transform_24(%arg0: i32) -> (i32, i32) {
    %c0_i32 = arith.constant 0 : i32
    %c0_i32_0 = arith.constant 0 : i32
    %c0_i32_1 = arith.constant 0 : i32
    return %c0_i32, %c0_i32_0 : i32, i32
  }
  func.func @transform_25(%arg0: i32) -> (i32, i32) {
    %c0_i32 = arith.constant 0 : i32
    %c0_i32_0 = arith.constant 0 : i32
    %c0_i32_1 = arith.constant 0 : i32
    return %c0_i32, %c0_i32_0 : i32, i32
  }
  func.func @transform_26(%arg0: i32) -> (i32, i32) {
    %c0_i32 = arith.constant 0 : i32
    %c0_i32_0 = arith.constant 0 : i32
    %c0_i32_1 = arith.constant 0 : i32
    return %c0_i32, %c0_i32_0 : i32, i32
  }
  func.func @transform_27(%arg0: i32) -> (i32, i32) {
    %c0_i32 = arith.constant 0 : i32
    %c0_i32_0 = arith.constant 0 : i32
    %c0_i32_1 = arith.constant 0 : i32
    return %c0_i32, %c0_i32_0 : i32, i32
  }
  func.func @transform_28(%arg0: i32) -> (i32, i32) {
    %c0_i32 = arith.constant 0 : i32
    %c0_i32_0 = arith.constant 0 : i32
    %c0_i32_1 = arith.constant 0 : i32
    return %c0_i32, %c0_i32_0 : i32, i32
  }
  func.func @transform_29(%arg0: i32) -> (i32, i32) {
    %c0_i32 = arith.constant 0 : i32
    %c0_i32_0 = arith.constant 0 : i32
    %c0_i32_1 = arith.constant 0 : i32
    return %c0_i32, %c0_i32_0 : i32, i32
  }
  func.func @transform_30(%arg0: i32) -> (i32, i32) {
    %c0_i32 = arith.constant 0 : i32
    %c0_i32_0 = arith.constant 0 : i32
    %c0_i32_1 = arith.constant 0 : i32
    return %c0_i32, %c0_i32_0 : i32, i32
  }
  func.func @transform_31(%arg0: i32) -> (i32, i32) {
    %c0_i32 = arith.constant 0 : i32
    %c0_i32_0 = arith.constant 0 : i32
    %c0_i32_1 = arith.constant 0 : i32
    return %c0_i32, %c0_i32_0 : i32, i32
  }
  func.func @transform_32(%arg0: i32) -> (i32, i32, i32) {
    %c0_i32 = arith.constant 0 : i32
    %c0_i32_0 = arith.constant 0 : i32
    %c0_i32_1 = arith.constant 0 : i32
    return %arg0, %c0_i32, %c0_i32_0 : i32, i32, i32
  }
}

</mosaic_0001>

<bundles_post_ra>
// kernel: prompted_conformer_masked_encoder.4
= control target key start
LH: loop header
LB: loop body
LE: loop exit
PB: predicated region body
PF: predicated region fallthrough
CT: control target
= control target key end

     0   :  { %s528_s21 = smov 0   ;;  %s567_s0 = inlined_call_operand.vmem [shape: f32[2,16,16], index: 0, kind: input, shape index: {}]   ;;  %s568_s1 = inlined_call_operand.vmem [shape: bf16[16,128], index: 1, kind: input, shape index: {}]   ;;  %s569_s2 = inlined_call_operand.vmem [shape: f32[1,128], index: 2, kind: input, shape index: {}]   ;;  %s570_s3 = inlined_call_operand.vmem [shape: f32[1,128], index: 3, kind: input, shape index: {}]   ;;  %s571_s4 = inlined_call_operand.vmem [shape: f32[1,128], index: 4, kind: input, shape index: {}]   ;;  %s572_s5 = inlined_call_operand.vmem [shape: f32[16,128], index: 5, kind: input, shape index: {}]   ;;  %s573_s6 = inlined_call_operand.vmem [shape: bf16[2,16,128], index: 6, kind: output, shape index: {}]  }
   0x1 LB: > { %s433_s22 = sadd.s32 4294967295, %s489_s21   ;;  %p437_p0 = scmp.ge.s32.totalorder %s489_s21, 1  ;;  %s489_s21 = sphi %s528_s21, %s16_s21  }
   0x2   : > { %p212_p1 = scmp.lt.s32.totalorder %s489_s21, 3 }
   0x4   : > { %p213_p2 = pnand %p437_p0, %p212_p1 }
   0x5   : > { %v478_v0 = vld [vmem:[%s568_s1] sm:$0xff] (!%p213_p2)   ;;  %v491_v1 = vmov (!%p213_p2), 0.0   ;;  %p242_p3 = scmp.lt.s32.totalorder (!%p213_p2), %s433_s22, 1  ;;  %vm492_vm0 = vmmov (!%p213_p2), 0   ;;  %vm271_vm1 = vcmask (!%p213_p2), 130048   ;;  %v365_v44 = vld [vmem:[%s572_s5 + $0x8] sm:$0xff] (!%p213_p2) }
   0x6   : > { %216 = sbr.rel (%p213_p2) target bundleno = 413 (0x19d), region = 44  ;;  %462 = vmatprep.subr.bf16.mxu0 (!%p213_p2), %v491_v1  ;;  %464 = vmatprep.mubr.msk.bf16.mxu0 (!%p213_p2), %vm492_vm0, %v491_v1  ;;  %v442_v5 = vld [vmem:[%s569_s2] ss:$0 sm:$0xff] (!%p213_p2) }
   0x7   : > { %463 = vmatpush3.bf16.msra.mxu0 (!%p213_p2), %v478_v0  ;;  %v445_v30 = vld [vmem:[%s570_s3] ss:$0 sm:$0xff] (!%p213_p2) }
   0x8   : > { %v446_v32 = vld [vmem:[%s571_s4] ss:$0 sm:$0xff] (!%p213_p2) }
   0x9   : > { %v364_v43 = vld [vmem:[%s572_s5] sm:$0xff] (!%p213_p2) }
   0xd   : > { %s575_s22 = smov (!%p242_p3, %s433_s22), 1 }
   0xe   : > { %s451_s25 = sshll.u32 %s575_s22, 4  ;;  %s452_s15 = sshll.u32 %s575_s22, 3 }
   0xf   : > { %s246_s28 = scalar_lea.vmem %s567_s0, %s451_s25  ;;  %s251_s18 = scalar_lea.vmem %s573_s6, %s452_s15 }
  0x10   : > { %v253_v2 = vld [vmem:[%s246_s28] sm:$0xff]  ;;  %v254_v3 = vld [vmem:[%s246_s28 + $0x8] sm:$0xff] }
  0x11   : > { %v255_v4 = vpack.c.bf16 %v254_v3, %v253_v2 }
  0x13   : > { %465 = vmatmul.mubr.msk.bf16.vlgmr.msra.gmra.mrb[0].mxu0 %vm271_vm1, %v255_v4 }
  0xe6   : > { %v309_v6 = vpop.f32.mrb[0].mxu0 }
  0xe7   : > { %v310_v7 = vadd.f32 %v442_v5, %v309_v6  ;;  %v466_v8 = vpop.f32.mrb[1].mxu0 }
  0xe8   : > { %v312_v9 = vpop.f32.mrb[2].mxu0 }
  0xe9   : > { %v313_v10 = vadd.f32 %v442_v5, %v312_v9  ;;  %318 = vadd.xlane.f32.xlu0 %v310_v7  ;;  %v467_v11 = vpop.f32.mrb[3].mxu0  ;;  %v324_v12 = vmul.f32 %v310_v7, %v310_v7 }
  0xeb   : > { %326 = vadd.xlane.f32.xlu1 %v324_v12  ;;  %v325_v13 = vmul.f32 %v313_v10, %v313_v10 }
  0xed   : > { %320 = vadd.xlane.f32.xlu0 %v313_v10 }
  0xef   : > { %328 = vadd.xlane.f32.xlu1 %v325_v13 }
 0x176   : > { %v319_v14 = vpop.xlane.xlu0 %318 }
 0x177   : > { %v322_v15 = vmul.f32 0.03125, %v319_v14 }
 0x178   : > { %v327_v16 = vpop.xlane.xlu1 %326 }
 0x179   : > { %v332_v17 = vmul.f32 %v322_v15, %v322_v15  ;;  %v330_v18 = vmul.f32 0.03125, %v327_v16  ;;  %v336_v28 = vsub.f32 %v310_v7, %v322_v15 }
 0x17a   : > { %v321_v19 = vpop.xlane.xlu0 %320 }
 0x17b   : > { %v334_v20 = vsub.f32 %v330_v18, %v332_v17  ;;  %v323_v21 = vmul.f32 0.03125, %v321_v19 }
 0x17c   : > { %v329_v22 = vpop.xlane.xlu1 %328 }
 0x17d   : > { %v338_v23 = vadd.f32 1e-05, %v334_v20  ;;  %v333_v24 = vmul.f32 %v323_v21, %v323_v21  ;;  %v331_v25 = vmul.f32 0.03125, %v329_v22  ;;  %v337_v34 = vsub.f32 %v313_v10, %v323_v21 }
 0x17f   : > { %479 = vrsqrt.f32 %v338_v23  ;;  %v335_v26 = vsub.f32 %v331_v25, %v333_v24 }
 0x181   : > { %v339_v27 = vadd.f32 1e-05, %v335_v26 }
 0x183   : > { %481 = vrsqrt.f32 %v339_v27 }
 0x189   : > { %v480_v29 = vpop.eup %479 }
 0x18a   : > { %v342_v31 = vmul.f32 %v480_v29, %v336_v28 }
 0x18c   : > { %v350_v33 = vmul.f32 %v445_v30, %v342_v31 }
 0x18d   : > { %v482_v35 = vpop.eup %481 }
 0x18e   : > { %v358_v36 = vadd.f32 %v446_v32, %v350_v33  ;;  %v343_v37 = vmul.f32 %v482_v35, %v337_v34 }
 0x190   : > { %v360_v38 = vmax.f32 %v358_v36, 0.0  ;;  %v351_v39 = vmul.f32 %v445_v30, %v343_v37 }
 0x192   : > { %v359_v40 = vadd.f32 %v446_v32, %v351_v39  ;;  %v362_v41 = vmul.f32 5.656854, %v360_v38 }
 0x194   : > { %v361_v42 = vmax.f32 %v359_v40, 0.0  ;;  %v366_v46 = vadd.f32 %v364_v43, %v362_v41 }
 0x196   : > { %v363_v45 = vmul.f32 5.656854, %v361_v42 }
 0x198   : > { %v367_v47 = vadd.f32 %v365_v44, %v363_v45 }
 0x19a   : > { %v458_v48 = vpack.c.bf16 %v367_v47, %v366_v46 }
 0x19c   : > { %459 = vst [vmem:[%s251_s18] sm:$0xff] %v458_v48  }
 0x19d PF: > { %s16_s21 = sadd.s32 1, %s489_s21  }
 0x19e   : > { %p13_p4 = scmp.ge.s32.totalorder %s16_s21, 4  }
 0x1a0   :  { %15 = sbr.rel (!%p13_p4) target bundleno = 1 (0x1), region = 74 }

// kernel: prompted_conformer_masked_encoder.6
= control target key start
LH: loop header
LB: loop body
LE: loop exit
PB: predicated region body
PF: predicated region fallthrough
CT: control target
= control target key end

     0   :  { %s5313_s6 = smov 1   ;;  %s5314_s10 = smov 2   ;;  %s6254_s0 = inlined_call_operand.smem [shape: u32[33], index: -1, kind: input, shape index: {}] }
   0x1   :  { %s5379_s5 = sld [smem:[%s6254_s0]]   ;;  %s5315_s14 = smov 3  }
   0x2   :  { %s5384_s9 = sld [smem:[%s6254_s0 + %s5313_s6]]   ;;  %s5316_s18 = smov 4  }
   0x3   :  { %s5389_s13 = sld [smem:[%s6254_s0 + %s5314_s10]]   ;;  %s5317_s22 = smov 5  }
   0x4   :  { %s5394_s17 = sld [smem:[%s6254_s0 + %s5315_s14]]   ;;  %s5318_s26 = smov 6  }
   0x5   :  { %s5399_s21 = sld [smem:[%s6254_s0 + %s5316_s18]]   ;;  %s5319_s30 = smov 7  }
   0x6   :  { %s5404_s25 = sld [smem:[%s6254_s0 + %s5317_s22]]   ;;  %s5320_s4 = smov 8  }
   0x7   :  { %6272 = sst [smem:[#allocation44_spill]] %s5379_s5  ;;  %s5321_s10 = smov 9  }
   0x8   :  { %s5409_s29 = sld [smem:[%s6254_s0 + %s5318_s26]]   ;;  %s5322_s15 = smov 10  }
   0x9   :  { %s5414_s3 = sld [smem:[%s6254_s0 + %s5319_s30]]   ;;  %s5323_s20 = smov 11  }
   0xa   :  { %6273 = sst [smem:[#allocation45_spill]] %s5394_s17  ;;  %s5324_s26 = smov 12  }
   0xb   :  { %s5419_s8 = sld [smem:[%s6254_s0 + %s5320_s4]]   ;;  %s5325_s1 = smov 13  }
   0xc   :  { %6274 = sst [smem:[#allocation46_spill]] %s5404_s25  ;;  %s5326_s7 = smov 14  }
   0xd   :  { %s5424_s14 = sld [smem:[%s6254_s0 + %s5321_s10]]   ;;  %s5328_s22 = smov 16  }
   0xe   :  { %s5429_s19 = sld [smem:[%s6254_s0 + %s5322_s15]]   ;;  %s5327_s15 = smov 15  }
   0xf   :  { %6275 = sst [smem:[#allocation47_spill]] %s5414_s3  ;;  %s5329_s28 = smov 17  }
  0x10   :  { %s5434_s24 = sld [smem:[%s6254_s0 + %s5323_s20]]  }
  0x11   :  { %s5439_s30 = sld [smem:[%s6254_s0 + %s5324_s26]]  }
  0x12   :  { %s5444_s6 = sld [smem:[%s6254_s0 + %s5325_s1]]  }
  0x13   :  { %6276 = sst [smem:[#allocation48_spill]] %s5424_s14 }
  0x14   :  { %6277 = sst [smem:[#allocation49_spill]] %s5429_s19 }
  0x15   :  { %s5449_s12 = sld [smem:[%s6254_s0 + %s5326_s7]]   ;;  %s5330_s7 = smov 18  }
  0x16   :  { %6278 = sst [smem:[#allocation50_spill]] %s5434_s24 }
  0x17   :  { %s5454_s20 = sld [smem:[%s6254_s0 + %s5327_s15]]   ;;  %s5331_s15 = smov 19  }
  0x18   :  { %6279 = sst [smem:[#allocation51_spill]] %s5444_s6 }
  0x19   :  { %s5459_s27 = sld [smem:[%s6254_s0 + %s5328_s22]]   ;;  %s5332_s22 = smov 20  }
  0x1a   :  { %s5464_s4 = sld [smem:[%s6254_s0 + %s5329_s28]]   ;;  %s5333_s28 = smov 21  }
  0x1b   :  { %s5469_s24 = sld [smem:[%s6254_s0 + %s5330_s7]]   ;;  %s5334_s7 = smov 22  }
  0x1c   :  { %s5479_s19 = sld [smem:[%s6254_s0 + %s5332_s22]]   ;;  %s5336_s22 = smov 24  }
  0x1d   :  { %6280 = sst [smem:[#allocation52_spill]] %s5454_s20 }
  0x1e   :  { %s5474_s20 = sld [smem:[%s6254_s0 + %s5331_s15]]   ;;  %s5335_s15 = smov 23  }
  0x1f   :  { %s5489_s14 = sld [smem:[%s6254_s0 + %s5334_s7]]   ;;  %s5338_s7 = smov 26  }
  0x20   :  { %6281 = sst [smem:[#allocation53_spill]] %s5464_s4 }
  0x21   :  { %s5484_s4 = sld [smem:[%s6254_s0 + %s5333_s28]]   ;;  %s5337_s28 = smov 25  }
  0x22   :  { %s5499_s25 = sld [smem:[%s6254_s0 + %s5336_s22]]   ;;  %s5340_s22 = smov 28  }
  0x23   :  { %s5504_s17 = sld [smem:[%s6254_s0 + %s5337_s28]]   ;;  %s5341_s28 = smov 29  }
  0x24   :  { %6282 = sst [smem:[#allocation54_spill]] %s5474_s20 }
  0x25   :  { %6284 = sst [smem:[#allocation56_spill]] %s5489_s14 }
  0x26   :  { %s5494_s20 = sld [smem:[%s6254_s0 + %s5335_s15]]   ;;  %s5339_s15 = smov 27  }
  0x27   :  { %6283 = sst [smem:[#allocation55_spill]] %s5484_s4 }
  0x28   :  { %6285 = sst [smem:[#allocation57_spill]] %s5499_s25 }
  0x29   :  { %s5509_s14 = sld [smem:[%s6254_s0 + %s5338_s7]]   ;;  %s5342_s7 = smov 30  }
  0x2a   :  { %s5514_s5 = sld [smem:[%s6254_s0 + %s5339_s15]]   ;;  %s5343_s15 = smov 31  }
  0x2b   :  { %s5519_s25 = sld [smem:[%s6254_s0 + %s5340_s22]]   ;;  %s5344_s22 = smov 32  }
  0x2c   :  { %s5524_s4 = sld [smem:[%s6254_s0 + %s5341_s28]]  }
  0x2f   :  { %6286 = sst [smem:[#allocation58_spill]] %s5509_s14 }
  0x30   :  { %6287 = sst [smem:[#allocation59_spill]] %s5514_s5 }
  0x31   :  { %6288 = sst [smem:[#allocation60_spill]] %s5519_s25 }
  0x32   :  { %6289 = sst [smem:[#allocation61_spill]] %s5524_s4 }
  0x33   :  { %s5529_s14 = sld [smem:[%s6254_s0 + %s5342_s7]]  }
  0x34   :  { %s5534_s5 = sld [smem:[%s6254_s0 + %s5343_s15]]  }
  0x35   :  { %s5539_s25 = sld [smem:[%s6254_s0 + %s5344_s22]]  }
  0x36   :  { %70 = vsyncpa [#allocation3], 0 }
  0x37   :  { %71 = vsyncpa [#allocation5], 0 }
  0x38   :  { %72 = vsyncpa [#allocation8], 0 }
  0x39   :  { %73 = vsyncpa [#allocation11], 0 }
  0x3a   :  { %74 = vsyncpa [#allocation14], 0 }
  0x3b   :  { %75 = vsyncpa [#allocation17], 0 }
  0x3c   :  { %76 = vsyncpa [#allocation20], 0 }
  0x3d   :  { %77 = vsyncpa [#allocation23], 0 }
  0x3e   :  { %78 = vsyncpa [#allocation26], 0 }
  0x3f   :  { %79 = vsyncpa [#allocation29], 0 }
  0x40   :  { %80 = vsyncpa [#allocation32], 0  ;;  %s5541_s28 = smov 0  }
  0x41 LB: > { %s6290_s6 = sld [smem:[#allocation51_spill]]  ;;  %s6291_s4 = sld [smem:[#allocation61_spill]]  ;;  %s5311_s28 = sphi %s5541_s28, %s86_s28  }
  0x42   : > { %s6292_s3 = sld [smem:[#allocation47_spill]]  ;;  %s5345_s0 = smov [#allocation4]  }
  0x43   : > { %s818_s1 = sshll.u32 %s5345_s0, 4  ;;  %s5547_s2 = sadd.s32 4294967295, %s5311_s28   ;;  %s5552_s1 = int_to_ptr.vmem [resolvable:$true] %s818_s1 }
  0x44   : > { %p3756_p0 = scmp.ge.s32.totalorder %s5311_s28, 1  ;;  %p794_p1 = scmp.lt.s32.totalorder %s5311_s28, 3 }
  0x45   : > { %p6267_p2 = scmp.eq.s32.totalorder %s5547_s2, 0  ;;  %s5346_s10 = smov [#allocation7]  }
  0x46   : > { %p5554_p3 = pnand %p3756_p0, %p794_p1  ;;  %s846_s11 = sshll.u32 %s5346_s10, 4  ;;  %s5560_s11 = int_to_ptr.vmem [resolvable:$true] %s846_s11 }
  0x47   : > { %s5347_s15 = smov [#allocation10]   ;;  %s5348_s22 = smov [#allocation13]  }
  0x48   : > { %s6293_s7 = scalar_select %p5554_p3, 1, 0 }
  0x49   : > { %p4362_p4 = pneg %p5554_p3  ;;  %s868_s16 = sshll.u32 %s5347_s15, 4  ;;  %s5568_s16 = int_to_ptr.vmem [resolvable:$true] %s868_s16 }
  0x4a   : > { %s899_s23 = sshll.u32 %s5348_s22, 4  ;;  %s4701_s26 = scalar_lea.hbm %s5389_s13, 16  ;;  %s5570_s23 = int_to_ptr.vmem [resolvable:$true] %s899_s23 }
  0x4b   : > { %p5564_p5 = pnand %p6267_p2, %p4362_p4  ;;  %p4702_p6 = scmp.ne.s32.totalorder %s5389_s13, %s4701_s26 }
  0x4c   : > { %p4708_p10 = scmp.lt.u32.totalorder %s4701_s26, %s5389_s13 }
  0x4d   : > { %p5576_p7 = pneg %p5564_p5 }
  0x4f   : > { %p4704_p8 = pnand %p5576_p7, %p4702_p6 }
  0x51   : > { %p4705_p9 = pneg %p4704_p8 }
  0x53   : > { %p4710_p11 = pnand %p4708_p10, %p4705_p9 }
  0x55   : > { %4713 = shalt.err (!%p4710_p11)
}
  0x56   : > { %s4714_s10 = scalar_lea.vmem %s5552_s1, 16  ;;  %s4721_s15 = scalar_lea.vmem %s5552_s1, 32 }
  0x57   : > { %p4715_p12 = scmp.ne.s32.totalorder %s5552_s1, %s4714_s10  ;;  %p4722_p1 = scmp.lt.s32.totalorder %s5552_s1, %s5552_s1 }
  0x58   : > { %p4723_p4 = scmp.lt.s32.totalorder %s4721_s15, %s4714_s10 }
  0x59   : > { %p4717_p13 = pnand %p4715_p12, %p5576_p7 }
  0x5a   : > { %p4724_p2 = por %p4723_p4, %p4722_p1 }
  0x5b   : > { %p4718_p0 = pneg %p4717_p13 }
  0x5d   : > { %p4725_p6 = pnand %p4724_p2, %p4718_p0 }
  0x5f   : > { %4728 = shalt.err (!%p4725_p6)
}
  0x60   : > { %4368 = dma.hbm_to_vmem [thread:$0]  (!%p5564_p5), %s5389_s13, 16, %s5552_s1, [#allocation5]  }
  0x61   : > { %s4729_s22 = scalar_lea.hbm %s5409_s29, 16 }
  0x62   : > { %p4730_p8 = scmp.ne.s32.totalorder %s5409_s29, %s4729_s22  ;;  %p4736_p11 = scmp.lt.u32.totalorder %s4729_s22, %s5409_s29 }
  0x64   : > { %p4732_p9 = pnand %p4730_p8, %p5576_p7 }
  0x66   : > { %p4733_p10 = pneg %p4732_p9 }
  0x68   : > { %p4738_p12 = pnand %p4736_p11, %p4733_p10 }
  0x6a   : > { %4741 = shalt.err (!%p4738_p12)
}
  0x6b   : > { %s4742_s26 = scalar_lea.vmem %s5560_s11, 16  ;;  %s4749_s10 = scalar_lea.vmem %s5560_s11, 32 }
  0x6c   : > { %p4743_p2 = scmp.ne.s32.totalorder %s5560_s11, %s4742_s26  ;;  %p4750_p1 = scmp.lt.s32.totalorder %s5560_s11, %s5560_s11 }
  0x6d   : > { %p4751_p4 = scmp.lt.s32.totalorder %s4749_s10, %s4742_s26 }
  0x6e   : > { %p4745_p13 = pnand %p4743_p2, %p5576_p7 }
  0x6f   : > { %p4752_p6 = por %p4751_p4, %p4750_p1 }
  0x70   : > { %p4746_p0 = pneg %p4745_p13 }
  0x72   : > { %p4753_p8 = pnand %p4752_p6, %p4746_p0 }
  0x74   : > { %4756 = shalt.err (!%p4753_p8)
}
  0x75   : > { %4374 = dma.hbm_to_vmem [thread:$0]  (!%p5564_p5), %s5409_s29, 16, %s5560_s11, [#allocation8]  }
  0x76   : > { %s4757_s1 = scalar_lea.hbm %s5419_s8, 16 }
  0x77   : > { %p4758_p9 = scmp.ne.s32.totalorder %s5419_s8, %s4757_s1  ;;  %p4764_p12 = scmp.lt.u32.totalorder %s4757_s1, %s5419_s8 }
  0x79   : > { %p4760_p10 = pnand %p4758_p9, %p5576_p7 }
  0x7b   : > { %p4761_p11 = pneg %p4760_p10 }
  0x7d   : > { %p4766_p2 = pnand %p4764_p12, %p4761_p11 }
  0x7f   : > { %4769 = shalt.err (!%p4766_p2)
}
  0x80   : > { %s4770_s15 = scalar_lea.vmem %s5568_s16, 16  ;;  %s4777_s22 = scalar_lea.vmem %s5568_s16, 32 }
  0x81   : > { %p4771_p13 = scmp.ne.s32.totalorder %s5568_s16, %s4770_s15  ;;  %p4778_p4 = scmp.lt.s32.totalorder %s5568_s16, %s5568_s16 }
  0x82   : > { %p4779_p6 = scmp.lt.s32.totalorder %s4777_s22, %s4770_s15 }
  0x83   : > { %p4773_p0 = pnand %p4771_p13, %p5576_p7 }
  0x84   : > { %p4780_p8 = por %p4779_p6, %p4778_p4 }
  0x85   : > { %p4774_p1 = pneg %p4773_p0 }
  0x87   : > { %p4781_p9 = pnand %p4780_p8, %p4774_p1 }
  0x89   : > { %4784 = shalt.err (!%p4781_p9)
}
  0x8a   : > { %4380 = dma.hbm_to_vmem [thread:$0]  (!%p5564_p5), %s5419_s8, 16, %s5568_s16, [#allocation11]  }
  0x8b   : > { %s4785_s11 = scalar_lea.hbm %s6290_s6, 16 }
  0x8c   : > { %p4786_p10 = scmp.ne.s32.totalorder %s6290_s6, %s4785_s11  ;;  %p4792_p2 = scmp.lt.u32.totalorder %s4785_s11, %s6290_s6 }
  0x8e   : > { %p4788_p11 = pnand %p4786_p10, %p5576_p7 }
  0x90   : > { %p4789_p12 = pneg %p4788_p11 }
  0x92   : > { %p4794_p13 = pnand %p4792_p2, %p4789_p12 }
  0x94   : > { %4797 = shalt.err (!%p4794_p13)
}
  0x95   : > { %s4798_s26 = scalar_lea.vmem %s5570_s23, 16  ;;  %s4805_s10 = scalar_lea.vmem %s5570_s23, 32 }
  0x96   : > { %p4799_p0 = scmp.ne.s32.totalorder %s5570_s23, %s4798_s26  ;;  %p4806_p6 = scmp.lt.s32.totalorder %s5570_s23, %s5570_s23 }
  0x97   : > { %p4807_p8 = scmp.lt.s32.totalorder %s4805_s10, %s4798_s26 }
  0x98   : > { %p4801_p1 = pnand %p4799_p0, %p5576_p7 }
  0x99   : > { %p4808_p9 = por %p4807_p8, %p4806_p6 }
  0x9a   : > { %p4802_p4 = pneg %p4801_p1 }
  0x9c   : > { %p4809_p10 = pnand %p4808_p9, %p4802_p4 }
  0x9e   : > { %4812 = shalt.err (!%p4809_p10)
}
  0x9f   : > { %4386 = dma.hbm_to_vmem [thread:$0]  (!%p5564_p5), %s6290_s6, 16, %s5570_s23, [#allocation14]  }
  0xa0   : > { %s5349_s16 = smov [#allocation16]   ;;  %s5350_s15 = smov [#allocation19]  }
  0xa1   : > { %s924_s1 = sshll.u32 %s5349_s16, 4  ;;  %s952_s22 = sshll.u32 %s5350_s15, 4  ;;  %s925_s1 = int_to_ptr.vmem [resolvable:$true] %s924_s1  ;;  %s953_s22 = int_to_ptr.vmem [resolvable:$true] %s952_s22 }
  0xa2   : > { %s4813_s11 = scalar_lea.hbm %s5459_s27, 16 }
  0xa3   : > { %p4814_p11 = scmp.ne.s32.totalorder %s5459_s27, %s4813_s11  ;;  %p4820_p13 = scmp.lt.u32.totalorder %s4813_s11, %s5459_s27 }
  0xa5   : > { %p4816_p12 = pnand %p4814_p11, %p5576_p7 }
  0xa7   : > { %p4817_p2 = pneg %p4816_p12 }
  0xa9   : > { %p4822_p0 = pnand %p4820_p13, %p4817_p2 }
  0xab   : > { %4825 = shalt.err (!%p4822_p0)
}
  0xac   : > { %s4826_s26 = scalar_lea.vmem %s925_s1, 16  ;;  %s4833_s23 = scalar_lea.vmem %s925_s1, 32 }
  0xad   : > { %p4827_p1 = scmp.ne.s32.totalorder %s925_s1, %s4826_s26  ;;  %p4834_p8 = scmp.lt.s32.totalorder %s925_s1, %s925_s1 }
  0xae   : > { %p4835_p9 = scmp.lt.s32.totalorder %s4833_s23, %s4826_s26 }
  0xaf   : > { %p4829_p4 = pnand %p4827_p1, %p5576_p7 }
  0xb0   : > { %p4836_p10 = por %p4835_p9, %p4834_p8 }
  0xb1   : > { %p4830_p6 = pneg %p4829_p4 }
  0xb3   : > { %p4837_p3 = pnand %p4836_p10, %p4830_p6 }
  0xb5   : > { %4840 = shalt.err (!%p4837_p3)
}
  0xb6   : > { %4392 = dma.hbm_to_vmem [thread:$0]  (!%p5564_p5), %s5459_s27, 16, %s925_s1, [#allocation17]  }
  0xb7   : > { %s4841_s10 = scalar_lea.hbm %s5479_s19, 16 }
  0xb8   : > { %p4842_p11 = scmp.ne.s32.totalorder %s5479_s19, %s4841_s10  ;;  %p4848_p13 = scmp.lt.u32.totalorder %s4841_s10, %s5479_s19 }
  0xba   : > { %p4844_p12 = pnand %p4842_p11, %p5576_p7 }
  0xbc   : > { %p4845_p2 = pneg %p4844_p12 }
  0xbe   : > { %p4850_p0 = pnand %p4848_p13, %p4845_p2 }
  0xc0   : > { %4853 = shalt.err (!%p4850_p0)
}
  0xc1   : > { %s4854_s16 = scalar_lea.vmem %s953_s22, 16  ;;  %s4861_s15 = scalar_lea.vmem %s953_s22, 32 }
  0xc2   : > { %p4855_p3 = scmp.ne.s32.totalorder %s953_s22, %s4854_s16  ;;  %p4862_p6 = scmp.lt.s32.totalorder %s953_s22, %s953_s22 }
  0xc3   : > { %p4863_p8 = scmp.lt.s32.totalorder %s4861_s15, %s4854_s16 }
  0xc4   : > { %p4857_p1 = pnand %p4855_p3, %p5576_p7 }
  0xc5   : > { %p4864_p9 = por %p4863_p8, %p4862_p6 }
  0xc6   : > { %p4858_p4 = pneg %p4857_p1 }
  0xc8   : > { %p4865_p10 = pnand %p4864_p9, %p4858_p4 }
  0xca   : > { %4868 = shalt.err (!%p4865_p10)
}
  0xcb   : > { %4398 = dma.hbm_to_vmem [thread:$0]  (!%p5564_p5), %s5479_s19, 16, %s953_s22, [#allocation20]  }
  0xcc   : > { %s5351_s1 = smov [#allocation22]   ;;  %s5352_s26 = smov [#allocation25]  }
  0xcd   : > { %s977_s11 = sshll.u32 %s5351_s1, 4  ;;  %s999_s23 = sshll.u32 %s5352_s26, 4  ;;  %s978_s11 = int_to_ptr.vmem [resolvable:$true] %s977_s11  ;;  %s1000_s23 = int_to_ptr.vmem [resolvable:$true] %s999_s23 }
  0xce   : > { %s4869_s10 = scalar_lea.hbm %s5494_s20, 16 }
  0xcf   : > { %p4870_p11 = scmp.ne.s32.totalorder %s5494_s20, %s4869_s10  ;;  %p4876_p13 = scmp.lt.u32.totalorder %s4869_s10, %s5494_s20 }
  0xd1   : > { %p4872_p12 = pnand %p4870_p11, %p5576_p7 }
  0xd3   : > { %p4873_p2 = pneg %p4872_p12 }
  0xd5   : > { %p4878_p0 = pnand %p4876_p13, %p4873_p2 }
  0xd7   : > { %4881 = shalt.err (!%p4878_p0)
}
  0xd8   : > { %s4882_s16 = scalar_lea.vmem %s978_s11, 16  ;;  %s4889_s22 = scalar_lea.vmem %s978_s11, 32 }
  0xd9   : > { %p4883_p3 = scmp.ne.s32.totalorder %s978_s11, %s4882_s16  ;;  %p4890_p6 = scmp.lt.s32.totalorder %s978_s11, %s978_s11 }
  0xda   : > { %p4891_p8 = scmp.lt.s32.totalorder %s4889_s22, %s4882_s16 }
  0xdb   : > { %p4885_p1 = pnand %p4883_p3, %p5576_p7 }
  0xdc   : > { %p4892_p9 = por %p4891_p8, %p4890_p6 }
  0xdd   : > { %p4886_p4 = pneg %p4885_p1 }
  0xdf   : > { %p4893_p10 = pnand %p4892_p9, %p4886_p4 }
  0xe1   : > { %4896 = shalt.err (!%p4893_p10)
}
  0xe2   : > { %4404 = dma.hbm_to_vmem [thread:$0]  (!%p5564_p5), %s5494_s20, 16, %s978_s11, [#allocation23]  }
  0xe3   : > { %s4897_s15 = scalar_lea.hbm %s5504_s17, 16 }
  0xe4   : > { %p4898_p11 = scmp.ne.s32.totalorder %s5504_s17, %s4897_s15  ;;  %p4904_p13 = scmp.lt.u32.totalorder %s4897_s15, %s5504_s17 }
  0xe6   : > { %p4900_p12 = pnand %p4898_p11, %p5576_p7 }
  0xe8   : > { %p4901_p2 = pneg %p4900_p12 }
  0xea   : > { %p4906_p0 = pnand %p4904_p13, %p4901_p2 }
  0xec   : > { %4909 = shalt.err (!%p4906_p0)
}
  0xed   : > { %s4910_s1 = scalar_lea.vmem %s1000_s23, 16  ;;  %s4917_s26 = scalar_lea.vmem %s1000_s23, 32 }
  0xee   : > { %p4911_p3 = scmp.ne.s32.totalorder %s1000_s23, %s4910_s1  ;;  %p4918_p6 = scmp.lt.s32.totalorder %s1000_s23, %s1000_s23 }
  0xef   : > { %p4919_p8 = scmp.lt.s32.totalorder %s4917_s26, %s4910_s1 }
  0xf0   : > { %p4913_p1 = pnand %p4911_p3, %p5576_p7 }
  0xf1   : > { %p4920_p9 = por %p4919_p8, %p4918_p6 }
  0xf2   : > { %p4914_p4 = pneg %p4913_p1 }
  0xf4   : > { %p4921_p10 = pnand %p4920_p9, %p4914_p4 }
  0xf6   : > { %4924 = shalt.err (!%p4921_p10)
}
  0xf7   : > { %4410 = dma.hbm_to_vmem [thread:$0]  (!%p5564_p5), %s5504_s17, 16, %s1000_s23, [#allocation26]  }
  0xf8   : > { %s5353_s11 = smov [#allocation28]   ;;  %s5354_s16 = smov [#allocation2]  }
  0xf9   : > { %s1027_s10 = sshll.u32 %s5353_s11, 4  ;;  %s807_s22 = sshll.u32 %s5354_s16, 4  ;;  %s1028_s10 = int_to_ptr.vmem [resolvable:$true] %s1027_s10  ;;  %s808_s22 = int_to_ptr.vmem [resolvable:$true] %s807_s22 }
  0xfa   : > { %s4925_s15 = scalar_lea.hbm %s6291_s4, 16 }
  0xfb   : > { %p4926_p11 = scmp.ne.s32.totalorder %s6291_s4, %s4925_s15  ;;  %p4932_p13 = scmp.lt.u32.totalorder %s4925_s15, %s6291_s4 }
  0xfd   : > { %p4928_p12 = pnand %p4926_p11, %p5576_p7 }
  0xff   : > { %p4929_p2 = pneg %p4928_p12 }
 0x101   : > { %p4934_p0 = pnand %p4932_p13, %p4929_p2 }
 0x103   : > { %4937 = shalt.err (!%p4934_p0)
}
 0x104   : > { %s4938_s1 = scalar_lea.vmem %s1028_s10, 16  ;;  %s4945_s23 = scalar_lea.vmem %s1028_s10, 32 }
 0x105   : > { %p4939_p3 = scmp.ne.s32.totalorder %s1028_s10, %s4938_s1  ;;  %p4946_p6 = scmp.lt.s32.totalorder %s1028_s10, %s1028_s10 }
 0x106   : > { %p4947_p8 = scmp.lt.s32.totalorder %s4945_s23, %s4938_s1 }
 0x107   : > { %p4941_p1 = pnand %p4939_p3, %p5576_p7 }
 0x108   : > { %p4948_p9 = por %p4947_p8, %p4946_p6 }
 0x109   : > { %p4942_p4 = pneg %p4941_p1 }
 0x10b   : > { %p4949_p10 = pnand %p4948_p9, %p4942_p4 }
 0x10d   : > { %4952 = shalt.err (!%p4949_p10)
}
 0x10e   : > { %4416 = dma.hbm_to_vmem [thread:$0]  (!%p5564_p5), %s6291_s4, 16, %s1028_s10, [#allocation29]  }
 0x10f   : > { %s4953_s26 = scalar_lea.hbm %s5384_s9, 16 }
 0x110   : > { %p4954_p11 = scmp.ne.s32.totalorder %s5384_s9, %s4953_s26  ;;  %p4960_p13 = scmp.lt.u32.totalorder %s4953_s26, %s5384_s9 }
 0x112   : > { %p4956_p12 = pnand %p4954_p11, %p5576_p7 }
 0x114   : > { %p4957_p2 = pneg %p4956_p12 }
 0x116   : > { %p4962_p0 = pnand %p4960_p13, %p4957_p2 }
 0x118   : > { %4965 = shalt.err (!%p4962_p0)
}
 0x119   : > { %s4966_s11 = scalar_lea.vmem %s808_s22, 16  ;;  %s4973_s16 = scalar_lea.vmem %s808_s22, 32 }
 0x11a   : > { %p4967_p3 = scmp.ne.s32.totalorder %s808_s22, %s4966_s11  ;;  %p4974_p6 = scmp.lt.s32.totalorder %s808_s22, %s808_s22 }
 0x11b   : > { %p4975_p8 = scmp.lt.s32.totalorder %s4973_s16, %s4966_s11 }
 0x11c   : > { %p4969_p1 = pnand %p4967_p3, %p5576_p7 }
 0x11d   : > { %p4976_p9 = por %p4975_p8, %p4974_p6 }
 0x11e   : > { %p4970_p4 = pneg %p4969_p1 }
 0x120   : > { %p4977_p10 = pnand %p4976_p9, %p4970_p4 }
 0x122   : > { %4980 = shalt.err (!%p4977_p10)
}
 0x123   : > { %4365 = dma.hbm_to_vmem [thread:$0]  (!%p5564_p5), %s5384_s9, 16, %s808_s22, [#allocation3]  }
 0x124   : > { %s5355_s10 = smov [#allocation6]   ;;  %s5356_s1 = smov [#allocation9]  }
 0x125   : > { %s832_s15 = sshll.u32 %s5355_s10, 4  ;;  %s857_s23 = sshll.u32 %s5356_s1, 4  ;;  %s833_s15 = int_to_ptr.vmem [resolvable:$true] %s832_s15  ;;  %s858_s23 = int_to_ptr.vmem [resolvable:$true] %s857_s23 }
 0x126   : > { %s4981_s26 = scalar_lea.hbm %s5399_s21, 16 }
 0x127   : > { %p4982_p11 = scmp.ne.s32.totalorder %s5399_s21, %s4981_s26  ;;  %p4988_p13 = scmp.lt.u32.totalorder %s4981_s26, %s5399_s21 }
 0x129   : > { %p4984_p12 = pnand %p4982_p11, %p5576_p7 }
 0x12b   : > { %p4985_p2 = pneg %p4984_p12 }
 0x12d   : > { %p4990_p0 = pnand %p4988_p13, %p4985_p2 }
 0x12f   : > { %4993 = shalt.err (!%p4990_p0)
}
 0x130   : > { %s4994_s11 = scalar_lea.vmem %s833_s15, 16  ;;  %s5001_s22 = scalar_lea.vmem %s833_s15, 32 }
 0x131   : > { %p4995_p3 = scmp.ne.s32.totalorder %s833_s15, %s4994_s11  ;;  %p5002_p6 = scmp.lt.s32.totalorder %s833_s15, %s833_s15 }
 0x132   : > { %p5003_p8 = scmp.lt.s32.totalorder %s5001_s22, %s4994_s11 }
 0x133   : > { %p4997_p1 = pnand %p4995_p3, %p5576_p7 }
 0x134   : > { %p5004_p9 = por %p5003_p8, %p5002_p6 }
 0x135   : > { %p4998_p4 = pneg %p4997_p1 }
 0x137   : > { %p5005_p10 = pnand %p5004_p9, %p4998_p4 }
 0x139   : > { %5008 = shalt.err (!%p5005_p10)
}
 0x13a   : > { %4371 = dma.hbm_to_vmem [thread:$0]  (!%p5564_p5), %s5399_s21, 16, %s833_s15, [#allocation5]  }
 0x13b   : > { %s5009_s16 = scalar_lea.hbm %s6292_s3, 16 }
 0x13c   : > { %p5010_p11 = scmp.ne.s32.totalorder %s6292_s3, %s5009_s16  ;;  %p5016_p13 = scmp.lt.u32.totalorder %s5009_s16, %s6292_s3 }
 0x13e   : > { %p5012_p12 = pnand %p5010_p11, %p5576_p7 }
 0x140   : > { %p5013_p2 = pneg %p5012_p12 }
 0x142   : > { %p5018_p0 = pnand %p5016_p13, %p5013_p2 }
 0x144   : > { %5021 = shalt.err (!%p5018_p0)
}
 0x145   : > { %s5022_s10 = scalar_lea.vmem %s858_s23, 16  ;;  %s5029_s1 = scalar_lea.vmem %s858_s23, 32 }
 0x146   : > { %p5023_p3 = scmp.ne.s32.totalorder %s858_s23, %s5022_s10  ;;  %p5030_p6 = scmp.lt.s32.totalorder %s858_s23, %s858_s23 }
 0x147   : > { %p5031_p8 = scmp.lt.s32.totalorder %s5029_s1, %s5022_s10 }
 0x148   : > { %p5025_p1 = pnand %p5023_p3, %p5576_p7 }
 0x149   : > { %p5032_p9 = por %p5031_p8, %p5030_p6 }
 0x14a   : > { %p5026_p4 = pneg %p5025_p1 }
 0x14c   : > { %p5033_p10 = pnand %p5032_p9, %p5026_p4 }
 0x14e   : > { %5036 = shalt.err (!%p5033_p10)
}
 0x14f   : > { %4377 = dma.hbm_to_vmem [thread:$0]  (!%p5564_p5), %s6292_s3, 16, %s858_s23, [#allocation8]  }
 0x150   : > { %s5357_s15 = smov [#allocation12]   ;;  %s5358_s11 = smov [#allocation15]  }
 0x151   : > { %s888_s26 = sshll.u32 %s5357_s15, 4  ;;  %s910_s22 = sshll.u32 %s5358_s11, 4  ;;  %s889_s26 = int_to_ptr.vmem [resolvable:$true] %s888_s26  ;;  %s911_s22 = int_to_ptr.vmem [resolvable:$true] %s910_s22 }
 0x152   : > { %s5037_s16 = scalar_lea.hbm %s5439_s30, 16 }
 0x153   : > { %p5038_p11 = scmp.ne.s32.totalorder %s5439_s30, %s5037_s16  ;;  %p5044_p13 = scmp.lt.u32.totalorder %s5037_s16, %s5439_s30 }
 0x155   : > { %p5040_p12 = pnand %p5038_p11, %p5576_p7 }
 0x157   : > { %p5041_p2 = pneg %p5040_p12 }
 0x159   : > { %p5046_p0 = pnand %p5044_p13, %p5041_p2 }
 0x15b   : > { %5049 = shalt.err (!%p5046_p0)
}
 0x15c   : > { %s5050_s10 = scalar_lea.vmem %s889_s26, 16  ;;  %s5057_s23 = scalar_lea.vmem %s889_s26, 32 }
 0x15d   : > { %p5051_p3 = scmp.ne.s32.totalorder %s889_s26, %s5050_s10  ;;  %p5058_p6 = scmp.lt.s32.totalorder %s889_s26, %s889_s26 }
 0x15e   : > { %p5059_p8 = scmp.lt.s32.totalorder %s5057_s23, %s5050_s10 }
 0x15f   : > { %p5053_p1 = pnand %p5051_p3, %p5576_p7 }
 0x160   : > { %p5060_p9 = por %p5059_p8, %p5058_p6 }
 0x161   : > { %p5054_p4 = pneg %p5053_p1 }
 0x163   : > { %p5061_p10 = pnand %p5060_p9, %p5054_p4 }
 0x165   : > { %5064 = shalt.err (!%p5061_p10)
}
 0x166   : > { %4383 = dma.hbm_to_vmem [thread:$0]  (!%p5564_p5), %s5439_s30, 16, %s889_s26, [#allocation11]  }
 0x167   : > { %s5065_s1 = scalar_lea.hbm %s5449_s12, 16 }
 0x168   : > { %p5066_p11 = scmp.ne.s32.totalorder %s5449_s12, %s5065_s1  ;;  %p5072_p13 = scmp.lt.u32.totalorder %s5065_s1, %s5449_s12 }
 0x16a   : > { %p5068_p12 = pnand %p5066_p11, %p5576_p7 }
 0x16c   : > { %p5069_p2 = pneg %p5068_p12 }
 0x16e   : > { %p5074_p0 = pnand %p5072_p13, %p5069_p2 }
 0x170   : > { %5077 = shalt.err (!%p5074_p0)
}
 0x171   : > { %s5078_s15 = scalar_lea.vmem %s911_s22, 16  ;;  %s5085_s11 = scalar_lea.vmem %s911_s22, 32 }
 0x172   : > { %p5079_p3 = scmp.ne.s32.totalorder %s911_s22, %s5078_s15  ;;  %p5086_p6 = scmp.lt.s32.totalorder %s911_s22, %s911_s22 }
 0x173   : > { %p5087_p8 = scmp.lt.s32.totalorder %s5085_s11, %s5078_s15 }
 0x174   : > { %p5081_p1 = pnand %p5079_p3, %p5576_p7 }
 0x175   : > { %p5088_p9 = por %p5087_p8, %p5086_p6 }
 0x176   : > { %p5082_p4 = pneg %p5081_p1 }
 0x178   : > { %p5089_p10 = pnand %p5088_p9, %p5082_p4 }
 0x17a   : > { %5092 = shalt.err (!%p5089_p10)
}
 0x17b   : > { %4389 = dma.hbm_to_vmem [thread:$0]  (!%p5564_p5), %s5449_s12, 16, %s911_s22, [#allocation14]  }
 0x17c   : > { %s5359_s26 = smov [#allocation18]   ;;  %s5360_s10 = smov [#allocation21]  }
 0x17d   : > { %s938_s16 = sshll.u32 %s5359_s26, 4  ;;  %s963_s23 = sshll.u32 %s5360_s10, 4  ;;  %s939_s16 = int_to_ptr.vmem [resolvable:$true] %s938_s16  ;;  %s964_s23 = int_to_ptr.vmem [resolvable:$true] %s963_s23 }
 0x17e   : > { %s5093_s1 = scalar_lea.hbm %s5469_s24, 16 }
 0x17f   : > { %p5094_p11 = scmp.ne.s32.totalorder %s5469_s24, %s5093_s1  ;;  %p5100_p13 = scmp.lt.u32.totalorder %s5093_s1, %s5469_s24 }
 0x181   : > { %p5096_p12 = pnand %p5094_p11, %p5576_p7 }
 0x183   : > { %p5097_p2 = pneg %p5096_p12 }
 0x185   : > { %p5102_p0 = pnand %p5100_p13, %p5097_p2 }
 0x187   : > { %5105 = shalt.err (!%p5102_p0)
}
 0x188   : > { %s5106_s15 = scalar_lea.vmem %s939_s16, 16  ;;  %s5113_s22 = scalar_lea.vmem %s939_s16, 32 }
 0x189   : > { %p5107_p3 = scmp.ne.s32.totalorder %s939_s16, %s5106_s15  ;;  %p5114_p6 = scmp.lt.s32.totalorder %s939_s16, %s939_s16 }
 0x18a   : > { %p5115_p8 = scmp.lt.s32.totalorder %s5113_s22, %s5106_s15 }
 0x18b   : > { %p5109_p1 = pnand %p5107_p3, %p5576_p7 }
 0x18c   : > { %p5116_p9 = por %p5115_p8, %p5114_p6 }
 0x18d   : > { %p5110_p4 = pneg %p5109_p1 }
 0x18f   : > { %p5117_p10 = pnand %p5116_p9, %p5110_p4 }
 0x191   : > { %5120 = shalt.err (!%p5117_p10)
}
 0x192   : > { %s6296_s11 = sld [smem:[#allocation55_spill]] }
 0x193   : > { %4395 = dma.hbm_to_vmem [thread:$0]  (!%p5564_p5), %s5469_s24, 16, %s939_s16, [#allocation17]  }
 0x198   : > { %s5121_s26 = scalar_lea.hbm %s6296_s11, 16 }
 0x199   : > { %p5122_p11 = scmp.ne.s32.totalorder %s6296_s11, %s5121_s26  ;;  %p5128_p13 = scmp.lt.u32.totalorder %s5121_s26, %s6296_s11 }
 0x19b   : > { %p5124_p12 = pnand %p5122_p11, %p5576_p7 }
 0x19d   : > { %p5125_p2 = pneg %p5124_p12 }
 0x19f   : > { %p5130_p0 = pnand %p5128_p13, %p5125_p2 }
 0x1a1   : > { %5133 = shalt.err (!%p5130_p0)
}
 0x1a2   : > { %s5134_s10 = scalar_lea.vmem %s964_s23, 16  ;;  %s5141_s1 = scalar_lea.vmem %s964_s23, 32 }
 0x1a3   : > { %p5135_p3 = scmp.ne.s32.totalorder %s964_s23, %s5134_s10  ;;  %p5142_p6 = scmp.lt.s32.totalorder %s964_s23, %s964_s23 }
 0x1a4   : > { %p5143_p8 = scmp.lt.s32.totalorder %s5141_s1, %s5134_s10 }
 0x1a5   : > { %p5137_p1 = pnand %p5135_p3, %p5576_p7 }
 0x1a6   : > { %p5144_p9 = por %p5143_p8, %p5142_p6 }
 0x1a7   : > { %p5138_p4 = pneg %p5137_p1 }
 0x1a9   : > { %p5145_p10 = pnand %p5144_p9, %p5138_p4 }
 0x1ab   : > { %5148 = shalt.err (!%p5145_p10)
}
 0x1ac   : > { %s6297_s16 = sld [smem:[#allocation57_spill]]  ;;  %s5361_s15 = smov [#allocation24]  }
 0x1ad   : > { %4401 = dma.hbm_to_vmem [thread:$0]  (!%p5564_p5), %s6296_s11, 16, %s964_s23, [#allocation20]  }
 0x1ae   : > { %s988_s22 = sshll.u32 %s5361_s15, 4  ;;  %s5362_s26 = smov [#allocation27]   ;;  %s989_s22 = int_to_ptr.vmem [resolvable:$true] %s988_s22 }
 0x1af   : > { %s1013_s3 = sshll.u32 %s5362_s26, 4  ;;  %s1014_s3 = int_to_ptr.vmem [resolvable:$true] %s1013_s3 }
 0x1b2   : > { %s5149_s4 = scalar_lea.hbm %s6297_s16, 16 }
 0x1b3   : > { %p5150_p11 = scmp.ne.s32.totalorder %s6297_s16, %s5149_s4  ;;  %p5156_p13 = scmp.lt.u32.totalorder %s5149_s4, %s6297_s16 }
 0x1b5   : > { %p5152_p12 = pnand %p5150_p11, %p5576_p7 }
 0x1b7   : > { %p5153_p2 = pneg %p5152_p12 }
 0x1b9   : > { %p5158_p0 = pnand %p5156_p13, %p5153_p2 }
 0x1bb   : > { %5161 = shalt.err (!%p5158_p0)
}
 0x1bc   : > { %s5162_s10 = scalar_lea.vmem %s989_s22, 16  ;;  %s5169_s23 = scalar_lea.vmem %s989_s22, 32 }
 0x1bd   : > { %p5163_p3 = scmp.ne.s32.totalorder %s989_s22, %s5162_s10  ;;  %p5170_p6 = scmp.lt.s32.totalorder %s989_s22, %s989_s22 }
 0x1be   : > { %p5171_p8 = scmp.lt.s32.totalorder %s5169_s23, %s5162_s10 }
 0x1bf   : > { %p5165_p1 = pnand %p5163_p3, %p5576_p7 }
 0x1c0   : > { %p5172_p9 = por %p5171_p8, %p5170_p6 }
 0x1c1   : > { %p5166_p4 = pneg %p5165_p1 }
 0x1c3   : > { %p5173_p10 = pnand %p5172_p9, %p5166_p4 }
 0x1c5   : > { %5176 = shalt.err (!%p5173_p10)
}
 0x1c6   : > { %s6298_s1 = sld [smem:[#allocation59_spill]] }
 0x1c7   : > { %4407 = dma.hbm_to_vmem [thread:$0]  (!%p5564_p5), %s6297_s16, 16, %s989_s22, [#allocation23]  }
 0x1cc   : > { %s5177_s4 = scalar_lea.hbm %s6298_s1, 16 }
 0x1cd   : > { %p5178_p11 = scmp.ne.s32.totalorder %s6298_s1, %s5177_s4  ;;  %p5184_p13 = scmp.lt.u32.totalorder %s5177_s4, %s6298_s1 }
 0x1cf   : > { %p5180_p12 = pnand %p5178_p11, %p5576_p7 }
 0x1d1   : > { %p5181_p2 = pneg %p5180_p12 }
 0x1d3   : > { %p5186_p0 = pnand %p5184_p13, %p5181_p2 }
 0x1d5   : > { %5189 = shalt.err (!%p5186_p0)
}
 0x1d6   : > { %s5190_s15 = scalar_lea.vmem %s1014_s3, 16  ;;  %s5197_s26 = scalar_lea.vmem %s1014_s3, 32 }
 0x1d7   : > { %p5191_p3 = scmp.ne.s32.totalorder %s1014_s3, %s5190_s15  ;;  %p5198_p6 = scmp.lt.s32.totalorder %s1014_s3, %s1014_s3 }
 0x1d8   : > { %p5199_p8 = scmp.lt.s32.totalorder %s5197_s26, %s5190_s15 }
 0x1d9   : > { %p5193_p1 = pnand %p5191_p3, %p5576_p7 }
 0x1da   : > { %p5200_p9 = por %p5199_p8, %p5198_p6 }
 0x1db   : > { %p5194_p4 = pneg %p5193_p1 }
 0x1dd   : > { %p5201_p10 = pnand %p5200_p9, %p5194_p4 }
 0x1df   : > { %5204 = shalt.err (!%p5201_p10)
}
 0x1e0   : > { %4413 = dma.hbm_to_vmem [thread:$0]  (!%p5564_p5), %s6298_s1, 16, %s1014_s3, [#allocation26]  }
 0x1e1   : > { %s5363_s22 = smov [#allocation30]   ;;  %s5364_s23 = smov [#allocation31]  }
 0x1e2   : > { %s1038_s10 = sshll.u32 %s5363_s22, 4  ;;  %s1049_s4 = sshll.u32 %s5364_s23, 4  ;;  %s1039_s10 = int_to_ptr.vmem [resolvable:$true] %s1038_s10  ;;  %s1050_s4 = int_to_ptr.vmem [resolvable:$true] %s1049_s4 }
 0x1e3   : > { %s5205_s6 = scalar_lea.hbm %s5529_s14, 16 }
 0x1e4   : > { %p5206_p11 = scmp.ne.s32.totalorder %s5529_s14, %s5205_s6  ;;  %p5212_p13 = scmp.lt.u32.totalorder %s5205_s6, %s5529_s14 }
 0x1e6   : > { %p5208_p12 = pnand %p5206_p11, %p5576_p7 }
 0x1e8   : > { %p5209_p2 = pneg %p5208_p12 }
 0x1ea   : > { %p5214_p0 = pnand %p5212_p13, %p5209_p2 }
 0x1ec   : > { %5217 = shalt.err (!%p5214_p0)
}
 0x1ed   : > { %s5218_s15 = scalar_lea.vmem %s1039_s10, 16  ;;  %s5225_s3 = scalar_lea.vmem %s1039_s10, 32 }
 0x1ee   : > { %p5219_p3 = scmp.ne.s32.totalorder %s1039_s10, %s5218_s15  ;;  %p5226_p6 = scmp.lt.s32.totalorder %s1039_s10, %s1039_s10 }
 0x1ef   : > { %p5227_p8 = scmp.lt.s32.totalorder %s5225_s3, %s5218_s15 }
 0x1f0   : > { %p5221_p1 = pnand %p5219_p3, %p5576_p7 }
 0x1f1   : > { %p5228_p9 = por %p5227_p8, %p5226_p6 }
 0x1f2   : > { %p5222_p4 = pneg %p5221_p1 }
 0x1f4   : > { %p5229_p10 = pnand %p5228_p9, %p5222_p4 }
 0x1f6   : > { %5232 = shalt.err (!%p5229_p10)
}
 0x1f7   : > { %4419 = dma.hbm_to_vmem [thread:$0]  (!%p5564_p5), %s5529_s14, 16, %s1039_s10, [#allocation29]  }
 0x1f8   : > { %s5233_s6 = scalar_lea.hbm %s5534_s5, 16 }
 0x1f9   : > { %p5234_p11 = scmp.ne.s32.totalorder %s5534_s5, %s5233_s6  ;;  %p5240_p13 = scmp.lt.u32.totalorder %s5233_s6, %s5534_s5 }
 0x1fb   : > { %p5236_p12 = pnand %p5234_p11, %p5576_p7 }
 0x1fd   : > { %p5237_p2 = pneg %p5236_p12 }
 0x1ff   : > { %p5242_p0 = pnand %p5240_p13, %p5237_p2 }
 0x201   : > { %5245 = shalt.err (!%p5242_p0)
}
 0x202   : > { %s5246_s26 = scalar_lea.vmem %s1050_s4, 16  ;;  %s5253_s22 = scalar_lea.vmem %s1050_s4, 32 }
 0x203   : > { %p5247_p3 = scmp.ne.s32.totalorder %s1050_s4, %s5246_s26  ;;  %p5254_p6 = scmp.lt.s32.totalorder %s1050_s4, %s1050_s4 }
 0x204   : > { %p5255_p8 = scmp.lt.s32.totalorder %s5253_s22, %s5246_s26 }
 0x205   : > { %p5249_p1 = pnand %p5247_p3, %p5576_p7 }
 0x206   : > { %p5256_p9 = por %p5255_p8, %p5254_p6 }
 0x207   : > { %p5250_p4 = pneg %p5249_p1 }
 0x209   : > { %p5257_p10 = pnand %p5256_p9, %p5250_p4 }
 0x20b   : > { %5260 = shalt.err (!%p5257_p10)
}
 0x20c   : > { %4422 = dma.hbm_to_vmem [thread:$0]  (!%p5564_p5), %s5534_s5, 16, %s1050_s4, [#allocation32]  }
 0x20d   : > { %p6299_p11 = scmp.ne.s32.totalorder %s6293_s7, 0 }
 0x20e   : > { %p6300_p12 = scmp.eq.s32.totalorder (!%p6299_p11), %s5547_s2, 0 }
 0x20f   : > { %1070 = sbr.rel (%p6299_p11) target bundleno = 4748 (0x128c), region = 148 }
 0x216   : > { %5266 = dma.done.wait (%p6300_p12), [#allocation3], 16   ;;  %p6301_p2 = pmov %p6300_p12 }
 0x218   : > { %5268 = vsyncadd (%p6301_p2), [#allocation3], 4294967280  ;;  %p6302_p7 = pmov %p6301_p2 }
 0x219   : > { %p6303_p13 = pmov %p6301_p2 }
 0x21a   : > { %5270 = dma.done.wait (%p6302_p7), [#allocation5], 32  }
 0x21b   : > { %5272 = vsyncadd (%p6303_p13), [#allocation5], 4294967264  ;;  %p6304_p0 = pmov %p6301_p2 }
 0x21d   : > { %5274 = dma.done.wait (%p6304_p0), [#allocation8], 32   ;;  %p6305_p5 = pmov %p6304_p0 }
 0x21e   : > { %p6306_p3 = pmov %p6304_p0 }
 0x21f   : > { %5276 = vsyncadd (%p6305_p5), [#allocation8], 4294967264 }
 0x220   : > { %5278 = dma.done.wait (%p6306_p3), [#allocation11], 32   ;;  %p6307_p1 = pmov %p6304_p0 }
 0x221   : > { %p6308_p4 = pmov %p6304_p0 }
 0x222   : > { %5280 = vsyncadd (%p6307_p1), [#allocation11], 4294967264 }
 0x223   : > { %5282 = dma.done.wait (%p6308_p4), [#allocation14], 32   ;;  %p6309_p6 = pmov %p6304_p0 }
 0x224   : > { %p6310_p8 = pmov %p6304_p0 }
 0x225   : > { %5284 = vsyncadd (%p6309_p6), [#allocation14], 4294967264 }
 0x226   : > { %5286 = dma.done.wait (%p6310_p8), [#allocation17], 32   ;;  %p6311_p9 = pmov %p6304_p0 }
 0x227   : > { %p6312_p10 = pmov %p6304_p0 }
 0x228   : > { %5288 = vsyncadd (%p6311_p9), [#allocation17], 4294967264 }
 0x229   : > { %5290 = dma.done.wait (%p6312_p10), [#allocation20], 32   ;;  %p6313_p11 = pmov %p6304_p0 }
 0x22a   : > { %p6314_p12 = pmov %p6304_p0 }
 0x22b   : > { %5292 = vsyncadd (%p6313_p11), [#allocation20], 4294967264 }
 0x22c   : > { %5294 = dma.done.wait (%p6314_p12), [#allocation23], 32   ;;  %p6315_p2 = pmov %p6304_p0 }
 0x22d   : > { %p6316_p7 = pmov %p6304_p0 }
 0x22e   : > { %5296 = vsyncadd (%p6315_p2), [#allocation23], 4294967264 }
 0x22f   : > { %5298 = dma.done.wait (%p6316_p7), [#allocation26], 32   ;;  %p6317_p13 = pmov %p6304_p0 }
 0x231   : > { %5300 = vsyncadd (%p6317_p13), [#allocation26], 4294967264 }
 0x232   : > { %5302 = dma.done.wait (%p6304_p0), [#allocation29], 32   ;;  %p6318_p5 = pmov %p6304_p0 }
 0x233   : > { %p6319_p3 = pmov %p6304_p0 }
 0x234   : > { %5304 = vsyncadd (%p6318_p5), [#allocation29], 4294967264 }
 0x235   : > { %5306 = dma.done.wait (%p6319_p3), [#allocation32], 16   ;;  %p6320_p1 = pmov %p6304_p0 }
 0x236   : > { %s6321_s7 = sld [smem:[#allocation44_spill]]  ;;  %p1228_p4 = scmp.lt.s32.totalorder %s5547_s2, 1  ;;  %v5365_v0 = vmov 0.0   ;;  %vm5366_vm0 = vmmov 0   ;;  %v3803_v31 = vld [vmem:[#allocation2] ss:$0 sm:$0xff] }
 0x237   : > { %5308 = vsyncadd (%p6320_p1), [#allocation32], 4294967280  ;;  %s6322_s18 = sld [smem:[#allocation45_spill]]  ;;  %4036 = vmatprep.subr.bf16.mxu0 %v5365_v0  ;;  %4056 = vmatprep.subr.bf16.mxu1 %v5365_v0  ;;  %s6323_s23 = sld [smem:[#allocation46_spill]]  ;;  %v3804_v36 = vld [vmem:[#allocation4] ss:$0 sm:$0xff] }
 0x238   : > { %s6334_s2 = smov (!%p1228_p4, %s5547_s2), 1  ;;  %4052 = vmatprep.mubr.msk.bf16.mxu0 %vm5366_vm0, %v5365_v0  ;;  %4072 = vmatprep.mubr.msk.bf16.mxu1 %vm5366_vm0, %v5365_v0  ;;  %v3805_v49 = vld [vmem:[#allocation6] ss:$0 sm:$0xff]  ;;  %s6324_s4 = sld [smem:[#allocation48_spill]]  ;;  %vm1853_vm1 = vcmask 64512   ;;  %vm1903_vm2 = vcmask 130048  }
 0x239   : > { %s3927_s0 = sshll.u32 %s6334_s2, 3  ;;  %s6325_s15 = sld [smem:[#allocation49_spill]]  ;;  %vm1975_vm3 = vcmask 1043456  }
 0x23a   : > { %s5368_s3 = smov 120   ;;  %s5369_s6 = smov 112  }
 0x23b   : > { %s5370_s26 = smov 104   ;;  %s6326_s22 = sld [smem:[#allocation50_spill]] }
 0x23c   : > { %s1232_s10 = scalar_lea.vmem %s6321_s7, %s3927_s0  ;;  %s6327_s7 = sld [smem:[#allocation52_spill]] }
 0x23d   : > { %v3932_v1 = vld [vmem:[%s1232_s10] sm:$0xff]   ;;  %v4530_v7 = vld [vmem:[%s6322_s18 + $0x8] sm:$0xff]   ;;  %v4531_v8 = vld [vmem:[%s6322_s18 + $0x10] sm:$0xff]   ;;  %s6328_s10 = sld [smem:[#allocation53_spill]] }
 0x23e   : > { %v5858_v2 = vunpack.c.l.bf16 %v3932_v1  ;;  %v5860_v3 = vunpack.c.h.bf16 %v3932_v1  ;;  %v4529_v6 = vld [vmem:[%s6322_s18] sm:$0xff]   ;;  %v4532_v9 = vld [vmem:[%s6322_s18 + $0x18] sm:$0xff]   ;;  %v4534_v11 = vld [vmem:[%s6322_s18 + $0x28] sm:$0xff]  }
 0x23f   : > { %4037 = vmatpush3.bf16.msra.mxu0 %v4529_v6  ;;  %v4533_v10 = vld [vmem:[%s6322_s18 + $0x20] sm:$0xff]   ;;  %v4535_v12 = vld [vmem:[%s6322_s18 + $0x30] sm:$0xff]   ;;  %v4536_v13 = vld [vmem:[%s6322_s18 + $0x38] sm:$0xff]  }
 0x240   : > { %1245 = vadd.xlane.f32.xlu0 %v5858_v2  ;;  %v1251_v4 = vmul.f32 %v5858_v2, %v5858_v2  ;;  %v1252_v5 = vmul.f32 %v5860_v3, %v5860_v3  ;;  %4038 = vmatprep.subr.bf16.mxu0 %v5365_v0  ;;  %v4537_v41 = vld [vmem:[%s6323_s23] sm:$0xff]   ;;  %v4538_v42 = vld [vmem:[%s6323_s23 + $0x8] sm:$0xff]   ;;  %v4539_v43 = vld [vmem:[%s6323_s23 + $0x10] sm:$0xff]  }
 0x241   : > { %4057 = vmatpush3.bf16.msra.mxu1 %v4537_v41  ;;  %v4540_v44 = vld [vmem:[%s6323_s23 + $0x18] sm:$0xff]   ;;  %v4541_v45 = vld [vmem:[%s6323_s23 + $0x20] sm:$0xff]   ;;  %v4542_v46 = vld [vmem:[%s6323_s23 + $0x28] sm:$0xff]  }
 0x242   : > { %1253 = vadd.xlane.f32.xlu1 %v1251_v4  ;;  %4058 = vmatprep.subr.bf16.mxu1 %v5365_v0  ;;  %v4543_v47 = vld [vmem:[%s6323_s23 + $0x30] sm:$0xff]   ;;  %v4544_v48 = vld [vmem:[%s6323_s23 + $0x38] sm:$0xff]   ;;  %v4545_v6 = vld [vmem:[%s6324_s4] ss:$12 sps:$4 sm:$0xff]  }
 0x243   : > { %4039 = vmatpush3.bf16.msra.mxu0 %v4530_v7  ;;  %v4547_v7 = vld [vmem:[%s6324_s4 + $0x4] ss:$12 sps:$4 sm:$0xff]  }
 0x244   : > { %1247 = vadd.xlane.f32.xlu0 %v5860_v3  ;;  %4040 = vmatprep.subr.bf16.mxu0 %v5365_v0  ;;  %v4576_v41 = vld [vmem:[%s6324_s4 + $0xb0] ss:$12 sps:$4 sm:$0xff]  }
 0x245   : > { %4059 = vmatpush3.bf16.msra.mxu1 %v4538_v42 }
 0x246   : > { %1255 = vadd.xlane.f32.xlu1 %v1252_v5  ;;  %4060 = vmatprep.subr.bf16.mxu1 %v5365_v0 }
 0x247   : > { %4041 = vmatpush3.bf16.msra.mxu0 %v4531_v8  ;;  %v3816_v8 = vld [vmem:[#allocation7] ss:$0 sm:$0xff] }
 0x248   : > { %4042 = vmatprep.subr.bf16.mxu0 %v5365_v0 }
 0x249   : > { %4061 = vmatpush3.bf16.msra.mxu1 %v4539_v43 }
 0x24a   : > { %4062 = vmatprep.subr.bf16.mxu1 %v5365_v0 }
 0x24b   : > { %4043 = vmatpush3.bf16.msra.mxu0 %v4532_v9 }
 0x24c   : > { %4044 = vmatprep.subr.bf16.mxu0 %v5365_v0 }
 0x24d   : > { %4063 = vmatpush3.bf16.msra.mxu1 %v4540_v44 }
 0x24e   : > { %4064 = vmatprep.subr.bf16.mxu1 %v5365_v0 }
 0x24f   : > { %4045 = vmatpush3.bf16.msra.mxu0 %v4533_v10 }
 0x250   : > { %4046 = vmatprep.subr.bf16.mxu0 %v5365_v0 }
 0x251   : > { %4065 = vmatpush3.bf16.msra.mxu1 %v4541_v45 }
 0x252   : > { %4066 = vmatprep.subr.bf16.mxu1 %v5365_v0 }
 0x253   : > { %4047 = vmatpush3.bf16.msra.mxu0 %v4534_v11 }
 0x254   : > { %4048 = vmatprep.subr.bf16.mxu0 %v5365_v0 }
 0x255   : > { %4067 = vmatpush3.bf16.msra.mxu1 %v4542_v46 }
 0x256   : > { %4068 = vmatprep.subr.bf16.mxu1 %v5365_v0 }
 0x257   : > { %4049 = vmatpush3.bf16.msra.mxu0 %v4535_v12 }
 0x258   : > { %4050 = vmatprep.subr.bf16.mxu0 %v5365_v0 }
 0x259   : > { %4069 = vmatpush3.bf16.msra.mxu1 %v4543_v47 }
 0x25a   : > { %4070 = vmatprep.subr.bf16.mxu1 %v5365_v0 }
 0x25b   : > { %4051 = vmatpush3.bf16.msra.mxu0 %v4536_v13 }
 0x25c   : > { %1753 = vmatprep.subr.bf16.mxu0 %v4547_v7 }
 0x25d   : > { %4071 = vmatpush3.bf16.msra.mxu1 %v4544_v48 }
 0x25e   : > { %4076 = vmatprep.subr.bf16.mxu1 %v5365_v0 }
 0x2cd   : > { %v1246_v14 = vpop.xlane.xlu0 %1245 }
 0x2ce   : > { %v1249_v15 = vmul.f32 0.03125, %v1246_v14 }
 0x2cf   : > { %v1254_v16 = vpop.xlane.xlu1 %1253 }
 0x2d0   : > { %v1259_v17 = vmul.f32 %v1249_v15, %v1249_v15  ;;  %v1257_v18 = vmul.f32 0.03125, %v1254_v16  ;;  %v1263_v28 = vsub.f32 %v5858_v2, %v1249_v15 }
 0x2d1   : > { %v1248_v19 = vpop.xlane.xlu0 %1247 }
 0x2d2   : > { %v1261_v20 = vsub.f32 %v1257_v18, %v1259_v17  ;;  %v1250_v21 = vmul.f32 0.03125, %v1248_v19 }
 0x2d3   : > { %v1256_v22 = vpop.xlane.xlu1 %1255 }
 0x2d4   : > { %v1265_v23 = vadd.f32 1e-05, %v1261_v20  ;;  %v1260_v24 = vmul.f32 %v1250_v21, %v1250_v21  ;;  %v1258_v25 = vmul.f32 0.03125, %v1256_v22  ;;  %v1264_v32 = vsub.f32 %v5860_v3, %v1250_v21  ;;  %v4549_v21 = vld [vmem:[%s6324_s4 + $0x18] ss:$12 sps:$4 sm:$0xff]  }
 0x2d5   : > { %v4552_v22 = vld [vmem:[%s6324_s4 + $0x20] ss:$12 sps:$4 sm:$0xff]  }
 0x2d6   : > { %4617 = vrsqrt.f32 %v1265_v23  ;;  %v1262_v26 = vsub.f32 %v1258_v25, %v1260_v24  ;;  %v4555_v23 = vld [vmem:[%s6324_s4 + $0x34] ss:$12 sps:$4 sm:$0xff]   ;;  %v4553_v24 = vld [vmem:[%s6324_s4 + $0x30] ss:$12 sps:$4 sm:$0xff]   ;;  %v4556_v25 = vld [vmem:[%s6324_s4 + $0x38] ss:$12 sps:$4 sm:$0xff]  }
 0x2d8   : > { %v1266_v27 = vadd.f32 1e-05, %v1262_v26  ;;  %v4559_v26 = vld [vmem:[%s6324_s4 + $0x4c] ss:$12 sps:$4 sm:$0xff]  }
 0x2da   : > { %4619 = vrsqrt.f32 %v1266_v27  ;;  %v4557_v27 = vld [vmem:[%s6324_s4 + $0x48] ss:$12 sps:$4 sm:$0xff]  }
 0x2e0   : > { %v4618_v29 = vpop.eup %4617 }
 0x2e1   : > { %v1269_v30 = vmul.f32 %v4618_v29, %v1263_v28  ;;  %v4560_v28 = vld [vmem:[%s6324_s4 + $0x50] ss:$12 sps:$4 sm:$0xff]   ;;  %v4561_v29 = vld [vmem:[%s6324_s4 + $0x60] ss:$12 sps:$4 sm:$0xff]  }
 0x2e3   : > { %v1277_v35 = vmul.f32 %v3803_v31, %v1269_v30  ;;  %v4563_v30 = vld [vmem:[%s6324_s4 + $0x64] ss:$12 sps:$4 sm:$0xff]  }
 0x2e4   : > { %v4620_v33 = vpop.eup %4619 }
 0x2e5   : > { %v1270_v34 = vmul.f32 %v4620_v33, %v1264_v32  ;;  %v1285_v38 = vadd.f32 %v3804_v36, %v1277_v35  ;;  %v4567_v32 = vld [vmem:[%s6324_s4 + $0x7c] ss:$12 sps:$4 sm:$0xff]   ;;  %v4565_v33 = vld [vmem:[%s6324_s4 + $0x78] ss:$12 sps:$4 sm:$0xff]   ;;  %v4571_v35 = vld [vmem:[%s6324_s4 + $0x94] ss:$12 sps:$4 sm:$0xff]  }
 0x2e7   : > { %v1278_v37 = vmul.f32 %v3803_v31, %v1270_v34  ;;  %v4564_v31 = vld [vmem:[%s6324_s4 + $0x68] ss:$12 sps:$4 sm:$0xff]   ;;  %v4568_v34 = vld [vmem:[%s6324_s4 + $0x80] ss:$12 sps:$4 sm:$0xff]  }
 0x2e9   : > { %v1286_v39 = vadd.f32 %v3804_v36, %v1278_v37  ;;  %v5367_v36 = vmov 0   ;;  %v4569_v37 = vld [vmem:[%s6324_s4 + $0x90] ss:$12 sps:$4 sm:$0xff]  }
 0x2eb   : > { %v1287_v40 = vpack.c.bf16 %v1286_v39, %v1285_v38  ;;  %v4572_v38 = vld [vmem:[%s6324_s4 + $0x98] ss:$12 sps:$4 sm:$0xff]  }
 0x2ec   : > { %v4575_v39 = vld [vmem:[%s6324_s4 + $0xac] ss:$12 sps:$4 sm:$0xff]  }
 0x2ed   : > { %4053 = vmatmul.mubr.bf16.vlgmr.msra.gmra.mrb[0].mxu0 %v1287_v40  ;;  %v4573_v40 = vld [vmem:[%s6324_s4 + $0xa8] ss:$12 sps:$4 sm:$0xff]  }
 0x2ee   : > { %1754 = vmatpush1.bf16.msra.mxu0 %v4545_v6  ;;  %1785 = vmatprep.mubr.bf16.mxu0 %v5367_v36 }
 0x3c0   : > { %v1393_v50 = vpop.f32.mrb[0].mxu0 }
 0x3c1   : > { %v1394_v51 = vadd.f32 %v3805_v49, %v1393_v50  ;;  %v4054_v52 = vpop.f32.mrb[1].mxu0 }
 0x3c2   : > { %v1396_v53 = vpop.f32.mrb[2].mxu0 }
 0x3c3   : > { %v3814_v54 = vmul.f32 -1.442695, %v1394_v51  ;;  %v1397_v55 = vadd.f32 %v3805_v49, %v1396_v53  ;;  %v4055_v56 = vpop.f32.mrb[3].mxu0 }
 0x3c5   : > { %4621 = vpow2.f32 %v3814_v54  ;;  %v3815_v57 = vmul.f32 -1.442695, %v1397_v55 }
 0x3c7   : > { %4623 = vpow2.f32 %v3815_v57 }
 0x3cf   : > { %v4622_v58 = vpop.eup %4621 }
 0x3d0   : > { %v1406_v59 = vadd.f32 1.0, %v4622_v58  ;;  %v3825_v58 = vld [vmem:[#allocation9] ss:$0 sm:$0xff] }
 0x3d1   : > { %v4624_v60 = vpop.eup %4623 }
 0x3d2   : > { %4625 = vrcp.f32 %v1406_v59  ;;  %v1407_v61 = vadd.f32 1.0, %v4624_v60 }
 0x3d4   : > { %4627 = vrcp.f32 %v1407_v61 }
 0x3dc   : > { %v4626_v62 = vpop.eup %4625 }
 0x3dd   : > { %v1412_v1 = vmul.f32 %v4626_v62, %v1394_v51 }
 0x3de   : > { %v4628_v63 = vpop.eup %4627 }
 0x3df   : > { %v1413_v4 = vmul.f32 %v4628_v63, %v1397_v55 }
 0x3e1   : > { %v1414_v5 = vpack.c.bf16 %v1413_v4, %v1412_v1  ;;  %v3826_v1 = vld [vmem:[#allocation10] ss:$0 sm:$0xff] }
 0x3e3   : > { %4073 = vmatmul.mubr.bf16.vlgmr.msra.gmra.mrb[0].mxu1 %v1414_v5 }
 0x3e4   : > { %4092 = vmatprep.mubr.msk.bf16.mxu1 %vm5366_vm0, %v5365_v0 }
 0x4b6   : > { %v1520_v9 = vpop.f32.mrb[0].mxu1 }
 0x4b7   : > { %v1521_v10 = vadd.f32 %v3816_v8, %v1520_v9  ;;  %v4074_v11 = vpop.f32.mrb[1].mxu1 }
 0x4b8   : > { %v1523_v12 = vpop.f32.mrb[2].mxu1 }
 0x4b9   : > { %v1527_v13 = vmul.f32 0.5, %v1521_v10  ;;  %v1524_v14 = vadd.f32 %v3816_v8, %v1523_v12  ;;  %v4075_v15 = vpop.f32.mrb[3].mxu1  ;;  %v1610_v8 = vlaneseq  ;;  %v1608_v12 = vld [vmem:[%s6325_s15] sm:$0x7]  ;;  %s6329_s15 = sld [smem:[#allocation56_spill]] }
 0x4bb   : > { %v5910_v16 = vadd.f32 %v5858_v2, %v1527_v13  ;;  %v1528_v17 = vmul.f32 0.5, %v1524_v14  ;;  %v4548_v2 = vld [vmem:[%s6324_s4 + $0x8] ss:$12 sps:$4 sm:$0xff]   ;;  %v5958_v9 = vshrl.u32 %v1610_v8, 7 }
 0x4bc   : > { %4077 = vmatpush3.bf16.msra.mxu1 %v4548_v2 }
 0x4bd   : > { %v5913_v18 = vadd.f32 %v5860_v3, %v1528_v17  ;;  %1533 = vadd.xlane.f32.xlu0 %v5910_v16  ;;  %v1539_v19 = vmul.f32 %v5910_v16, %v5910_v16  ;;  %v4551_v3 = vld [vmem:[%s6324_s4 + $0x1c] ss:$12 sps:$4 sm:$0xff]   ;;  %4078 = vmatprep.subr.bf16.mxu1 %v5365_v0  ;;  %v1612_v10 = vsub.s32 0, %v5958_v9  ;;  %v1620_v11 = vsub.s32 2, %v5958_v9 }
 0x4be   : > { %1755 = vmatprep.subr.bf16.mxu0 %v4551_v3  ;;  %v1616_v13 = vsub.s32 1, %v5958_v9  ;;  %vm2833_vm4 = vcmp.lt.s32.totalorder %v5958_v9, 3  ;;  %vm2856_vm5 = vcmp.lt.s32.totalorder %v5958_v9, 2  ;;  %vm2879_vm8 = vcmp.lt.s32.totalorder %v5958_v9, 1 }
 0x4bf   : > { %1535 = vadd.xlane.f32.xlu1 %v5913_v18  ;;  %v1540_v20 = vmul.f32 %v5913_v18, %v5913_v18  ;;  %1756 = vmatpush1.bf16.msra.mxu0 %v4549_v21  ;;  %v1613_v14 = vrot.slane %v1608_v12, %v1612_v10  ;;  %v1621_v15 = vrot.slane %v1608_v12, %v1620_v11  ;;  %vm2918_vm10 = vcmp.lt.s32.totalorder %v5958_v9, 7 }
 0x4c0   : > { %4079 = vmatpush3.bf16.msra.mxu1 %v4552_v22  ;;  %1757 = vmatprep.subr.bf16.mxu0 %v4555_v23  ;;  %vm2941_vm12 = vcmp.lt.s32.totalorder %v5958_v9, 6  ;;  %vm2964_vm14 = vcmp.lt.s32.totalorder %v5958_v9, 5 }
 0x4c1   : > { %1541 = vadd.xlane.f32.xlu0 %v1539_v19  ;;  %4080 = vmatprep.subr.bf16.mxu1 %v5365_v0 }
 0x4c3   : > { %1543 = vadd.xlane.f32.xlu1 %v1540_v20  ;;  %1758 = vmatpush1.bf16.msra.mxu0 %v4553_v24  ;;  %v1617_v20 = vrot.slane %v1608_v12, %v1616_v13 }
 0x4c4   : > { %4081 = vmatpush3.bf16.msra.mxu1 %v4556_v25  ;;  %1759 = vmatprep.subr.bf16.mxu0 %v4559_v26 }
 0x4c5   : > { %4082 = vmatprep.subr.bf16.mxu1 %v5365_v0 }
 0x4c7   : > { %1760 = vmatpush1.bf16.msra.mxu0 %v4557_v27 }
 0x4c8   : > { %4083 = vmatpush3.bf16.msra.mxu1 %v4560_v28  ;;  %1761 = vmatprep.subr.bf16.mxu0 %v4563_v30 }
 0x4c9   : > { %4084 = vmatprep.subr.bf16.mxu1 %v5365_v0 }
 0x4cb   : > { %1762 = vmatpush1.bf16.msra.mxu0 %v4561_v29 }
 0x4cc   : > { %4085 = vmatpush3.bf16.msra.mxu1 %v4564_v31  ;;  %1763 = vmatprep.subr.bf16.mxu0 %v4567_v32 }
 0x4cd   : > { %4086 = vmatprep.subr.bf16.mxu1 %v5365_v0 }
 0x4cf   : > { %1764 = vmatpush1.bf16.msra.mxu0 %v4565_v33 }
 0x4d0   : > { %4087 = vmatpush3.bf16.msra.mxu1 %v4568_v34  ;;  %1765 = vmatprep.subr.bf16.mxu0 %v4571_v35 }
 0x4d1   : > { %4088 = vmatprep.subr.bf16.mxu1 %v5365_v0 }
 0x4d3   : > { %1766 = vmatpush1.bf16.msra.mxu0 %v4569_v37 }
 0x4d4   : > { %4089 = vmatpush3.bf16.msra.mxu1 %v4572_v38  ;;  %1767 = vmatprep.subr.bf16.mxu0 %v4575_v39 }
 0x4d5   : > { %4090 = vmatprep.subr.bf16.mxu1 %v5365_v0 }
 0x4d7   : > { %1768 = vmatpush1.bf16.msra.mxu0 %v4573_v40 }
 0x4d8   : > { %4091 = vmatpush3.bf16.msra.mxu1 %v4576_v41  ;;  %4096 = vmatprep.subr.bf16.mxu0 %v5365_v0 }
 0x4d9   : > { %4114 = vmatprep.subr.bf16.mxu1 %v5365_v0 }
 0x54a   : > { %v1534_v42 = vpop.xlane.xlu0 %1533 }
 0x54b   : > { %v1537_v43 = vmul.f32 0.03125, %v1534_v42 }
 0x54c   : > { %v1536_v44 = vpop.xlane.xlu1 %1535 }
 0x54d   : > { %v1538_v45 = vmul.f32 0.03125, %v1536_v44  ;;  %v1547_v47 = vmul.f32 %v1537_v43, %v1537_v43  ;;  %v1551_v56 = vsub.f32 %v5910_v16, %v1537_v43 }
 0x54e   : > { %v1542_v46 = vpop.xlane.xlu0 %1541 }
 0x54f   : > { %v1545_v48 = vmul.f32 0.03125, %v1542_v46  ;;  %v1548_v50 = vmul.f32 %v1538_v45, %v1538_v45  ;;  %v1552_v59 = vsub.f32 %v5913_v18, %v1538_v45 }
 0x550   : > { %v1544_v49 = vpop.xlane.xlu1 %1543 }
 0x551   : > { %v1549_v51 = vsub.f32 %v1545_v48, %v1547_v47  ;;  %v1546_v52 = vmul.f32 0.03125, %v1544_v49 }
 0x553   : > { %v1553_v53 = vadd.f32 1e-05, %v1549_v51  ;;  %v1550_v54 = vsub.f32 %v1546_v52, %v1548_v50 }
 0x555   : > { %4629 = vrsqrt.f32 %v1553_v53  ;;  %v1554_v55 = vadd.f32 1e-05, %v1550_v54 }
 0x557   : > { %4631 = vrsqrt.f32 %v1554_v55 }
 0x55f   : > { %v4630_v57 = vpop.eup %4629 }
 0x560   : > { %v1557_v60 = vmul.f32 %v4630_v57, %v1551_v56 }
 0x561   : > { %v4632_v61 = vpop.eup %4631 }
 0x562   : > { %v1558_v62 = vmul.f32 %v4632_v61, %v1552_v59  ;;  %v1565_v63 = vmul.f32 %v3825_v58, %v1557_v60 }
 0x564   : > { %v1566_v4 = vmul.f32 %v3825_v58, %v1558_v62  ;;  %v1573_v5 = vadd.f32 %v3826_v1, %v1565_v63 }
 0x566   : > { %v1574_v6 = vadd.f32 %v3826_v1, %v1566_v4 }
 0x568   : > { %v1575_v7 = vpack.c.bf16 %v1574_v6, %v1573_v5 }
 0x56a   : > { %1786 = vmatmul.mubr.bf16.vlgmr.msra.gmra.mrb[4].mxu0 %v1575_v7  ;;  %4093 = vmatmul.mubr.bf16.vlgmr.msra.gmra.mrb[4].mxu1 %v1575_v7 }
 0x56b   : > { %4098 = vmatprep.mubr.msk.bf16.mxu0 %vm5366_vm0, %v5365_v0  ;;  %4116 = vmatprep.mubr.msk.bf16.mxu1 %vm5366_vm0, %v5365_v0 }
 0x63d   : > { %v1787_v17 = vpop.f32.mrb[4].mxu0  ;;  %v1830_v19 = vpop.f32.mrb[4].mxu1 }
 0x63e   : > { %v1789_v2 = vpop.f32.mrb[5].mxu0  ;;  %v4094_v3 = vpop.f32.mrb[5].mxu1  ;;  %v1788_v23 = vadd.f32 %v1787_v17, %v1613_v14  ;;  %v1831_v24 = vadd.f32 %v1830_v19, %v1621_v15 }
 0x63f   : > { %v1791_v21 = vpop.f32.mrb[6].mxu0  ;;  %v1833_v22 = vpop.f32.mrb[6].mxu1  ;;  %v1790_v29 = vadd.f32 %v1789_v2, %v1617_v20 }
 0x640   : > { %v1792_v25 = vadd.f32 %v1791_v21, %v1613_v14  ;;  %v1834_v26 = vadd.f32 %v1833_v22, %v1621_v15  ;;  %v1793_v27 = vpop.f32.mrb[7].mxu0  ;;  %v4095_v28 = vpop.f32.mrb[7].mxu1 }
 0x641   : > { %v1794_v30 = vadd.f32 %v1793_v27, %v1617_v20 }
 0x642   : > { %v5970_v31 = vpack.c.bf16 %v1792_v25, %v1788_v23  ;;  %v5972_v32 = vpack.c.bf16 %v1834_v26, %v1831_v24 }
 0x643   : > { %v5974_v33 = vpack.c.bf16 %v1794_v30, %v1790_v29 }
 0x644   : > { %2023 = vrot.lane.b32.xlu1 %v5970_v31, %s5368_s3 }
 0x645   : > { %2026 = vrot.lane.b32.xlu0 %v5974_v33, %s5368_s3  ;;  %v1858_v34 = vsel %vm1853_vm1, %v5974_v33, 0 }
 0x646   : > { %4097 = vmatpush3.bf16.xpose.msra.mxu0 %v1858_v34 }
 0x647   : > { %4102 = vmatprep.subr.bf16.mxu0 %v5365_v0 }
 0x648   : > { %2200 = vrot.lane.b32.xlu1 %v5974_v33, %s5369_s6 }
 0x64c   : > { %2198 = vrot.lane.b32.xlu1 %v5970_v31, %s5369_s6 }
 0x64d   : > { %4099 = vmatmul.mubr.msk.bf16.vlgmr.msra.gmra.mrb[8].mxu0 %vm1853_vm1, %v5970_v31 }
 0x64e   : > { %4103 = vmatpush3.bf16.msra.mxu0 %v5972_v32  ;;  %4104 = vmatprep.mubr.msk.bf16.mxu0 %vm5366_vm0, %v5365_v0 }
 0x64f   : > { %4108 = vmatprep.subr.bf16.mxu0 %v5365_v0 }
 0x6b6   : > { %v2024_v35 = vpop.permute.xlu1 %2023 }
 0x6b7   : > { %v2027_v36 = vpop.permute.xlu0 %2026 }
 0x6b8   : > { %v2032_v37 = vsel %vm1853_vm1, %v2027_v36, 0 }
 0x6b9   : > { %4115 = vmatpush3.bf16.xpose.msra.mxu1 %v2032_v37 }
 0x6ba   : > { %4132 = vmatprep.subr.bf16.mxu1 %v5365_v0  ;;  %v2201_v38 = vpop.permute.xlu1 %2200 }
 0x6bb   : > { %v2206_v39 = vsel %vm1853_vm1, %v2201_v38, 0 }
 0x6be   : > { %v2199_v40 = vpop.permute.xlu1 %2198 }
 0x6c0   : > { %4117 = vmatmul.mubr.msk.bf16.vlgmr.msra.gmra.mrb[8].mxu1 %vm1853_vm1, %v2024_v35 }
 0x6c1   : > { %4133 = vmatpush3.bf16.xpose.msra.mxu1 %v2206_v39  ;;  %4134 = vmatprep.mubr.msk.bf16.mxu1 %vm5366_vm0, %v5365_v0 }
 0x6c2   : > { %4138 = vmatprep.subr.bf16.mxu1 %v5365_v0 }
 0x6c8   : > { %4135 = vmatmul.mubr.msk.bf16.vlgmr.msra.gmra.mrb[12].mxu1 %vm1853_vm1, %v2199_v40 }
 0x6c9   : > { %4140 = vmatprep.mubr.msk.bf16.mxu1 %vm5366_vm0, %v5365_v0 }
 0x720   : > { %v1894_v41 = vpop.f32.mrb[8].mxu0 }
 0x721   : > { %v1901_v42 = vmul.f32 0.35355338, %v1894_v41  ;;  %v4100_v43 = vpop.f32.mrb[9].mxu0 }
 0x722   : > { %v1897_v44 = vpop.f32.mrb[10].mxu0 }
 0x723   : > { %v1902_v45 = vmul.f32 0.35355338, %v1897_v44  ;;  %v4101_v46 = vpop.f32.mrb[11].mxu0  ;;  %v1904_v47 = vsel %vm1903_vm2, %v1901_v42, -inf }
 0x724   : > { %1905 = vmax.xlane.f32.xlu0 %v1904_v47 }
 0x725   : > { %v1907_v48 = vsel %vm1903_vm2, %v1902_v45, -inf }
 0x726   : > { %1908 = vmax.xlane.f32.xlu1 %v1907_v48 }
 0x793   : > { %v2068_v49 = vpop.f32.mrb[8].mxu1 }
 0x794   : > { %v4118_v50 = vpop.f32.mrb[9].mxu1 }
 0x795   : > { %v2071_v51 = vpop.f32.mrb[10].mxu1 }
 0x796   : > { %v4119_v52 = vpop.f32.mrb[11].mxu1  ;;  %v2076_v34 = vmul.f32 0.35355338, %v2071_v51 }
 0x798   : > { %v2080_v35 = vsel %vm1903_vm2, %v2076_v34, -inf }
 0x79b   : > { %v2242_v53 = vpop.f32.mrb[12].mxu1 }
 0x79c   : > { %v2249_v54 = vmul.f32 0.35355338, %v2242_v53  ;;  %v4136_v55 = vpop.f32.mrb[13].mxu1 }
 0x79d   : > { %v2245_v56 = vpop.f32.mrb[14].mxu1 }
 0x79e   : > { %v2250_v57 = vmul.f32 0.35355338, %v2245_v56  ;;  %v4137_v58 = vpop.f32.mrb[15].mxu1  ;;  %v2251_v59 = vsel %vm1903_vm2, %v2249_v54, -inf }
 0x79f   : > { %2252 = vmax.xlane.f32.xlu0 %v2251_v59 }
 0x7a0   : > { %v2254_v60 = vsel %vm1903_vm2, %v2250_v57, -inf }
 0x7a3   : > { %2255 = vmax.xlane.f32.xlu0 %v2254_v60 }
 0x7b1   : > { %v1906_v61 = vpop.xlane.xlu0 %1905 }
 0x7b2   : > { %v1910_v62 = vsub.f32 %v1901_v42, %v1906_v61 }
 0x7b3   : > { %v1909_v63 = vpop.xlane.xlu1 %1908 }
 0x7b4   : > { %v1912_v1 = vmul.f32 1.442695, %v1910_v62  ;;  %v1911_v4 = vsub.f32 %v1902_v45, %v1909_v63 }
 0x7b6   : > { %4633 = vpow2.f32 %v1912_v1  ;;  %v1914_v5 = vmul.f32 1.442695, %v1911_v4 }
 0x7b8   : > { %4635 = vpow2.f32 %v1914_v5 }
 0x7c0   : > { %v4634_v6 = vpop.eup %4633 }
 0x7c1   : > { %v1916_v7 = vsel %vm1903_vm2, %v4634_v6, 0.0 }
 0x7c2   : > { %v4636_v8 = vpop.eup %4635  ;;  %1917 = vadd.xlane.f32.xlu0 %v1916_v7 }
 0x7c3   : > { %v1919_v12 = vsel %vm1903_vm2, %v4636_v8, 0.0 }
 0x7c4   : > { %1920 = vadd.xlane.f32.xlu1 %v1919_v12 }
 0x82c   : > { %v2253_v14 = vpop.xlane.xlu0 %2252 }
 0x82d   : > { %v2257_v15 = vsub.f32 %v2249_v54, %v2253_v14 }
 0x82f   : > { %v2259_v17 = vmul.f32 1.442695, %v2257_v15 }
 0x830   : > { %v2256_v19 = vpop.xlane.xlu0 %2255 }
 0x831   : > { %4637 = vpow2.f32 %v2259_v17  ;;  %v2258_v20 = vsub.f32 %v2250_v57, %v2256_v19 }
 0x833   : > { %v2261_v2 = vmul.f32 1.442695, %v2258_v20 }
 0x835   : > { %4639 = vpow2.f32 %v2261_v2 }
 0x83b   : > { %v4638_v3 = vpop.eup %4637 }
 0x83c   : > { %v2263_v21 = vsel %vm1903_vm2, %v4638_v3, 0.0 }
 0x83d   : > { %2264 = vadd.xlane.f32.xlu0 %v2263_v21 }
 0x83f   : > { %v4640_v22 = vpop.eup %4639 }
 0x840   : > { %v2266_v23 = vsel %vm1903_vm2, %v4640_v22, 0.0 }
 0x841   : > { %2267 = vadd.xlane.f32.xlu1 %v2266_v23 }
 0x84f   : > { %v1918_v24 = vpop.xlane.xlu0 %1917 }
 0x850   : > { %4641 = vrcp.f32 %v1918_v24 }
 0x851   : > { %v1921_v25 = vpop.xlane.xlu1 %1920 }
 0x852   : > { %4643 = vrcp.f32 %v1921_v25  ;;  %2373 = vrot.lane.b32.xlu1 %v5974_v33, %s5370_s26  ;;  %v2075_v33 = vmul.f32 0.35355338, %v2068_v49 }
 0x853   : > { %2274 = vrot.lane.b32.xlu0 %v5972_v32, %s5369_s6  ;;  %s6331_s6 = sld [smem:[#allocation58_spill]] }
 0x854   : > { %v2077_v36 = vsel %vm1903_vm2, %v2075_v33, -inf }
 0x856   : > { %2371 = vrot.lane.b32.xlu1 %v5970_v31, %s5370_s26  ;;  %v1837_v31 = vld [vmem:[%s6326_s22] sm:$0xf] }
 0x857   : > { %v1977_v37 = vsel %vm1975_vm3, %v1837_v31, 0 }
 0x85a   : > { %v4642_v26 = vpop.eup %4641 }
 0x85b   : > { %v1924_v28 = vmul.f32 %v4642_v26, %v4634_v6 }
 0x85c   : > { %v4644_v27 = vpop.eup %4643 }
 0x85d   : > { %v1925_v29 = vmul.f32 %v4644_v27, %v4636_v8  ;;  %v1838_v27 = vld [vmem:[%s6326_s22 + $0x4] sm:$0xf] }
 0x85f   : > { %v1926_v30 = vpack.c.bf16 %v1925_v29, %v1924_v28  ;;  %v2153_v28 = vsel %vm1975_vm3, %v1838_v27, 0  ;;  %v4591_v27 = vld [vmem:[%s6327_s7 + $0x38] sm:$0xff]  }
 0x861   : > { %4105 = vmatmul.mubr.msk.bf16.vlgmr.msra.gmra.mrb[12].mxu0 %vm1903_vm2, %v1926_v30 }
 0x862   : > { %4110 = vmatprep.mubr.msk.bf16.mxu0 %vm5366_vm0, %v5365_v0  ;;  %4109 = vmatpush3.bf16.msra.mxu0 %v1977_v37 }
 0x863   : > { %4120 = vmatprep.subr.bf16.mxu0 %v5365_v0 }
 0x872   : > { %2081 = vmax.xlane.f32.xlu0 %v2080_v35 }
 0x87a   : > { %2078 = vmax.xlane.f32.xlu1 %v2077_v36 }
 0x88b   : > { %2101 = vrot.lane.b32.xlu1 %v5972_v32, %s5368_s3  ;;  %s6330_s3 = sld [smem:[#allocation54_spill]] }
 0x88f   : > { %2447 = vrot.lane.b32.xlu1 %v5972_v32, %s5370_s26  ;;  %s6332_s26 = sld [smem:[#allocation60_spill]] }
 0x8ca   : > { %v2265_v38 = vpop.xlane.xlu0 %2264 }
 0x8cb   : > { %4645 = vrcp.f32 %v2265_v38 }
 0x8ce   : > { %v2275_v39 = vpop.permute.xlu0 %2274  ;;  %v2268_v40 = vpop.xlane.xlu1 %2267 }
 0x8cf   : > { %4647 = vrcp.f32 %v2268_v40  ;;  %4139 = vmatpush3.bf16.msra.mxu1 %v2275_v39 }
 0x8d0   : > { %4150 = vmatprep.subr.bf16.mxu1 %v5365_v0 }
 0x8d2   : > { %v2374_v32 = vpop.permute.xlu1 %2373 }
 0x8d3   : > { %v2379_v46 = vsel %vm1853_vm1, %v2374_v32, 0 }
 0x8d5   : > { %v4646_v41 = vpop.eup %4645 }
 0x8d6   : > { %v2271_v43 = vmul.f32 %v4646_v41, %v4638_v3  ;;  %v2372_v47 = vpop.permute.xlu1 %2371  ;;  %v1839_v41 = vld [vmem:[%s6326_s22 + $0x8] sm:$0xf] }
 0x8d9   : > { %v4648_v42 = vpop.eup %4647 }
 0x8da   : > { %v2272_v44 = vmul.f32 %v4648_v42, %v4640_v22 }
 0x8dc   : > { %v2273_v45 = vpack.c.bf16 %v2272_v44, %v2271_v43 }
 0x8de   : > { %4141 = vmatmul.mubr.msk.bf16.vlgmr.msra.gmra.mrb[16].mxu1 %vm1903_vm2, %v2273_v45  ;;  %v2326_v45 = vsel %vm1975_vm3, %v1839_v41, 0 }
 0x8df   : > { %4151 = vmatpush3.bf16.xpose.msra.mxu1 %v2379_v46  ;;  %4152 = vmatprep.mubr.msk.bf16.mxu1 %vm5366_vm0, %v5365_v0 }
 0x8e0   : > { %4168 = vmatprep.subr.bf16.mxu1 %v5365_v0 }
 0x8e6   : > { %4153 = vmatmul.mubr.msk.bf16.vlgmr.msra.gmra.mrb[20].mxu1 %vm1853_vm1, %v2372_v47 }
 0x8e7   : > { %4184 = vmatprep.mubr.msk.bf16.mxu1 %vm5366_vm0, %v5365_v0 }
 0x8ff   : > { %v2082_v48 = vpop.xlane.xlu0 %2081 }
 0x900   : > { %v2084_v49 = vsub.f32 %v2076_v34, %v2082_v48 }
 0x902   : > { %v2087_v52 = vmul.f32 1.442695, %v2084_v49 }
 0x907   : > { %v2079_v50 = vpop.xlane.xlu1 %2078 }
 0x908   : > { %v2083_v51 = vsub.f32 %v2075_v33, %v2079_v50 }
 0x90a   : > { %v2085_v53 = vmul.f32 1.442695, %v2083_v51  ;;  %v1840_v51 = vld [vmem:[%s6326_s22 + $0xc] sm:$0xf] }
 0x90b   : > { %v2102_v63 = vpop.permute.xlu1 %2101 }
 0x90c   : > { %4649 = vpow2.f32 %v2085_v53 }
 0x90d   : > { %4651 = vpow2.f32 %v2087_v52 }
 0x90f   : > { %v2448_v46 = vpop.permute.xlu1 %2447 }
 0x916   : > { %v4650_v54 = vpop.eup %4649 }
 0x917   : > { %v2089_v55 = vsel %vm1903_vm2, %v4650_v54, 0.0  ;;  %v4652_v56 = vpop.eup %4651 }
 0x918   : > { %2090 = vadd.xlane.f32.xlu0 %v2089_v55  ;;  %v2092_v57 = vsel %vm1903_vm2, %v4652_v56, 0.0  ;;  %v2499_v55 = vsel %vm1975_vm3, %v1840_v51, 0  ;;  %v3865_v51 = vld [vmem:[#allocation15] ss:$0 sm:$0xff] }
 0x91c   : > { %2093 = vadd.xlane.f32.xlu0 %v2092_v57 }
 0x934   : > { %v1964_v58 = vpop.f32.mrb[12].mxu0 }
 0x935   : > { %v4106_v59 = vpop.f32.mrb[13].mxu0 }
 0x936   : > { %v1967_v60 = vpop.f32.mrb[14].mxu0 }
 0x937   : > { %v1971_v61 = vpack.c.bf16 %v1967_v60, %v1964_v58  ;;  %v4107_v62 = vpop.f32.mrb[15].mxu0 }
 0x939   : > { %4111 = vmatmul.mubr.msk.bf16.vlgmr.msra.gmra.mrb[16].mxu0 %vm1853_vm1, %v1971_v61  ;;  %v3851_v61 = vld [vmem:[#allocation12] ss:$0 sm:$0xff] }
 0x93a   : > { %4121 = vmatpush3.bf16.msra.mxu0 %v2102_v63  ;;  %4122 = vmatprep.mubr.msk.bf16.mxu0 %vm5366_vm0, %v5365_v0  ;;  %v1848_v62 = vadd.f32 %v3851_v61, %v5910_v16 }
 0x93b   : > { %4126 = vmatprep.subr.bf16.mxu0 %v5365_v0 }
 0x9a5   : > { %v2091_v1 = vpop.xlane.xlu0 %2090 }
 0x9a6   : > { %4653 = vrcp.f32 %v2091_v1 }
 0x9a9   : > { %v2094_v4 = vpop.xlane.xlu0 %2093 }
 0x9aa   : > { %4655 = vrcp.f32 %v2094_v4 }
 0x9b0   : > { %v4654_v6 = vpop.eup %4653 }
 0x9b1   : > { %v2314_v5 = vpop.f32.mrb[16].mxu1  ;;  %v2097_v17 = vmul.f32 %v4654_v6, %v4650_v54 }
 0x9b2   : > { %v4142_v7 = vpop.f32.mrb[17].mxu1 }
 0x9b3   : > { %v2317_v8 = vpop.f32.mrb[18].mxu1 }
 0x9b4   : > { %v4656_v12 = vpop.eup %4655  ;;  %v2321_v14 = vpack.c.bf16 %v2317_v8, %v2314_v5  ;;  %v4143_v15 = vpop.f32.mrb[19].mxu1  ;;  %v1849_v5 = vadd.f32 %v3851_v61, %v5913_v18  ;;  %v4577_v18 = vld [vmem:[%s6327_s7] sm:$0xff]   ;;  %v4598_v61 = vld [vmem:[%s6329_s15 + $0x28] sm:$0xff]  }
 0x9b5   : > { %v2098_v19 = vmul.f32 %v4656_v12, %v4652_v56  ;;  %4169 = vmatpush3.bf16.msra.mxu1 %v4577_v18  ;;  %v4579_v15 = vld [vmem:[%s6327_s7 + $0x8] sm:$0xff]  }
 0x9b6   : > { %4170 = vmatprep.subr.bf16.mxu1 %v5365_v0 }
 0x9b7   : > { %v2099_v20 = vpack.c.bf16 %v2098_v19, %v2097_v17  ;;  %v4580_v17 = vld [vmem:[%s6328_s10 + $0x8] sm:$0xff]   ;;  %v4581_v19 = vld [vmem:[%s6327_s7 + $0x10] sm:$0xff]  }
 0x9b9   : > { %4123 = vmatmul.mubr.msk.bf16.vlgmr.msra.gmra.mrb[20].mxu0 %vm1903_vm2, %v2099_v20  ;;  %v2415_v2 = vpop.f32.mrb[20].mxu1  ;;  %4171 = vmatpush3.bf16.msra.mxu1 %v4579_v15  ;;  %v4582_v20 = vld [vmem:[%s6328_s10 + $0x10] sm:$0xff]  }
 0x9ba   : > { %v2422_v3 = vmul.f32 0.35355338, %v2415_v2  ;;  %v4154_v21 = vpop.f32.mrb[21].mxu1  ;;  %4128 = vmatprep.mubr.msk.bf16.mxu0 %vm5366_vm0, %v5365_v0  ;;  %4127 = vmatpush3.bf16.msra.mxu0 %v2153_v28  ;;  %v4583_v2 = vld [vmem:[%s6327_s7 + $0x18] sm:$0xff]  }
 0x9bb   : > { %v2418_v22 = vpop.f32.mrb[22].mxu1  ;;  %4144 = vmatprep.subr.bf16.mxu0 %v5365_v0  ;;  %4172 = vmatprep.subr.bf16.mxu1 %v5365_v0  ;;  %v4585_v21 = vld [vmem:[%s6327_s7 + $0x20] sm:$0xff]   ;;  %v4592_v28 = vld [vmem:[%s6328_s10 + $0x38] sm:$0xff]  }
 0x9bc   : > { %v2423_v23 = vmul.f32 0.35355338, %v2418_v22  ;;  %v4155_v24 = vpop.f32.mrb[23].mxu1  ;;  %v2424_v25 = vsel %vm1903_vm2, %v2422_v3, -inf  ;;  %v4586_v22 = vld [vmem:[%s6328_s10 + $0x20] sm:$0xff]  }
 0x9bd   : > { %2425 = vmax.xlane.f32.xlu0 %v2424_v25  ;;  %4173 = vmatpush3.bf16.msra.mxu1 %v4581_v19  ;;  %v4588_v24 = vld [vmem:[%s6328_s10 + $0x28] sm:$0xff]   ;;  %v4589_v25 = vld [vmem:[%s6327_s7 + $0x30] sm:$0xff]  }
 0x9be   : > { %v2427_v26 = vsel %vm1903_vm2, %v2423_v23, -inf  ;;  %4174 = vmatprep.subr.bf16.mxu1 %v5365_v0 }
 0x9c1   : > { %2428 = vmax.xlane.f32.xlu0 %v2427_v26  ;;  %4175 = vmatpush3.bf16.msra.mxu1 %v4583_v2  ;;  %v4590_v26 = vld [vmem:[%s6328_s10 + $0x30] sm:$0xff]  }
 0x9c2   : > { %4176 = vmatprep.subr.bf16.mxu1 %v5365_v0 }
 0x9c5   : > { %4177 = vmatpush3.bf16.msra.mxu1 %v4585_v21 }
 0x9c6   : > { %4178 = vmatprep.subr.bf16.mxu1 %v5365_v0 }
 0xa4a   : > { %v2426_v29 = vpop.xlane.xlu0 %2425 }
 0xa4b   : > { %v2430_v30 = vsub.f32 %v2422_v3, %v2426_v29  ;;  %v4584_v3 = vld [vmem:[%s6328_s10 + $0x18] sm:$0xff]  }
 0xa4d   : > { %v2432_v34 = vmul.f32 1.442695, %v2430_v30 }
 0xa4e   : > { %v2429_v35 = vpop.xlane.xlu0 %2428 }
 0xa4f   : > { %4657 = vpow2.f32 %v2432_v34  ;;  %v2431_v33 = vsub.f32 %v2423_v23, %v2429_v35  ;;  %v4587_v23 = vld [vmem:[%s6327_s7 + $0x28] sm:$0xff]  }
 0xa50   : > { %4179 = vmatpush3.bf16.msra.mxu1 %v4587_v23 }
 0xa51   : > { %v2434_v36 = vmul.f32 1.442695, %v2431_v33  ;;  %4180 = vmatprep.subr.bf16.mxu1 %v5365_v0 }
 0xa53   : > { %4659 = vpow2.f32 %v2434_v36 }
 0xa54   : > { %4181 = vmatpush3.bf16.msra.mxu1 %v4589_v25  ;;  %v2910_v25 = vsub.s32 3, %v5958_v9 }
 0xa55   : > { %4182 = vmatprep.subr.bf16.mxu1 %v5365_v0 }
 0xa58   : > { %4183 = vmatpush3.bf16.msra.mxu1 %v4591_v27  ;;  %v3866_v27 = vld [vmem:[#allocation16] ss:$0 sm:$0xff] }
 0xa59   : > { %v4658_v31 = vpop.eup %4657  ;;  %4208 = vmatprep.subr.bf16.mxu1 %v5365_v0 }
 0xa5a   : > { %v2436_v37 = vsel %vm1903_vm2, %v4658_v31, 0.0 }
 0xa5b   : > { %2437 = vadd.xlane.f32.xlu0 %v2436_v37 }
 0xa5d   : > { %v4660_v38 = vpop.eup %4659 }
 0xa5e   : > { %v2439_v39 = vsel %vm1903_vm2, %v4660_v38, 0.0 }
 0xa5f   : > { %2440 = vadd.xlane.f32.xlu0 %v2439_v39 }
 0xa8c   : > { %v2141_v40 = vpop.f32.mrb[20].mxu0 }
 0xa8d   : > { %v4124_v42 = vpop.f32.mrb[21].mxu0 }
 0xa8e   : > { %v2144_v43 = vpop.f32.mrb[22].mxu0 }
 0xa8f   : > { %v2148_v44 = vpack.c.bf16 %v2144_v43, %v2141_v40  ;;  %v4125_v32 = vpop.f32.mrb[23].mxu0 }
 0xa91   : > { %4129 = vmatmul.mubr.msk.bf16.vlgmr.msra.gmra.mrb[16].mxu0 %vm1853_vm1, %v2148_v44 }
 0xa92   : > { %4145 = vmatpush3.bf16.msra.mxu0 %v2326_v45  ;;  %4146 = vmatprep.mubr.msk.bf16.mxu0 %vm5366_vm0, %v5365_v0 }
 0xa93   : > { %4156 = vmatprep.subr.bf16.mxu0 %v5365_v0 }
 0xa9d   : > { %4147 = vmatmul.mubr.msk.bf16.vlgmr.msra.gmra.mrb[16].mxu0 %vm1853_vm1, %v2321_v14  ;;  %v4578_v14 = vld [vmem:[%s6328_s10] sm:$0xff]  }
 0xa9e   : > { %4157 = vmatpush3.bf16.msra.mxu0 %v2448_v46  ;;  %4158 = vmatprep.mubr.msk.bf16.mxu0 %vm5366_vm0, %v5365_v0  ;;  %v3864_v46 = vld [vmem:[#allocation13] ss:$0 sm:$0xff] }
 0xa9f   : > { %4162 = vmatprep.subr.bf16.mxu0 %v5365_v0 }
 0xae8   : > { %v2438_v47 = vpop.xlane.xlu0 %2437 }
 0xae9   : > { %4661 = vrcp.f32 %v2438_v47 }
 0xaec   : > { %v2441_v48 = vpop.xlane.xlu0 %2440 }
 0xaed   : > { %4663 = vrcp.f32 %v2441_v48 }
 0xaf3   : > { %v4662_v49 = vpop.eup %4661 }
 0xaf4   : > { %v2444_v52 = vmul.f32 %v4662_v49, %v4658_v31 }
 0xaf7   : > { %v4664_v50 = vpop.eup %4663 }
 0xaf8   : > { %v2445_v53 = vmul.f32 %v4664_v50, %v4660_v38 }
 0xafa   : > { %v2446_v54 = vpack.c.bf16 %v2445_v53, %v2444_v52 }
 0xafc   : > { %4159 = vmatmul.mubr.msk.bf16.vlgmr.msra.gmra.mrb[24].mxu0 %vm1903_vm2, %v2446_v54 }
 0xafd   : > { %4163 = vmatpush3.bf16.msra.mxu0 %v2499_v55  ;;  %4164 = vmatprep.mubr.msk.bf16.mxu0 %vm5366_vm0, %v5365_v0 }
 0xafe   : > { %4188 = vmatprep.subr.bf16.mxu0 %v5365_v0 }
 0xbcf   : > { %v2487_v56 = vpop.f32.mrb[24].mxu0 }
 0xbd0   : > { %v4160_v57 = vpop.f32.mrb[25].mxu0 }
 0xbd1   : > { %v2490_v58 = vpop.f32.mrb[26].mxu0  ;;  %v4594_v57 = vld [vmem:[%s6329_s15 + $0x8] sm:$0xff]  }
 0xbd2   : > { %v2494_v59 = vpack.c.bf16 %v2490_v58, %v2487_v56  ;;  %v4161_v60 = vpop.f32.mrb[27].mxu0  ;;  %v4593_v56 = vld [vmem:[%s6329_s15] sm:$0xff]   ;;  %v4595_v58 = vld [vmem:[%s6329_s15 + $0x10] sm:$0xff]  }
 0xbd3   : > { %v4597_v60 = vld [vmem:[%s6329_s15 + $0x20] sm:$0xff]  }
 0xbd4   : > { %4165 = vmatmul.mubr.msk.bf16.vlgmr.msra.gmra.mrb[16].mxu0 %vm1853_vm1, %v2494_v59  ;;  %v4596_v59 = vld [vmem:[%s6329_s15 + $0x18] sm:$0xff]  }
 0xbd5   : > { %4204 = vmatprep.mubr.msk.bf16.mxu0 %vm5366_vm0, %v5365_v0  ;;  %4189 = vmatpush3.bf16.msra.mxu0 %v4578_v14 }
 0xbd6   : > { %4190 = vmatprep.subr.bf16.mxu0 %v5365_v0 }
 0xbd9   : > { %4191 = vmatpush3.bf16.msra.mxu0 %v4580_v17 }
 0xbda   : > { %4192 = vmatprep.subr.bf16.mxu0 %v5365_v0 }
 0xbdd   : > { %4193 = vmatpush3.bf16.msra.mxu0 %v4582_v20 }
 0xbde   : > { %4194 = vmatprep.subr.bf16.mxu0 %v5365_v0 }
 0xbe1   : > { %4195 = vmatpush3.bf16.msra.mxu0 %v4584_v3 }
 0xbe2   : > { %4196 = vmatprep.subr.bf16.mxu0 %v5365_v0 }
 0xbe5   : > { %4197 = vmatpush3.bf16.msra.mxu0 %v4586_v22 }
 0xbe6   : > { %4198 = vmatprep.subr.bf16.mxu0 %v5365_v0 }
 0xbe9   : > { %4199 = vmatpush3.bf16.msra.mxu0 %v4588_v24  ;;  %v2829_v24 = vadd.s32 8, %v5958_v9 }
 0xbea   : > { %4200 = vmatprep.subr.bf16.mxu0 %v5365_v0 }
 0xbed   : > { %4201 = vmatpush3.bf16.msra.mxu0 %v4590_v26  ;;  %v6139_v26 = vld [vmem:[%s6330_s3] sm:$0x7f]  ;;  %s1237_s3 = scalar_lea.vmem %s5539_s25, %s3927_s0 }
 0xbee   : > { %4202 = vmatprep.subr.bf16.mxu0 %v5365_v0 }
 0xbf1   : > { %4203 = vmatpush3.bf16.msra.mxu0 %v4592_v28  ;;  %v2836_v28 = vadd.s32 4294967293, %v5958_v9 }
 0xbf2   : > { %4228 = vmatprep.subr.bf16.mxu0 %v5365_v0 }
 0xbf3   : > { %vm2838_vm6 = vcmp.ge.s32.totalorder %v2836_v28, 0 }
 0xca7   : > { %v2535_v63 = vpop.f32.mrb[16].mxu0 }
 0xca8   : > { %v6071_v1 = vadd.f32 %v2535_v63, %v1848_v62  ;;  %v4166_v4 = vpop.f32.mrb[17].mxu0  ;;  %v4599_v62 = vld [vmem:[%s6329_s15 + $0x30] sm:$0xff]   ;;  %v4600_v63 = vld [vmem:[%s6329_s15 + $0x38] sm:$0xff]  }
 0xca9   : > { %v2538_v6 = vpop.f32.mrb[18].mxu0  ;;  %v3875_v4 = vld [vmem:[#allocation18] ss:$0 sm:$0xff] }
 0xcaa   : > { %v6074_v7 = vadd.f32 %v2538_v6, %v1849_v5  ;;  %2546 = vadd.xlane.f32.xlu0 %v6071_v1  ;;  %v4167_v8 = vpop.f32.mrb[19].mxu0  ;;  %v2552_v12 = vmul.f32 %v6071_v1, %v6071_v1 }
 0xcac   : > { %2548 = vadd.xlane.f32.xlu1 %v6074_v7  ;;  %v2553_v16 = vmul.f32 %v6074_v7, %v6074_v7 }
 0xcae   : > { %2554 = vadd.xlane.f32.xlu0 %v2552_v12 }
 0xcb2   : > { %2556 = vadd.xlane.f32.xlu0 %v2553_v16 }
 0xd37   : > { %v2547_v29 = vpop.xlane.xlu0 %2546 }
 0xd38   : > { %v2550_v30 = vmul.f32 0.03125, %v2547_v29  ;;  %v2859_v29 = vadd.s32 4294967294, %v5958_v9 }
 0xd39   : > { %v2549_v34 = vpop.xlane.xlu1 %2548 }
 0xd3a   : > { %v2560_v33 = vmul.f32 %v2550_v30, %v2550_v30  ;;  %v2551_v36 = vmul.f32 0.03125, %v2549_v34  ;;  %v2564_v44 = vsub.f32 %v6071_v1, %v2550_v30  ;;  %v2849_v30 = vrot.slane %v6139_v26, %v1612_v10 }
 0xd3b   : > { %v2555_v35 = vpop.xlane.xlu0 %2554  ;;  %v2895_v34 = vrot.slane %v6139_v26, %v1620_v11  ;;  %v2945_v10 = vadd.s32 2, %v2829_v24  ;;  %vm2861_vm7 = vcmp.ge.s32.totalorder %v2859_v29, 0 }
 0xd3c   : > { %v2558_v31 = vmul.f32 0.03125, %v2555_v35  ;;  %v2561_v39 = vmul.f32 %v2551_v36, %v2551_v36  ;;  %v2565_v47 = vsub.f32 %v6074_v7, %v2551_v36  ;;  %v2872_v35 = vrot.slane %v6139_v26, %v1616_v13 }
 0xd3d   : > { %v6154_v36 = vrot.slane %v6139_v26, %v2910_v25  ;;  %v2968_v13 = vadd.s32 3, %v2829_v24  ;;  %vm2949_vm13 = vcmp.lt.s32.totalorder %v2945_v10, 16 }
 0xd3e   : > { %v2562_v37 = vsub.f32 %v2558_v31, %v2560_v33  ;;  %v2882_v33 = vadd.s32 4294967295, %v5958_v9  ;;  %v2922_v31 = vadd.s32 1, %v2829_v24 }
 0xd3f   : > { %v2557_v38 = vpop.xlane.xlu0 %2556  ;;  %vm2972_vm15 = vcmp.lt.s32.totalorder %v2968_v13, 16 }
 0xd40   : > { %v2566_v40 = vadd.f32 1e-05, %v2562_v37  ;;  %v2559_v41 = vmul.f32 0.03125, %v2557_v38  ;;  %v2933_v37 = vsub.s32 4, %v5958_v9  ;;  %v2956_v38 = vsub.s32 5, %v5958_v9 }
 0xd41   : > { %vm2884_vm9 = vcmp.ge.s32.totalorder %v2882_v33, 0  ;;  %vm2926_vm11 = vcmp.lt.s32.totalorder %v2922_v31, 16 }
 0xd42   : > { %4665 = vrsqrt.f32 %v2566_v40  ;;  %v2563_v42 = vsub.f32 %v2559_v41, %v2561_v39 }
 0xd44   : > { %v2567_v43 = vadd.f32 1e-05, %v2563_v42 }
 0xd46   : > { %4667 = vrsqrt.f32 %v2567_v43  ;;  %v2934_v43 = vrot.slane %v6139_v26, %v2933_v37 }
 0xd4c   : > { %v4666_v32 = vpop.eup %4665 }
 0xd4d   : > { %v2570_v45 = vmul.f32 %v4666_v32, %v2564_v44  ;;  %v2957_v44 = vrot.slane %v6139_v26, %v2956_v38 }
 0xd4f   : > { %v2578_v50 = vmul.f32 %v3864_v46, %v2570_v45  ;;  %v2979_v45 = vsub.s32 6, %v5958_v9 }
 0xd50   : > { %v4668_v48 = vpop.eup %4667 }
 0xd51   : > { %v2571_v49 = vmul.f32 %v4668_v48, %v2565_v47  ;;  %v2586_v53 = vadd.f32 %v3865_v51, %v2578_v50  ;;  %v2980_v29 = vrot.slane %v6139_v26, %v2979_v45 }
 0xd53   : > { %v2579_v52 = vmul.f32 %v3864_v46, %v2571_v49 }
 0xd55   : > { %v2587_v54 = vadd.f32 %v3865_v51, %v2579_v52 }
 0xd57   : > { %v2588_v55 = vpack.c.bf16 %v2587_v54, %v2586_v53 }
 0xd59   : > { %4185 = vmatmul.mubr.bf16.vlgmr.msra.gmra.mrb[24].mxu1 %v2588_v55  ;;  %4205 = vmatmul.mubr.bf16.vlgmr.msra.gmra.mrb[28].mxu0 %v2588_v55 }
 0xd5a   : > { %4224 = vmatprep.mubr.msk.bf16.mxu1 %vm5366_vm0, %v5365_v0  ;;  %4244 = vmatprep.mubr.msk.bf16.mxu0 %vm5366_vm0, %v5365_v0 }
 0xd5b   : > { %4209 = vmatpush3.bf16.msra.mxu1 %v4593_v56 }
 0xd5c   : > { %4210 = vmatprep.subr.bf16.mxu1 %v5365_v0 }
 0xd5f   : > { %4211 = vmatpush3.bf16.msra.mxu1 %v4594_v57 }
 0xd60   : > { %4212 = vmatprep.subr.bf16.mxu1 %v5365_v0 }
 0xd63   : > { %4213 = vmatpush3.bf16.msra.mxu1 %v4595_v58 }
 0xd64   : > { %4214 = vmatprep.subr.bf16.mxu1 %v5365_v0 }
 0xd67   : > { %4215 = vmatpush3.bf16.msra.mxu1 %v4596_v59 }
 0xd68   : > { %4216 = vmatprep.subr.bf16.mxu1 %v5365_v0 }
 0xd6b   : > { %4217 = vmatpush3.bf16.msra.mxu1 %v4597_v60 }
 0xd6c   : > { %4218 = vmatprep.subr.bf16.mxu1 %v5365_v0 }
 0xd6f   : > { %4219 = vmatpush3.bf16.msra.mxu1 %v4598_v61 }
 0xd70   : > { %4220 = vmatprep.subr.bf16.mxu1 %v5365_v0 }
 0xd73   : > { %4221 = vmatpush3.bf16.msra.mxu1 %v4599_v62 }
 0xd74   : > { %4222 = vmatprep.subr.bf16.mxu1 %v5365_v0 }
 0xd77   : > { %4223 = vmatpush3.bf16.msra.mxu1 %v4600_v63 }
 0xd78   : > { %4248 = vmatprep.subr.bf16.mxu1 %v5365_v0 }
 0xe2c   : > { %v2694_v5 = vpop.f32.mrb[24].mxu1  ;;  %v2806_v6 = vpop.f32.mrb[28].mxu0 }
 0xe2d   : > { %v2807_v8 = vadd.f32 %v3875_v4, %v2806_v6  ;;  %v4186_v12 = vpop.f32.mrb[25].mxu1  ;;  %v4206_v16 = vpop.f32.mrb[29].mxu0  ;;  %v2695_v39 = vadd.f32 %v3866_v27, %v2694_v5 }
 0xe2e   : > { %v2697_v18 = vpop.f32.mrb[26].mxu1  ;;  %v2809_v14 = vpop.f32.mrb[30].mxu0 }
 0xe2f   : > { %v3884_v15 = vmul.f32 -1.442695, %v2807_v8  ;;  %v2810_v17 = vadd.f32 %v3875_v4, %v2809_v14  ;;  %v4187_v19 = vpop.f32.mrb[27].mxu1  ;;  %v4207_v20 = vpop.f32.mrb[31].mxu0  ;;  %v2698_v41 = vadd.f32 %v3866_v27, %v2697_v18 }
 0xe31   : > { %4669 = vpow2.f32 %v3884_v15  ;;  %v3885_v2 = vmul.f32 -1.442695, %v2810_v17 }
 0xe33   : > { %4671 = vpow2.f32 %v3885_v2 }
 0xe3b   : > { %v4670_v3 = vpop.eup %4669 }
 0xe3c   : > { %v2819_v21 = vadd.f32 1.0, %v4670_v3 }
 0xe3d   : > { %v4672_v22 = vpop.eup %4671 }
 0xe3e   : > { %4673 = vrcp.f32 %v2819_v21  ;;  %v2820_v23 = vadd.f32 1.0, %v4672_v22 }
 0xe40   : > { %4675 = vrcp.f32 %v2820_v23 }
 0xe48   : > { %v4674_v11 = vpop.eup %4673 }
 0xe49   : > { %v2825_v40 = vmul.f32 %v4674_v11, %v2695_v39 }
 0xe4a   : > { %v4676_v42 = vpop.eup %4675 }
 0xe4b   : > { %v2826_v32 = vmul.f32 %v4676_v42, %v2698_v41  ;;  %v2831_v46 = vrot.slane %v2825_v40, 5  ;;  %v2854_v47 = vrot.slane %v2825_v40, 6  ;;  %v2877_v48 = vrot.slane %v2825_v40, 7 }
 0xe4c   : > { %v2916_v49 = vrot.slane %v2825_v40, 1  ;;  %v2939_v53 = vrot.slane %v2825_v40, 2  ;;  %v2962_v56 = vrot.slane %v2825_v40, 3  ;;  %v2912_v27 = vmul.f32 %v6154_v36, %v2825_v40 }
 0xe4d   : > { %v2832_v50 = vrot.slane %v2826_v32, 5  ;;  %v2855_v51 = vrot.slane %v2826_v32, 6  ;;  %v2878_v52 = vrot.slane %v2826_v32, 7  ;;  %v2917_v54 = vrot.slane %v2826_v32, 1 }
 0xe4e   : > { %v2940_v55 = vrot.slane %v2826_v32, 2  ;;  %v2963_v57 = vrot.slane %v2826_v32, 3  ;;  %v2913_v2 = vmul.f32 %v6154_v36, %v2826_v32  ;;  %v3886_v32 = vld [vmem:[#allocation19] ss:$0 sm:$0xff] }
 0xe4f   : > { %v2834_v58 = vsel %vm2833_vm4, %v2831_v46, %v2832_v50  ;;  %v2835_v59 = vsel %vm2833_vm4, %v2832_v50, %v2831_v46  ;;  %v2857_v60 = vsel %vm2856_vm5, %v2854_v47, %v2855_v51  ;;  %v2858_v61 = vsel %vm2856_vm5, %v2855_v51, %v2854_v47  ;;  %v3887_v47 = vld [vmem:[#allocation21] ss:$0 sm:$0xff] }
 0xe50   : > { %v2844_v62 = vsel %vm2838_vm6, %v2835_v59, 0.0  ;;  %v2851_v63 = vmul.f32 %v2849_v30, %v2834_v58  ;;  %v2867_v4 = vsel %vm2861_vm7, %v2858_v61, 0.0  ;;  %v2874_v5 = vmul.f32 %v2872_v35, %v2857_v60  ;;  %v3890_v59 = vld [vmem:[#allocation22] ss:$0 sm:$0xff] }
 0xe51   : > { %v2850_v6 = vmul.f32 %v2849_v30, %v2844_v62  ;;  %v2873_v8 = vmul.f32 %v2872_v35, %v2867_v4  ;;  %v2880_v12 = vsel %vm2879_vm8, %v2877_v48, %v2878_v52  ;;  %v2881_v16 = vsel %vm2879_vm8, %v2878_v52, %v2877_v48 }
 0xe52   : > { %v2876_v18 = vadd.f32 %v2874_v5, %v2851_v63  ;;  %v2890_v14 = vsel %vm2884_vm9, %v2881_v16, 0.0  ;;  %v2897_v15 = vmul.f32 %v2895_v34, %v2880_v12  ;;  %v2919_v17 = vsel %vm2918_vm10, %v2916_v49, %v2917_v54  ;;  %v4601_v16 = vld [vmem:[%s6331_s6] sm:$0xff]  }
 0xe53   : > { %v2875_v19 = vadd.f32 %v2873_v8, %v2850_v6  ;;  %v2896_v20 = vmul.f32 %v2895_v34, %v2890_v14  ;;  %v2920_v3 = vsel %vm2918_vm10, %v2917_v54, %v2916_v49  ;;  %v2942_v23 = vsel %vm2941_vm12, %v2939_v53, %v2940_v55  ;;  %4229 = vmatpush3.bf16.msra.mxu0 %v4601_v16  ;;  %v4604_v14 = vld [vmem:[%s6331_s6 + $0x18] sm:$0xff]  }
 0xe54   : > { %v2899_v21 = vadd.f32 %v2897_v15, %v2876_v18  ;;  %v2930_v22 = vsel %vm2926_vm11, %v2920_v3, 0.0  ;;  %v2943_v24 = vsel %vm2941_vm12, %v2940_v55, %v2939_v53  ;;  %v2965_v35 = vsel %vm2964_vm14, %v2962_v56, %v2963_v57  ;;  %4230 = vmatprep.subr.bf16.mxu0 %v5365_v0  ;;  %v4602_v18 = vld [vmem:[%s6331_s6 + $0x8] sm:$0xff]   ;;  %v4605_v15 = vld [vmem:[%s6331_s6 + $0x20] sm:$0xff]  }
 0xe55   : > { %v2898_v25 = vadd.f32 %v2896_v20, %v2875_v19  ;;  %v2953_v28 = vsel %vm2949_vm13, %v2943_v24, 0.0  ;;  %v2936_v34 = vmul.f32 %v2934_v43, %v2930_v22  ;;  %v2966_v33 = vsel %vm2964_vm14, %v2963_v57, %v2962_v56  ;;  %v4607_v19 = vld [vmem:[%s6331_s6 + $0x30] sm:$0xff]   ;;  %v4608_v20 = vld [vmem:[%s6331_s6 + $0x38] sm:$0xff]  }
 0xe56   : > { %v2915_v30 = vadd.f32 %v2913_v2, %v2899_v21  ;;  %v2935_v37 = vmul.f32 %v2934_v43, %v2919_v17  ;;  %v2976_v38 = vsel %vm2972_vm15, %v2966_v33, 0.0  ;;  %v2959_v11 = vmul.f32 %v2957_v44, %v2953_v28  ;;  %v4606_v17 = vld [vmem:[%s6331_s6 + $0x28] sm:$0xff]  }
 0xe57   : > { %v2914_v31 = vadd.f32 %v2912_v27, %v2898_v25  ;;  %v2958_v36 = vmul.f32 %v2957_v44, %v2942_v23  ;;  %v2982_v40 = vmul.f32 %v2980_v29, %v2976_v38  ;;  %v2981_v26 = vmul.f32 %v2980_v29, %v2965_v35  ;;  %4231 = vmatpush3.bf16.msra.mxu0 %v4602_v18 }
 0xe58   : > { %v2938_v39 = vadd.f32 %v2936_v34, %v2915_v30  ;;  %4232 = vmatprep.subr.bf16.mxu0 %v5365_v0 }
 0xe59   : > { %v2937_v41 = vadd.f32 %v2935_v37, %v2914_v31 }
 0xe5a   : > { %v2961_v10 = vadd.f32 %v2959_v11, %v2938_v39  ;;  %v3899_v39 = vld [vmem:[#allocation24] ss:$0 sm:$0xff] }
 0xe5b   : > { %v2960_v42 = vadd.f32 %v2958_v36, %v2937_v41 }
 0xe5c   : > { %v2984_v45 = vadd.f32 %v2982_v40, %v2961_v10  ;;  %v3900_v40 = vld [vmem:[#allocation25] ss:$0 sm:$0xff] }
 0xe5d   : > { %v2983_v46 = vadd.f32 %v2981_v26, %v2960_v42 }
 0xe5e   : > { %v2993_v48 = vmul.f32 %v3886_v32, %v2984_v45 }
 0xe5f   : > { %v2992_v49 = vmul.f32 %v3886_v32, %v2983_v46  ;;  %v4609_v46 = vld [vmem:[%s6332_s26] sm:$0xff]  }
 0xe60   : > { %v3002_v9 = vadd.f32 %v3887_v47, %v2993_v48  ;;  %v4611_v48 = vld [vmem:[%s6332_s26 + $0x10] sm:$0xff]  }
 0xe61   : > { %v3001_v50 = vadd.f32 %v3887_v47, %v2992_v49  ;;  %v4610_v47 = vld [vmem:[%s6332_s26 + $0x8] sm:$0xff]   ;;  %v4612_v49 = vld [vmem:[%s6332_s26 + $0x18] sm:$0xff]  }
 0xe62   : > { %v3889_v51 = vmul.f32 -1.442695, %v3002_v9 }
 0xe63   : > { %v3888_v43 = vmul.f32 -1.442695, %v3001_v50 }
 0xe64   : > { %4677 = vpow2.f32 %v3889_v51  ;;  %v4615_v51 = vld [vmem:[%s6332_s26 + $0x30] sm:$0xff]  }
 0xe65   : > { %4679 = vpow2.f32 %v3888_v43  ;;  %v4616_v43 = vld [vmem:[%s6332_s26 + $0x38] sm:$0xff]  }
 0xe6e   : > { %v4678_v13 = vpop.eup %4677 }
 0xe6f   : > { %v4680_v52 = vpop.eup %4679  ;;  %v3010_v53 = vadd.f32 1.0, %v4678_v13  ;;  %v3901_v13 = vld [vmem:[#allocation27] ss:$0 sm:$0xff] }
 0xe70   : > { %v3009_v44 = vadd.f32 1.0, %v4680_v52 }
 0xe71   : > { %4681 = vrcp.f32 %v3010_v53 }
 0xe72   : > { %4683 = vrcp.f32 %v3009_v44 }
 0xe7b   : > { %v4682_v54 = vpop.eup %4681 }
 0xe7c   : > { %v4684_v55 = vpop.eup %4683  ;;  %v3016_v56 = vmul.f32 %v4682_v54, %v3002_v9  ;;  %v4613_v9 = vld [vmem:[%s6332_s26 + $0x20] sm:$0xff]  }
 0xe7d   : > { %v3015_v57 = vmul.f32 %v4684_v55, %v3001_v50  ;;  %v4614_v50 = vld [vmem:[%s6332_s26 + $0x28] sm:$0xff]  }
 0xe7f   : > { %v3017_v58 = vpack.c.bf16 %v3016_v56, %v3015_v57 }
 0xe81   : > { %4225 = vmatmul.mubr.bf16.vlgmr.msra.gmra.mrb[28].mxu1 %v3017_v58 }
 0xe82   : > { %4264 = vmatprep.mubr.msk.bf16.mxu1 %vm5366_vm0, %v5365_v0  ;;  %4249 = vmatpush3.bf16.msra.mxu1 %v4609_v46 }
 0xe83   : > { %4250 = vmatprep.subr.bf16.mxu1 %v5365_v0 }
 0xe86   : > { %4251 = vmatpush3.bf16.msra.mxu1 %v4610_v47 }
 0xe87   : > { %4252 = vmatprep.subr.bf16.mxu1 %v5365_v0 }
 0xe8a   : > { %4253 = vmatpush3.bf16.msra.mxu1 %v4611_v48 }
 0xe8b   : > { %4254 = vmatprep.subr.bf16.mxu1 %v5365_v0 }
 0xe8e   : > { %4255 = vmatpush3.bf16.msra.mxu1 %v4612_v49 }
 0xe8f   : > { %4256 = vmatprep.subr.bf16.mxu1 %v5365_v0 }
 0xe92   : > { %4257 = vmatpush3.bf16.msra.mxu1 %v4613_v9 }
 0xe93   : > { %4258 = vmatprep.subr.bf16.mxu1 %v5365_v0 }
 0xe96   : > { %4259 = vmatpush3.bf16.msra.mxu1 %v4614_v50 }
 0xe97   : > { %4260 = vmatprep.subr.bf16.mxu1 %v5365_v0 }
 0xe9a   : > { %4261 = vmatpush3.bf16.msra.mxu1 %v4615_v51 }
 0xe9b   : > { %4262 = vmatprep.subr.bf16.mxu1 %v5365_v0 }
 0xe9e   : > { %4263 = vmatpush3.bf16.msra.mxu1 %v4616_v43 }
 0xf54   : > { %v3123_v60 = vpop.f32.mrb[28].mxu1 }
 0xf55   : > { %v3124_v61 = vadd.f32 %v3890_v59, %v3123_v60  ;;  %v4226_v62 = vpop.f32.mrb[29].mxu1 }
 0xf56   : > { %v3126_v63 = vpop.f32.mrb[30].mxu1 }
 0xf57   : > { %v6203_v4 = vadd.f32 %v6071_v1, %v3124_v61  ;;  %v3127_v5 = vadd.f32 %v3890_v59, %v3126_v63  ;;  %v4227_v6 = vpop.f32.mrb[31].mxu1 }
 0xf59   : > { %3134 = vadd.xlane.f32.xlu0 %v6203_v4  ;;  %v6207_v8 = vadd.f32 %v6074_v7, %v3127_v5  ;;  %v3140_v12 = vmul.f32 %v6203_v4, %v6203_v4  ;;  %v4603_v7 = vld [vmem:[%s6331_s6 + $0x10] sm:$0xff]  }
 0xf5a   : > { %4233 = vmatpush3.bf16.msra.mxu0 %v4603_v7 }
 0xf5b   : > { %v3141_v1 = vmul.f32 %v6207_v8, %v6207_v8  ;;  %4234 = vmatprep.subr.bf16.mxu0 %v5365_v0 }
 0xf5d   : > { %3136 = vadd.xlane.f32.xlu0 %v6207_v8 }
 0xf5e   : > { %4235 = vmatpush3.bf16.msra.mxu0 %v4604_v14 }
 0xf5f   : > { %4236 = vmatprep.subr.bf16.mxu0 %v5365_v0 }
 0xf61   : > { %3142 = vadd.xlane.f32.xlu0 %v3140_v12 }
 0xf62   : > { %4237 = vmatpush3.bf16.msra.mxu0 %v4605_v15 }
 0xf63   : > { %4238 = vmatprep.subr.bf16.mxu0 %v5365_v0 }
 0xf65   : > { %3144 = vadd.xlane.f32.xlu0 %v3141_v1  ;;  %v3912_v1 = vld [vmem:[#allocation28] ss:$0 sm:$0xff] }
 0xf66   : > { %4239 = vmatpush3.bf16.msra.mxu0 %v4606_v17 }
 0xf67   : > { %4240 = vmatprep.subr.bf16.mxu0 %v5365_v0 }
 0xf6a   : > { %4241 = vmatpush3.bf16.msra.mxu0 %v4607_v19 }
 0xf6b   : > { %4242 = vmatprep.subr.bf16.mxu0 %v5365_v0 }
 0xf6e   : > { %4243 = vmatpush3.bf16.msra.mxu0 %v4608_v20 }
 0xfe6   : > { %v3135_v2 = vpop.xlane.xlu0 %3134 }
 0xfe7   : > { %v3138_v21 = vmul.f32 0.03125, %v3135_v2 }
 0xfe9   : > { %v3148_v23 = vmul.f32 %v3138_v21, %v3138_v21  ;;  %v3152_v31 = vsub.f32 %v6203_v4, %v3138_v21 }
 0xfea   : > { %v3137_v3 = vpop.xlane.xlu0 %3136 }
 0xfeb   : > { %v3139_v24 = vmul.f32 0.03125, %v3137_v3 }
 0xfed   : > { %v3149_v29 = vmul.f32 %v3139_v24, %v3139_v24  ;;  %v3153_v11 = vsub.f32 %v6207_v8, %v3139_v24 }
 0xfee   : > { %v3143_v22 = vpop.xlane.xlu0 %3142 }
 0xfef   : > { %v3146_v25 = vmul.f32 0.03125, %v3143_v22 }
 0xff1   : > { %v3150_v27 = vsub.f32 %v3146_v25, %v3148_v23 }
 0xff2   : > { %v3145_v28 = vpop.xlane.xlu0 %3144 }
 0xff3   : > { %v3154_v30 = vadd.f32 1e-05, %v3150_v27  ;;  %v3147_v34 = vmul.f32 0.03125, %v3145_v28 }
 0xff5   : > { %4685 = vrsqrt.f32 %v3154_v30  ;;  %v3151_v35 = vsub.f32 %v3147_v34, %v3149_v29 }
 0xff7   : > { %v3155_v33 = vadd.f32 1e-05, %v3151_v35 }
 0xff9   : > { %4687 = vrsqrt.f32 %v3155_v33 }
 0xfff   : > { %v4686_v37 = vpop.eup %4685 }
0x1000   : > { %v3158_v38 = vmul.f32 %v4686_v37, %v3152_v31 }
0x1002   : > { %v3166_v10 = vmul.f32 %v3899_v39, %v3158_v38 }
0x1003   : > { %v4688_v41 = vpop.eup %4687 }
0x1004   : > { %v3159_v36 = vmul.f32 %v4688_v41, %v3153_v11  ;;  %v3174_v26 = vadd.f32 %v3900_v40, %v3166_v10  ;;  %v3921_v11 = vld [vmem:[#allocation30] ss:$0 sm:$0xff] }
0x1006   : > { %v3167_v42 = vmul.f32 %v3899_v39, %v3159_v36 }
0x1008   : > { %v3175_v32 = vadd.f32 %v3900_v40, %v3167_v42 }
0x100a   : > { %v3176_v45 = vpack.c.bf16 %v3175_v32, %v3174_v26  ;;  %v3922_v26 = vld [vmem:[#allocation31] ss:$0 sm:$0xff] }
0x100c   : > { %4245 = vmatmul.mubr.bf16.vlgmr.msra.gmra.mrb[32].mxu0 %v3176_v45 }
0x10df   : > { %v3282_v52 = vpop.f32.mrb[32].mxu0 }
0x10e0   : > { %v3283_v53 = vadd.f32 %v3901_v13, %v3282_v52  ;;  %v4246_v44 = vpop.f32.mrb[33].mxu0 }
0x10e1   : > { %v3285_v54 = vpop.f32.mrb[34].mxu0 }
0x10e2   : > { %v3910_v55 = vmul.f32 -1.442695, %v3283_v53  ;;  %v3286_v56 = vadd.f32 %v3901_v13, %v3285_v54  ;;  %v4247_v57 = vpop.f32.mrb[35].mxu0 }
0x10e4   : > { %4689 = vpow2.f32 %v3910_v55  ;;  %v3911_v58 = vmul.f32 -1.442695, %v3286_v56 }
0x10e6   : > { %4691 = vpow2.f32 %v3911_v58 }
0x10ee   : > { %v4690_v59 = vpop.eup %4689 }
0x10ef   : > { %v3295_v60 = vadd.f32 1.0, %v4690_v59 }
0x10f0   : > { %v4692_v61 = vpop.eup %4691 }
0x10f1   : > { %4693 = vrcp.f32 %v3295_v60  ;;  %v3296_v62 = vadd.f32 1.0, %v4692_v61 }
0x10f3   : > { %4695 = vrcp.f32 %v3296_v62 }
0x10fb   : > { %v4694_v63 = vpop.eup %4693 }
0x10fc   : > { %v3301_v5 = vmul.f32 %v4694_v63, %v3283_v53 }
0x10fd   : > { %v4696_v0 = vpop.eup %4695 }
0x10fe   : > { %v3302_v6 = vmul.f32 %v4696_v0, %v3286_v56 }
0x1100   : > { %v3303_v12 = vpack.c.bf16 %v3302_v6, %v3301_v5 }
0x1102   : > { %4265 = vmatmul.mubr.bf16.vlgmr.msra.gmra.mrb[32].mxu1 %v3303_v12 }
0x11d5   : > { %v3409_v16 = vpop.f32.mrb[32].mxu1 }
0x11d6   : > { %v3410_v18 = vadd.f32 %v3912_v1, %v3409_v16  ;;  %v4266_v7 = vpop.f32.mrb[33].mxu1 }
0x11d7   : > { %v3412_v14 = vpop.f32.mrb[34].mxu1 }
0x11d8   : > { %v3416_v15 = vmul.f32 0.5, %v3410_v18  ;;  %v3413_v17 = vadd.f32 %v3912_v1, %v3412_v14  ;;  %v4267_v19 = vpop.f32.mrb[35].mxu1 }
0x11da   : > { %v3418_v20 = vadd.f32 %v3416_v15, %v6203_v4  ;;  %v3417_v2 = vmul.f32 0.5, %v3413_v17 }
0x11dc   : > { %v3419_v3 = vadd.f32 %v3417_v2, %v6207_v8  ;;  %3422 = vadd.xlane.f32.xlu0 %v3418_v20  ;;  %v3428_v22 = vmul.f32 %v3418_v20, %v3418_v20 }
0x11de   : > { %v3429_v21 = vmul.f32 %v3419_v3, %v3419_v3 }
0x11e0   : > { %3424 = vadd.xlane.f32.xlu0 %v3419_v3  ;;  %3432 = vadd.xlane.f32.xlu1 %v3429_v21 }
0x11e4   : > { %3430 = vadd.xlane.f32.xlu0 %v3428_v22 }
0x1269   : > { %v3423_v23 = vpop.xlane.xlu0 %3422 }
0x126a   : > { %v3426_v27 = vmul.f32 0.03125, %v3423_v23 }
0x126c   : > { %v3436_v35 = vmul.f32 %v3426_v27, %v3426_v27  ;;  %v3440_v41 = vsub.f32 %v3418_v20, %v3426_v27 }
0x126d   : > { %v3425_v24 = vpop.xlane.xlu0 %3424  ;;  %v3433_v25 = vpop.xlane.xlu1 %3432 }
0x126e   : > { %v3427_v28 = vmul.f32 0.03125, %v3425_v24  ;;  %v3435_v30 = vmul.f32 0.03125, %v3433_v25 }
0x1270   : > { %v3437_v29 = vmul.f32 %v3427_v28, %v3427_v28  ;;  %v3441_v38 = vsub.f32 %v3419_v3, %v3427_v28 }
0x1271   : > { %v3431_v34 = vpop.xlane.xlu0 %3430 }
0x1272   : > { %v3439_v33 = vsub.f32 %v3435_v30, %v3437_v29  ;;  %v3434_v4 = vmul.f32 0.03125, %v3431_v34 }
0x1274   : > { %v3443_v31 = vadd.f32 1e-05, %v3439_v33  ;;  %v3438_v37 = vsub.f32 %v3434_v4, %v3436_v35 }
0x1276   : > { %4697 = vrsqrt.f32 %v3443_v31  ;;  %v3442_v8 = vadd.f32 1e-05, %v3438_v37 }
0x1278   : > { %4699 = vrsqrt.f32 %v3442_v8 }
0x1280   : > { %v4698_v39 = vpop.eup %4697 }
0x1281   : > { %v3447_v36 = vmul.f32 %v4698_v39, %v3441_v38 }
0x1282   : > { %v4700_v10 = vpop.eup %4699 }
0x1283   : > { %v3455_v40 = vmul.f32 %v3921_v11, %v3447_v36  ;;  %v3446_v42 = vmul.f32 %v4700_v10, %v3440_v41 }
0x1285   : > { %v3454_v32 = vmul.f32 %v3921_v11, %v3446_v42  ;;  %v3463_v45 = vadd.f32 %v3922_v26, %v3455_v40 }
0x1287   : > { %v3462_v46 = vadd.f32 %v3922_v26, %v3454_v32 }
0x1289   : > { %v3938_v47 = vpack.c.bf16 %v3463_v45, %v3462_v46 }
0x128b   : > { %3939 = vst [vmem:[%s1237_s3] sm:$0xff] %v3938_v47  }
0x128c PF: > { %s86_s28 = sadd.s32 1, %s5311_s28  }
0x128d   : > { %p83_p6 = scmp.ge.s32.totalorder %s86_s28, 4  }
0x128f   :  { %85 = sbr.rel (!%p83_p6) target bundleno = 65 (0x41), region = 291 }
0x1296   :  { %3495 = vsyncpa [#allocation3], 1 }
0x1297   :  { %3497 = vsyncpa [#allocation3 + $0x1], 1 }
0x1298   :  { %3498 = vsyncpa [#allocation5], 1 }
0x1299   :  { %3499 = vsyncpa [#allocation8], 1 }
0x129a   :  { %3500 = vsyncpa [#allocation11], 1 }
0x129b   :  { %3501 = vsyncpa [#allocation14], 1 }
0x129c   :  { %3502 = vsyncpa [#allocation17], 1 }
0x129d   :  { %3503 = vsyncpa [#allocation20], 1 }
0x129e   :  { %3504 = vsyncpa [#allocation23], 1 }
0x129f   :  { %3505 = vsyncpa [#allocation26], 1 }
0x12a0   :  { %3506 = vsyncpa [#allocation29], 1 }
0x12a1   :  { %3507 = vsyncpa [#allocation32], 1 }

// kernel: prompted_conformer_masked_encoder.5
= control target key start
LH: loop header
LB: loop body
LE: loop exit
PB: predicated region body
PF: predicated region fallthrough
CT: control target
= control target key end

     0   :  { %s4545_s6 = smov 1   ;;  %s4546_s10 = smov 2   ;;  %s5342_s0 = inlined_call_operand.smem [shape: u32[33], index: -1, kind: input, shape index: {}] }
   0x1   :  { %s4599_s5 = sld [smem:[%s5342_s0]]   ;;  %s4547_s14 = smov 3  }
   0x2   :  { %s4604_s9 = sld [smem:[%s5342_s0 + %s4545_s6]]   ;;  %s4548_s18 = smov 4  }
   0x3   :  { %s4609_s13 = sld [smem:[%s5342_s0 + %s4546_s10]]   ;;  %s4549_s22 = smov 5  }
   0x4   :  { %s4614_s17 = sld [smem:[%s5342_s0 + %s4547_s14]]   ;;  %s4550_s26 = smov 6  }
   0x5   :  { %s4619_s21 = sld [smem:[%s5342_s0 + %s4548_s18]]   ;;  %s4551_s30 = smov 7  }
   0x6   :  { %s4624_s25 = sld [smem:[%s5342_s0 + %s4549_s22]]   ;;  %s4552_s4 = smov 8  }
   0x7   :  { %s4629_s29 = sld [smem:[%s5342_s0 + %s4550_s26]]   ;;  %s4553_s10 = smov 9  }
   0x8   :  { %s4634_s3 = sld [smem:[%s5342_s0 + %s4551_s30]]   ;;  %s4554_s15 = smov 10  }
   0x9   :  { %s4639_s8 = sld [smem:[%s5342_s0 + %s4552_s4]]   ;;  %s4555_s20 = smov 11  }
   0xa   :  { %s4644_s14 = sld [smem:[%s5342_s0 + %s4553_s10]]   ;;  %s4556_s26 = smov 12  }
   0xb   :  { %s4649_s19 = sld [smem:[%s5342_s0 + %s4554_s15]]   ;;  %s4557_s1 = smov 13  }
   0xc   :  { %s4654_s24 = sld [smem:[%s5342_s0 + %s4555_s20]]   ;;  %s4558_s7 = smov 14  }
   0xd   :  { %s4659_s30 = sld [smem:[%s5342_s0 + %s4556_s26]]   ;;  %s4559_s15 = smov 15  }
   0xe   :  { %s4664_s6 = sld [smem:[%s5342_s0 + %s4557_s1]]   ;;  %s4560_s22 = smov 16  }
   0xf   :  { %5351 = sst [smem:[#allocation20_spill]] %s4639_s8  ;;  %s4561_s28 = smov 17  }
  0x10   :  { %s4669_s12 = sld [smem:[%s5342_s0 + %s4558_s7]]   ;;  %s4562_s7 = smov 18  }
  0x11   :  { %5352 = sst [smem:[#allocation21_spill]] %s4649_s19 }
  0x12   :  { %5353 = sst [smem:[#allocation22_spill]] %s4654_s24 }
  0x13   :  { %5354 = sst [smem:[#allocation23_spill]] %s4659_s30 }
  0x14   :  { %5355 = sst [smem:[#allocation24_spill]] %s4664_s6 }
  0x15   :  { %s4674_s20 = sld [smem:[%s5342_s0 + %s4559_s15]]   ;;  %s4563_s15 = smov 19  }
  0x16   :  { %5356 = sst [smem:[#allocation25_spill]] %s4669_s12 }
  0x17   :  { %s4679_s27 = sld [smem:[%s5342_s0 + %s4560_s22]]   ;;  %s4564_s22 = smov 20  }
  0x18   :  { %s4684_s4 = sld [smem:[%s5342_s0 + %s4561_s28]]   ;;  %s4565_s28 = smov 21  }
  0x19   :  { %s4689_s12 = sld [smem:[%s5342_s0 + %s4562_s7]]   ;;  %s4566_s7 = smov 22  }
  0x1a   :  { %s4694_s6 = sld [smem:[%s5342_s0 + %s4563_s15]]   ;;  %s4567_s15 = smov 23  }
  0x1b   :  { %5357 = sst [smem:[#allocation26_spill]] %s4674_s20 }
  0x1d   :  { %5358 = sst [smem:[#allocation27_spill]] %s4679_s27 }
  0x1e   :  { %5359 = sst [smem:[#allocation28_spill]] %s4684_s4 }
  0x1f   :  { %5360 = sst [smem:[#allocation29_spill]] %s4689_s12 }
  0x20   :  { %5361 = sst [smem:[#allocation30_spill]] %s4694_s6 }
  0x21   :  { %s4699_s27 = sld [smem:[%s5342_s0 + %s4564_s22]]   ;;  %s4568_s22 = smov 24  }
  0x22   :  { %s4704_s4 = sld [smem:[%s5342_s0 + %s4565_s28]]   ;;  %s4569_s28 = smov 25  }
  0x23   :  { %s4709_s12 = sld [smem:[%s5342_s0 + %s4566_s7]]   ;;  %s4570_s7 = smov 26  }
  0x24   :  { %s4714_s6 = sld [smem:[%s5342_s0 + %s4567_s15]]   ;;  %s4571_s15 = smov 27  }
  0x25   :  { %s4724_s20 = sld [smem:[%s5342_s0 + %s4569_s28]]   ;;  %s4573_s28 = smov 29  }
  0x26   :  { %s4734_s30 = sld [smem:[%s5342_s0 + %s4571_s15]]   ;;  %s4575_s15 = smov 31  }
  0x27   :  { %5362 = sst [smem:[#allocation31_spill]] %s4699_s27 }
  0x28   :  { %s4719_s27 = sld [smem:[%s5342_s0 + %s4568_s22]]   ;;  %s4572_s22 = smov 28  }
  0x29   :  { %5363 = sst [smem:[#allocation32_spill]] %s4709_s12 }
  0x2a   :  { %s4729_s12 = sld [smem:[%s5342_s0 + %s4570_s7]]   ;;  %s4574_s7 = smov 30  }
  0x2b   :  { %s4739_s24 = sld [smem:[%s5342_s0 + %s4572_s22]]   ;;  %s4576_s22 = smov 32  }
  0x2c   :  { %s4744_s19 = sld [smem:[%s5342_s0 + %s4573_s28]]  }
  0x2d   :  { %s4754_s8 = sld [smem:[%s5342_s0 + %s4575_s15]]  }
  0x30   :  { %5364 = sst [smem:[#allocation33_spill]] %s4729_s12 }
  0x31   :  { %5365 = sst [smem:[#allocation34_spill]] %s4739_s24 }
  0x32   :  { %s4749_s12 = sld [smem:[%s5342_s0 + %s4574_s7]]  }
  0x33   :  { %s4759_s24 = sld [smem:[%s5342_s0 + %s4576_s22]]  }
  0x34   :  { %70 = vsyncpa [#allocation3], 0 }
  0x35   :  { %71 = vsyncpa [#allocation5], 0 }
  0x36   :  { %72 = vsyncpa [#allocation8], 0 }
  0x37   :  { %73 = vsyncpa [#allocation11], 0 }
  0x38   :  { %74 = vsyncpa [#allocation14], 0  ;;  %s4761_s28 = smov 0  }
  0x39 LB: > { %s4577_s1 = smov [#allocation4]   ;;  %s4767_s7 = sadd.s32 4294967295, %s4543_s28   ;;  %s4543_s28 = sphi %s4761_s28, %s80_s28  }
  0x3a   : > { %s875_s2 = sshll.u32 %s4577_s1, 4  ;;  %p3492_p0 = scmp.ge.s32.totalorder %s4543_s28, 1  ;;  %s4772_s2 = int_to_ptr.vmem [resolvable:$true] %s875_s2 }
  0x3b   : > { %p788_p1 = scmp.lt.s32.totalorder %s4543_s28, 3  ;;  %p5349_p2 = scmp.eq.s32.totalorder %s4767_s7, 0 }
  0x3c   : > { %s4578_s10 = smov [#allocation7]   ;;  %s4579_s15 = smov [#allocation10]  }
  0x3d   : > { %p4774_p3 = pnand %p3492_p0, %p788_p1  ;;  %s897_s11 = sshll.u32 %s4578_s10, 4  ;;  %s4780_s11 = int_to_ptr.vmem [resolvable:$true] %s897_s11 }
  0x3e   : > { %s925_s16 = sshll.u32 %s4579_s15, 4  ;;  %s4580_s22 = smov [#allocation2]   ;;  %s4788_s16 = int_to_ptr.vmem [resolvable:$true] %s925_s16 }
  0x3f   : > { %s5366_s0 = scalar_select %p4774_p3, 1, 0 }
  0x40   : > { %p4026_p4 = pneg %p4774_p3  ;;  %s861_s23 = sshll.u32 %s4580_s22, 4  ;;  %s4790_s23 = int_to_ptr.vmem [resolvable:$true] %s861_s23 }
  0x41   : > { %s4293_s26 = scalar_lea.hbm %s4714_s6, 16 }
  0x42   : > { %p4784_p5 = pnand %p5349_p2, %p4026_p4  ;;  %p4294_p6 = scmp.ne.s32.totalorder %s4714_s6, %s4293_s26 }
  0x43   : > { %p4300_p10 = scmp.lt.u32.totalorder %s4293_s26, %s4714_s6 }
  0x44   : > { %p4796_p7 = pneg %p4784_p5 }
  0x46   : > { %p4296_p8 = pnand %p4796_p7, %p4294_p6 }
  0x48   : > { %p4297_p9 = pneg %p4296_p8 }
  0x4a   : > { %p4302_p11 = pnand %p4300_p10, %p4297_p9 }
  0x4c   : > { %4305 = shalt.err (!%p4302_p11)
}
  0x4d   : > { %s4306_s10 = scalar_lea.vmem %s4772_s2, 16  ;;  %s4313_s15 = scalar_lea.vmem %s4772_s2, 32 }
  0x4e   : > { %p4307_p12 = scmp.ne.s32.totalorder %s4772_s2, %s4306_s10  ;;  %p4314_p1 = scmp.lt.s32.totalorder %s4772_s2, %s4772_s2 }
  0x4f   : > { %p4315_p4 = scmp.lt.s32.totalorder %s4313_s15, %s4306_s10 }
  0x50   : > { %p4309_p13 = pnand %p4307_p12, %p4796_p7 }
  0x51   : > { %p4316_p2 = por %p4315_p4, %p4314_p1 }
  0x52   : > { %p4310_p0 = pneg %p4309_p13 }
  0x54   : > { %p4317_p6 = pnand %p4316_p2, %p4310_p0 }
  0x56   : > { %4320 = shalt.err (!%p4317_p6)
}
  0x57   : > { %4032 = dma.hbm_to_vmem [thread:$0]  (!%p4784_p5), %s4714_s6, 16, %s4772_s2, [#allocation5]  }
  0x58   : > { %s4321_s22 = scalar_lea.hbm %s4724_s20, 16 }
  0x59   : > { %p4322_p8 = scmp.ne.s32.totalorder %s4724_s20, %s4321_s22  ;;  %p4328_p11 = scmp.lt.u32.totalorder %s4321_s22, %s4724_s20 }
  0x5b   : > { %p4324_p9 = pnand %p4322_p8, %p4796_p7 }
  0x5d   : > { %p4325_p10 = pneg %p4324_p9 }
  0x5f   : > { %p4330_p12 = pnand %p4328_p11, %p4325_p10 }
  0x61   : > { %4333 = shalt.err (!%p4330_p12)
}
  0x62   : > { %s4334_s26 = scalar_lea.vmem %s4780_s11, 16  ;;  %s4341_s10 = scalar_lea.vmem %s4780_s11, 32 }
  0x63   : > { %p4335_p2 = scmp.ne.s32.totalorder %s4780_s11, %s4334_s26  ;;  %p4342_p1 = scmp.lt.s32.totalorder %s4780_s11, %s4780_s11 }
  0x64   : > { %p4343_p4 = scmp.lt.s32.totalorder %s4341_s10, %s4334_s26 }
  0x65   : > { %p4337_p13 = pnand %p4335_p2, %p4796_p7 }
  0x66   : > { %p4344_p6 = por %p4343_p4, %p4342_p1 }
  0x67   : > { %p4338_p0 = pneg %p4337_p13 }
  0x69   : > { %p4345_p8 = pnand %p4344_p6, %p4338_p0 }
  0x6b   : > { %4348 = shalt.err (!%p4345_p8)
}
  0x6c   : > { %4038 = dma.hbm_to_vmem [thread:$0]  (!%p4784_p5), %s4724_s20, 16, %s4780_s11, [#allocation8]  }
  0x6d   : > { %s4349_s2 = scalar_lea.hbm %s4744_s19, 16 }
  0x6e   : > { %p4350_p9 = scmp.ne.s32.totalorder %s4744_s19, %s4349_s2  ;;  %p4356_p12 = scmp.lt.u32.totalorder %s4349_s2, %s4744_s19 }
  0x70   : > { %p4352_p10 = pnand %p4350_p9, %p4796_p7 }
  0x72   : > { %p4353_p11 = pneg %p4352_p10 }
  0x74   : > { %p4358_p2 = pnand %p4356_p12, %p4353_p11 }
  0x76   : > { %4361 = shalt.err (!%p4358_p2)
}
  0x77   : > { %s4362_s15 = scalar_lea.vmem %s4788_s16, 16  ;;  %s4369_s22 = scalar_lea.vmem %s4788_s16, 32 }
  0x78   : > { %p4363_p13 = scmp.ne.s32.totalorder %s4788_s16, %s4362_s15  ;;  %p4370_p4 = scmp.lt.s32.totalorder %s4788_s16, %s4788_s16 }
  0x79   : > { %p4371_p6 = scmp.lt.s32.totalorder %s4369_s22, %s4362_s15 }
  0x7a   : > { %p4365_p0 = pnand %p4363_p13, %p4796_p7 }
  0x7b   : > { %p4372_p8 = por %p4371_p6, %p4370_p4 }
  0x7c   : > { %p4366_p1 = pneg %p4365_p0 }
  0x7e   : > { %p4373_p9 = pnand %p4372_p8, %p4366_p1 }
  0x80   : > { %4376 = shalt.err (!%p4373_p9)
}
  0x81   : > { %4044 = dma.hbm_to_vmem [thread:$0]  (!%p4784_p5), %s4744_s19, 16, %s4788_s16, [#allocation11]  }
  0x82   : > { %s4377_s11 = scalar_lea.hbm %s4704_s4, 16 }
  0x83   : > { %p4378_p10 = scmp.ne.s32.totalorder %s4704_s4, %s4377_s11  ;;  %p4384_p2 = scmp.lt.u32.totalorder %s4377_s11, %s4704_s4 }
  0x85   : > { %p4380_p11 = pnand %p4378_p10, %p4796_p7 }
  0x87   : > { %p4381_p12 = pneg %p4380_p11 }
  0x89   : > { %p4386_p13 = pnand %p4384_p2, %p4381_p12 }
  0x8b   : > { %4389 = shalt.err (!%p4386_p13)
}
  0x8c   : > { %s4390_s26 = scalar_lea.vmem %s4790_s23, 16  ;;  %s4397_s10 = scalar_lea.vmem %s4790_s23, 32 }
  0x8d   : > { %p4391_p0 = scmp.ne.s32.totalorder %s4790_s23, %s4390_s26  ;;  %p4398_p6 = scmp.lt.s32.totalorder %s4790_s23, %s4790_s23 }
  0x8e   : > { %p4399_p8 = scmp.lt.s32.totalorder %s4397_s10, %s4390_s26 }
  0x8f   : > { %p4393_p1 = pnand %p4391_p0, %p4796_p7 }
  0x90   : > { %p4400_p9 = por %p4399_p8, %p4398_p6 }
  0x91   : > { %p4394_p4 = pneg %p4393_p1 }
  0x93   : > { %p4401_p10 = pnand %p4400_p9, %p4394_p4 }
  0x95   : > { %4404 = shalt.err (!%p4401_p10)
}
  0x96   : > { %4029 = dma.hbm_to_vmem [thread:$0]  (!%p4784_p5), %s4704_s4, 16, %s4790_s23, [#allocation3]  }
  0x97   : > { %s4581_s16 = smov [#allocation6]   ;;  %s4582_s15 = smov [#allocation9]  }
  0x98   : > { %s886_s2 = sshll.u32 %s4581_s16, 4  ;;  %s911_s22 = sshll.u32 %s4582_s15, 4  ;;  %s887_s2 = int_to_ptr.vmem [resolvable:$true] %s886_s2  ;;  %s912_s22 = int_to_ptr.vmem [resolvable:$true] %s911_s22 }
  0x99   : > { %s4405_s11 = scalar_lea.hbm %s4719_s27, 16 }
  0x9a   : > { %p4406_p11 = scmp.ne.s32.totalorder %s4719_s27, %s4405_s11  ;;  %p4412_p13 = scmp.lt.u32.totalorder %s4405_s11, %s4719_s27 }
  0x9c   : > { %p4408_p12 = pnand %p4406_p11, %p4796_p7 }
  0x9e   : > { %p4409_p2 = pneg %p4408_p12 }
  0xa0   : > { %p4414_p0 = pnand %p4412_p13, %p4409_p2 }
  0xa2   : > { %4417 = shalt.err (!%p4414_p0)
}
  0xa3   : > { %s4418_s26 = scalar_lea.vmem %s887_s2, 16  ;;  %s4425_s23 = scalar_lea.vmem %s887_s2, 32 }
  0xa4   : > { %p4419_p1 = scmp.ne.s32.totalorder %s887_s2, %s4418_s26  ;;  %p4426_p8 = scmp.lt.s32.totalorder %s887_s2, %s887_s2 }
  0xa5   : > { %p4427_p9 = scmp.lt.s32.totalorder %s4425_s23, %s4418_s26 }
  0xa6   : > { %p4421_p4 = pnand %p4419_p1, %p4796_p7 }
  0xa7   : > { %p4428_p10 = por %p4427_p9, %p4426_p8 }
  0xa8   : > { %p4422_p6 = pneg %p4421_p4 }
  0xaa   : > { %p4429_p3 = pnand %p4428_p10, %p4422_p6 }
  0xac   : > { %4432 = shalt.err (!%p4429_p3)
}
  0xad   : > { %4035 = dma.hbm_to_vmem [thread:$0]  (!%p4784_p5), %s4719_s27, 16, %s887_s2, [#allocation5]  }
  0xae   : > { %s4433_s10 = scalar_lea.hbm %s4734_s30, 16 }
  0xaf   : > { %p4434_p11 = scmp.ne.s32.totalorder %s4734_s30, %s4433_s10  ;;  %p4440_p13 = scmp.lt.u32.totalorder %s4433_s10, %s4734_s30 }
  0xb1   : > { %p4436_p12 = pnand %p4434_p11, %p4796_p7 }
  0xb3   : > { %p4437_p2 = pneg %p4436_p12 }
  0xb5   : > { %p4442_p0 = pnand %p4440_p13, %p4437_p2 }
  0xb7   : > { %4445 = shalt.err (!%p4442_p0)
}
  0xb8   : > { %s4446_s16 = scalar_lea.vmem %s912_s22, 16  ;;  %s4453_s15 = scalar_lea.vmem %s912_s22, 32 }
  0xb9   : > { %p4447_p3 = scmp.ne.s32.totalorder %s912_s22, %s4446_s16  ;;  %p4454_p6 = scmp.lt.s32.totalorder %s912_s22, %s912_s22 }
  0xba   : > { %p4455_p8 = scmp.lt.s32.totalorder %s4453_s15, %s4446_s16 }
  0xbb   : > { %p4449_p1 = pnand %p4447_p3, %p4796_p7 }
  0xbc   : > { %p4456_p9 = por %p4455_p8, %p4454_p6 }
  0xbd   : > { %p4450_p4 = pneg %p4449_p1 }
  0xbf   : > { %p4457_p10 = pnand %p4456_p9, %p4450_p4 }
  0xc1   : > { %4460 = shalt.err (!%p4457_p10)
}
  0xc2   : > { %4041 = dma.hbm_to_vmem [thread:$0]  (!%p4784_p5), %s4734_s30, 16, %s912_s22, [#allocation8]  }
  0xc3   : > { %s4583_s2 = smov [#allocation12]   ;;  %s4584_s26 = smov [#allocation13]  }
  0xc4   : > { %s936_s11 = sshll.u32 %s4583_s2, 4  ;;  %s947_s23 = sshll.u32 %s4584_s26, 4  ;;  %s937_s11 = int_to_ptr.vmem [resolvable:$true] %s936_s11  ;;  %s948_s23 = int_to_ptr.vmem [resolvable:$true] %s947_s23 }
  0xc5   : > { %s4461_s10 = scalar_lea.hbm %s4749_s12, 16 }
  0xc6   : > { %p4462_p11 = scmp.ne.s32.totalorder %s4749_s12, %s4461_s10  ;;  %p4468_p13 = scmp.lt.u32.totalorder %s4461_s10, %s4749_s12 }
  0xc8   : > { %p4464_p12 = pnand %p4462_p11, %p4796_p7 }
  0xca   : > { %p4465_p2 = pneg %p4464_p12 }
  0xcc   : > { %p4470_p0 = pnand %p4468_p13, %p4465_p2 }
  0xce   : > { %4473 = shalt.err (!%p4470_p0)
}
  0xcf   : > { %s4474_s16 = scalar_lea.vmem %s937_s11, 16  ;;  %s4481_s22 = scalar_lea.vmem %s937_s11, 32 }
  0xd0   : > { %p4475_p3 = scmp.ne.s32.totalorder %s937_s11, %s4474_s16  ;;  %p4482_p6 = scmp.lt.s32.totalorder %s937_s11, %s937_s11 }
  0xd1   : > { %p4483_p8 = scmp.lt.s32.totalorder %s4481_s22, %s4474_s16 }
  0xd2   : > { %p4477_p1 = pnand %p4475_p3, %p4796_p7 }
  0xd3   : > { %p4484_p9 = por %p4483_p8, %p4482_p6 }
  0xd4   : > { %p4478_p4 = pneg %p4477_p1 }
  0xd6   : > { %p4485_p10 = pnand %p4484_p9, %p4478_p4 }
  0xd8   : > { %4488 = shalt.err (!%p4485_p10)
}
  0xd9   : > { %4047 = dma.hbm_to_vmem [thread:$0]  (!%p4784_p5), %s4749_s12, 16, %s937_s11, [#allocation11]  }
  0xda   : > { %s4489_s15 = scalar_lea.hbm %s4754_s8, 16 }
  0xdb   : > { %p4490_p11 = scmp.ne.s32.totalorder %s4754_s8, %s4489_s15  ;;  %p4496_p13 = scmp.lt.u32.totalorder %s4489_s15, %s4754_s8 }
  0xdd   : > { %p4492_p12 = pnand %p4490_p11, %p4796_p7 }
  0xdf   : > { %p4493_p2 = pneg %p4492_p12 }
  0xe1   : > { %p4498_p0 = pnand %p4496_p13, %p4493_p2 }
  0xe3   : > { %4501 = shalt.err (!%p4498_p0)
}
  0xe4   : > { %s4502_s2 = scalar_lea.vmem %s948_s23, 16  ;;  %s4509_s26 = scalar_lea.vmem %s948_s23, 32 }
  0xe5   : > { %p4503_p3 = scmp.ne.s32.totalorder %s948_s23, %s4502_s2  ;;  %p4510_p6 = scmp.lt.s32.totalorder %s948_s23, %s948_s23 }
  0xe6   : > { %p4511_p8 = scmp.lt.s32.totalorder %s4509_s26, %s4502_s2 }
  0xe7   : > { %p4505_p1 = pnand %p4503_p3, %p4796_p7 }
  0xe8   : > { %p4512_p9 = por %p4511_p8, %p4510_p6 }
  0xe9   : > { %p4506_p4 = pneg %p4505_p1 }
  0xeb   : > { %p4513_p10 = pnand %p4512_p9, %p4506_p4 }
  0xed   : > { %4516 = shalt.err (!%p4513_p10)
}
  0xee   : > { %4050 = dma.hbm_to_vmem [thread:$0]  (!%p4784_p5), %s4754_s8, 16, %s948_s23, [#allocation14]  }
  0xef   : > { %p5369_p11 = scmp.ne.s32.totalorder %s5366_s0, 0 }
  0xf0   : > { %p5370_p12 = scmp.eq.s32.totalorder (!%p5369_p11), %s4767_s7, 0 }
  0xf1   : > { %968 = sbr.rel (%p5369_p11) target bundleno = 4442 (0x115a), region = 148 }
  0xf8   : > { %4522 = dma.done.wait (%p5370_p12), [#allocation3], 16   ;;  %p5371_p2 = pmov %p5370_p12 }
  0xfa   : > { %4524 = vsyncadd (%p5371_p2), [#allocation3], 4294967280  ;;  %p5372_p7 = pmov %p5371_p2 }
  0xfb   : > { %p5373_p13 = pmov %p5371_p2 }
  0xfc   : > { %4526 = dma.done.wait (%p5372_p7), [#allocation5], 32  }
  0xfd   : > { %4528 = vsyncadd (%p5373_p13), [#allocation5], 4294967264  ;;  %p5374_p0 = pmov %p5371_p2 }
  0xff   : > { %4530 = dma.done.wait (%p5374_p0), [#allocation8], 32   ;;  %p5375_p5 = pmov %p5374_p0 }
 0x100   : > { %p5376_p3 = pmov %p5374_p0 }
 0x101   : > { %4532 = vsyncadd (%p5375_p5), [#allocation8], 4294967264 }
 0x102   : > { %4534 = dma.done.wait (%p5376_p3), [#allocation11], 32   ;;  %p5377_p1 = pmov %p5374_p0 }
 0x103   : > { %p5378_p4 = pmov %p5374_p0 }
 0x104   : > { %4536 = vsyncadd (%p5377_p1), [#allocation11], 4294967264 }
 0x105   : > { %4538 = dma.done.wait (%p5378_p4), [#allocation14], 16   ;;  %p5379_p6 = pmov %p5374_p0 }
 0x106   : > { %p1078_p8 = scmp.lt.s32.totalorder %s4767_s7, 1  ;;  %v4585_v0 = vmov 0.0   ;;  %v4121_v6 = vld [vmem:[%s4614_s17] sm:$0xff]   ;;  %v4122_v7 = vld [vmem:[%s4614_s17 + $0x8] sm:$0xff]   ;;  %v4123_v8 = vld [vmem:[%s4614_s17 + $0x10] sm:$0xff]   ;;  %vm4586_vm0 = vmmov 0  }
 0x107   : > { %4540 = vsyncadd (%p5379_p6), [#allocation14], 4294967280  ;;  %3748 = vmatprep.subr.bf16.mxu0 %v4585_v0  ;;  %3768 = vmatprep.subr.bf16.mxu1 %v4585_v0  ;;  %v4124_v9 = vld [vmem:[%s4614_s17 + $0x18] sm:$0xff]   ;;  %v4125_v10 = vld [vmem:[%s4614_s17 + $0x20] sm:$0xff]   ;;  %s5380_s1 = sld [smem:[#allocation20_spill]]  ;;  %s5381_s11 = sld [smem:[#allocation21_spill]] }
 0x108   : > { %s5396_s7 = smov (!%p1078_p8, %s4767_s7), 1  ;;  %3749 = vmatpush3.bf16.msra.mxu0 %v4121_v6  ;;  %3764 = vmatprep.mubr.msk.bf16.mxu0 %vm4586_vm0, %v4585_v0  ;;  %v4126_v11 = vld [vmem:[%s4614_s17 + $0x28] sm:$0xff]   ;;  %v4127_v12 = vld [vmem:[%s4614_s17 + $0x30] sm:$0xff]   ;;  %v4128_v13 = vld [vmem:[%s4614_s17 + $0x38] sm:$0xff]   ;;  %vm1703_vm1 = vcmask 64512   ;;  %s4588_s23 = smov 120  }
 0x109   : > { %s3639_s0 = sshll.u32 %s5396_s7, 3  ;;  %3750 = vmatprep.subr.bf16.mxu0 %v4585_v0  ;;  %3784 = vmatprep.mubr.msk.bf16.mxu1 %vm4586_vm0, %v4585_v0  ;;  %v3515_v31 = vld [vmem:[%s4604_s9] ss:$0 sm:$0xff]  ;;  %v4130_v42 = vld [vmem:[%s4624_s25 + $0x8] sm:$0xff]   ;;  %v4131_v43 = vld [vmem:[%s4624_s25 + $0x10] sm:$0xff]   ;;  %s4589_s10 = smov 112  }
 0x10a   : > { %s1082_s18 = scalar_lea.vmem %s4599_s5, %s3639_s0  ;;  %v3516_v36 = vld [vmem:[%s4609_s13] ss:$0 sm:$0xff]  ;;  %v4132_v44 = vld [vmem:[%s4624_s25 + $0x18] sm:$0xff]   ;;  %v4134_v46 = vld [vmem:[%s4624_s25 + $0x28] sm:$0xff]   ;;  %vm1753_vm2 = vcmask 130048   ;;  %s4590_s16 = smov 104  }
 0x10b   : > { %v3644_v1 = vld [vmem:[%s1082_s18] sm:$0xff]   ;;  %v4135_v47 = vld [vmem:[%s4624_s25 + $0x30] sm:$0xff]   ;;  %v4136_v48 = vld [vmem:[%s4624_s25 + $0x38] sm:$0xff]   ;;  %s5382_s22 = sld [smem:[#allocation22_spill]]  ;;  %vm1825_vm3 = vcmask 1043456   ;;  %s5383_s15 = sld [smem:[#allocation23_spill]] }
 0x10c   : > { %v4934_v2 = vunpack.c.l.bf16 %v3644_v1  ;;  %v4936_v3 = vunpack.c.h.bf16 %v3644_v1  ;;  %3751 = vmatpush3.bf16.msra.mxu0 %v4122_v7  ;;  %v4129_v41 = vld [vmem:[%s4624_s25] sm:$0xff]   ;;  %s5384_s2 = sld [smem:[#allocation26_spill]]  ;;  %s5385_s26 = sld [smem:[#allocation28_spill]] }
 0x10d   : > { %3752 = vmatprep.subr.bf16.mxu0 %v4585_v0  ;;  %3769 = vmatpush3.bf16.msra.mxu1 %v4129_v41  ;;  %v4133_v45 = vld [vmem:[%s4624_s25 + $0x20] sm:$0xff]   ;;  %v4168_v41 = vld [vmem:[%s4644_s14 + $0xb0] ss:$12 sps:$4 sm:$0xff]   ;;  %s5386_s18 = sld [smem:[#allocation24_spill]] }
 0x10e   : > { %1095 = vadd.xlane.f32.xlu0 %v4934_v2  ;;  %v1101_v4 = vmul.f32 %v4934_v2, %v4934_v2  ;;  %v1102_v5 = vmul.f32 %v4936_v3, %v4936_v3  ;;  %3770 = vmatprep.subr.bf16.mxu1 %v4585_v0  ;;  %v3517_v49 = vld [vmem:[%s4619_s21] ss:$0 sm:$0xff]  ;;  %v4139_v7 = vld [vmem:[%s4644_s14 + $0x4] ss:$12 sps:$4 sm:$0xff]  }
 0x10f   : > { %v4137_v6 = vld [vmem:[%s4644_s14] ss:$12 sps:$4 sm:$0xff]  }
 0x110   : > { %1103 = vadd.xlane.f32.xlu1 %v1101_v4  ;;  %3753 = vmatpush3.bf16.msra.mxu0 %v4123_v8  ;;  %v3528_v8 = vld [vmem:[%s4629_s29] ss:$0 sm:$0xff] }
 0x111   : > { %3754 = vmatprep.subr.bf16.mxu0 %v4585_v0  ;;  %3771 = vmatpush3.bf16.msra.mxu1 %v4130_v42 }
 0x112   : > { %1097 = vadd.xlane.f32.xlu0 %v4936_v3  ;;  %3772 = vmatprep.subr.bf16.mxu1 %v4585_v0 }
 0x114   : > { %1105 = vadd.xlane.f32.xlu1 %v1102_v5  ;;  %3755 = vmatpush3.bf16.msra.mxu0 %v4124_v9 }
 0x115   : > { %3756 = vmatprep.subr.bf16.mxu0 %v4585_v0  ;;  %3773 = vmatpush3.bf16.msra.mxu1 %v4131_v43 }
 0x116   : > { %3774 = vmatprep.subr.bf16.mxu1 %v4585_v0 }
 0x118   : > { %3757 = vmatpush3.bf16.msra.mxu0 %v4125_v10 }
 0x119   : > { %3758 = vmatprep.subr.bf16.mxu0 %v4585_v0  ;;  %3775 = vmatpush3.bf16.msra.mxu1 %v4132_v44 }
 0x11a   : > { %3776 = vmatprep.subr.bf16.mxu1 %v4585_v0 }
 0x11c   : > { %3759 = vmatpush3.bf16.msra.mxu0 %v4126_v11 }
 0x11d   : > { %3760 = vmatprep.subr.bf16.mxu0 %v4585_v0  ;;  %3777 = vmatpush3.bf16.msra.mxu1 %v4133_v45 }
 0x11e   : > { %3778 = vmatprep.subr.bf16.mxu1 %v4585_v0 }
 0x120   : > { %3761 = vmatpush3.bf16.msra.mxu0 %v4127_v12 }
 0x121   : > { %3762 = vmatprep.subr.bf16.mxu0 %v4585_v0  ;;  %3779 = vmatpush3.bf16.msra.mxu1 %v4134_v46 }
 0x122   : > { %3780 = vmatprep.subr.bf16.mxu1 %v4585_v0 }
 0x124   : > { %3763 = vmatpush3.bf16.msra.mxu0 %v4128_v13 }
 0x125   : > { %3781 = vmatpush3.bf16.msra.mxu1 %v4135_v47  ;;  %1603 = vmatprep.subr.bf16.mxu0 %v4139_v7 }
 0x126   : > { %3782 = vmatprep.subr.bf16.mxu1 %v4585_v0 }
 0x129   : > { %3783 = vmatpush3.bf16.msra.mxu1 %v4136_v48 }
 0x12a   : > { %3788 = vmatprep.subr.bf16.mxu1 %v4585_v0 }
 0x19b   : > { %v1096_v14 = vpop.xlane.xlu0 %1095 }
 0x19c   : > { %v1099_v15 = vmul.f32 0.03125, %v1096_v14 }
 0x19d   : > { %v1104_v16 = vpop.xlane.xlu1 %1103 }
 0x19e   : > { %v1109_v17 = vmul.f32 %v1099_v15, %v1099_v15  ;;  %v1107_v18 = vmul.f32 0.03125, %v1104_v16  ;;  %v1113_v28 = vsub.f32 %v4934_v2, %v1099_v15 }
 0x19f   : > { %v1098_v19 = vpop.xlane.xlu0 %1097 }
 0x1a0   : > { %v1111_v20 = vsub.f32 %v1107_v18, %v1109_v17  ;;  %v1100_v21 = vmul.f32 0.03125, %v1098_v19 }
 0x1a1   : > { %v1106_v22 = vpop.xlane.xlu1 %1105 }
 0x1a2   : > { %v1115_v23 = vadd.f32 1e-05, %v1111_v20  ;;  %v1110_v24 = vmul.f32 %v1100_v21, %v1100_v21  ;;  %v1108_v25 = vmul.f32 0.03125, %v1106_v22  ;;  %v1114_v32 = vsub.f32 %v4936_v3, %v1100_v21  ;;  %v4141_v21 = vld [vmem:[%s4644_s14 + $0x18] ss:$12 sps:$4 sm:$0xff]  }
 0x1a3   : > { %v4144_v22 = vld [vmem:[%s4644_s14 + $0x20] ss:$12 sps:$4 sm:$0xff]  }
 0x1a4   : > { %4209 = vrsqrt.f32 %v1115_v23  ;;  %v1112_v26 = vsub.f32 %v1108_v25, %v1110_v24  ;;  %v4147_v23 = vld [vmem:[%s4644_s14 + $0x34] ss:$12 sps:$4 sm:$0xff]   ;;  %v4145_v24 = vld [vmem:[%s4644_s14 + $0x30] ss:$12 sps:$4 sm:$0xff]   ;;  %v4148_v25 = vld [vmem:[%s4644_s14 + $0x38] ss:$12 sps:$4 sm:$0xff]  }
 0x1a6   : > { %v1116_v27 = vadd.f32 1e-05, %v1112_v26  ;;  %v4151_v26 = vld [vmem:[%s4644_s14 + $0x4c] ss:$12 sps:$4 sm:$0xff]  }
 0x1a8   : > { %4211 = vrsqrt.f32 %v1116_v27  ;;  %v4149_v27 = vld [vmem:[%s4644_s14 + $0x48] ss:$12 sps:$4 sm:$0xff]  }
 0x1ae   : > { %v4210_v29 = vpop.eup %4209 }
 0x1af   : > { %v1119_v30 = vmul.f32 %v4210_v29, %v1113_v28  ;;  %v4152_v28 = vld [vmem:[%s4644_s14 + $0x50] ss:$12 sps:$4 sm:$0xff]   ;;  %v4153_v29 = vld [vmem:[%s4644_s14 + $0x60] ss:$12 sps:$4 sm:$0xff]  }
 0x1b1   : > { %v1127_v35 = vmul.f32 %v3515_v31, %v1119_v30  ;;  %v4155_v30 = vld [vmem:[%s4644_s14 + $0x64] ss:$12 sps:$4 sm:$0xff]  }
 0x1b2   : > { %v4212_v33 = vpop.eup %4211 }
 0x1b3   : > { %v1120_v34 = vmul.f32 %v4212_v33, %v1114_v32  ;;  %v1135_v38 = vadd.f32 %v3516_v36, %v1127_v35  ;;  %v4159_v32 = vld [vmem:[%s4644_s14 + $0x7c] ss:$12 sps:$4 sm:$0xff]   ;;  %v4157_v33 = vld [vmem:[%s4644_s14 + $0x78] ss:$12 sps:$4 sm:$0xff]   ;;  %v4163_v35 = vld [vmem:[%s4644_s14 + $0x94] ss:$12 sps:$4 sm:$0xff]  }
 0x1b5   : > { %v1128_v37 = vmul.f32 %v3515_v31, %v1120_v34  ;;  %v4156_v31 = vld [vmem:[%s4644_s14 + $0x68] ss:$12 sps:$4 sm:$0xff]   ;;  %v4160_v34 = vld [vmem:[%s4644_s14 + $0x80] ss:$12 sps:$4 sm:$0xff]  }
 0x1b7   : > { %v1136_v39 = vadd.f32 %v3516_v36, %v1128_v37  ;;  %v4587_v36 = vmov 0   ;;  %v4161_v37 = vld [vmem:[%s4644_s14 + $0x90] ss:$12 sps:$4 sm:$0xff]  }
 0x1b9   : > { %v1137_v40 = vpack.c.bf16 %v1136_v39, %v1135_v38  ;;  %v4164_v38 = vld [vmem:[%s4644_s14 + $0x98] ss:$12 sps:$4 sm:$0xff]  }
 0x1ba   : > { %v4167_v39 = vld [vmem:[%s4644_s14 + $0xac] ss:$12 sps:$4 sm:$0xff]  }
 0x1bb   : > { %3765 = vmatmul.mubr.bf16.vlgmr.msra.gmra.mrb[0].mxu0 %v1137_v40  ;;  %v4165_v40 = vld [vmem:[%s4644_s14 + $0xa8] ss:$12 sps:$4 sm:$0xff]  }
 0x1bc   : > { %1604 = vmatpush1.bf16.msra.mxu0 %v4137_v6  ;;  %1635 = vmatprep.mubr.bf16.mxu0 %v4587_v36 }
 0x28e   : > { %v1243_v50 = vpop.f32.mrb[0].mxu0 }
 0x28f   : > { %v1244_v51 = vadd.f32 %v3517_v49, %v1243_v50  ;;  %v3766_v52 = vpop.f32.mrb[1].mxu0 }
 0x290   : > { %v1246_v53 = vpop.f32.mrb[2].mxu0 }
 0x291   : > { %v3526_v54 = vmul.f32 -1.442695, %v1244_v51  ;;  %v1247_v55 = vadd.f32 %v3517_v49, %v1246_v53  ;;  %v3767_v56 = vpop.f32.mrb[3].mxu0 }
 0x293   : > { %4213 = vpow2.f32 %v3526_v54  ;;  %v3527_v57 = vmul.f32 -1.442695, %v1247_v55 }
 0x295   : > { %4215 = vpow2.f32 %v3527_v57 }
 0x29d   : > { %v4214_v58 = vpop.eup %4213 }
 0x29e   : > { %v1256_v59 = vadd.f32 1.0, %v4214_v58  ;;  %v3537_v58 = vld [vmem:[%s4634_s3] ss:$0 sm:$0xff] }
 0x29f   : > { %v4216_v60 = vpop.eup %4215 }
 0x2a0   : > { %4217 = vrcp.f32 %v1256_v59  ;;  %v1257_v61 = vadd.f32 1.0, %v4216_v60 }
 0x2a2   : > { %4219 = vrcp.f32 %v1257_v61 }
 0x2aa   : > { %v4218_v62 = vpop.eup %4217 }
 0x2ab   : > { %v1262_v1 = vmul.f32 %v4218_v62, %v1244_v51 }
 0x2ac   : > { %v4220_v63 = vpop.eup %4219 }
 0x2ad   : > { %v1263_v4 = vmul.f32 %v4220_v63, %v1247_v55 }
 0x2af   : > { %v1264_v5 = vpack.c.bf16 %v1263_v4, %v1262_v1  ;;  %v3538_v1 = vld [vmem:[%s5380_s1] ss:$0 sm:$0xff]  ;;  %s5387_s1 = sld [smem:[#allocation25_spill]] }
 0x2b1   : > { %3785 = vmatmul.mubr.bf16.vlgmr.msra.gmra.mrb[0].mxu1 %v1264_v5 }
 0x2b2   : > { %3804 = vmatprep.mubr.msk.bf16.mxu1 %vm4586_vm0, %v4585_v0 }
 0x384   : > { %v1370_v9 = vpop.f32.mrb[0].mxu1 }
 0x385   : > { %v1371_v10 = vadd.f32 %v3528_v8, %v1370_v9  ;;  %v3786_v11 = vpop.f32.mrb[1].mxu1 }
 0x386   : > { %v1373_v12 = vpop.f32.mrb[2].mxu1 }
 0x387   : > { %v1377_v13 = vmul.f32 0.5, %v1371_v10  ;;  %v1374_v14 = vadd.f32 %v3528_v8, %v1373_v12  ;;  %v3787_v15 = vpop.f32.mrb[3].mxu1  ;;  %v1460_v8 = vlaneseq  ;;  %v1458_v12 = vld [vmem:[%s5381_s11] sm:$0x7]  ;;  %s5388_s11 = sld [smem:[#allocation32_spill]] }
 0x389   : > { %v4990_v16 = vadd.f32 %v4934_v2, %v1377_v13  ;;  %v1378_v17 = vmul.f32 0.5, %v1374_v14  ;;  %v4140_v2 = vld [vmem:[%s4644_s14 + $0x8] ss:$12 sps:$4 sm:$0xff]   ;;  %v5040_v9 = vshrl.u32 %v1460_v8, 7 }
 0x38a   : > { %3789 = vmatpush3.bf16.msra.mxu1 %v4140_v2 }
 0x38b   : > { %v4993_v18 = vadd.f32 %v4936_v3, %v1378_v17  ;;  %1383 = vadd.xlane.f32.xlu0 %v4990_v16  ;;  %v1389_v19 = vmul.f32 %v4990_v16, %v4990_v16  ;;  %v4143_v3 = vld [vmem:[%s4644_s14 + $0x1c] ss:$12 sps:$4 sm:$0xff]   ;;  %3790 = vmatprep.subr.bf16.mxu1 %v4585_v0  ;;  %v1462_v10 = vsub.s32 0, %v5040_v9  ;;  %v1470_v11 = vsub.s32 2, %v5040_v9 }
 0x38c   : > { %1605 = vmatprep.subr.bf16.mxu0 %v4143_v3  ;;  %v1466_v13 = vsub.s32 1, %v5040_v9  ;;  %vm2683_vm4 = vcmp.lt.s32.totalorder %v5040_v9, 3  ;;  %vm2706_vm5 = vcmp.lt.s32.totalorder %v5040_v9, 2  ;;  %vm2729_vm8 = vcmp.lt.s32.totalorder %v5040_v9, 1 }
 0x38d   : > { %1385 = vadd.xlane.f32.xlu1 %v4993_v18  ;;  %v1390_v20 = vmul.f32 %v4993_v18, %v4993_v18  ;;  %1606 = vmatpush1.bf16.msra.mxu0 %v4141_v21  ;;  %v1463_v14 = vrot.slane %v1458_v12, %v1462_v10  ;;  %v1471_v15 = vrot.slane %v1458_v12, %v1470_v11  ;;  %vm2768_vm10 = vcmp.lt.s32.totalorder %v5040_v9, 7 }
 0x38e   : > { %3791 = vmatpush3.bf16.msra.mxu1 %v4144_v22  ;;  %1607 = vmatprep.subr.bf16.mxu0 %v4147_v23  ;;  %vm2791_vm12 = vcmp.lt.s32.totalorder %v5040_v9, 6  ;;  %vm2814_vm14 = vcmp.lt.s32.totalorder %v5040_v9, 5 }
 0x38f   : > { %1391 = vadd.xlane.f32.xlu0 %v1389_v19  ;;  %3792 = vmatprep.subr.bf16.mxu1 %v4585_v0 }
 0x391   : > { %1393 = vadd.xlane.f32.xlu1 %v1390_v20  ;;  %1608 = vmatpush1.bf16.msra.mxu0 %v4145_v24  ;;  %v1467_v20 = vrot.slane %v1458_v12, %v1466_v13 }
 0x392   : > { %3793 = vmatpush3.bf16.msra.mxu1 %v4148_v25  ;;  %1609 = vmatprep.subr.bf16.mxu0 %v4151_v26 }
 0x393   : > { %3794 = vmatprep.subr.bf16.mxu1 %v4585_v0 }
 0x395   : > { %1610 = vmatpush1.bf16.msra.mxu0 %v4149_v27 }
 0x396   : > { %3795 = vmatpush3.bf16.msra.mxu1 %v4152_v28  ;;  %1611 = vmatprep.subr.bf16.mxu0 %v4155_v30 }
 0x397   : > { %3796 = vmatprep.subr.bf16.mxu1 %v4585_v0 }
 0x399   : > { %1612 = vmatpush1.bf16.msra.mxu0 %v4153_v29 }
 0x39a   : > { %3797 = vmatpush3.bf16.msra.mxu1 %v4156_v31  ;;  %1613 = vmatprep.subr.bf16.mxu0 %v4159_v32 }
 0x39b   : > { %3798 = vmatprep.subr.bf16.mxu1 %v4585_v0 }
 0x39d   : > { %1614 = vmatpush1.bf16.msra.mxu0 %v4157_v33 }
 0x39e   : > { %3799 = vmatpush3.bf16.msra.mxu1 %v4160_v34  ;;  %1615 = vmatprep.subr.bf16.mxu0 %v4163_v35 }
 0x39f   : > { %3800 = vmatprep.subr.bf16.mxu1 %v4585_v0 }
 0x3a1   : > { %1616 = vmatpush1.bf16.msra.mxu0 %v4161_v37 }
 0x3a2   : > { %3801 = vmatpush3.bf16.msra.mxu1 %v4164_v38  ;;  %1617 = vmatprep.subr.bf16.mxu0 %v4167_v39 }
 0x3a3   : > { %3802 = vmatprep.subr.bf16.mxu1 %v4585_v0 }
 0x3a5   : > { %1618 = vmatpush1.bf16.msra.mxu0 %v4165_v40 }
 0x3a6   : > { %3803 = vmatpush3.bf16.msra.mxu1 %v4168_v41  ;;  %3808 = vmatprep.subr.bf16.mxu0 %v4585_v0 }
 0x3a7   : > { %3826 = vmatprep.subr.bf16.mxu1 %v4585_v0 }
 0x418   : > { %v1384_v42 = vpop.xlane.xlu0 %1383 }
 0x419   : > { %v1387_v43 = vmul.f32 0.03125, %v1384_v42 }
 0x41a   : > { %v1386_v44 = vpop.xlane.xlu1 %1385 }
 0x41b   : > { %v1388_v45 = vmul.f32 0.03125, %v1386_v44  ;;  %v1397_v47 = vmul.f32 %v1387_v43, %v1387_v43  ;;  %v1401_v56 = vsub.f32 %v4990_v16, %v1387_v43 }
 0x41c   : > { %v1392_v46 = vpop.xlane.xlu0 %1391 }
 0x41d   : > { %v1395_v48 = vmul.f32 0.03125, %v1392_v46  ;;  %v1398_v50 = vmul.f32 %v1388_v45, %v1388_v45  ;;  %v1402_v59 = vsub.f32 %v4993_v18, %v1388_v45 }
 0x41e   : > { %v1394_v49 = vpop.xlane.xlu1 %1393 }
 0x41f   : > { %v1399_v51 = vsub.f32 %v1395_v48, %v1397_v47  ;;  %v1396_v52 = vmul.f32 0.03125, %v1394_v49 }
 0x421   : > { %v1403_v53 = vadd.f32 1e-05, %v1399_v51  ;;  %v1400_v54 = vsub.f32 %v1396_v52, %v1398_v50 }
 0x423   : > { %4221 = vrsqrt.f32 %v1403_v53  ;;  %v1404_v55 = vadd.f32 1e-05, %v1400_v54 }
 0x425   : > { %4223 = vrsqrt.f32 %v1404_v55 }
 0x42d   : > { %v4222_v57 = vpop.eup %4221 }
 0x42e   : > { %v1407_v60 = vmul.f32 %v4222_v57, %v1401_v56 }
 0x42f   : > { %v4224_v61 = vpop.eup %4223 }
 0x430   : > { %v1408_v62 = vmul.f32 %v4224_v61, %v1402_v59  ;;  %v1415_v63 = vmul.f32 %v3537_v58, %v1407_v60 }
 0x432   : > { %v1416_v4 = vmul.f32 %v3537_v58, %v1408_v62  ;;  %v1423_v5 = vadd.f32 %v3538_v1, %v1415_v63 }
 0x434   : > { %v1424_v6 = vadd.f32 %v3538_v1, %v1416_v4 }
 0x436   : > { %v1425_v7 = vpack.c.bf16 %v1424_v6, %v1423_v5 }
 0x438   : > { %1636 = vmatmul.mubr.bf16.vlgmr.msra.gmra.mrb[4].mxu0 %v1425_v7  ;;  %3805 = vmatmul.mubr.bf16.vlgmr.msra.gmra.mrb[4].mxu1 %v1425_v7 }
 0x439   : > { %3810 = vmatprep.mubr.msk.bf16.mxu0 %vm4586_vm0, %v4585_v0  ;;  %3828 = vmatprep.mubr.msk.bf16.mxu1 %vm4586_vm0, %v4585_v0 }
 0x50b   : > { %v1637_v17 = vpop.f32.mrb[4].mxu0  ;;  %v1680_v19 = vpop.f32.mrb[4].mxu1 }
 0x50c   : > { %v1639_v2 = vpop.f32.mrb[5].mxu0  ;;  %v3806_v3 = vpop.f32.mrb[5].mxu1  ;;  %v1638_v23 = vadd.f32 %v1637_v17, %v1463_v14  ;;  %v1681_v24 = vadd.f32 %v1680_v19, %v1471_v15 }
 0x50d   : > { %v1641_v21 = vpop.f32.mrb[6].mxu0  ;;  %v1683_v22 = vpop.f32.mrb[6].mxu1  ;;  %v1640_v29 = vadd.f32 %v1639_v2, %v1467_v20 }
 0x50e   : > { %v1642_v25 = vadd.f32 %v1641_v21, %v1463_v14  ;;  %v1684_v26 = vadd.f32 %v1683_v22, %v1471_v15  ;;  %v1643_v27 = vpop.f32.mrb[7].mxu0  ;;  %v3807_v28 = vpop.f32.mrb[7].mxu1 }
 0x50f   : > { %v1644_v30 = vadd.f32 %v1643_v27, %v1467_v20 }
 0x510   : > { %v5052_v31 = vpack.c.bf16 %v1642_v25, %v1638_v23  ;;  %v5054_v32 = vpack.c.bf16 %v1684_v26, %v1681_v24 }
 0x511   : > { %v5056_v33 = vpack.c.bf16 %v1644_v30, %v1640_v29 }
 0x512   : > { %1873 = vrot.lane.b32.xlu1 %v5052_v31, %s4588_s23 }
 0x513   : > { %1876 = vrot.lane.b32.xlu0 %v5056_v33, %s4588_s23  ;;  %v1708_v34 = vsel %vm1703_vm1, %v5056_v33, 0 }
 0x514   : > { %3809 = vmatpush3.bf16.xpose.msra.mxu0 %v1708_v34 }
 0x515   : > { %3814 = vmatprep.subr.bf16.mxu0 %v4585_v0 }
 0x516   : > { %2050 = vrot.lane.b32.xlu1 %v5056_v33, %s4589_s10 }
 0x51a   : > { %2048 = vrot.lane.b32.xlu1 %v5052_v31, %s4589_s10 }
 0x51b   : > { %3811 = vmatmul.mubr.msk.bf16.vlgmr.msra.gmra.mrb[8].mxu0 %vm1703_vm1, %v5052_v31 }
 0x51c   : > { %3815 = vmatpush3.bf16.msra.mxu0 %v5054_v32  ;;  %3816 = vmatprep.mubr.msk.bf16.mxu0 %vm4586_vm0, %v4585_v0 }
 0x51d   : > { %3820 = vmatprep.subr.bf16.mxu0 %v4585_v0 }
 0x584   : > { %v1874_v35 = vpop.permute.xlu1 %1873 }
 0x585   : > { %v1877_v36 = vpop.permute.xlu0 %1876 }
 0x586   : > { %v1882_v37 = vsel %vm1703_vm1, %v1877_v36, 0 }
 0x587   : > { %3827 = vmatpush3.bf16.xpose.msra.mxu1 %v1882_v37 }
 0x588   : > { %3844 = vmatprep.subr.bf16.mxu1 %v4585_v0  ;;  %v2051_v38 = vpop.permute.xlu1 %2050 }
 0x589   : > { %v2056_v39 = vsel %vm1703_vm1, %v2051_v38, 0 }
 0x58c   : > { %v2049_v40 = vpop.permute.xlu1 %2048 }
 0x58e   : > { %3829 = vmatmul.mubr.msk.bf16.vlgmr.msra.gmra.mrb[8].mxu1 %vm1703_vm1, %v1874_v35 }
 0x58f   : > { %3845 = vmatpush3.bf16.xpose.msra.mxu1 %v2056_v39  ;;  %3846 = vmatprep.mubr.msk.bf16.mxu1 %vm4586_vm0, %v4585_v0 }
 0x590   : > { %3850 = vmatprep.subr.bf16.mxu1 %v4585_v0 }
 0x596   : > { %3847 = vmatmul.mubr.msk.bf16.vlgmr.msra.gmra.mrb[12].mxu1 %vm1703_vm1, %v2049_v40 }
 0x597   : > { %3852 = vmatprep.mubr.msk.bf16.mxu1 %vm4586_vm0, %v4585_v0 }
 0x5ee   : > { %v1744_v41 = vpop.f32.mrb[8].mxu0 }
 0x5ef   : > { %v1751_v42 = vmul.f32 0.35355338, %v1744_v41  ;;  %v3812_v43 = vpop.f32.mrb[9].mxu0 }
 0x5f0   : > { %v1747_v44 = vpop.f32.mrb[10].mxu0 }
 0x5f1   : > { %v1752_v45 = vmul.f32 0.35355338, %v1747_v44  ;;  %v3813_v46 = vpop.f32.mrb[11].mxu0  ;;  %v1754_v47 = vsel %vm1753_vm2, %v1751_v42, -inf }
 0x5f2   : > { %1755 = vmax.xlane.f32.xlu0 %v1754_v47 }
 0x5f3   : > { %v1757_v48 = vsel %vm1753_vm2, %v1752_v45, -inf }
 0x5f4   : > { %1758 = vmax.xlane.f32.xlu1 %v1757_v48 }
 0x661   : > { %v1918_v49 = vpop.f32.mrb[8].mxu1 }
 0x662   : > { %v3830_v50 = vpop.f32.mrb[9].mxu1 }
 0x663   : > { %v1921_v51 = vpop.f32.mrb[10].mxu1 }
 0x664   : > { %v3831_v52 = vpop.f32.mrb[11].mxu1  ;;  %v1926_v34 = vmul.f32 0.35355338, %v1921_v51 }
 0x666   : > { %v1930_v35 = vsel %vm1753_vm2, %v1926_v34, -inf }
 0x669   : > { %v2092_v53 = vpop.f32.mrb[12].mxu1 }
 0x66a   : > { %v2099_v54 = vmul.f32 0.35355338, %v2092_v53  ;;  %v3848_v55 = vpop.f32.mrb[13].mxu1 }
 0x66b   : > { %v2095_v56 = vpop.f32.mrb[14].mxu1 }
 0x66c   : > { %v2100_v57 = vmul.f32 0.35355338, %v2095_v56  ;;  %v3849_v58 = vpop.f32.mrb[15].mxu1  ;;  %v2101_v59 = vsel %vm1753_vm2, %v2099_v54, -inf }
 0x66d   : > { %2102 = vmax.xlane.f32.xlu0 %v2101_v59 }
 0x66e   : > { %v2104_v60 = vsel %vm1753_vm2, %v2100_v57, -inf }
 0x671   : > { %2105 = vmax.xlane.f32.xlu0 %v2104_v60 }
 0x67f   : > { %v1756_v61 = vpop.xlane.xlu0 %1755 }
 0x680   : > { %v1760_v62 = vsub.f32 %v1751_v42, %v1756_v61 }
 0x681   : > { %v1759_v63 = vpop.xlane.xlu1 %1758 }
 0x682   : > { %v1762_v1 = vmul.f32 1.442695, %v1760_v62  ;;  %v1761_v4 = vsub.f32 %v1752_v45, %v1759_v63 }
 0x684   : > { %4225 = vpow2.f32 %v1762_v1  ;;  %v1764_v5 = vmul.f32 1.442695, %v1761_v4 }
 0x686   : > { %4227 = vpow2.f32 %v1764_v5 }
 0x68e   : > { %v4226_v6 = vpop.eup %4225 }
 0x68f   : > { %v1766_v7 = vsel %vm1753_vm2, %v4226_v6, 0.0 }
 0x690   : > { %v4228_v8 = vpop.eup %4227  ;;  %1767 = vadd.xlane.f32.xlu0 %v1766_v7 }
 0x691   : > { %v1769_v12 = vsel %vm1753_vm2, %v4228_v8, 0.0 }
 0x692   : > { %1770 = vadd.xlane.f32.xlu1 %v1769_v12 }
 0x6fa   : > { %v2103_v14 = vpop.xlane.xlu0 %2102 }
 0x6fb   : > { %v2107_v15 = vsub.f32 %v2099_v54, %v2103_v14 }
 0x6fd   : > { %v2109_v17 = vmul.f32 1.442695, %v2107_v15 }
 0x6fe   : > { %v2106_v19 = vpop.xlane.xlu0 %2105 }
 0x6ff   : > { %4229 = vpow2.f32 %v2109_v17  ;;  %v2108_v20 = vsub.f32 %v2100_v57, %v2106_v19 }
 0x701   : > { %v2111_v2 = vmul.f32 1.442695, %v2108_v20 }
 0x703   : > { %4231 = vpow2.f32 %v2111_v2 }
 0x709   : > { %v4230_v3 = vpop.eup %4229 }
 0x70a   : > { %v2113_v21 = vsel %vm1753_vm2, %v4230_v3, 0.0 }
 0x70b   : > { %2114 = vadd.xlane.f32.xlu0 %v2113_v21 }
 0x70d   : > { %v4232_v22 = vpop.eup %4231 }
 0x70e   : > { %v2116_v23 = vsel %vm1753_vm2, %v4232_v22, 0.0 }
 0x70f   : > { %2117 = vadd.xlane.f32.xlu1 %v2116_v23 }
 0x71d   : > { %v1768_v24 = vpop.xlane.xlu0 %1767 }
 0x71e   : > { %4233 = vrcp.f32 %v1768_v24 }
 0x71f   : > { %v1771_v25 = vpop.xlane.xlu1 %1770 }
 0x720   : > { %4235 = vrcp.f32 %v1771_v25  ;;  %2223 = vrot.lane.b32.xlu1 %v5056_v33, %s4590_s16  ;;  %v1925_v33 = vmul.f32 0.35355338, %v1918_v49 }
 0x721   : > { %2124 = vrot.lane.b32.xlu0 %v5054_v32, %s4589_s10  ;;  %s5390_s10 = sld [smem:[#allocation30_spill]] }
 0x722   : > { %v1927_v36 = vsel %vm1753_vm2, %v1925_v33, -inf }
 0x724   : > { %2221 = vrot.lane.b32.xlu1 %v5052_v31, %s4590_s16  ;;  %v1687_v31 = vld [vmem:[%s5382_s22] sm:$0xf] }
 0x725   : > { %v1827_v37 = vsel %vm1825_vm3, %v1687_v31, 0 }
 0x728   : > { %v4234_v26 = vpop.eup %4233 }
 0x729   : > { %v1774_v28 = vmul.f32 %v4234_v26, %v4226_v6 }
 0x72a   : > { %v4236_v27 = vpop.eup %4235 }
 0x72b   : > { %v1775_v29 = vmul.f32 %v4236_v27, %v4228_v8  ;;  %v1688_v27 = vld [vmem:[%s5382_s22 + $0x4] sm:$0xf] }
 0x72d   : > { %v1776_v30 = vpack.c.bf16 %v1775_v29, %v1774_v28  ;;  %v2003_v28 = vsel %vm1825_vm3, %v1688_v27, 0  ;;  %v4183_v27 = vld [vmem:[%s5384_s2 + $0x38] sm:$0xff]  }
 0x72f   : > { %3817 = vmatmul.mubr.msk.bf16.vlgmr.msra.gmra.mrb[12].mxu0 %vm1753_vm2, %v1776_v30 }
 0x730   : > { %3822 = vmatprep.mubr.msk.bf16.mxu0 %vm4586_vm0, %v4585_v0  ;;  %3821 = vmatpush3.bf16.msra.mxu0 %v1827_v37 }
 0x731   : > { %3832 = vmatprep.subr.bf16.mxu0 %v4585_v0 }
 0x740   : > { %1931 = vmax.xlane.f32.xlu0 %v1930_v35 }
 0x748   : > { %1928 = vmax.xlane.f32.xlu1 %v1927_v36 }
 0x759   : > { %1951 = vrot.lane.b32.xlu1 %v5054_v32, %s4588_s23  ;;  %s5389_s23 = sld [smem:[#allocation29_spill]] }
 0x75d   : > { %2297 = vrot.lane.b32.xlu1 %v5054_v32, %s4590_s16  ;;  %s5391_s16 = sld [smem:[#allocation27_spill]] }
 0x798   : > { %v2115_v38 = vpop.xlane.xlu0 %2114 }
 0x799   : > { %4237 = vrcp.f32 %v2115_v38 }
 0x79c   : > { %v2125_v39 = vpop.permute.xlu0 %2124  ;;  %v2118_v40 = vpop.xlane.xlu1 %2117 }
 0x79d   : > { %4239 = vrcp.f32 %v2118_v40  ;;  %3851 = vmatpush3.bf16.msra.mxu1 %v2125_v39 }
 0x79e   : > { %3862 = vmatprep.subr.bf16.mxu1 %v4585_v0 }
 0x7a0   : > { %v2224_v32 = vpop.permute.xlu1 %2223 }
 0x7a1   : > { %v2229_v46 = vsel %vm1703_vm1, %v2224_v32, 0 }
 0x7a3   : > { %v4238_v41 = vpop.eup %4237 }
 0x7a4   : > { %v2121_v43 = vmul.f32 %v4238_v41, %v4230_v3  ;;  %v2222_v47 = vpop.permute.xlu1 %2221  ;;  %v1689_v41 = vld [vmem:[%s5382_s22 + $0x8] sm:$0xf] }
 0x7a7   : > { %v4240_v42 = vpop.eup %4239 }
 0x7a8   : > { %v2122_v44 = vmul.f32 %v4240_v42, %v4232_v22 }
 0x7aa   : > { %v2123_v45 = vpack.c.bf16 %v2122_v44, %v2121_v43 }
 0x7ac   : > { %3853 = vmatmul.mubr.msk.bf16.vlgmr.msra.gmra.mrb[16].mxu1 %vm1753_vm2, %v2123_v45  ;;  %v2176_v45 = vsel %vm1825_vm3, %v1689_v41, 0 }
 0x7ad   : > { %3863 = vmatpush3.bf16.xpose.msra.mxu1 %v2229_v46  ;;  %3864 = vmatprep.mubr.msk.bf16.mxu1 %vm4586_vm0, %v4585_v0 }
 0x7ae   : > { %3880 = vmatprep.subr.bf16.mxu1 %v4585_v0 }
 0x7b4   : > { %3865 = vmatmul.mubr.msk.bf16.vlgmr.msra.gmra.mrb[20].mxu1 %vm1703_vm1, %v2222_v47 }
 0x7b5   : > { %3896 = vmatprep.mubr.msk.bf16.mxu1 %vm4586_vm0, %v4585_v0 }
 0x7cd   : > { %v1932_v48 = vpop.xlane.xlu0 %1931 }
 0x7ce   : > { %v1934_v49 = vsub.f32 %v1926_v34, %v1932_v48 }
 0x7d0   : > { %v1937_v52 = vmul.f32 1.442695, %v1934_v49 }
 0x7d5   : > { %v1929_v50 = vpop.xlane.xlu1 %1928 }
 0x7d6   : > { %v1933_v51 = vsub.f32 %v1925_v33, %v1929_v50 }
 0x7d8   : > { %v1935_v53 = vmul.f32 1.442695, %v1933_v51  ;;  %v1690_v51 = vld [vmem:[%s5382_s22 + $0xc] sm:$0xf] }
 0x7d9   : > { %v1952_v63 = vpop.permute.xlu1 %1951 }
 0x7da   : > { %4241 = vpow2.f32 %v1935_v53 }
 0x7db   : > { %4243 = vpow2.f32 %v1937_v52 }
 0x7dd   : > { %v2298_v46 = vpop.permute.xlu1 %2297 }
 0x7e4   : > { %v4242_v54 = vpop.eup %4241 }
 0x7e5   : > { %v1939_v55 = vsel %vm1753_vm2, %v4242_v54, 0.0  ;;  %v4244_v56 = vpop.eup %4243 }
 0x7e6   : > { %1940 = vadd.xlane.f32.xlu0 %v1939_v55  ;;  %v1942_v57 = vsel %vm1753_vm2, %v4244_v56, 0.0  ;;  %v2349_v55 = vsel %vm1825_vm3, %v1690_v51, 0  ;;  %v3577_v51 = vld [vmem:[%s5387_s1] ss:$0 sm:$0xff]  ;;  %s5394_s1 = sld [smem:[#allocation34_spill]] }
 0x7ea   : > { %1943 = vadd.xlane.f32.xlu0 %v1942_v57 }
 0x802   : > { %v1814_v58 = vpop.f32.mrb[12].mxu0 }
 0x803   : > { %v3818_v59 = vpop.f32.mrb[13].mxu0 }
 0x804   : > { %v1817_v60 = vpop.f32.mrb[14].mxu0 }
 0x805   : > { %v1821_v61 = vpack.c.bf16 %v1817_v60, %v1814_v58  ;;  %v3819_v62 = vpop.f32.mrb[15].mxu0 }
 0x807   : > { %3823 = vmatmul.mubr.msk.bf16.vlgmr.msra.gmra.mrb[16].mxu0 %vm1703_vm1, %v1821_v61  ;;  %v3563_v61 = vld [vmem:[%s5383_s15] ss:$0 sm:$0xff]  ;;  %s5392_s15 = sld [smem:[#allocation31_spill]] }
 0x808   : > { %3833 = vmatpush3.bf16.msra.mxu0 %v1952_v63  ;;  %3834 = vmatprep.mubr.msk.bf16.mxu0 %vm4586_vm0, %v4585_v0  ;;  %v1698_v62 = vadd.f32 %v3563_v61, %v4990_v16 }
 0x809   : > { %3838 = vmatprep.subr.bf16.mxu0 %v4585_v0 }
 0x873   : > { %v1941_v1 = vpop.xlane.xlu0 %1940 }
 0x874   : > { %4245 = vrcp.f32 %v1941_v1 }
 0x877   : > { %v1944_v4 = vpop.xlane.xlu0 %1943 }
 0x878   : > { %4247 = vrcp.f32 %v1944_v4 }
 0x87e   : > { %v4246_v6 = vpop.eup %4245 }
 0x87f   : > { %v2164_v5 = vpop.f32.mrb[16].mxu1  ;;  %v1947_v17 = vmul.f32 %v4246_v6, %v4242_v54 }
 0x880   : > { %v3854_v7 = vpop.f32.mrb[17].mxu1 }
 0x881   : > { %v2167_v8 = vpop.f32.mrb[18].mxu1 }
 0x882   : > { %v4248_v12 = vpop.eup %4247  ;;  %v2171_v14 = vpack.c.bf16 %v2167_v8, %v2164_v5  ;;  %v3855_v15 = vpop.f32.mrb[19].mxu1  ;;  %v1699_v5 = vadd.f32 %v3563_v61, %v4993_v18  ;;  %v4169_v18 = vld [vmem:[%s5384_s2] sm:$0xff]   ;;  %v4190_v61 = vld [vmem:[%s5388_s11 + $0x28] sm:$0xff]  }
 0x883   : > { %v1948_v19 = vmul.f32 %v4248_v12, %v4244_v56  ;;  %3881 = vmatpush3.bf16.msra.mxu1 %v4169_v18  ;;  %v4171_v15 = vld [vmem:[%s5384_s2 + $0x8] sm:$0xff]  }
 0x884   : > { %3882 = vmatprep.subr.bf16.mxu1 %v4585_v0 }
 0x885   : > { %v1949_v20 = vpack.c.bf16 %v1948_v19, %v1947_v17  ;;  %v4172_v17 = vld [vmem:[%s5385_s26 + $0x8] sm:$0xff]   ;;  %v4173_v19 = vld [vmem:[%s5384_s2 + $0x10] sm:$0xff]  }
 0x887   : > { %3835 = vmatmul.mubr.msk.bf16.vlgmr.msra.gmra.mrb[20].mxu0 %vm1753_vm2, %v1949_v20  ;;  %v2265_v2 = vpop.f32.mrb[20].mxu1  ;;  %3883 = vmatpush3.bf16.msra.mxu1 %v4171_v15  ;;  %v4174_v20 = vld [vmem:[%s5385_s26 + $0x10] sm:$0xff]  }
 0x888   : > { %v2272_v3 = vmul.f32 0.35355338, %v2265_v2  ;;  %v3866_v21 = vpop.f32.mrb[21].mxu1  ;;  %3840 = vmatprep.mubr.msk.bf16.mxu0 %vm4586_vm0, %v4585_v0  ;;  %3839 = vmatpush3.bf16.msra.mxu0 %v2003_v28  ;;  %v4175_v2 = vld [vmem:[%s5384_s2 + $0x18] sm:$0xff]  }
 0x889   : > { %v2268_v22 = vpop.f32.mrb[22].mxu1  ;;  %3856 = vmatprep.subr.bf16.mxu0 %v4585_v0  ;;  %3884 = vmatprep.subr.bf16.mxu1 %v4585_v0  ;;  %v4177_v21 = vld [vmem:[%s5384_s2 + $0x20] sm:$0xff]   ;;  %v4184_v28 = vld [vmem:[%s5385_s26 + $0x38] sm:$0xff]  }
 0x88a   : > { %v2273_v23 = vmul.f32 0.35355338, %v2268_v22  ;;  %v3867_v24 = vpop.f32.mrb[23].mxu1  ;;  %v2274_v25 = vsel %vm1753_vm2, %v2272_v3, -inf  ;;  %v4178_v22 = vld [vmem:[%s5385_s26 + $0x20] sm:$0xff]  }
 0x88b   : > { %2275 = vmax.xlane.f32.xlu0 %v2274_v25  ;;  %3885 = vmatpush3.bf16.msra.mxu1 %v4173_v19  ;;  %v4180_v24 = vld [vmem:[%s5385_s26 + $0x28] sm:$0xff]   ;;  %v4181_v25 = vld [vmem:[%s5384_s2 + $0x30] sm:$0xff]  }
 0x88c   : > { %v2277_v26 = vsel %vm1753_vm2, %v2273_v23, -inf  ;;  %3886 = vmatprep.subr.bf16.mxu1 %v4585_v0 }
 0x88f   : > { %2278 = vmax.xlane.f32.xlu0 %v2277_v26  ;;  %3887 = vmatpush3.bf16.msra.mxu1 %v4175_v2  ;;  %v4182_v26 = vld [vmem:[%s5385_s26 + $0x30] sm:$0xff]  }
 0x890   : > { %3888 = vmatprep.subr.bf16.mxu1 %v4585_v0 }
 0x893   : > { %3889 = vmatpush3.bf16.msra.mxu1 %v4177_v21 }
 0x894   : > { %3890 = vmatprep.subr.bf16.mxu1 %v4585_v0 }
 0x918   : > { %v2276_v29 = vpop.xlane.xlu0 %2275 }
 0x919   : > { %v2280_v30 = vsub.f32 %v2272_v3, %v2276_v29  ;;  %v4176_v3 = vld [vmem:[%s5385_s26 + $0x18] sm:$0xff]  }
 0x91b   : > { %v2282_v34 = vmul.f32 1.442695, %v2280_v30 }
 0x91c   : > { %v2279_v35 = vpop.xlane.xlu0 %2278 }
 0x91d   : > { %4249 = vpow2.f32 %v2282_v34  ;;  %v2281_v33 = vsub.f32 %v2273_v23, %v2279_v35  ;;  %v4179_v23 = vld [vmem:[%s5384_s2 + $0x28] sm:$0xff]  }
 0x91e   : > { %3891 = vmatpush3.bf16.msra.mxu1 %v4179_v23 }
 0x91f   : > { %v2284_v36 = vmul.f32 1.442695, %v2281_v33  ;;  %3892 = vmatprep.subr.bf16.mxu1 %v4585_v0 }
 0x921   : > { %4251 = vpow2.f32 %v2284_v36 }
 0x922   : > { %3893 = vmatpush3.bf16.msra.mxu1 %v4181_v25  ;;  %v2760_v25 = vsub.s32 3, %v5040_v9 }
 0x923   : > { %3894 = vmatprep.subr.bf16.mxu1 %v4585_v0 }
 0x926   : > { %3895 = vmatpush3.bf16.msra.mxu1 %v4183_v27  ;;  %v3578_v27 = vld [vmem:[%s5391_s16] ss:$0 sm:$0xff] }
 0x927   : > { %v4250_v31 = vpop.eup %4249  ;;  %3920 = vmatprep.subr.bf16.mxu1 %v4585_v0 }
 0x928   : > { %v2286_v37 = vsel %vm1753_vm2, %v4250_v31, 0.0 }
 0x929   : > { %2287 = vadd.xlane.f32.xlu0 %v2286_v37 }
 0x92b   : > { %v4252_v38 = vpop.eup %4251 }
 0x92c   : > { %v2289_v39 = vsel %vm1753_vm2, %v4252_v38, 0.0 }
 0x92d   : > { %2290 = vadd.xlane.f32.xlu0 %v2289_v39 }
 0x95a   : > { %v1991_v40 = vpop.f32.mrb[20].mxu0 }
 0x95b   : > { %v3836_v42 = vpop.f32.mrb[21].mxu0 }
 0x95c   : > { %v1994_v43 = vpop.f32.mrb[22].mxu0 }
 0x95d   : > { %v1998_v44 = vpack.c.bf16 %v1994_v43, %v1991_v40  ;;  %v3837_v32 = vpop.f32.mrb[23].mxu0 }
 0x95f   : > { %3841 = vmatmul.mubr.msk.bf16.vlgmr.msra.gmra.mrb[16].mxu0 %vm1703_vm1, %v1998_v44 }
 0x960   : > { %3857 = vmatpush3.bf16.msra.mxu0 %v2176_v45  ;;  %3858 = vmatprep.mubr.msk.bf16.mxu0 %vm4586_vm0, %v4585_v0 }
 0x961   : > { %3868 = vmatprep.subr.bf16.mxu0 %v4585_v0 }
 0x96b   : > { %3859 = vmatmul.mubr.msk.bf16.vlgmr.msra.gmra.mrb[16].mxu0 %vm1703_vm1, %v2171_v14  ;;  %v4170_v14 = vld [vmem:[%s5385_s26] sm:$0xff]  }
 0x96c   : > { %3869 = vmatpush3.bf16.msra.mxu0 %v2298_v46  ;;  %3870 = vmatprep.mubr.msk.bf16.mxu0 %vm4586_vm0, %v4585_v0  ;;  %v3576_v46 = vld [vmem:[%s5386_s18] ss:$0 sm:$0xff]  ;;  %s5393_s18 = sld [smem:[#allocation33_spill]] }
 0x96d   : > { %3874 = vmatprep.subr.bf16.mxu0 %v4585_v0 }
 0x9b6   : > { %v2288_v47 = vpop.xlane.xlu0 %2287 }
 0x9b7   : > { %4253 = vrcp.f32 %v2288_v47 }
 0x9ba   : > { %v2291_v48 = vpop.xlane.xlu0 %2290 }
 0x9bb   : > { %4255 = vrcp.f32 %v2291_v48 }
 0x9c1   : > { %v4254_v49 = vpop.eup %4253 }
 0x9c2   : > { %v2294_v52 = vmul.f32 %v4254_v49, %v4250_v31 }
 0x9c5   : > { %v4256_v50 = vpop.eup %4255 }
 0x9c6   : > { %v2295_v53 = vmul.f32 %v4256_v50, %v4252_v38 }
 0x9c8   : > { %v2296_v54 = vpack.c.bf16 %v2295_v53, %v2294_v52 }
 0x9ca   : > { %3871 = vmatmul.mubr.msk.bf16.vlgmr.msra.gmra.mrb[24].mxu0 %vm1753_vm2, %v2296_v54 }
 0x9cb   : > { %3875 = vmatpush3.bf16.msra.mxu0 %v2349_v55  ;;  %3876 = vmatprep.mubr.msk.bf16.mxu0 %vm4586_vm0, %v4585_v0 }
 0x9cc   : > { %3900 = vmatprep.subr.bf16.mxu0 %v4585_v0 }
 0xa9d   : > { %v2337_v56 = vpop.f32.mrb[24].mxu0 }
 0xa9e   : > { %v3872_v57 = vpop.f32.mrb[25].mxu0 }
 0xa9f   : > { %v2340_v58 = vpop.f32.mrb[26].mxu0  ;;  %v4186_v57 = vld [vmem:[%s5388_s11 + $0x8] sm:$0xff]  }
 0xaa0   : > { %v2344_v59 = vpack.c.bf16 %v2340_v58, %v2337_v56  ;;  %v3873_v60 = vpop.f32.mrb[27].mxu0  ;;  %v4185_v56 = vld [vmem:[%s5388_s11] sm:$0xff]   ;;  %v4187_v58 = vld [vmem:[%s5388_s11 + $0x10] sm:$0xff]  }
 0xaa1   : > { %v4189_v60 = vld [vmem:[%s5388_s11 + $0x20] sm:$0xff]  }
 0xaa2   : > { %3877 = vmatmul.mubr.msk.bf16.vlgmr.msra.gmra.mrb[16].mxu0 %vm1703_vm1, %v2344_v59  ;;  %v4188_v59 = vld [vmem:[%s5388_s11 + $0x18] sm:$0xff]  }
 0xaa3   : > { %3916 = vmatprep.mubr.msk.bf16.mxu0 %vm4586_vm0, %v4585_v0  ;;  %3901 = vmatpush3.bf16.msra.mxu0 %v4170_v14 }
 0xaa4   : > { %3902 = vmatprep.subr.bf16.mxu0 %v4585_v0 }
 0xaa7   : > { %3903 = vmatpush3.bf16.msra.mxu0 %v4172_v17 }
 0xaa8   : > { %3904 = vmatprep.subr.bf16.mxu0 %v4585_v0 }
 0xaab   : > { %3905 = vmatpush3.bf16.msra.mxu0 %v4174_v20 }
 0xaac   : > { %3906 = vmatprep.subr.bf16.mxu0 %v4585_v0 }
 0xaaf   : > { %3907 = vmatpush3.bf16.msra.mxu0 %v4176_v3 }
 0xab0   : > { %3908 = vmatprep.subr.bf16.mxu0 %v4585_v0 }
 0xab3   : > { %3909 = vmatpush3.bf16.msra.mxu0 %v4178_v22 }
 0xab4   : > { %3910 = vmatprep.subr.bf16.mxu0 %v4585_v0 }
 0xab7   : > { %3911 = vmatpush3.bf16.msra.mxu0 %v4180_v24  ;;  %v2679_v24 = vadd.s32 8, %v5040_v9 }
 0xab8   : > { %3912 = vmatprep.subr.bf16.mxu0 %v4585_v0 }
 0xabb   : > { %3913 = vmatpush3.bf16.msra.mxu0 %v4182_v26  ;;  %v5225_v26 = vld [vmem:[%s5390_s10] sm:$0x7f] }
 0xabc   : > { %3914 = vmatprep.subr.bf16.mxu0 %v4585_v0 }
 0xabf   : > { %3915 = vmatpush3.bf16.msra.mxu0 %v4184_v28  ;;  %v2686_v28 = vadd.s32 4294967293, %v5040_v9 }
 0xac0   : > { %3940 = vmatprep.subr.bf16.mxu0 %v4585_v0 }
 0xac1   : > { %vm2688_vm6 = vcmp.ge.s32.totalorder %v2686_v28, 0 }
 0xb75   : > { %v2385_v63 = vpop.f32.mrb[16].mxu0 }
 0xb76   : > { %v5154_v1 = vadd.f32 %v2385_v63, %v1698_v62  ;;  %v3878_v4 = vpop.f32.mrb[17].mxu0  ;;  %v4191_v62 = vld [vmem:[%s5388_s11 + $0x30] sm:$0xff]   ;;  %v4192_v63 = vld [vmem:[%s5388_s11 + $0x38] sm:$0xff]  }
 0xb77   : > { %v2388_v6 = vpop.f32.mrb[18].mxu0  ;;  %v3587_v4 = vld [vmem:[%s5389_s23] ss:$0 sm:$0xff]  ;;  %s1087_s23 = scalar_lea.vmem %s4759_s24, %s3639_s0 }
 0xb78   : > { %v5157_v7 = vadd.f32 %v2388_v6, %v1699_v5  ;;  %2396 = vadd.xlane.f32.xlu0 %v5154_v1  ;;  %v3879_v8 = vpop.f32.mrb[19].mxu0  ;;  %v2402_v12 = vmul.f32 %v5154_v1, %v5154_v1 }
 0xb7a   : > { %2398 = vadd.xlane.f32.xlu1 %v5157_v7  ;;  %v2403_v16 = vmul.f32 %v5157_v7, %v5157_v7 }
 0xb7c   : > { %2404 = vadd.xlane.f32.xlu0 %v2402_v12 }
 0xb80   : > { %2406 = vadd.xlane.f32.xlu0 %v2403_v16 }
 0xc05   : > { %v2397_v29 = vpop.xlane.xlu0 %2396 }
 0xc06   : > { %v2400_v30 = vmul.f32 0.03125, %v2397_v29  ;;  %v2709_v29 = vadd.s32 4294967294, %v5040_v9 }
 0xc07   : > { %v2399_v34 = vpop.xlane.xlu1 %2398 }
 0xc08   : > { %v2410_v33 = vmul.f32 %v2400_v30, %v2400_v30  ;;  %v2401_v36 = vmul.f32 0.03125, %v2399_v34  ;;  %v2414_v44 = vsub.f32 %v5154_v1, %v2400_v30  ;;  %v2699_v30 = vrot.slane %v5225_v26, %v1462_v10 }
 0xc09   : > { %v2405_v35 = vpop.xlane.xlu0 %2404  ;;  %v2745_v34 = vrot.slane %v5225_v26, %v1470_v11  ;;  %v2795_v10 = vadd.s32 2, %v2679_v24  ;;  %vm2711_vm7 = vcmp.ge.s32.totalorder %v2709_v29, 0 }
 0xc0a   : > { %v2408_v31 = vmul.f32 0.03125, %v2405_v35  ;;  %v2411_v39 = vmul.f32 %v2401_v36, %v2401_v36  ;;  %v2415_v47 = vsub.f32 %v5157_v7, %v2401_v36  ;;  %v2722_v35 = vrot.slane %v5225_v26, %v1466_v13 }
 0xc0b   : > { %v5241_v36 = vrot.slane %v5225_v26, %v2760_v25  ;;  %v2818_v13 = vadd.s32 3, %v2679_v24  ;;  %vm2799_vm13 = vcmp.lt.s32.totalorder %v2795_v10, 16 }
 0xc0c   : > { %v2412_v37 = vsub.f32 %v2408_v31, %v2410_v33  ;;  %v2732_v33 = vadd.s32 4294967295, %v5040_v9  ;;  %v2772_v31 = vadd.s32 1, %v2679_v24 }
 0xc0d   : > { %v2407_v38 = vpop.xlane.xlu0 %2406  ;;  %vm2822_vm15 = vcmp.lt.s32.totalorder %v2818_v13, 16 }
 0xc0e   : > { %v2416_v40 = vadd.f32 1e-05, %v2412_v37  ;;  %v2409_v41 = vmul.f32 0.03125, %v2407_v38  ;;  %v2783_v37 = vsub.s32 4, %v5040_v9  ;;  %v2806_v38 = vsub.s32 5, %v5040_v9 }
 0xc0f   : > { %vm2734_vm9 = vcmp.ge.s32.totalorder %v2732_v33, 0  ;;  %vm2776_vm11 = vcmp.lt.s32.totalorder %v2772_v31, 16 }
 0xc10   : > { %4257 = vrsqrt.f32 %v2416_v40  ;;  %v2413_v42 = vsub.f32 %v2409_v41, %v2411_v39 }
 0xc12   : > { %v2417_v43 = vadd.f32 1e-05, %v2413_v42 }
 0xc14   : > { %4259 = vrsqrt.f32 %v2417_v43  ;;  %v2784_v43 = vrot.slane %v5225_v26, %v2783_v37 }
 0xc1a   : > { %v4258_v32 = vpop.eup %4257 }
 0xc1b   : > { %v2420_v45 = vmul.f32 %v4258_v32, %v2414_v44  ;;  %v2807_v44 = vrot.slane %v5225_v26, %v2806_v38 }
 0xc1d   : > { %v2428_v50 = vmul.f32 %v3576_v46, %v2420_v45  ;;  %v2829_v45 = vsub.s32 6, %v5040_v9 }
 0xc1e   : > { %v4260_v48 = vpop.eup %4259 }
 0xc1f   : > { %v2421_v49 = vmul.f32 %v4260_v48, %v2415_v47  ;;  %v2436_v53 = vadd.f32 %v3577_v51, %v2428_v50  ;;  %v2830_v29 = vrot.slane %v5225_v26, %v2829_v45 }
 0xc21   : > { %v2429_v52 = vmul.f32 %v3576_v46, %v2421_v49 }
 0xc23   : > { %v2437_v54 = vadd.f32 %v3577_v51, %v2429_v52 }
 0xc25   : > { %v2438_v55 = vpack.c.bf16 %v2437_v54, %v2436_v53 }
 0xc27   : > { %3897 = vmatmul.mubr.bf16.vlgmr.msra.gmra.mrb[24].mxu1 %v2438_v55  ;;  %3917 = vmatmul.mubr.bf16.vlgmr.msra.gmra.mrb[28].mxu0 %v2438_v55 }
 0xc28   : > { %3936 = vmatprep.mubr.msk.bf16.mxu1 %vm4586_vm0, %v4585_v0  ;;  %3956 = vmatprep.mubr.msk.bf16.mxu0 %vm4586_vm0, %v4585_v0 }
 0xc29   : > { %3921 = vmatpush3.bf16.msra.mxu1 %v4185_v56 }
 0xc2a   : > { %3922 = vmatprep.subr.bf16.mxu1 %v4585_v0 }
 0xc2d   : > { %3923 = vmatpush3.bf16.msra.mxu1 %v4186_v57 }
 0xc2e   : > { %3924 = vmatprep.subr.bf16.mxu1 %v4585_v0 }
 0xc31   : > { %3925 = vmatpush3.bf16.msra.mxu1 %v4187_v58 }
 0xc32   : > { %3926 = vmatprep.subr.bf16.mxu1 %v4585_v0 }
 0xc35   : > { %3927 = vmatpush3.bf16.msra.mxu1 %v4188_v59 }
 0xc36   : > { %3928 = vmatprep.subr.bf16.mxu1 %v4585_v0 }
 0xc39   : > { %3929 = vmatpush3.bf16.msra.mxu1 %v4189_v60 }
 0xc3a   : > { %3930 = vmatprep.subr.bf16.mxu1 %v4585_v0 }
 0xc3d   : > { %3931 = vmatpush3.bf16.msra.mxu1 %v4190_v61 }
 0xc3e   : > { %3932 = vmatprep.subr.bf16.mxu1 %v4585_v0 }
 0xc41   : > { %3933 = vmatpush3.bf16.msra.mxu1 %v4191_v62 }
 0xc42   : > { %3934 = vmatprep.subr.bf16.mxu1 %v4585_v0 }
 0xc45   : > { %3935 = vmatpush3.bf16.msra.mxu1 %v4192_v63 }
 0xc46   : > { %3960 = vmatprep.subr.bf16.mxu1 %v4585_v0 }
 0xcfa   : > { %v2544_v5 = vpop.f32.mrb[24].mxu1  ;;  %v2656_v6 = vpop.f32.mrb[28].mxu0 }
 0xcfb   : > { %v2657_v8 = vadd.f32 %v3587_v4, %v2656_v6  ;;  %v3898_v12 = vpop.f32.mrb[25].mxu1  ;;  %v3918_v16 = vpop.f32.mrb[29].mxu0  ;;  %v2545_v39 = vadd.f32 %v3578_v27, %v2544_v5 }
 0xcfc   : > { %v2547_v18 = vpop.f32.mrb[26].mxu1  ;;  %v2659_v14 = vpop.f32.mrb[30].mxu0 }
 0xcfd   : > { %v3596_v15 = vmul.f32 -1.442695, %v2657_v8  ;;  %v2660_v17 = vadd.f32 %v3587_v4, %v2659_v14  ;;  %v3899_v19 = vpop.f32.mrb[27].mxu1  ;;  %v3919_v20 = vpop.f32.mrb[31].mxu0  ;;  %v2548_v41 = vadd.f32 %v3578_v27, %v2547_v18 }
 0xcff   : > { %4261 = vpow2.f32 %v3596_v15  ;;  %v3597_v2 = vmul.f32 -1.442695, %v2660_v17 }
 0xd01   : > { %4263 = vpow2.f32 %v3597_v2 }
 0xd09   : > { %v4262_v3 = vpop.eup %4261 }
 0xd0a   : > { %v2669_v21 = vadd.f32 1.0, %v4262_v3 }
 0xd0b   : > { %v4264_v22 = vpop.eup %4263 }
 0xd0c   : > { %4265 = vrcp.f32 %v2669_v21  ;;  %v2670_v23 = vadd.f32 1.0, %v4264_v22 }
 0xd0e   : > { %4267 = vrcp.f32 %v2670_v23 }
 0xd16   : > { %v4266_v11 = vpop.eup %4265 }
 0xd17   : > { %v2675_v40 = vmul.f32 %v4266_v11, %v2545_v39 }
 0xd18   : > { %v4268_v42 = vpop.eup %4267 }
 0xd19   : > { %v2676_v32 = vmul.f32 %v4268_v42, %v2548_v41  ;;  %v2681_v46 = vrot.slane %v2675_v40, 5  ;;  %v2704_v47 = vrot.slane %v2675_v40, 6  ;;  %v2727_v48 = vrot.slane %v2675_v40, 7 }
 0xd1a   : > { %v2766_v49 = vrot.slane %v2675_v40, 1  ;;  %v2789_v53 = vrot.slane %v2675_v40, 2  ;;  %v2812_v56 = vrot.slane %v2675_v40, 3  ;;  %v2762_v27 = vmul.f32 %v5241_v36, %v2675_v40 }
 0xd1b   : > { %v2682_v50 = vrot.slane %v2676_v32, 5  ;;  %v2705_v51 = vrot.slane %v2676_v32, 6  ;;  %v2728_v52 = vrot.slane %v2676_v32, 7  ;;  %v2767_v54 = vrot.slane %v2676_v32, 1 }
 0xd1c   : > { %v2790_v55 = vrot.slane %v2676_v32, 2  ;;  %v2813_v57 = vrot.slane %v2676_v32, 3  ;;  %v2763_v2 = vmul.f32 %v5241_v36, %v2676_v32  ;;  %v3598_v32 = vld [vmem:[%s5392_s15] ss:$0 sm:$0xff] }
 0xd1d   : > { %v2684_v58 = vsel %vm2683_vm4, %v2681_v46, %v2682_v50  ;;  %v2685_v59 = vsel %vm2683_vm4, %v2682_v50, %v2681_v46  ;;  %v2707_v60 = vsel %vm2706_vm5, %v2704_v47, %v2705_v51  ;;  %v2708_v61 = vsel %vm2706_vm5, %v2705_v51, %v2704_v47  ;;  %v3599_v47 = vld [vmem:[#allocation2] ss:$0 sm:$0xff] }
 0xd1e   : > { %v2694_v62 = vsel %vm2688_vm6, %v2685_v59, 0.0  ;;  %v2701_v63 = vmul.f32 %v2699_v30, %v2684_v58  ;;  %v2717_v4 = vsel %vm2711_vm7, %v2708_v61, 0.0  ;;  %v2724_v5 = vmul.f32 %v2722_v35, %v2707_v60  ;;  %v3602_v59 = vld [vmem:[#allocation4] ss:$0 sm:$0xff] }
 0xd1f   : > { %v2700_v6 = vmul.f32 %v2699_v30, %v2694_v62  ;;  %v2723_v8 = vmul.f32 %v2722_v35, %v2717_v4  ;;  %v2730_v12 = vsel %vm2729_vm8, %v2727_v48, %v2728_v52  ;;  %v2731_v16 = vsel %vm2729_vm8, %v2728_v52, %v2727_v48 }
 0xd20   : > { %v2726_v18 = vadd.f32 %v2724_v5, %v2701_v63  ;;  %v2740_v14 = vsel %vm2734_vm9, %v2731_v16, 0.0  ;;  %v2747_v15 = vmul.f32 %v2745_v34, %v2730_v12  ;;  %v2769_v17 = vsel %vm2768_vm10, %v2766_v49, %v2767_v54  ;;  %v4193_v16 = vld [vmem:[%s5393_s18] sm:$0xff]  }
 0xd21   : > { %v2725_v19 = vadd.f32 %v2723_v8, %v2700_v6  ;;  %v2746_v20 = vmul.f32 %v2745_v34, %v2740_v14  ;;  %v2770_v3 = vsel %vm2768_vm10, %v2767_v54, %v2766_v49  ;;  %v2792_v23 = vsel %vm2791_vm12, %v2789_v53, %v2790_v55  ;;  %3941 = vmatpush3.bf16.msra.mxu0 %v4193_v16  ;;  %v4196_v14 = vld [vmem:[%s5393_s18 + $0x18] sm:$0xff]  }
 0xd22   : > { %v2749_v21 = vadd.f32 %v2747_v15, %v2726_v18  ;;  %v2780_v22 = vsel %vm2776_vm11, %v2770_v3, 0.0  ;;  %v2793_v24 = vsel %vm2791_vm12, %v2790_v55, %v2789_v53  ;;  %v2815_v35 = vsel %vm2814_vm14, %v2812_v56, %v2813_v57  ;;  %3942 = vmatprep.subr.bf16.mxu0 %v4585_v0  ;;  %v4194_v18 = vld [vmem:[%s5393_s18 + $0x8] sm:$0xff]   ;;  %v4197_v15 = vld [vmem:[%s5393_s18 + $0x20] sm:$0xff]  }
 0xd23   : > { %v2748_v25 = vadd.f32 %v2746_v20, %v2725_v19  ;;  %v2803_v28 = vsel %vm2799_vm13, %v2793_v24, 0.0  ;;  %v2786_v34 = vmul.f32 %v2784_v43, %v2780_v22  ;;  %v2816_v33 = vsel %vm2814_vm14, %v2813_v57, %v2812_v56  ;;  %v4199_v19 = vld [vmem:[%s5393_s18 + $0x30] sm:$0xff]   ;;  %v4200_v20 = vld [vmem:[%s5393_s18 + $0x38] sm:$0xff]  }
 0xd24   : > { %v2765_v30 = vadd.f32 %v2763_v2, %v2749_v21  ;;  %v2785_v37 = vmul.f32 %v2784_v43, %v2769_v17  ;;  %v2826_v38 = vsel %vm2822_vm15, %v2816_v33, 0.0  ;;  %v2809_v11 = vmul.f32 %v2807_v44, %v2803_v28  ;;  %v4198_v17 = vld [vmem:[%s5393_s18 + $0x28] sm:$0xff]  }
 0xd25   : > { %v2764_v31 = vadd.f32 %v2762_v27, %v2748_v25  ;;  %v2808_v10 = vmul.f32 %v2807_v44, %v2792_v23  ;;  %v2832_v41 = vmul.f32 %v2830_v29, %v2826_v38  ;;  %v2831_v42 = vmul.f32 %v2830_v29, %v2815_v35  ;;  %3943 = vmatpush3.bf16.msra.mxu0 %v4194_v18 }
 0xd26   : > { %v2788_v39 = vadd.f32 %v2786_v34, %v2765_v30  ;;  %3944 = vmatprep.subr.bf16.mxu0 %v4585_v0 }
 0xd27   : > { %v2787_v36 = vadd.f32 %v2785_v37, %v2764_v31 }
 0xd28   : > { %v2811_v40 = vadd.f32 %v2809_v11, %v2788_v39  ;;  %v3611_v39 = vld [vmem:[#allocation6] ss:$0 sm:$0xff] }
 0xd29   : > { %v2810_v26 = vadd.f32 %v2808_v10, %v2787_v36 }
 0xd2a   : > { %v2834_v45 = vadd.f32 %v2832_v41, %v2811_v40  ;;  %v3612_v41 = vld [vmem:[#allocation7] ss:$0 sm:$0xff] }
 0xd2b   : > { %v2833_v46 = vadd.f32 %v2831_v42, %v2810_v26 }
 0xd2c   : > { %v2843_v48 = vmul.f32 %v3598_v32, %v2834_v45 }
 0xd2d   : > { %v2842_v49 = vmul.f32 %v3598_v32, %v2833_v46  ;;  %v4201_v46 = vld [vmem:[%s5394_s1] sm:$0xff]  }
 0xd2e   : > { %v2852_v9 = vadd.f32 %v3599_v47, %v2843_v48  ;;  %v4203_v48 = vld [vmem:[%s5394_s1 + $0x10] sm:$0xff]  }
 0xd2f   : > { %v2851_v50 = vadd.f32 %v3599_v47, %v2842_v49  ;;  %v4202_v47 = vld [vmem:[%s5394_s1 + $0x8] sm:$0xff]   ;;  %v4204_v49 = vld [vmem:[%s5394_s1 + $0x18] sm:$0xff]  }
 0xd30   : > { %v3601_v51 = vmul.f32 -1.442695, %v2852_v9 }
 0xd31   : > { %v3600_v43 = vmul.f32 -1.442695, %v2851_v50 }
 0xd32   : > { %4269 = vpow2.f32 %v3601_v51  ;;  %v4207_v51 = vld [vmem:[%s5394_s1 + $0x30] sm:$0xff]  }
 0xd33   : > { %4271 = vpow2.f32 %v3600_v43  ;;  %v4208_v43 = vld [vmem:[%s5394_s1 + $0x38] sm:$0xff]  }
 0xd3c   : > { %v4270_v13 = vpop.eup %4269 }
 0xd3d   : > { %v4272_v52 = vpop.eup %4271  ;;  %v2860_v53 = vadd.f32 1.0, %v4270_v13  ;;  %v3613_v13 = vld [vmem:[#allocation9] ss:$0 sm:$0xff] }
 0xd3e   : > { %v2859_v44 = vadd.f32 1.0, %v4272_v52 }
 0xd3f   : > { %4273 = vrcp.f32 %v2860_v53 }
 0xd40   : > { %4275 = vrcp.f32 %v2859_v44 }
 0xd49   : > { %v4274_v54 = vpop.eup %4273 }
 0xd4a   : > { %v4276_v55 = vpop.eup %4275  ;;  %v2866_v56 = vmul.f32 %v4274_v54, %v2852_v9  ;;  %v4205_v9 = vld [vmem:[%s5394_s1 + $0x20] sm:$0xff]  }
 0xd4b   : > { %v2865_v57 = vmul.f32 %v4276_v55, %v2851_v50  ;;  %v4206_v50 = vld [vmem:[%s5394_s1 + $0x28] sm:$0xff]  }
 0xd4d   : > { %v2867_v58 = vpack.c.bf16 %v2866_v56, %v2865_v57 }
 0xd4f   : > { %3937 = vmatmul.mubr.bf16.vlgmr.msra.gmra.mrb[28].mxu1 %v2867_v58 }
 0xd50   : > { %3976 = vmatprep.mubr.msk.bf16.mxu1 %vm4586_vm0, %v4585_v0  ;;  %3961 = vmatpush3.bf16.msra.mxu1 %v4201_v46 }
 0xd51   : > { %3962 = vmatprep.subr.bf16.mxu1 %v4585_v0 }
 0xd54   : > { %3963 = vmatpush3.bf16.msra.mxu1 %v4202_v47 }
 0xd55   : > { %3964 = vmatprep.subr.bf16.mxu1 %v4585_v0 }
 0xd58   : > { %3965 = vmatpush3.bf16.msra.mxu1 %v4203_v48 }
 0xd59   : > { %3966 = vmatprep.subr.bf16.mxu1 %v4585_v0 }
 0xd5c   : > { %3967 = vmatpush3.bf16.msra.mxu1 %v4204_v49 }
 0xd5d   : > { %3968 = vmatprep.subr.bf16.mxu1 %v4585_v0 }
 0xd60   : > { %3969 = vmatpush3.bf16.msra.mxu1 %v4205_v9 }
 0xd61   : > { %3970 = vmatprep.subr.bf16.mxu1 %v4585_v0 }
 0xd64   : > { %3971 = vmatpush3.bf16.msra.mxu1 %v4206_v50 }
 0xd65   : > { %3972 = vmatprep.subr.bf16.mxu1 %v4585_v0 }
 0xd68   : > { %3973 = vmatpush3.bf16.msra.mxu1 %v4207_v51 }
 0xd69   : > { %3974 = vmatprep.subr.bf16.mxu1 %v4585_v0 }
 0xd6c   : > { %3975 = vmatpush3.bf16.msra.mxu1 %v4208_v43 }
 0xe22   : > { %v2973_v60 = vpop.f32.mrb[28].mxu1 }
 0xe23   : > { %v2974_v61 = vadd.f32 %v3602_v59, %v2973_v60  ;;  %v3938_v62 = vpop.f32.mrb[29].mxu1 }
 0xe24   : > { %v2976_v63 = vpop.f32.mrb[30].mxu1 }
 0xe25   : > { %v5291_v4 = vadd.f32 %v5154_v1, %v2974_v61  ;;  %v2977_v5 = vadd.f32 %v3602_v59, %v2976_v63  ;;  %v3939_v6 = vpop.f32.mrb[31].mxu1 }
 0xe27   : > { %2984 = vadd.xlane.f32.xlu0 %v5291_v4  ;;  %v5295_v8 = vadd.f32 %v5157_v7, %v2977_v5  ;;  %v2990_v12 = vmul.f32 %v5291_v4, %v5291_v4  ;;  %v4195_v7 = vld [vmem:[%s5393_s18 + $0x10] sm:$0xff]  }
 0xe28   : > { %3945 = vmatpush3.bf16.msra.mxu0 %v4195_v7 }
 0xe29   : > { %v2991_v1 = vmul.f32 %v5295_v8, %v5295_v8  ;;  %3946 = vmatprep.subr.bf16.mxu0 %v4585_v0 }
 0xe2b   : > { %2986 = vadd.xlane.f32.xlu0 %v5295_v8 }
 0xe2c   : > { %3947 = vmatpush3.bf16.msra.mxu0 %v4196_v14 }
 0xe2d   : > { %3948 = vmatprep.subr.bf16.mxu0 %v4585_v0 }
 0xe2f   : > { %2992 = vadd.xlane.f32.xlu0 %v2990_v12 }
 0xe30   : > { %3949 = vmatpush3.bf16.msra.mxu0 %v4197_v15 }
 0xe31   : > { %3950 = vmatprep.subr.bf16.mxu0 %v4585_v0 }
 0xe33   : > { %2994 = vadd.xlane.f32.xlu0 %v2991_v1  ;;  %v3624_v1 = vld [vmem:[#allocation10] ss:$0 sm:$0xff] }
 0xe34   : > { %3951 = vmatpush3.bf16.msra.mxu0 %v4198_v17 }
 0xe35   : > { %3952 = vmatprep.subr.bf16.mxu0 %v4585_v0 }
 0xe38   : > { %3953 = vmatpush3.bf16.msra.mxu0 %v4199_v19 }
 0xe39   : > { %3954 = vmatprep.subr.bf16.mxu0 %v4585_v0 }
 0xe3c   : > { %3955 = vmatpush3.bf16.msra.mxu0 %v4200_v20 }
 0xeb4   : > { %v2985_v2 = vpop.xlane.xlu0 %2984 }
 0xeb5   : > { %v2988_v21 = vmul.f32 0.03125, %v2985_v2 }
 0xeb7   : > { %v2998_v23 = vmul.f32 %v2988_v21, %v2988_v21  ;;  %v3002_v31 = vsub.f32 %v5291_v4, %v2988_v21 }
 0xeb8   : > { %v2987_v3 = vpop.xlane.xlu0 %2986 }
 0xeb9   : > { %v2989_v24 = vmul.f32 0.03125, %v2987_v3 }
 0xebb   : > { %v2999_v29 = vmul.f32 %v2989_v24, %v2989_v24  ;;  %v3003_v11 = vsub.f32 %v5295_v8, %v2989_v24 }
 0xebc   : > { %v2993_v22 = vpop.xlane.xlu0 %2992 }
 0xebd   : > { %v2996_v25 = vmul.f32 0.03125, %v2993_v22 }
 0xebf   : > { %v3000_v27 = vsub.f32 %v2996_v25, %v2998_v23 }
 0xec0   : > { %v2995_v28 = vpop.xlane.xlu0 %2994 }
 0xec1   : > { %v3004_v30 = vadd.f32 1e-05, %v3000_v27  ;;  %v2997_v34 = vmul.f32 0.03125, %v2995_v28 }
 0xec3   : > { %4277 = vrsqrt.f32 %v3004_v30  ;;  %v3001_v35 = vsub.f32 %v2997_v34, %v2999_v29 }
 0xec5   : > { %v3005_v33 = vadd.f32 1e-05, %v3001_v35 }
 0xec7   : > { %4279 = vrsqrt.f32 %v3005_v33 }
 0xecd   : > { %v4278_v37 = vpop.eup %4277 }
 0xece   : > { %v3008_v38 = vmul.f32 %v4278_v37, %v3002_v31 }
 0xed0   : > { %v3016_v40 = vmul.f32 %v3611_v39, %v3008_v38 }
 0xed1   : > { %v4280_v36 = vpop.eup %4279 }
 0xed2   : > { %v3009_v10 = vmul.f32 %v4280_v36, %v3003_v11  ;;  %v3024_v42 = vadd.f32 %v3612_v41, %v3016_v40  ;;  %v3633_v11 = vld [vmem:[#allocation12] ss:$0 sm:$0xff] }
 0xed4   : > { %v3017_v26 = vmul.f32 %v3611_v39, %v3009_v10 }
 0xed6   : > { %v3025_v32 = vadd.f32 %v3612_v41, %v3017_v26 }
 0xed8   : > { %v3026_v45 = vpack.c.bf16 %v3025_v32, %v3024_v42  ;;  %v3634_v42 = vld [vmem:[#allocation13] ss:$0 sm:$0xff] }
 0xeda   : > { %3957 = vmatmul.mubr.bf16.vlgmr.msra.gmra.mrb[32].mxu0 %v3026_v45 }
 0xfad   : > { %v3132_v52 = vpop.f32.mrb[32].mxu0 }
 0xfae   : > { %v3133_v53 = vadd.f32 %v3613_v13, %v3132_v52  ;;  %v3958_v44 = vpop.f32.mrb[33].mxu0 }
 0xfaf   : > { %v3135_v54 = vpop.f32.mrb[34].mxu0 }
 0xfb0   : > { %v3622_v55 = vmul.f32 -1.442695, %v3133_v53  ;;  %v3136_v56 = vadd.f32 %v3613_v13, %v3135_v54  ;;  %v3959_v57 = vpop.f32.mrb[35].mxu0 }
 0xfb2   : > { %4281 = vpow2.f32 %v3622_v55  ;;  %v3623_v58 = vmul.f32 -1.442695, %v3136_v56 }
 0xfb4   : > { %4283 = vpow2.f32 %v3623_v58 }
 0xfbc   : > { %v4282_v59 = vpop.eup %4281 }
 0xfbd   : > { %v3145_v60 = vadd.f32 1.0, %v4282_v59 }
 0xfbe   : > { %v4284_v61 = vpop.eup %4283 }
 0xfbf   : > { %4285 = vrcp.f32 %v3145_v60  ;;  %v3146_v62 = vadd.f32 1.0, %v4284_v61 }
 0xfc1   : > { %4287 = vrcp.f32 %v3146_v62 }
 0xfc9   : > { %v4286_v63 = vpop.eup %4285 }
 0xfca   : > { %v3151_v5 = vmul.f32 %v4286_v63, %v3133_v53 }
 0xfcb   : > { %v4288_v0 = vpop.eup %4287 }
 0xfcc   : > { %v3152_v6 = vmul.f32 %v4288_v0, %v3136_v56 }
 0xfce   : > { %v3153_v12 = vpack.c.bf16 %v3152_v6, %v3151_v5 }
 0xfd0   : > { %3977 = vmatmul.mubr.bf16.vlgmr.msra.gmra.mrb[32].mxu1 %v3153_v12 }
0x10a3   : > { %v3259_v16 = vpop.f32.mrb[32].mxu1 }
0x10a4   : > { %v3260_v18 = vadd.f32 %v3624_v1, %v3259_v16  ;;  %v3978_v7 = vpop.f32.mrb[33].mxu1 }
0x10a5   : > { %v3262_v14 = vpop.f32.mrb[34].mxu1 }
0x10a6   : > { %v3266_v15 = vmul.f32 0.5, %v3260_v18  ;;  %v3263_v17 = vadd.f32 %v3624_v1, %v3262_v14  ;;  %v3979_v19 = vpop.f32.mrb[35].mxu1 }
0x10a8   : > { %v3268_v20 = vadd.f32 %v3266_v15, %v5291_v4  ;;  %v3267_v2 = vmul.f32 0.5, %v3263_v17 }
0x10aa   : > { %v3269_v3 = vadd.f32 %v3267_v2, %v5295_v8  ;;  %3272 = vadd.xlane.f32.xlu0 %v3268_v20  ;;  %v3278_v22 = vmul.f32 %v3268_v20, %v3268_v20 }
0x10ac   : > { %v3279_v21 = vmul.f32 %v3269_v3, %v3269_v3 }
0x10ae   : > { %3274 = vadd.xlane.f32.xlu0 %v3269_v3  ;;  %3282 = vadd.xlane.f32.xlu1 %v3279_v21 }
0x10b2   : > { %3280 = vadd.xlane.f32.xlu0 %v3278_v22 }
0x1137   : > { %v3273_v23 = vpop.xlane.xlu0 %3272 }
0x1138   : > { %v3276_v27 = vmul.f32 0.03125, %v3273_v23 }
0x113a   : > { %v3286_v35 = vmul.f32 %v3276_v27, %v3276_v27  ;;  %v3290_v36 = vsub.f32 %v3268_v20, %v3276_v27 }
0x113b   : > { %v3275_v24 = vpop.xlane.xlu0 %3274  ;;  %v3283_v25 = vpop.xlane.xlu1 %3282 }
0x113c   : > { %v3277_v28 = vmul.f32 0.03125, %v3275_v24  ;;  %v3285_v30 = vmul.f32 0.03125, %v3283_v25 }
0x113e   : > { %v3287_v29 = vmul.f32 %v3277_v28, %v3277_v28  ;;  %v3291_v38 = vsub.f32 %v3269_v3, %v3277_v28 }
0x113f   : > { %v3281_v34 = vpop.xlane.xlu0 %3280 }
0x1140   : > { %v3289_v33 = vsub.f32 %v3285_v30, %v3287_v29  ;;  %v3284_v4 = vmul.f32 0.03125, %v3281_v34 }
0x1142   : > { %v3293_v31 = vadd.f32 1e-05, %v3289_v33  ;;  %v3288_v37 = vsub.f32 %v3284_v4, %v3286_v35 }
0x1144   : > { %4289 = vrsqrt.f32 %v3293_v31  ;;  %v3292_v8 = vadd.f32 1e-05, %v3288_v37 }
0x1146   : > { %4291 = vrsqrt.f32 %v3292_v8 }
0x114e   : > { %v4290_v39 = vpop.eup %4289 }
0x114f   : > { %v3297_v10 = vmul.f32 %v4290_v39, %v3291_v38 }
0x1150   : > { %v4292_v40 = vpop.eup %4291 }
0x1151   : > { %v3305_v41 = vmul.f32 %v3633_v11, %v3297_v10  ;;  %v3296_v26 = vmul.f32 %v4292_v40, %v3290_v36 }
0x1153   : > { %v3304_v32 = vmul.f32 %v3633_v11, %v3296_v26  ;;  %v3313_v45 = vadd.f32 %v3634_v42, %v3305_v41 }
0x1155   : > { %v3312_v46 = vadd.f32 %v3634_v42, %v3304_v32 }
0x1157   : > { %v3650_v47 = vpack.c.bf16 %v3313_v45, %v3312_v46 }
0x1159   : > { %3651 = vst [vmem:[%s1087_s23] sm:$0xff] %v3650_v47  }
0x115a PF: > { %s80_s28 = sadd.s32 1, %s4543_s28  }
0x115b   : > { %p77_p9 = scmp.ge.s32.totalorder %s80_s28, 4  }
0x115d   :  { %79 = sbr.rel (!%p77_p9) target bundleno = 57 (0x39), region = 243 }
0x1164   :  { %3345 = vsyncpa [#allocation3], 1 }
0x1165   :  { %3347 = vsyncpa [#allocation3 + $0x1], 1 }
0x1166   :  { %3348 = vsyncpa [#allocation5], 1 }
0x1167   :  { %3349 = vsyncpa [#allocation8], 1 }
0x1168   :  { %3350 = vsyncpa [#allocation11], 1 }
0x1169   :  { %3351 = vsyncpa [#allocation14], 1 }

</bundles_post_ra>
